<compile_context>
chip_gen: v5e
topology: v5e:2x2
jax: 0.10.0
libtpu: 0.0.40
codegen_flags: <defaults>
</compile_context>

<pallas_src>
import numpy as np

import jax
import jax.numpy as jnp
from jax.experimental import pallas as pl
from jax.experimental.pallas import tpu as pltpu

# ---------------- structural constants of FixationNet_DGazeDataset ----------------
GAZE_FEAT = 2        # self.gazeFeatureNum
HEAD_FEAT = 2        # self.headFeatureNum
OBJ_FEAT = 9         # self.objectFeatureNum
SAL_W = 24           # self.saliencyWidth

# small synthetic constructor arguments (gazeSeqSize, headSeqSize, objectSeqSize, saliencySize)
GAZE_SEQ_SIZE = 32            # -> gazeSeqLength = 16
HEAD_SEQ_SIZE = 32            # -> headSeqLength = 16
OBJ_SEQ_SIZE = OBJ_FEAT * 16  # -> objectSeqLength = 16
SAL_NUM = 2                   # saliencyNum
SAL_SIZE = SAL_NUM * SAL_W * SAL_W
CLUSTER_SIZE = 16             # rows of the (synthetic) cluster matrix
CLUSTER_DIM = 2               # cluster centers are 2-D gaze positions

GAZE_LEN = GAZE_SEQ_SIZE // GAZE_FEAT
HEAD_LEN = HEAD_SEQ_SIZE // HEAD_FEAT
OBJ_LEN = OBJ_SEQ_SIZE // OBJ_FEAT

GAZE_OUT_CH = 32
HEAD_OUT_CH = 64
OBJ_OUT_CH1 = 64
OBJ_OUT_CH2 = 32
SAL_OUT_CH = 8
FC_HIDDEN = 128

GAZE_OUT = GAZE_OUT_CH * (GAZE_LEN // 2)             # 32 * 8  = 256
HEAD_OUT = HEAD_OUT_CH * (HEAD_LEN // 2)             # 64 * 8  = 512
OBJ_OUT = OBJ_OUT_CH2 * (OBJ_LEN // 4)               # 32 * 4  = 128
SAL_POOL_HW = (SAL_W // 2) * (SAL_W // 2)            # 12*12   = 144
SAL_OUT = SAL_OUT_CH * SAL_POOL_HW                   # 8*144   = 1152
FC_IN = GAZE_OUT + HEAD_OUT + OBJ_OUT + SAL_OUT      # 2048
SAL_FC_OFF = GAZE_OUT + HEAD_OUT + OBJ_OUT           # 896

EPS = 1e-5


# ------------------------------- fused Pallas kernel -------------------------------
def _fixationnet_kernel(
    gaze_ref, head_ref, obj_ref, sal0_ref, sal1_ref,
    gwe_ref, gwo_ref, gb_ref,
    hwe_ref, hwo_ref, hb_ref,
    o1we_ref, o1wo_ref, o1b_ref,
    o2we_ref, o2wo_ref, o2b_ref,
    ssel_ref, ssc_ref,
    w1_ref, b1_ref, w2_ref, b2_ref, cl_ref,
    out_ref,
):
    f32 = jnp.float32

    def sigmoid(v):
        return 1.0 / (1.0 + jnp.exp(-v))

    def conv_pool(xv, we_ref, wo_ref, b_ref):
        # Conv1d(k=1)+BN folded into We/Wo (even / odd pooled positions, PyTorch
        # channel-major output order), sigmoid, MaxPool1d(2) == elementwise max.
        bias = b_ref[...]
        ze = jnp.dot(xv, we_ref[...], preferred_element_type=f32) + bias
        zo = jnp.dot(xv, wo_ref[...], preferred_element_type=f32) + bias
        return jnp.maximum(sigmoid(ze), sigmoid(zo))

    gaze_out = conv_pool(gaze_ref[...], gwe_ref, gwo_ref, gb_ref)      # (B, 256)
    head_out = conv_pool(head_ref[...], hwe_ref, hwo_ref, hb_ref)      # (B, 512)
    obj_mid = conv_pool(obj_ref[...], o1we_ref, o1wo_ref, o1b_ref)     # (B, 512)
    obj_out = conv_pool(obj_mid, o2we_ref, o2wo_ref, o2b_ref)          # (B, 128)

    # FC1 accumulated branch-by-branch against row slices of the folded weight
    # (replaces the (B, 2048) concat + single big matmul).
    h = jnp.dot(gaze_out, w1_ref[pl.ds(0, GAZE_OUT), :], preferred_element_type=f32)
    h = h + jnp.dot(head_out, w1_ref[pl.ds(GAZE_OUT, HEAD_OUT), :],
                    preferred_element_type=f32)
    h = h + jnp.dot(obj_out, w1_ref[pl.ds(GAZE_OUT + HEAD_OUT, OBJ_OUT), :],
                    preferred_element_type=f32)

    # Saliency branch: 0/1 selection matmuls gather the four 2x2-pool offsets into
    # pooled-position order; the Cin=2 channel mix runs on the VPU with SMEM scalars.
    s0 = sal0_ref[...]                                                  # (B, 576)
    s1 = sal1_ref[...]
    s0_sel = [jnp.dot(s0, ssel_ref[q], preferred_element_type=f32) for q in range(4)]
    s1_sel = [jnp.dot(s1, ssel_ref[q], preferred_element_type=f32) for q in range(4)]
    for c in range(SAL_OUT_CH):
        w0c = ssc_ref[2 * c]
        w1c = ssc_ref[2 * c + 1]
        bc = ssc_ref[2 * SAL_OUT_CH + c]
        pooled = None
        for q in range(4):
            z = jnp.maximum(s0_sel[q] * w0c + s1_sel[q] * w1c + bc, 0.0)
            pooled = z if pooled is None else jnp.maximum(pooled, z)
        row0 = SAL_FC_OFF + c * SAL_POOL_HW
        h = h + jnp.dot(pooled, w1_ref[pl.ds(row0, SAL_POOL_HW), :],
                        preferred_element_type=f32)

    # FC head (BatchNorm folded into w1/b1; dropouts are identity in eval mode).
    h = sigmoid(h + b1_ref[...])                                        # (B, 128)
    logits = jnp.dot(h, w2_ref[...], preferred_element_type=f32) + b2_ref[...]
    mx = jnp.max(logits, axis=1, keepdims=True)
    e = jnp.exp(logits - mx)
    probs = e * pl.reciprocal(jnp.sum(e, axis=1, keepdims=True), approx=True)
    out_ref[...] = jnp.dot(probs, cl_ref[...], preferred_element_type=f32)


# ------------------------------------- forward --------------------------------------
@jax.jit
def forward(x, kp):
    b = x.shape[0]
    x = x.astype(jnp.float32)
    off = 0
    gaze = x[:, off:off + GAZE_SEQ_SIZE]; off += GAZE_SEQ_SIZE
    head = x[:, off:off + HEAD_SEQ_SIZE]; off += HEAD_SEQ_SIZE
    obj = x[:, off:off + OBJ_SEQ_SIZE]; off += OBJ_SEQ_SIZE
    sal0 = x[:, off:off + SAL_W * SAL_W]
    sal1 = x[:, off + SAL_W * SAL_W:off + SAL_SIZE]

    args = (
        gaze, head, obj, sal0, sal1,
        kp["gaze_we"], kp["gaze_wo"], kp["gaze_b"],
        kp["head_we"], kp["head_wo"], kp["head_b"],
        kp["obj1_we"], kp["obj1_wo"], kp["obj1_b"],
        kp["obj2_we"], kp["obj2_wo"], kp["obj2_b"],
        kp["sal_sel"], kp["sal_sc"],
        kp["w1"], kp["b1"], kp["w2"], kp["b2"], kp["cluster"],
    )
    vmem = pl.BlockSpec(memory_space=pltpu.MemorySpace.VMEM)
    smem = pl.BlockSpec(memory_space=pltpu.MemorySpace.SMEM)
    in_specs = [vmem] * 18 + [smem] + [vmem] * 5   # index 18 = sal scalar table
    # NOTE: batch is tiny (B=2) so everything is one block; for large batches add a
    # row-tiled grid over batch (weights pinned with index_map lambda i: (0, 0)) and
    # compiler_params=pltpu.CompilerParams(dimension_semantics=("parallel",)).
    return pl.pallas_call(
        _fixationnet_kernel,
        out_shape=jax.ShapeDtypeStruct((b, CLUSTER_DIM), jnp.float32),
        in_specs=in_specs,
        out_specs=vmem,
    )(*args)


# -------------------------- init-time weight preparation ----------------------------
def _expand_posmajor(w_f, seq_len, offset, pool=2):
    """Conv1d(k=1) on position-major flat input (idx = l*cin + f) -> PyTorch
    channel-major flattened output (idx = c*(seq_len//pool) + t) at position
    l = pool*t + offset."""
    cout, cin = w_f.shape
    out_len = seq_len // pool
    mat = np.zeros((seq_len * cin, cout * out_len), np.float32)
    for c in range(cout):
        for t in range(out_len):
            l = pool * t + offset
            mat[l * cin:l * cin + cin, c * out_len + t] = w_f[c]
    return mat


def _expand_chmajor(w_f, in_len, offset, pool=2):
    """Conv1d(k=1) on channel-major flat input (idx = ci*in_len + m) -> channel-major
    flattened output (idx = co*(in_len//pool) + t) at position m = pool*t + offset."""
    cout, cin = w_f.shape
    out_len = in_len // pool
    mat = np.zeros((cin * in_len, cout * out_len), np.float32)
    for co in range(cout):
        for t in range(out_len):
            m = pool * t + offset
            for ci in range(cin):
                mat[ci * in_len + m, co * out_len + t] = w_f[co, ci]
    return mat


def _sal_selection_matrices():
    """4 x (576, 144) 0/1 matrices: offset q = di*2+dj picks pixel (2i+di, 2j+dj)
    of the 24x24 plane into pooled position i*12+j."""
    hw = SAL_W // 2
    sel = np.zeros((4, SAL_W * SAL_W, hw * hw), np.float32)
    for di in range(2):
        for dj in range(2):
            q = di * 2 + dj
            for i in range(hw):
                for j in range(hw):
                    sel[q, (2 * i + di) * SAL_W + (2 * j + dj), i * hw + j] = 1.0
    return sel


def prepare_kernel_params(p):
    """Fold eval-mode BatchNorm + conv bias into weights, build the expanded
    conv/pool matrices, and store everything in kernel-ready f32 layout."""
    def fold_bn(w, b, bn):
        gamma, beta, mean, var = (np.asarray(a, np.float32) for a in bn)
        w = np.asarray(w, np.float32)
        b = np.asarray(b, np.float32)
        scale = gamma / np.sqrt(var + EPS)
        return w * scale[:, None], (b - mean) * scale + beta

    kp = {}

    def branch_posmajor(name, w, b, bn, seq_len):
        wf, bf = fold_bn(w, b, bn)
        out_len = seq_len // 2
        kp[name + "_we"] = jnp.asarray(_expand_posmajor(wf, seq_len, 0))
        kp[name + "_wo"] = jnp.asarray(_expand_posmajor(wf, seq_len, 1))
        kp[name + "_b"] = jnp.asarray(np.repeat(bf, out_len)[None, :])

    branch_posmajor("gaze", p["gaze_w"], p["gaze_b"], p["gaze_bn"], GAZE_LEN)
    branch_posmajor("head", p["head_w"], p["head_b"], p["head_bn"], HEAD_LEN)
    branch_posmajor("obj1", p["obj1_w"], p["obj1_b"], p["obj1_bn"], OBJ_LEN)

    w2f, b2f = fold_bn(p["obj2_w"], p["obj2_b"], p["obj2_bn"])
    kp["obj2_we"] = jnp.asarray(_expand_chmajor(w2f, OBJ_LEN // 2, 0))
    kp["obj2_wo"] = jnp.asarray(_expand_chmajor(w2f, OBJ_LEN // 2, 1))
    kp["obj2_b"] = jnp.asarray(np.repeat(b2f, OBJ_LEN // 4)[None, :])

    wsf, bsf = fold_bn(p["sal_w"], p["sal_b"], p["sal_bn"])          # (8,2), (8,)
    kp["sal_sel"] = jnp.asarray(_sal_selection_matrices())           # (4, 576, 144)
    kp["sal_sc"] = jnp.asarray(
        np.concatenate([wsf.reshape(-1), bsf]).astype(np.float32))   # (24,) SMEM table

    gamma, beta, mean, var = (np.asarray(a, np.float32) for a in p["fc1_bn"])
    scale = gamma / np.sqrt(var + EPS)
    w1 = np.asarray(p["fc1_w"], np.float32)                          # (128, 2048)
    b1 = np.asarray(p["fc1_b"], np.float32)
    kp["w1"] = jnp.asarray((w1 * scale[:, None]).T)                  # (2048, 128)
    kp["b1"] = jnp.asarray(((b1 - mean) * scale + beta)[None, :])
    kp["w2"] = jnp.asarray(np.asarray(p["fc2_w"], np.float32).T)     # (128, 16)
    kp["b2"] = jnp.asarray(np.asarray(p["fc2_b"], np.float32)[None, :])
    kp["cluster"] = jnp.asarray(p["cluster"], jnp.float32)
    return kp


# --------------------------- raw (PyTorch-layout) parameters -------------------------
def _conv_params(key, cout, cin, scale=0.1):
    kw, kb = jax.random.split(key)
    w = scale * jax.random.normal(kw, (cout, cin), jnp.float32)
    b = 0.01 * jax.random.normal(kb, (cout,), jnp.float32)
    return w, b


def _bn_params(key, c):
    k1, k2, k3, k4 = jax.random.split(key, 4)
    gamma = 1.0 + 0.1 * jax.random.normal(k1, (c,), jnp.float32)
    beta = 0.1 * jax.random.normal(k2, (c,), jnp.float32)
    mean = 0.1 * jax.random.normal(k3, (c,), jnp.float32)
    var = 1.0 + 0.2 * jax.random.uniform(k4, (c,), jnp.float32)
    return gamma, beta, mean, var


def init_params(key):
    ks = jax.random.split(key, 14)
    p = {}
    p["gaze_w"], p["gaze_b"] = _conv_params(ks[0], GAZE_OUT_CH, GAZE_FEAT)
    p["gaze_bn"] = _bn_params(ks[1], GAZE_OUT_CH)
    p["head_w"], p["head_b"] = _conv_params(ks[2], HEAD_OUT_CH, HEAD_FEAT)
    p["head_bn"] = _bn_params(ks[3], HEAD_OUT_CH)
    p["obj1_w"], p["obj1_b"] = _conv_params(ks[4], OBJ_OUT_CH1, OBJ_FEAT)
    p["obj1_bn"] = _bn_params(ks[5], OBJ_OUT_CH1)
    p["obj2_w"], p["obj2_b"] = _conv_params(ks[6], OBJ_OUT_CH2, OBJ_OUT_CH1)
    p["obj2_bn"] = _bn_params(ks[7], OBJ_OUT_CH2)
    p["sal_w"], p["sal_b"] = _conv_params(ks[8], SAL_OUT_CH, SAL_NUM)
    p["sal_bn"] = _bn_params(ks[9], SAL_OUT_CH)
    p["fc1_w"], p["fc1_b"] = _conv_params(ks[10], FC_HIDDEN, FC_IN, scale=0.05)
    p["fc1_bn"] = _bn_params(ks[11], FC_HIDDEN)
    p["fc2_w"], p["fc2_b"] = _conv_params(ks[12], CLUSTER_SIZE, FC_HIDDEN, scale=0.1)
    # synthetic stand-in for np.load(clusterPath): deterministic cluster centers
    p["cluster"] = jax.random.normal(ks[13], (CLUSTER_SIZE, CLUSTER_DIM), jnp.float32)
    return p


# ----------------------------- pure-JAX reference (check) ----------------------------
def _bn_eval(y, bn):
    gamma, beta, mean, var = bn
    return (y - mean) / jnp.sqrt(var + EPS) * gamma + beta


@jax.jit
def reference_forward(x, p):
    b = x.shape[0]
    sig = jax.nn.sigmoid

    gz = x[:, :GAZE_SEQ_SIZE].reshape(b, GAZE_LEN, GAZE_FEAT)
    y = jnp.einsum("blf,cf->blc", gz, p["gaze_w"]) + p["gaze_b"]
    y = sig(_bn_eval(y, p["gaze_bn"]))
    y = y.reshape(b, GAZE_LEN // 2, 2, GAZE_OUT_CH).max(axis=2)
    gaze_out = jnp.transpose(y, (0, 2, 1)).reshape(b, GAZE_OUT)

    hd = x[:, GAZE_SEQ_SIZE:GAZE_SEQ_SIZE + HEAD_SEQ_SIZE].reshape(b, HEAD_LEN, HEAD_FEAT)
    y = jnp.einsum("blf,cf->blc", hd, p["head_w"]) + p["head_b"]
    y = sig(_bn_eval(y, p["head_bn"]))
    y = y.reshape(b, HEAD_LEN // 2, 2, HEAD_OUT_CH).max(axis=2)
    head_out = jnp.transpose(y, (0, 2, 1)).reshape(b, HEAD_OUT)

    obj_off = GAZE_SEQ_SIZE + HEAD_SEQ_SIZE
    ob = x[:, obj_off:obj_off + OBJ_SEQ_SIZE].reshape(b, OBJ_LEN, OBJ_FEAT)
    y = jnp.einsum("blf,cf->blc", ob, p["obj1_w"]) + p["obj1_b"]
    y = sig(_bn_eval(y, p["obj1_bn"]))
    y = y.reshape(b, OBJ_LEN // 2, 2, OBJ_OUT_CH1).max(axis=2)
    y = jnp.einsum("blf,cf->blc", y, p["obj2_w"]) + p["obj2_b"]
    y = sig(_bn_eval(y, p["obj2_bn"]))
    y = y.reshape(b, OBJ_LEN // 4, 2, OBJ_OUT_CH2).max(axis=2)
    obj_out = jnp.transpose(y, (0, 2, 1)).reshape(b, OBJ_OUT)

    sal_off = obj_off + OBJ_SEQ_SIZE
    sal = x[:, sal_off:sal_off + SAL_SIZE].reshape(b, SAL_NUM, SAL_W, SAL_W)
    y = jnp.einsum("bihw,ci->bhwc", sal, p["sal_w"]) + p["sal_b"]
    y = jnp.maximum(_bn_eval(y, p["sal_bn"]), 0.0)
    y = y.reshape(b, SAL_W // 2, 2, SAL_W // 2, 2, SAL_OUT_CH).max(axis=(2, 4))
    sal_out = jnp.transpose(y, (0, 3, 1, 2)).reshape(b, SAL_OUT)

    feat = jnp.concatenate([gaze_out, head_out, obj_out, sal_out], axis=1)
    h = feat @ p["fc1_w"].T + p["fc1_b"]
    h = sig(_bn_eval(h, p["fc1_bn"]))
    logits = h @ p["fc2_w"].T + p["fc2_b"]
    probs = jax.nn.softmax(logits, axis=1)
    return probs @ p["cluster"]


# -------------------------------------- main ------------------------------------------
if __name__ == "__main__":
    key = jax.random.PRNGKey(0)
    pkey, xkey = jax.random.split(key)
    raw = init_params(pkey)
    kp = prepare_kernel_params(raw)

    B = 2
    total = GAZE_SEQ_SIZE + HEAD_SEQ_SIZE + OBJ_SEQ_SIZE + SAL_SIZE  # 1360
    x = jax.random.normal(xkey, (B, total), jnp.float32)

    out = jax.block_until_ready(forward(x, kp))
    assert out.shape == (B, CLUSTER_DIM), out.shape
    assert bool(jnp.all(jnp.isfinite(out)))

    ref = jax.block_until_ready(reference_forward(x, raw))
    assert bool(jnp.allclose(out, ref, rtol=1e-2, atol=1e-2)), (out, ref)

    print("KERNEL_OK")
</pallas_src>

<mosaic_0001>
module attributes {stable_mosaic.version = 11 : i64} {
  func.func @_fixationnet_kernel(%arg0: memref<2x32xf32, #tpu.memory_space<vmem>>, %arg1: memref<2x32xf32, #tpu.memory_space<vmem>>, %arg2: memref<2x144xf32, #tpu.memory_space<vmem>>, %arg3: memref<2x576xf32, #tpu.memory_space<vmem>>, %arg4: memref<2x576xf32, #tpu.memory_space<vmem>>, %arg5: memref<32x256xf32, #tpu.memory_space<vmem>>, %arg6: memref<32x256xf32, #tpu.memory_space<vmem>>, %arg7: memref<1x256xf32, #tpu.memory_space<vmem>>, %arg8: memref<32x512xf32, #tpu.memory_space<vmem>>, %arg9: memref<32x512xf32, #tpu.memory_space<vmem>>, %arg10: memref<1x512xf32, #tpu.memory_space<vmem>>, %arg11: memref<144x512xf32, #tpu.memory_space<vmem>>, %arg12: memref<144x512xf32, #tpu.memory_space<vmem>>, %arg13: memref<1x512xf32, #tpu.memory_space<vmem>>, %arg14: memref<512x128xf32, #tpu.memory_space<vmem>>, %arg15: memref<512x128xf32, #tpu.memory_space<vmem>>, %arg16: memref<1x128xf32, #tpu.memory_space<vmem>>, %arg17: memref<4x576x144xf32, #tpu.memory_space<vmem>>, %arg18: memref<24xf32, #tpu.memory_space<smem>>, %arg19: memref<2048x128xf32, #tpu.memory_space<vmem>>, %arg20: memref<1x128xf32, #tpu.memory_space<vmem>>, %arg21: memref<128x16xf32, #tpu.memory_space<vmem>>, %arg22: memref<1x16xf32, #tpu.memory_space<vmem>>, %arg23: memref<16x2xf32, #tpu.memory_space<vmem>>, %arg24: memref<2x2xf32, #tpu.memory_space<vmem>>) attributes {dimension_semantics = [], scalar_prefetch = 0 : i64, scratch_operands = 0 : i64, tpu.core_type = #tpu.core_type<tc>} {
    %c0 = arith.constant 0 : index
    %c0_0 = arith.constant 0 : index
    %0 = vector.load %arg0[%c0, %c0_0] : memref<2x32xf32, #tpu.memory_space<vmem>>, vector<2x32xf32>
    %c0_1 = arith.constant 0 : index
    %c0_2 = arith.constant 0 : index
    %1 = vector.load %arg7[%c0_1, %c0_2] : memref<1x256xf32, #tpu.memory_space<vmem>>, vector<1x256xf32>
    %c0_3 = arith.constant 0 : index
    %c0_4 = arith.constant 0 : index
    %2 = vector.load %arg5[%c0_3, %c0_4] : memref<32x256xf32, #tpu.memory_space<vmem>>, vector<32x256xf32>
    %cst = arith.constant dense<0.000000e+00> : vector<2x256xf32>
    %3 = tpu.matmul %0, %2, %cst {dimension_numbers = #tpu.dot_dimension_numbers<[1], [0], [0], [1], [0, 0, 1, 1], [], []>} : vector<2x32xf32>, vector<32x256xf32>, vector<2x256xf32> -> vector<2x256xf32>
    %4 = vector.broadcast %1 : vector<1x256xf32> to vector<2x256xf32>
    %5 = arith.addf %3, %4 : vector<2x256xf32>
    %c0_5 = arith.constant 0 : index
    %c0_6 = arith.constant 0 : index
    %6 = vector.load %arg6[%c0_5, %c0_6] : memref<32x256xf32, #tpu.memory_space<vmem>>, vector<32x256xf32>
    %cst_7 = arith.constant dense<0.000000e+00> : vector<2x256xf32>
    %7 = tpu.matmul %0, %6, %cst_7 {dimension_numbers = #tpu.dot_dimension_numbers<[1], [0], [0], [1], [0, 0, 1, 1], [], []>} : vector<2x32xf32>, vector<32x256xf32>, vector<2x256xf32> -> vector<2x256xf32>
    %8 = vector.broadcast %1 : vector<1x256xf32> to vector<2x256xf32>
    %9 = arith.addf %7, %8 : vector<2x256xf32>
    %cst_8 = arith.constant 0.000000e+00 : f32
    %10 = vector.broadcast %cst_8 : f32 to vector<2x256xf32>
    %11 = arith.subf %10, %5 : vector<2x256xf32>
    %12 = math.exp %11 : vector<2x256xf32>
    %cst_9 = arith.constant 1.000000e+00 : f32
    %13 = vector.broadcast %cst_9 : f32 to vector<2x256xf32>
    %14 = arith.addf %13, %12 : vector<2x256xf32>
    %cst_10 = arith.constant 1.000000e+00 : f32
    %15 = vector.broadcast %cst_10 : f32 to vector<2x256xf32>
    %16 = arith.divf %15, %14 : vector<2x256xf32>
    %cst_11 = arith.constant 0.000000e+00 : f32
    %17 = vector.broadcast %cst_11 : f32 to vector<2x256xf32>
    %18 = arith.subf %17, %9 : vector<2x256xf32>
    %19 = math.exp %18 : vector<2x256xf32>
    %cst_12 = arith.constant 1.000000e+00 : f32
    %20 = vector.broadcast %cst_12 : f32 to vector<2x256xf32>
    %21 = arith.addf %20, %19 : vector<2x256xf32>
    %cst_13 = arith.constant 1.000000e+00 : f32
    %22 = vector.broadcast %cst_13 : f32 to vector<2x256xf32>
    %23 = arith.divf %22, %21 : vector<2x256xf32>
    %24 = arith.maximumf %16, %23 : vector<2x256xf32>
    %c0_14 = arith.constant 0 : index
    %c0_15 = arith.constant 0 : index
    %25 = vector.load %arg1[%c0_14, %c0_15] : memref<2x32xf32, #tpu.memory_space<vmem>>, vector<2x32xf32>
    %c0_16 = arith.constant 0 : index
    %c0_17 = arith.constant 0 : index
    %26 = vector.load %arg10[%c0_16, %c0_17] : memref<1x512xf32, #tpu.memory_space<vmem>>, vector<1x512xf32>
    %c0_18 = arith.constant 0 : index
    %c0_19 = arith.constant 0 : index
    %27 = vector.load %arg8[%c0_18, %c0_19] : memref<32x512xf32, #tpu.memory_space<vmem>>, vector<32x512xf32>
    %cst_20 = arith.constant dense<0.000000e+00> : vector<2x512xf32>
    %28 = tpu.matmul %25, %27, %cst_20 {dimension_numbers = #tpu.dot_dimension_numbers<[1], [0], [0], [1], [0, 0, 1, 1], [], []>} : vector<2x32xf32>, vector<32x512xf32>, vector<2x512xf32> -> vector<2x512xf32>
    %29 = vector.broadcast %26 : vector<1x512xf32> to vector<2x512xf32>
    %30 = arith.addf %28, %29 : vector<2x512xf32>
    %c0_21 = arith.constant 0 : index
    %c0_22 = arith.constant 0 : index
    %31 = vector.load %arg9[%c0_21, %c0_22] : memref<32x512xf32, #tpu.memory_space<vmem>>, vector<32x512xf32>
    %cst_23 = arith.constant dense<0.000000e+00> : vector<2x512xf32>
    %32 = tpu.matmul %25, %31, %cst_23 {dimension_numbers = #tpu.dot_dimension_numbers<[1], [0], [0], [1], [0, 0, 1, 1], [], []>} : vector<2x32xf32>, vector<32x512xf32>, vector<2x512xf32> -> vector<2x512xf32>
    %33 = vector.broadcast %26 : vector<1x512xf32> to vector<2x512xf32>
    %34 = arith.addf %32, %33 : vector<2x512xf32>
    %cst_24 = arith.constant 0.000000e+00 : f32
    %35 = vector.broadcast %cst_24 : f32 to vector<2x512xf32>
    %36 = arith.subf %35, %30 : vector<2x512xf32>
    %37 = math.exp %36 : vector<2x512xf32>
    %cst_25 = arith.constant 1.000000e+00 : f32
    %38 = vector.broadcast %cst_25 : f32 to vector<2x512xf32>
    %39 = arith.addf %38, %37 : vector<2x512xf32>
    %cst_26 = arith.constant 1.000000e+00 : f32
    %40 = vector.broadcast %cst_26 : f32 to vector<2x512xf32>
    %41 = arith.divf %40, %39 : vector<2x512xf32>
    %cst_27 = arith.constant 0.000000e+00 : f32
    %42 = vector.broadcast %cst_27 : f32 to vector<2x512xf32>
    %43 = arith.subf %42, %34 : vector<2x512xf32>
    %44 = math.exp %43 : vector<2x512xf32>
    %cst_28 = arith.constant 1.000000e+00 : f32
    %45 = vector.broadcast %cst_28 : f32 to vector<2x512xf32>
    %46 = arith.addf %45, %44 : vector<2x512xf32>
    %cst_29 = arith.constant 1.000000e+00 : f32
    %47 = vector.broadcast %cst_29 : f32 to vector<2x512xf32>
    %48 = arith.divf %47, %46 : vector<2x512xf32>
    %49 = arith.maximumf %41, %48 : vector<2x512xf32>
    %c0_30 = arith.constant 0 : index
    %c0_31 = arith.constant 0 : index
    %50 = vector.load %arg2[%c0_30, %c0_31] : memref<2x144xf32, #tpu.memory_space<vmem>>, vector<2x144xf32>
    %c0_32 = arith.constant 0 : index
    %c0_33 = arith.constant 0 : index
    %51 = vector.load %arg13[%c0_32, %c0_33] : memref<1x512xf32, #tpu.memory_space<vmem>>, vector<1x512xf32>
    %c0_34 = arith.constant 0 : index
    %c0_35 = arith.constant 0 : index
    %52 = vector.load %arg11[%c0_34, %c0_35] : memref<144x512xf32, #tpu.memory_space<vmem>>, vector<144x512xf32>
    %cst_36 = arith.constant dense<0.000000e+00> : vector<2x512xf32>
    %53 = tpu.matmul %50, %52, %cst_36 {dimension_numbers = #tpu.dot_dimension_numbers<[1], [0], [0], [1], [0, 0, 1, 1], [], []>} : vector<2x144xf32>, vector<144x512xf32>, vector<2x512xf32> -> vector<2x512xf32>
    %54 = vector.broadcast %51 : vector<1x512xf32> to vector<2x512xf32>
    %55 = arith.addf %53, %54 : vector<2x512xf32>
    %c0_37 = arith.constant 0 : index
    %c0_38 = arith.constant 0 : index
    %56 = vector.load %arg12[%c0_37, %c0_38] : memref<144x512xf32, #tpu.memory_space<vmem>>, vector<144x512xf32>
    %cst_39 = arith.constant dense<0.000000e+00> : vector<2x512xf32>
    %57 = tpu.matmul %50, %56, %cst_39 {dimension_numbers = #tpu.dot_dimension_numbers<[1], [0], [0], [1], [0, 0, 1, 1], [], []>} : vector<2x144xf32>, vector<144x512xf32>, vector<2x512xf32> -> vector<2x512xf32>
    %58 = vector.broadcast %51 : vector<1x512xf32> to vector<2x512xf32>
    %59 = arith.addf %57, %58 : vector<2x512xf32>
    %cst_40 = arith.constant 0.000000e+00 : f32
    %60 = vector.broadcast %cst_40 : f32 to vector<2x512xf32>
    %61 = arith.subf %60, %55 : vector<2x512xf32>
    %62 = math.exp %61 : vector<2x512xf32>
    %cst_41 = arith.constant 1.000000e+00 : f32
    %63 = vector.broadcast %cst_41 : f32 to vector<2x512xf32>
    %64 = arith.addf %63, %62 : vector<2x512xf32>
    %cst_42 = arith.constant 1.000000e+00 : f32
    %65 = vector.broadcast %cst_42 : f32 to vector<2x512xf32>
    %66 = arith.divf %65, %64 : vector<2x512xf32>
    %cst_43 = arith.constant 0.000000e+00 : f32
    %67 = vector.broadcast %cst_43 : f32 to vector<2x512xf32>
    %68 = arith.subf %67, %59 : vector<2x512xf32>
    %69 = math.exp %68 : vector<2x512xf32>
    %cst_44 = arith.constant 1.000000e+00 : f32
    %70 = vector.broadcast %cst_44 : f32 to vector<2x512xf32>
    %71 = arith.addf %70, %69 : vector<2x512xf32>
    %cst_45 = arith.constant 1.000000e+00 : f32
    %72 = vector.broadcast %cst_45 : f32 to vector<2x512xf32>
    %73 = arith.divf %72, %71 : vector<2x512xf32>
    %74 = arith.maximumf %66, %73 : vector<2x512xf32>
    %c0_46 = arith.constant 0 : index
    %c0_47 = arith.constant 0 : index
    %75 = vector.load %arg16[%c0_46, %c0_47] : memref<1x128xf32, #tpu.memory_space<vmem>>, vector<1x128xf32>
    %c0_48 = arith.constant 0 : index
    %c0_49 = arith.constant 0 : index
    %76 = vector.load %arg14[%c0_48, %c0_49] : memref<512x128xf32, #tpu.memory_space<vmem>>, vector<512x128xf32>
    %cst_50 = arith.constant dense<0.000000e+00> : vector<2x128xf32>
    %77 = tpu.matmul %74, %76, %cst_50 {dimension_numbers = #tpu.dot_dimension_numbers<[1], [0], [0], [1], [0, 0, 1, 1], [], []>} : vector<2x512xf32>, vector<512x128xf32>, vector<2x128xf32> -> vector<2x128xf32>
    %78 = vector.broadcast %75 : vector<1x128xf32> to vector<2x128xf32>
    %79 = arith.addf %77, %78 : vector<2x128xf32>
    %c0_51 = arith.constant 0 : index
    %c0_52 = arith.constant 0 : index
    %80 = vector.load %arg15[%c0_51, %c0_52] : memref<512x128xf32, #tpu.memory_space<vmem>>, vector<512x128xf32>
    %cst_53 = arith.constant dense<0.000000e+00> : vector<2x128xf32>
    %81 = tpu.matmul %74, %80, %cst_53 {dimension_numbers = #tpu.dot_dimension_numbers<[1], [0], [0], [1], [0, 0, 1, 1], [], []>} : vector<2x512xf32>, vector<512x128xf32>, vector<2x128xf32> -> vector<2x128xf32>
    %82 = vector.broadcast %75 : vector<1x128xf32> to vector<2x128xf32>
    %83 = arith.addf %81, %82 : vector<2x128xf32>
    %cst_54 = arith.constant 0.000000e+00 : f32
    %84 = vector.broadcast %cst_54 : f32 to vector<2x128xf32>
    %85 = arith.subf %84, %79 : vector<2x128xf32>
    %86 = math.exp %85 : vector<2x128xf32>
    %cst_55 = arith.constant 1.000000e+00 : f32
    %87 = vector.broadcast %cst_55 : f32 to vector<2x128xf32>
    %88 = arith.addf %87, %86 : vector<2x128xf32>
    %cst_56 = arith.constant 1.000000e+00 : f32
    %89 = vector.broadcast %cst_56 : f32 to vector<2x128xf32>
    %90 = arith.divf %89, %88 : vector<2x128xf32>
    %cst_57 = arith.constant 0.000000e+00 : f32
    %91 = vector.broadcast %cst_57 : f32 to vector<2x128xf32>
    %92 = arith.subf %91, %83 : vector<2x128xf32>
    %93 = math.exp %92 : vector<2x128xf32>
    %cst_58 = arith.constant 1.000000e+00 : f32
    %94 = vector.broadcast %cst_58 : f32 to vector<2x128xf32>
    %95 = arith.addf %94, %93 : vector<2x128xf32>
    %cst_59 = arith.constant 1.000000e+00 : f32
    %96 = vector.broadcast %cst_59 : f32 to vector<2x128xf32>
    %97 = arith.divf %96, %95 : vector<2x128xf32>
    %98 = arith.maximumf %90, %97 : vector<2x128xf32>
    %c0_60 = arith.constant 0 : index
    %c0_61 = arith.constant 0 : index
    %99 = vector.load %arg19[%c0_60, %c0_61] : memref<2048x128xf32, #tpu.memory_space<vmem>>, vector<256x128xf32>
    %cst_62 = arith.constant dense<0.000000e+00> : vector<2x128xf32>
    %100 = tpu.matmul %24, %99, %cst_62 {dimension_numbers = #tpu.dot_dimension_numbers<[1], [0], [0], [1], [0, 0, 1, 1], [], []>} : vector<2x256xf32>, vector<256x128xf32>, vector<2x128xf32> -> vector<2x128xf32>
    %c256 = arith.constant 256 : index
    %c0_63 = arith.constant 0 : index
    %101 = vector.load %arg19[%c256, %c0_63] : memref<2048x128xf32, #tpu.memory_space<vmem>>, vector<512x128xf32>
    %cst_64 = arith.constant dense<0.000000e+00> : vector<2x128xf32>
    %102 = tpu.matmul %49, %101, %cst_64 {dimension_numbers = #tpu.dot_dimension_numbers<[1], [0], [0], [1], [0, 0, 1, 1], [], []>} : vector<2x512xf32>, vector<512x128xf32>, vector<2x128xf32> -> vector<2x128xf32>
    %103 = arith.addf %100, %102 : vector<2x128xf32>
    %c768 = arith.constant 768 : index
    %c0_65 = arith.constant 0 : index
    %104 = vector.load %arg19[%c768, %c0_65] : memref<2048x128xf32, #tpu.memory_space<vmem>>, vector<128x128xf32>
    %cst_66 = arith.constant dense<0.000000e+00> : vector<2x128xf32>
    %105 = tpu.matmul %98, %104, %cst_66 {dimension_numbers = #tpu.dot_dimension_numbers<[1], [0], [0], [1], [0, 0, 1, 1], [], []>} : vector<2x128xf32>, vector<128x128xf32>, vector<2x128xf32> -> vector<2x128xf32>
    %106 = arith.addf %103, %105 : vector<2x128xf32>
    %c0_67 = arith.constant 0 : index
    %c0_68 = arith.constant 0 : index
    %107 = vector.load %arg3[%c0_67, %c0_68] : memref<2x576xf32, #tpu.memory_space<vmem>>, vector<2x576xf32>
    %c0_69 = arith.constant 0 : index
    %c0_70 = arith.constant 0 : index
    %108 = vector.load %arg4[%c0_69, %c0_70] : memref<2x576xf32, #tpu.memory_space<vmem>>, vector<2x576xf32>
    %c0_71 = arith.constant 0 : index
    %c0_72 = arith.constant 0 : index
    %c0_73 = arith.constant 0 : index
    %109 = vector.load %arg17[%c0_71, %c0_72, %c0_73] : memref<4x576x144xf32, #tpu.memory_space<vmem>>, vector<1x576x144xf32>
    %110 = vector.shape_cast %109 : vector<1x576x144xf32> to vector<576x144xf32>
    %cst_74 = arith.constant dense<0.000000e+00> : vector<2x144xf32>
    %111 = tpu.matmul %107, %110, %cst_74 {dimension_numbers = #tpu.dot_dimension_numbers<[1], [0], [0], [1], [0, 0, 1, 1], [], []>} : vector<2x576xf32>, vector<576x144xf32>, vector<2x144xf32> -> vector<2x144xf32>
    %c1 = arith.constant 1 : index
    %c0_75 = arith.constant 0 : index
    %c0_76 = arith.constant 0 : index
    %112 = vector.load %arg17[%c1, %c0_75, %c0_76] : memref<4x576x144xf32, #tpu.memory_space<vmem>>, vector<1x576x144xf32>
    %113 = vector.shape_cast %112 : vector<1x576x144xf32> to vector<576x144xf32>
    %cst_77 = arith.constant dense<0.000000e+00> : vector<2x144xf32>
    %114 = tpu.matmul %107, %113, %cst_77 {dimension_numbers = #tpu.dot_dimension_numbers<[1], [0], [0], [1], [0, 0, 1, 1], [], []>} : vector<2x576xf32>, vector<576x144xf32>, vector<2x144xf32> -> vector<2x144xf32>
    %c2 = arith.constant 2 : index
    %c0_78 = arith.constant 0 : index
    %c0_79 = arith.constant 0 : index
    %115 = vector.load %arg17[%c2, %c0_78, %c0_79] : memref<4x576x144xf32, #tpu.memory_space<vmem>>, vector<1x576x144xf32>
    %116 = vector.shape_cast %115 : vector<1x576x144xf32> to vector<576x144xf32>
    %cst_80 = arith.constant dense<0.000000e+00> : vector<2x144xf32>
    %117 = tpu.matmul %107, %116, %cst_80 {dimension_numbers = #tpu.dot_dimension_numbers<[1], [0], [0], [1], [0, 0, 1, 1], [], []>} : vector<2x576xf32>, vector<576x144xf32>, vector<2x144xf32> -> vector<2x144xf32>
    %c3 = arith.constant 3 : index
    %c0_81 = arith.constant 0 : index
    %c0_82 = arith.constant 0 : index
    %118 = vector.load %arg17[%c3, %c0_81, %c0_82] : memref<4x576x144xf32, #tpu.memory_space<vmem>>, vector<1x576x144xf32>
    %119 = vector.shape_cast %118 : vector<1x576x144xf32> to vector<576x144xf32>
    %cst_83 = arith.constant dense<0.000000e+00> : vector<2x144xf32>
    %120 = tpu.matmul %107, %119, %cst_83 {dimension_numbers = #tpu.dot_dimension_numbers<[1], [0], [0], [1], [0, 0, 1, 1], [], []>} : vector<2x576xf32>, vector<576x144xf32>, vector<2x144xf32> -> vector<2x144xf32>
    %c0_84 = arith.constant 0 : index
    %c0_85 = arith.constant 0 : index
    %c0_86 = arith.constant 0 : index
    %121 = vector.load %arg17[%c0_84, %c0_85, %c0_86] : memref<4x576x144xf32, #tpu.memory_space<vmem>>, vector<1x576x144xf32>
    %122 = vector.shape_cast %121 : vector<1x576x144xf32> to vector<576x144xf32>
    %cst_87 = arith.constant dense<0.000000e+00> : vector<2x144xf32>
    %123 = tpu.matmul %108, %122, %cst_87 {dimension_numbers = #tpu.dot_dimension_numbers<[1], [0], [0], [1], [0, 0, 1, 1], [], []>} : vector<2x576xf32>, vector<576x144xf32>, vector<2x144xf32> -> vector<2x144xf32>
    %c1_88 = arith.constant 1 : index
    %c0_89 = arith.constant 0 : index
    %c0_90 = arith.constant 0 : index
    %124 = vector.load %arg17[%c1_88, %c0_89, %c0_90] : memref<4x576x144xf32, #tpu.memory_space<vmem>>, vector<1x576x144xf32>
    %125 = vector.shape_cast %124 : vector<1x576x144xf32> to vector<576x144xf32>
    %cst_91 = arith.constant dense<0.000000e+00> : vector<2x144xf32>
    %126 = tpu.matmul %108, %125, %cst_91 {dimension_numbers = #tpu.dot_dimension_numbers<[1], [0], [0], [1], [0, 0, 1, 1], [], []>} : vector<2x576xf32>, vector<576x144xf32>, vector<2x144xf32> -> vector<2x144xf32>
    %c2_92 = arith.constant 2 : index
    %c0_93 = arith.constant 0 : index
    %c0_94 = arith.constant 0 : index
    %127 = vector.load %arg17[%c2_92, %c0_93, %c0_94] : memref<4x576x144xf32, #tpu.memory_space<vmem>>, vector<1x576x144xf32>
    %128 = vector.shape_cast %127 : vector<1x576x144xf32> to vector<576x144xf32>
    %cst_95 = arith.constant dense<0.000000e+00> : vector<2x144xf32>
    %129 = tpu.matmul %108, %128, %cst_95 {dimension_numbers = #tpu.dot_dimension_numbers<[1], [0], [0], [1], [0, 0, 1, 1], [], []>} : vector<2x576xf32>, vector<576x144xf32>, vector<2x144xf32> -> vector<2x144xf32>
    %c3_96 = arith.constant 3 : index
    %c0_97 = arith.constant 0 : index
    %c0_98 = arith.constant 0 : index
    %130 = vector.load %arg17[%c3_96, %c0_97, %c0_98] : memref<4x576x144xf32, #tpu.memory_space<vmem>>, vector<1x576x144xf32>
    %131 = vector.shape_cast %130 : vector<1x576x144xf32> to vector<576x144xf32>
    %cst_99 = arith.constant dense<0.000000e+00> : vector<2x144xf32>
    %132 = tpu.matmul %108, %131, %cst_99 {dimension_numbers = #tpu.dot_dimension_numbers<[1], [0], [0], [1], [0, 0, 1, 1], [], []>} : vector<2x576xf32>, vector<576x144xf32>, vector<2x144xf32> -> vector<2x144xf32>
    %c0_100 = arith.constant 0 : index
    %133 = memref.load %arg18[%c0_100] : memref<24xf32, #tpu.memory_space<smem>>
    %c1_101 = arith.constant 1 : index
    %134 = memref.load %arg18[%c1_101] : memref<24xf32, #tpu.memory_space<smem>>
    %c16 = arith.constant 16 : index
    %135 = memref.load %arg18[%c16] : memref<24xf32, #tpu.memory_space<smem>>
    %136 = vector.broadcast %133 : f32 to vector<2x144xf32>
    %137 = arith.mulf %111, %136 : vector<2x144xf32>
    %138 = vector.broadcast %134 : f32 to vector<2x144xf32>
    %139 = arith.mulf %123, %138 : vector<2x144xf32>
    %140 = arith.addf %137, %139 : vector<2x144xf32>
    %141 = vector.broadcast %135 : f32 to vector<2x144xf32>
    %142 = arith.addf %140, %141 : vector<2x144xf32>
    %cst_102 = arith.constant 0.000000e+00 : f32
    %143 = vector.broadcast %cst_102 : f32 to vector<2x144xf32>
    %144 = arith.maximumf %142, %143 : vector<2x144xf32>
    %145 = vector.broadcast %133 : f32 to vector<2x144xf32>
    %146 = arith.mulf %114, %145 : vector<2x144xf32>
    %147 = vector.broadcast %134 : f32 to vector<2x144xf32>
    %148 = arith.mulf %126, %147 : vector<2x144xf32>
    %149 = arith.addf %146, %148 : vector<2x144xf32>
    %150 = vector.broadcast %135 : f32 to vector<2x144xf32>
    %151 = arith.addf %149, %150 : vector<2x144xf32>
    %cst_103 = arith.constant 0.000000e+00 : f32
    %152 = vector.broadcast %cst_103 : f32 to vector<2x144xf32>
    %153 = arith.maximumf %151, %152 : vector<2x144xf32>
    %154 = arith.maximumf %144, %153 : vector<2x144xf32>
    %155 = vector.broadcast %133 : f32 to vector<2x144xf32>
    %156 = arith.mulf %117, %155 : vector<2x144xf32>
    %157 = vector.broadcast %134 : f32 to vector<2x144xf32>
    %158 = arith.mulf %129, %157 : vector<2x144xf32>
    %159 = arith.addf %156, %158 : vector<2x144xf32>
    %160 = vector.broadcast %135 : f32 to vector<2x144xf32>
    %161 = arith.addf %159, %160 : vector<2x144xf32>
    %cst_104 = arith.constant 0.000000e+00 : f32
    %162 = vector.broadcast %cst_104 : f32 to vector<2x144xf32>
    %163 = arith.maximumf %161, %162 : vector<2x144xf32>
    %164 = arith.maximumf %154, %163 : vector<2x144xf32>
    %165 = vector.broadcast %133 : f32 to vector<2x144xf32>
    %166 = arith.mulf %120, %165 : vector<2x144xf32>
    %167 = vector.broadcast %134 : f32 to vector<2x144xf32>
    %168 = arith.mulf %132, %167 : vector<2x144xf32>
    %169 = arith.addf %166, %168 : vector<2x144xf32>
    %170 = vector.broadcast %135 : f32 to vector<2x144xf32>
    %171 = arith.addf %169, %170 : vector<2x144xf32>
    %cst_105 = arith.constant 0.000000e+00 : f32
    %172 = vector.broadcast %cst_105 : f32 to vector<2x144xf32>
    %173 = arith.maximumf %171, %172 : vector<2x144xf32>
    %174 = arith.maximumf %164, %173 : vector<2x144xf32>
    %c896 = arith.constant 896 : index
    %c0_106 = arith.constant 0 : index
    %175 = vector.load %arg19[%c896, %c0_106] : memref<2048x128xf32, #tpu.memory_space<vmem>>, vector<144x128xf32>
    %cst_107 = arith.constant dense<0.000000e+00> : vector<2x128xf32>
    %176 = tpu.matmul %174, %175, %cst_107 {dimension_numbers = #tpu.dot_dimension_numbers<[1], [0], [0], [1], [0, 0, 1, 1], [], []>} : vector<2x144xf32>, vector<144x128xf32>, vector<2x128xf32> -> vector<2x128xf32>
    %177 = arith.addf %106, %176 : vector<2x128xf32>
    %c2_108 = arith.constant 2 : index
    %178 = memref.load %arg18[%c2_108] : memref<24xf32, #tpu.memory_space<smem>>
    %c3_109 = arith.constant 3 : index
    %179 = memref.load %arg18[%c3_109] : memref<24xf32, #tpu.memory_space<smem>>
    %c17 = arith.constant 17 : index
    %180 = memref.load %arg18[%c17] : memref<24xf32, #tpu.memory_space<smem>>
    %181 = vector.broadcast %178 : f32 to vector<2x144xf32>
    %182 = arith.mulf %111, %181 : vector<2x144xf32>
    %183 = vector.broadcast %179 : f32 to vector<2x144xf32>
    %184 = arith.mulf %123, %183 : vector<2x144xf32>
    %185 = arith.addf %182, %184 : vector<2x144xf32>
    %186 = vector.broadcast %180 : f32 to vector<2x144xf32>
    %187 = arith.addf %185, %186 : vector<2x144xf32>
    %cst_110 = arith.constant 0.000000e+00 : f32
    %188 = vector.broadcast %cst_110 : f32 to vector<2x144xf32>
    %189 = arith.maximumf %187, %188 : vector<2x144xf32>
    %190 = vector.broadcast %178 : f32 to vector<2x144xf32>
    %191 = arith.mulf %114, %190 : vector<2x144xf32>
    %192 = vector.broadcast %179 : f32 to vector<2x144xf32>
    %193 = arith.mulf %126, %192 : vector<2x144xf32>
    %194 = arith.addf %191, %193 : vector<2x144xf32>
    %195 = vector.broadcast %180 : f32 to vector<2x144xf32>
    %196 = arith.addf %194, %195 : vector<2x144xf32>
    %cst_111 = arith.constant 0.000000e+00 : f32
    %197 = vector.broadcast %cst_111 : f32 to vector<2x144xf32>
    %198 = arith.maximumf %196, %197 : vector<2x144xf32>
    %199 = arith.maximumf %189, %198 : vector<2x144xf32>
    %200 = vector.broadcast %178 : f32 to vector<2x144xf32>
    %201 = arith.mulf %117, %200 : vector<2x144xf32>
    %202 = vector.broadcast %179 : f32 to vector<2x144xf32>
    %203 = arith.mulf %129, %202 : vector<2x144xf32>
    %204 = arith.addf %201, %203 : vector<2x144xf32>
    %205 = vector.broadcast %180 : f32 to vector<2x144xf32>
    %206 = arith.addf %204, %205 : vector<2x144xf32>
    %cst_112 = arith.constant 0.000000e+00 : f32
    %207 = vector.broadcast %cst_112 : f32 to vector<2x144xf32>
    %208 = arith.maximumf %206, %207 : vector<2x144xf32>
    %209 = arith.maximumf %199, %208 : vector<2x144xf32>
    %210 = vector.broadcast %178 : f32 to vector<2x144xf32>
    %211 = arith.mulf %120, %210 : vector<2x144xf32>
    %212 = vector.broadcast %179 : f32 to vector<2x144xf32>
    %213 = arith.mulf %132, %212 : vector<2x144xf32>
    %214 = arith.addf %211, %213 : vector<2x144xf32>
    %215 = vector.broadcast %180 : f32 to vector<2x144xf32>
    %216 = arith.addf %214, %215 : vector<2x144xf32>
    %cst_113 = arith.constant 0.000000e+00 : f32
    %217 = vector.broadcast %cst_113 : f32 to vector<2x144xf32>
    %218 = arith.maximumf %216, %217 : vector<2x144xf32>
    %219 = arith.maximumf %209, %218 : vector<2x144xf32>
    %c1040 = arith.constant 1040 : index
    %c0_114 = arith.constant 0 : index
    %220 = vector.load %arg19[%c1040, %c0_114] : memref<2048x128xf32, #tpu.memory_space<vmem>>, vector<144x128xf32>
    %cst_115 = arith.constant dense<0.000000e+00> : vector<2x128xf32>
    %221 = tpu.matmul %219, %220, %cst_115 {dimension_numbers = #tpu.dot_dimension_numbers<[1], [0], [0], [1], [0, 0, 1, 1], [], []>} : vector<2x144xf32>, vector<144x128xf32>, vector<2x128xf32> -> vector<2x128xf32>
    %222 = arith.addf %177, %221 : vector<2x128xf32>
    %c4 = arith.constant 4 : index
    %223 = memref.load %arg18[%c4] : memref<24xf32, #tpu.memory_space<smem>>
    %c5 = arith.constant 5 : index
    %224 = memref.load %arg18[%c5] : memref<24xf32, #tpu.memory_space<smem>>
    %c18 = arith.constant 18 : index
    %225 = memref.load %arg18[%c18] : memref<24xf32, #tpu.memory_space<smem>>
    %226 = vector.broadcast %223 : f32 to vector<2x144xf32>
    %227 = arith.mulf %111, %226 : vector<2x144xf32>
    %228 = vector.broadcast %224 : f32 to vector<2x144xf32>
    %229 = arith.mulf %123, %228 : vector<2x144xf32>
    %230 = arith.addf %227, %229 : vector<2x144xf32>
    %231 = vector.broadcast %225 : f32 to vector<2x144xf32>
    %232 = arith.addf %230, %231 : vector<2x144xf32>
    %cst_116 = arith.constant 0.000000e+00 : f32
    %233 = vector.broadcast %cst_116 : f32 to vector<2x144xf32>
    %234 = arith.maximumf %232, %233 : vector<2x144xf32>
    %235 = vector.broadcast %223 : f32 to vector<2x144xf32>
    %236 = arith.mulf %114, %235 : vector<2x144xf32>
    %237 = vector.broadcast %224 : f32 to vector<2x144xf32>
    %238 = arith.mulf %126, %237 : vector<2x144xf32>
    %239 = arith.addf %236, %238 : vector<2x144xf32>
    %240 = vector.broadcast %225 : f32 to vector<2x144xf32>
    %241 = arith.addf %239, %240 : vector<2x144xf32>
    %cst_117 = arith.constant 0.000000e+00 : f32
    %242 = vector.broadcast %cst_117 : f32 to vector<2x144xf32>
    %243 = arith.maximumf %241, %242 : vector<2x144xf32>
    %244 = arith.maximumf %234, %243 : vector<2x144xf32>
    %245 = vector.broadcast %223 : f32 to vector<2x144xf32>
    %246 = arith.mulf %117, %245 : vector<2x144xf32>
    %247 = vector.broadcast %224 : f32 to vector<2x144xf32>
    %248 = arith.mulf %129, %247 : vector<2x144xf32>
    %249 = arith.addf %246, %248 : vector<2x144xf32>
    %250 = vector.broadcast %225 : f32 to vector<2x144xf32>
    %251 = arith.addf %249, %250 : vector<2x144xf32>
    %cst_118 = arith.constant 0.000000e+00 : f32
    %252 = vector.broadcast %cst_118 : f32 to vector<2x144xf32>
    %253 = arith.maximumf %251, %252 : vector<2x144xf32>
    %254 = arith.maximumf %244, %253 : vector<2x144xf32>
    %255 = vector.broadcast %223 : f32 to vector<2x144xf32>
    %256 = arith.mulf %120, %255 : vector<2x144xf32>
    %257 = vector.broadcast %224 : f32 to vector<2x144xf32>
    %258 = arith.mulf %132, %257 : vector<2x144xf32>
    %259 = arith.addf %256, %258 : vector<2x144xf32>
    %260 = vector.broadcast %225 : f32 to vector<2x144xf32>
    %261 = arith.addf %259, %260 : vector<2x144xf32>
    %cst_119 = arith.constant 0.000000e+00 : f32
    %262 = vector.broadcast %cst_119 : f32 to vector<2x144xf32>
    %263 = arith.maximumf %261, %262 : vector<2x144xf32>
    %264 = arith.maximumf %254, %263 : vector<2x144xf32>
    %c1184 = arith.constant 1184 : index
    %c0_120 = arith.constant 0 : index
    %265 = vector.load %arg19[%c1184, %c0_120] : memref<2048x128xf32, #tpu.memory_space<vmem>>, vector<144x128xf32>
    %cst_121 = arith.constant dense<0.000000e+00> : vector<2x128xf32>
    %266 = tpu.matmul %264, %265, %cst_121 {dimension_numbers = #tpu.dot_dimension_numbers<[1], [0], [0], [1], [0, 0, 1, 1], [], []>} : vector<2x144xf32>, vector<144x128xf32>, vector<2x128xf32> -> vector<2x128xf32>
    %267 = arith.addf %222, %266 : vector<2x128xf32>
    %c6 = arith.constant 6 : index
    %268 = memref.load %arg18[%c6] : memref<24xf32, #tpu.memory_space<smem>>
    %c7 = arith.constant 7 : index
    %269 = memref.load %arg18[%c7] : memref<24xf32, #tpu.memory_space<smem>>
    %c19 = arith.constant 19 : index
    %270 = memref.load %arg18[%c19] : memref<24xf32, #tpu.memory_space<smem>>
    %271 = vector.broadcast %268 : f32 to vector<2x144xf32>
    %272 = arith.mulf %111, %271 : vector<2x144xf32>
    %273 = vector.broadcast %269 : f32 to vector<2x144xf32>
    %274 = arith.mulf %123, %273 : vector<2x144xf32>
    %275 = arith.addf %272, %274 : vector<2x144xf32>
    %276 = vector.broadcast %270 : f32 to vector<2x144xf32>
    %277 = arith.addf %275, %276 : vector<2x144xf32>
    %cst_122 = arith.constant 0.000000e+00 : f32
    %278 = vector.broadcast %cst_122 : f32 to vector<2x144xf32>
    %279 = arith.maximumf %277, %278 : vector<2x144xf32>
    %280 = vector.broadcast %268 : f32 to vector<2x144xf32>
    %281 = arith.mulf %114, %280 : vector<2x144xf32>
    %282 = vector.broadcast %269 : f32 to vector<2x144xf32>
    %283 = arith.mulf %126, %282 : vector<2x144xf32>
    %284 = arith.addf %281, %283 : vector<2x144xf32>
    %285 = vector.broadcast %270 : f32 to vector<2x144xf32>
    %286 = arith.addf %284, %285 : vector<2x144xf32>
    %cst_123 = arith.constant 0.000000e+00 : f32
    %287 = vector.broadcast %cst_123 : f32 to vector<2x144xf32>
    %288 = arith.maximumf %286, %287 : vector<2x144xf32>
    %289 = arith.maximumf %279, %288 : vector<2x144xf32>
    %290 = vector.broadcast %268 : f32 to vector<2x144xf32>
    %291 = arith.mulf %117, %290 : vector<2x144xf32>
    %292 = vector.broadcast %269 : f32 to vector<2x144xf32>
    %293 = arith.mulf %129, %292 : vector<2x144xf32>
    %294 = arith.addf %291, %293 : vector<2x144xf32>
    %295 = vector.broadcast %270 : f32 to vector<2x144xf32>
    %296 = arith.addf %294, %295 : vector<2x144xf32>
    %cst_124 = arith.constant 0.000000e+00 : f32
    %297 = vector.broadcast %cst_124 : f32 to vector<2x144xf32>
    %298 = arith.maximumf %296, %297 : vector<2x144xf32>
    %299 = arith.maximumf %289, %298 : vector<2x144xf32>
    %300 = vector.broadcast %268 : f32 to vector<2x144xf32>
    %301 = arith.mulf %120, %300 : vector<2x144xf32>
    %302 = vector.broadcast %269 : f32 to vector<2x144xf32>
    %303 = arith.mulf %132, %302 : vector<2x144xf32>
    %304 = arith.addf %301, %303 : vector<2x144xf32>
    %305 = vector.broadcast %270 : f32 to vector<2x144xf32>
    %306 = arith.addf %304, %305 : vector<2x144xf32>
    %cst_125 = arith.constant 0.000000e+00 : f32
    %307 = vector.broadcast %cst_125 : f32 to vector<2x144xf32>
    %308 = arith.maximumf %306, %307 : vector<2x144xf32>
    %309 = arith.maximumf %299, %308 : vector<2x144xf32>
    %c1328 = arith.constant 1328 : index
    %c0_126 = arith.constant 0 : index
    %310 = vector.load %arg19[%c1328, %c0_126] : memref<2048x128xf32, #tpu.memory_space<vmem>>, vector<144x128xf32>
    %cst_127 = arith.constant dense<0.000000e+00> : vector<2x128xf32>
    %311 = tpu.matmul %309, %310, %cst_127 {dimension_numbers = #tpu.dot_dimension_numbers<[1], [0], [0], [1], [0, 0, 1, 1], [], []>} : vector<2x144xf32>, vector<144x128xf32>, vector<2x128xf32> -> vector<2x128xf32>
    %312 = arith.addf %267, %311 : vector<2x128xf32>
    %c8 = arith.constant 8 : index
    %313 = memref.load %arg18[%c8] : memref<24xf32, #tpu.memory_space<smem>>
    %c9 = arith.constant 9 : index
    %314 = memref.load %arg18[%c9] : memref<24xf32, #tpu.memory_space<smem>>
    %c20 = arith.constant 20 : index
    %315 = memref.load %arg18[%c20] : memref<24xf32, #tpu.memory_space<smem>>
    %316 = vector.broadcast %313 : f32 to vector<2x144xf32>
    %317 = arith.mulf %111, %316 : vector<2x144xf32>
    %318 = vector.broadcast %314 : f32 to vector<2x144xf32>
    %319 = arith.mulf %123, %318 : vector<2x144xf32>
    %320 = arith.addf %317, %319 : vector<2x144xf32>
    %321 = vector.broadcast %315 : f32 to vector<2x144xf32>
    %322 = arith.addf %320, %321 : vector<2x144xf32>
    %cst_128 = arith.constant 0.000000e+00 : f32
    %323 = vector.broadcast %cst_128 : f32 to vector<2x144xf32>
    %324 = arith.maximumf %322, %323 : vector<2x144xf32>
    %325 = vector.broadcast %313 : f32 to vector<2x144xf32>
    %326 = arith.mulf %114, %325 : vector<2x144xf32>
    %327 = vector.broadcast %314 : f32 to vector<2x144xf32>
    %328 = arith.mulf %126, %327 : vector<2x144xf32>
    %329 = arith.addf %326, %328 : vector<2x144xf32>
    %330 = vector.broadcast %315 : f32 to vector<2x144xf32>
    %331 = arith.addf %329, %330 : vector<2x144xf32>
    %cst_129 = arith.constant 0.000000e+00 : f32
    %332 = vector.broadcast %cst_129 : f32 to vector<2x144xf32>
    %333 = arith.maximumf %331, %332 : vector<2x144xf32>
    %334 = arith.maximumf %324, %333 : vector<2x144xf32>
    %335 = vector.broadcast %313 : f32 to vector<2x144xf32>
    %336 = arith.mulf %117, %335 : vector<2x144xf32>
    %337 = vector.broadcast %314 : f32 to vector<2x144xf32>
    %338 = arith.mulf %129, %337 : vector<2x144xf32>
    %339 = arith.addf %336, %338 : vector<2x144xf32>
    %340 = vector.broadcast %315 : f32 to vector<2x144xf32>
    %341 = arith.addf %339, %340 : vector<2x144xf32>
    %cst_130 = arith.constant 0.000000e+00 : f32
    %342 = vector.broadcast %cst_130 : f32 to vector<2x144xf32>
    %343 = arith.maximumf %341, %342 : vector<2x144xf32>
    %344 = arith.maximumf %334, %343 : vector<2x144xf32>
    %345 = vector.broadcast %313 : f32 to vector<2x144xf32>
    %346 = arith.mulf %120, %345 : vector<2x144xf32>
    %347 = vector.broadcast %314 : f32 to vector<2x144xf32>
    %348 = arith.mulf %132, %347 : vector<2x144xf32>
    %349 = arith.addf %346, %348 : vector<2x144xf32>
    %350 = vector.broadcast %315 : f32 to vector<2x144xf32>
    %351 = arith.addf %349, %350 : vector<2x144xf32>
    %cst_131 = arith.constant 0.000000e+00 : f32
    %352 = vector.broadcast %cst_131 : f32 to vector<2x144xf32>
    %353 = arith.maximumf %351, %352 : vector<2x144xf32>
    %354 = arith.maximumf %344, %353 : vector<2x144xf32>
    %c1472 = arith.constant 1472 : index
    %c0_132 = arith.constant 0 : index
    %355 = vector.load %arg19[%c1472, %c0_132] : memref<2048x128xf32, #tpu.memory_space<vmem>>, vector<144x128xf32>
    %cst_133 = arith.constant dense<0.000000e+00> : vector<2x128xf32>
    %356 = tpu.matmul %354, %355, %cst_133 {dimension_numbers = #tpu.dot_dimension_numbers<[1], [0], [0], [1], [0, 0, 1, 1], [], []>} : vector<2x144xf32>, vector<144x128xf32>, vector<2x128xf32> -> vector<2x128xf32>
    %357 = arith.addf %312, %356 : vector<2x128xf32>
    %c10 = arith.constant 10 : index
    %358 = memref.load %arg18[%c10] : memref<24xf32, #tpu.memory_space<smem>>
    %c11 = arith.constant 11 : index
    %359 = memref.load %arg18[%c11] : memref<24xf32, #tpu.memory_space<smem>>
    %c21 = arith.constant 21 : index
    %360 = memref.load %arg18[%c21] : memref<24xf32, #tpu.memory_space<smem>>
    %361 = vector.broadcast %358 : f32 to vector<2x144xf32>
    %362 = arith.mulf %111, %361 : vector<2x144xf32>
    %363 = vector.broadcast %359 : f32 to vector<2x144xf32>
    %364 = arith.mulf %123, %363 : vector<2x144xf32>
    %365 = arith.addf %362, %364 : vector<2x144xf32>
    %366 = vector.broadcast %360 : f32 to vector<2x144xf32>
    %367 = arith.addf %365, %366 : vector<2x144xf32>
    %cst_134 = arith.constant 0.000000e+00 : f32
    %368 = vector.broadcast %cst_134 : f32 to vector<2x144xf32>
    %369 = arith.maximumf %367, %368 : vector<2x144xf32>
    %370 = vector.broadcast %358 : f32 to vector<2x144xf32>
    %371 = arith.mulf %114, %370 : vector<2x144xf32>
    %372 = vector.broadcast %359 : f32 to vector<2x144xf32>
    %373 = arith.mulf %126, %372 : vector<2x144xf32>
    %374 = arith.addf %371, %373 : vector<2x144xf32>
    %375 = vector.broadcast %360 : f32 to vector<2x144xf32>
    %376 = arith.addf %374, %375 : vector<2x144xf32>
    %cst_135 = arith.constant 0.000000e+00 : f32
    %377 = vector.broadcast %cst_135 : f32 to vector<2x144xf32>
    %378 = arith.maximumf %376, %377 : vector<2x144xf32>
    %379 = arith.maximumf %369, %378 : vector<2x144xf32>
    %380 = vector.broadcast %358 : f32 to vector<2x144xf32>
    %381 = arith.mulf %117, %380 : vector<2x144xf32>
    %382 = vector.broadcast %359 : f32 to vector<2x144xf32>
    %383 = arith.mulf %129, %382 : vector<2x144xf32>
    %384 = arith.addf %381, %383 : vector<2x144xf32>
    %385 = vector.broadcast %360 : f32 to vector<2x144xf32>
    %386 = arith.addf %384, %385 : vector<2x144xf32>
    %cst_136 = arith.constant 0.000000e+00 : f32
    %387 = vector.broadcast %cst_136 : f32 to vector<2x144xf32>
    %388 = arith.maximumf %386, %387 : vector<2x144xf32>
    %389 = arith.maximumf %379, %388 : vector<2x144xf32>
    %390 = vector.broadcast %358 : f32 to vector<2x144xf32>
    %391 = arith.mulf %120, %390 : vector<2x144xf32>
    %392 = vector.broadcast %359 : f32 to vector<2x144xf32>
    %393 = arith.mulf %132, %392 : vector<2x144xf32>
    %394 = arith.addf %391, %393 : vector<2x144xf32>
    %395 = vector.broadcast %360 : f32 to vector<2x144xf32>
    %396 = arith.addf %394, %395 : vector<2x144xf32>
    %cst_137 = arith.constant 0.000000e+00 : f32
    %397 = vector.broadcast %cst_137 : f32 to vector<2x144xf32>
    %398 = arith.maximumf %396, %397 : vector<2x144xf32>
    %399 = arith.maximumf %389, %398 : vector<2x144xf32>
    %c1616 = arith.constant 1616 : index
    %c0_138 = arith.constant 0 : index
    %400 = vector.load %arg19[%c1616, %c0_138] : memref<2048x128xf32, #tpu.memory_space<vmem>>, vector<144x128xf32>
    %cst_139 = arith.constant dense<0.000000e+00> : vector<2x128xf32>
    %401 = tpu.matmul %399, %400, %cst_139 {dimension_numbers = #tpu.dot_dimension_numbers<[1], [0], [0], [1], [0, 0, 1, 1], [], []>} : vector<2x144xf32>, vector<144x128xf32>, vector<2x128xf32> -> vector<2x128xf32>
    %402 = arith.addf %357, %401 : vector<2x128xf32>
    %c12 = arith.constant 12 : index
    %403 = memref.load %arg18[%c12] : memref<24xf32, #tpu.memory_space<smem>>
    %c13 = arith.constant 13 : index
    %404 = memref.load %arg18[%c13] : memref<24xf32, #tpu.memory_space<smem>>
    %c22 = arith.constant 22 : index
    %405 = memref.load %arg18[%c22] : memref<24xf32, #tpu.memory_space<smem>>
    %406 = vector.broadcast %403 : f32 to vector<2x144xf32>
    %407 = arith.mulf %111, %406 : vector<2x144xf32>
    %408 = vector.broadcast %404 : f32 to vector<2x144xf32>
    %409 = arith.mulf %123, %408 : vector<2x144xf32>
    %410 = arith.addf %407, %409 : vector<2x144xf32>
    %411 = vector.broadcast %405 : f32 to vector<2x144xf32>
    %412 = arith.addf %410, %411 : vector<2x144xf32>
    %cst_140 = arith.constant 0.000000e+00 : f32
    %413 = vector.broadcast %cst_140 : f32 to vector<2x144xf32>
    %414 = arith.maximumf %412, %413 : vector<2x144xf32>
    %415 = vector.broadcast %403 : f32 to vector<2x144xf32>
    %416 = arith.mulf %114, %415 : vector<2x144xf32>
    %417 = vector.broadcast %404 : f32 to vector<2x144xf32>
    %418 = arith.mulf %126, %417 : vector<2x144xf32>
    %419 = arith.addf %416, %418 : vector<2x144xf32>
    %420 = vector.broadcast %405 : f32 to vector<2x144xf32>
    %421 = arith.addf %419, %420 : vector<2x144xf32>
    %cst_141 = arith.constant 0.000000e+00 : f32
    %422 = vector.broadcast %cst_141 : f32 to vector<2x144xf32>
    %423 = arith.maximumf %421, %422 : vector<2x144xf32>
    %424 = arith.maximumf %414, %423 : vector<2x144xf32>
    %425 = vector.broadcast %403 : f32 to vector<2x144xf32>
    %426 = arith.mulf %117, %425 : vector<2x144xf32>
    %427 = vector.broadcast %404 : f32 to vector<2x144xf32>
    %428 = arith.mulf %129, %427 : vector<2x144xf32>
    %429 = arith.addf %426, %428 : vector<2x144xf32>
    %430 = vector.broadcast %405 : f32 to vector<2x144xf32>
    %431 = arith.addf %429, %430 : vector<2x144xf32>
    %cst_142 = arith.constant 0.000000e+00 : f32
    %432 = vector.broadcast %cst_142 : f32 to vector<2x144xf32>
    %433 = arith.maximumf %431, %432 : vector<2x144xf32>
    %434 = arith.maximumf %424, %433 : vector<2x144xf32>
    %435 = vector.broadcast %403 : f32 to vector<2x144xf32>
    %436 = arith.mulf %120, %435 : vector<2x144xf32>
    %437 = vector.broadcast %404 : f32 to vector<2x144xf32>
    %438 = arith.mulf %132, %437 : vector<2x144xf32>
    %439 = arith.addf %436, %438 : vector<2x144xf32>
    %440 = vector.broadcast %405 : f32 to vector<2x144xf32>
    %441 = arith.addf %439, %440 : vector<2x144xf32>
    %cst_143 = arith.constant 0.000000e+00 : f32
    %442 = vector.broadcast %cst_143 : f32 to vector<2x144xf32>
    %443 = arith.maximumf %441, %442 : vector<2x144xf32>
    %444 = arith.maximumf %434, %443 : vector<2x144xf32>
    %c1760 = arith.constant 1760 : index
    %c0_144 = arith.constant 0 : index
    %445 = vector.load %arg19[%c1760, %c0_144] : memref<2048x128xf32, #tpu.memory_space<vmem>>, vector<144x128xf32>
    %cst_145 = arith.constant dense<0.000000e+00> : vector<2x128xf32>
    %446 = tpu.matmul %444, %445, %cst_145 {dimension_numbers = #tpu.dot_dimension_numbers<[1], [0], [0], [1], [0, 0, 1, 1], [], []>} : vector<2x144xf32>, vector<144x128xf32>, vector<2x128xf32> -> vector<2x128xf32>
    %447 = arith.addf %402, %446 : vector<2x128xf32>
    %c14 = arith.constant 14 : index
    %448 = memref.load %arg18[%c14] : memref<24xf32, #tpu.memory_space<smem>>
    %c15 = arith.constant 15 : index
    %449 = memref.load %arg18[%c15] : memref<24xf32, #tpu.memory_space<smem>>
    %c23 = arith.constant 23 : index
    %450 = memref.load %arg18[%c23] : memref<24xf32, #tpu.memory_space<smem>>
    %451 = vector.broadcast %448 : f32 to vector<2x144xf32>
    %452 = arith.mulf %111, %451 : vector<2x144xf32>
    %453 = vector.broadcast %449 : f32 to vector<2x144xf32>
    %454 = arith.mulf %123, %453 : vector<2x144xf32>
    %455 = arith.addf %452, %454 : vector<2x144xf32>
    %456 = vector.broadcast %450 : f32 to vector<2x144xf32>
    %457 = arith.addf %455, %456 : vector<2x144xf32>
    %cst_146 = arith.constant 0.000000e+00 : f32
    %458 = vector.broadcast %cst_146 : f32 to vector<2x144xf32>
    %459 = arith.maximumf %457, %458 : vector<2x144xf32>
    %460 = vector.broadcast %448 : f32 to vector<2x144xf32>
    %461 = arith.mulf %114, %460 : vector<2x144xf32>
    %462 = vector.broadcast %449 : f32 to vector<2x144xf32>
    %463 = arith.mulf %126, %462 : vector<2x144xf32>
    %464 = arith.addf %461, %463 : vector<2x144xf32>
    %465 = vector.broadcast %450 : f32 to vector<2x144xf32>
    %466 = arith.addf %464, %465 : vector<2x144xf32>
    %cst_147 = arith.constant 0.000000e+00 : f32
    %467 = vector.broadcast %cst_147 : f32 to vector<2x144xf32>
    %468 = arith.maximumf %466, %467 : vector<2x144xf32>
    %469 = arith.maximumf %459, %468 : vector<2x144xf32>
    %470 = vector.broadcast %448 : f32 to vector<2x144xf32>
    %471 = arith.mulf %117, %470 : vector<2x144xf32>
    %472 = vector.broadcast %449 : f32 to vector<2x144xf32>
    %473 = arith.mulf %129, %472 : vector<2x144xf32>
    %474 = arith.addf %471, %473 : vector<2x144xf32>
    %475 = vector.broadcast %450 : f32 to vector<2x144xf32>
    %476 = arith.addf %474, %475 : vector<2x144xf32>
    %cst_148 = arith.constant 0.000000e+00 : f32
    %477 = vector.broadcast %cst_148 : f32 to vector<2x144xf32>
    %478 = arith.maximumf %476, %477 : vector<2x144xf32>
    %479 = arith.maximumf %469, %478 : vector<2x144xf32>
    %480 = vector.broadcast %448 : f32 to vector<2x144xf32>
    %481 = arith.mulf %120, %480 : vector<2x144xf32>
    %482 = vector.broadcast %449 : f32 to vector<2x144xf32>
    %483 = arith.mulf %132, %482 : vector<2x144xf32>
    %484 = arith.addf %481, %483 : vector<2x144xf32>
    %485 = vector.broadcast %450 : f32 to vector<2x144xf32>
    %486 = arith.addf %484, %485 : vector<2x144xf32>
    %cst_149 = arith.constant 0.000000e+00 : f32
    %487 = vector.broadcast %cst_149 : f32 to vector<2x144xf32>
    %488 = arith.maximumf %486, %487 : vector<2x144xf32>
    %489 = arith.maximumf %479, %488 : vector<2x144xf32>
    %c1904 = arith.constant 1904 : index
    %c0_150 = arith.constant 0 : index
    %490 = vector.load %arg19[%c1904, %c0_150] : memref<2048x128xf32, #tpu.memory_space<vmem>>, vector<144x128xf32>
    %cst_151 = arith.constant dense<0.000000e+00> : vector<2x128xf32>
    %491 = tpu.matmul %489, %490, %cst_151 {dimension_numbers = #tpu.dot_dimension_numbers<[1], [0], [0], [1], [0, 0, 1, 1], [], []>} : vector<2x144xf32>, vector<144x128xf32>, vector<2x128xf32> -> vector<2x128xf32>
    %492 = arith.addf %447, %491 : vector<2x128xf32>
    %c0_152 = arith.constant 0 : index
    %c0_153 = arith.constant 0 : index
    %493 = vector.load %arg20[%c0_152, %c0_153] : memref<1x128xf32, #tpu.memory_space<vmem>>, vector<1x128xf32>
    %494 = vector.broadcast %493 : vector<1x128xf32> to vector<2x128xf32>
    %495 = arith.addf %492, %494 : vector<2x128xf32>
    %cst_154 = arith.constant 0.000000e+00 : f32
    %496 = vector.broadcast %cst_154 : f32 to vector<2x128xf32>
    %497 = arith.subf %496, %495 : vector<2x128xf32>
    %498 = math.exp %497 : vector<2x128xf32>
    %cst_155 = arith.constant 1.000000e+00 : f32
    %499 = vector.broadcast %cst_155 : f32 to vector<2x128xf32>
    %500 = arith.addf %499, %498 : vector<2x128xf32>
    %cst_156 = arith.constant 1.000000e+00 : f32
    %501 = vector.broadcast %cst_156 : f32 to vector<2x128xf32>
    %502 = arith.divf %501, %500 : vector<2x128xf32>
    %c0_157 = arith.constant 0 : index
    %c0_158 = arith.constant 0 : index
    %503 = vector.load %arg21[%c0_157, %c0_158] : memref<128x16xf32, #tpu.memory_space<vmem>>, vector<128x16xf32>
    %cst_159 = arith.constant dense<0.000000e+00> : vector<2x16xf32>
    %504 = tpu.matmul %502, %503, %cst_159 {dimension_numbers = #tpu.dot_dimension_numbers<[1], [0], [0], [1], [0, 0, 1, 1], [], []>} : vector<2x128xf32>, vector<128x16xf32>, vector<2x16xf32> -> vector<2x16xf32>
    %c0_160 = arith.constant 0 : index
    %c0_161 = arith.constant 0 : index
    %505 = vector.load %arg22[%c0_160, %c0_161] : memref<1x16xf32, #tpu.memory_space<vmem>>, vector<1x16xf32>
    %506 = vector.broadcast %505 : vector<1x16xf32> to vector<2x16xf32>
    %507 = arith.addf %504, %506 : vector<2x16xf32>
    %cst_162 = arith.constant dense<0xFF800000> : vector<2xf32>
    %508 = vector.multi_reduction <maximumf>, %507, %cst_162 [1] : vector<2x16xf32> to vector<2xf32>
    %509 = vector.shape_cast %508 : vector<2xf32> to vector<2x1xf32>
    %510 = vector.broadcast %509 : vector<2x1xf32> to vector<2x16xf32>
    %511 = arith.subf %507, %510 : vector<2x16xf32>
    %512 = math.exp %511 : vector<2x16xf32>
    %cst_163 = arith.constant dense<0.000000e+00> : vector<2xf32>
    %513 = vector.multi_reduction <add>, %512, %cst_163 [1] : vector<2x16xf32> to vector<2xf32>
    %514 = vector.shape_cast %513 : vector<2xf32> to vector<2x1xf32>
    %515 = tpu.reciprocal %514 {approx = true} : vector<2x1xf32> -> vector<2x1xf32>
    %516 = vector.broadcast %515 : vector<2x1xf32> to vector<2x16xf32>
    %517 = arith.mulf %512, %516 : vector<2x16xf32>
    %c0_164 = arith.constant 0 : index
    %c0_165 = arith.constant 0 : index
    %518 = vector.load %arg23[%c0_164, %c0_165] : memref<16x2xf32, #tpu.memory_space<vmem>>, vector<16x2xf32>
    %cst_166 = arith.constant dense<0.000000e+00> : vector<2x2xf32>
    %519 = tpu.matmul %517, %518, %cst_166 {dimension_numbers = #tpu.dot_dimension_numbers<[1], [0], [0], [1], [0, 0, 1, 1], [], []>} : vector<2x16xf32>, vector<16x2xf32>, vector<2x2xf32> -> vector<2x2xf32>
    %c0_167 = arith.constant 0 : index
    %c0_168 = arith.constant 0 : index
    %520 = vector.load %arg24[%c0_167, %c0_168] : memref<2x2xf32, #tpu.memory_space<vmem>>, vector<2x2xf32>
    tpu.vector_store %arg24[%c0_167, %c0_168], %519 {strides = array<i32>} : memref<2x2xf32, #tpu.memory_space<vmem>>, vector<2x2xf32>,
    return
  }
}

</mosaic_0001>

<bundles_post_ra>
// kernel: forward.1
= control target key start
LH: loop header
LB: loop body
LE: loop exit
PB: predicated region body
PF: predicated region fallthrough
CT: control target
= control target key end

     0   :  { %s13493_s0 = inlined_call_operand.vmem [shape: f32[2,32], index: 0, kind: input, shape index: {}]   ;;  %s13494_s1 = inlined_call_operand.vmem [shape: f32[2,32], index: 1, kind: input, shape index: {}]   ;;  %s13495_s2 = inlined_call_operand.vmem [shape: f32[2,144], index: 2, kind: input, shape index: {}]   ;;  %s13496_s3 = inlined_call_operand.vmem [shape: f32[2,576], index: 3, kind: input, shape index: {}]   ;;  %s13497_s4 = inlined_call_operand.vmem [shape: f32[2,576], index: 4, kind: input, shape index: {}]   ;;  %s13498_s5 = inlined_call_operand.vmem [shape: f32[32,256], index: 5, kind: input, shape index: {}]   ;;  %s13499_s6 = inlined_call_operand.vmem [shape: f32[32,256], index: 6, kind: input, shape index: {}]   ;;  %s13500_s7 = inlined_call_operand.vmem [shape: f32[1,256], index: 7, kind: input, shape index: {}]   ;;  %s13501_s8 = inlined_call_operand.vmem [shape: f32[32,512], index: 8, kind: input, shape index: {}]   ;;  %s13502_s9 = inlined_call_operand.vmem [shape: f32[32,512], index: 9, kind: input, shape index: {}]   ;;  %s13503_s10 = inlined_call_operand.vmem [shape: f32[1,512], index: 10, kind: input, shape index: {}]   ;;  %s13504_s11 = inlined_call_operand.vmem [shape: f32[144,512], index: 11, kind: input, shape index: {}]   ;;  %s13505_s12 = inlined_call_operand.vmem [shape: f32[144,512], index: 12, kind: input, shape index: {}]   ;;  %s13506_s13 = inlined_call_operand.vmem [shape: f32[1,512], index: 13, kind: input, shape index: {}]   ;;  %s13507_s14 = inlined_call_operand.vmem [shape: f32[512,128], index: 14, kind: input, shape index: {}]   ;;  %s13508_s15 = inlined_call_operand.vmem [shape: f32[512,128], index: 15, kind: input, shape index: {}]   ;;  %s13509_s16 = inlined_call_operand.vmem [shape: f32[1,128], index: 16, kind: input, shape index: {}]   ;;  %s13510_s17 = inlined_call_operand.vmem [shape: f32[4,576,144], index: 17, kind: input, shape index: {}]   ;;  %s13511_s18 = inlined_call_operand.vmem [shape: f32[24], index: 18, kind: input, shape index: {}]   ;;  %s13512_s19 = inlined_call_operand.vmem [shape: f32[2048,128], index: 19, kind: input, shape index: {}]   ;;  %s13513_s20 = inlined_call_operand.vmem [shape: f32[1,128], index: 20, kind: input, shape index: {}]   ;;  %s13514_s21 = inlined_call_operand.vmem [shape: f32[128,16], index: 21, kind: input, shape index: {}]   ;;  %s13515_s22 = inlined_call_operand.vmem [shape: f32[1,16], index: 22, kind: input, shape index: {}]   ;;  %s13516_s23 = inlined_call_operand.vmem [shape: f32[16,2], index: 23, kind: input, shape index: {}]   ;;  %s13517_s24 = inlined_call_operand.hbm [shape: f32[2,2], index: 24, kind: output, shape index: {}]  }
   0x1   :  { %13526 = sst [smem:[#allocation25_spill]] %s13493_s0 }
   0x2   :  { %13527 = sst [smem:[#allocation26_spill]] %s13494_s1 }
   0x3   :  { %13528 = sst [smem:[#allocation27_spill]] %s13495_s2 }
   0x4   :  { %13529 = sst [smem:[#allocation28_spill]] %s13496_s3 }
   0x5   :  { %13530 = sst [smem:[#allocation29_spill]] %s13497_s4 }
   0x6   :  { %13531 = sst [smem:[#allocation30_spill]] %s13498_s5 }
   0x7   :  { %13532 = sst [smem:[#allocation31_spill]] %s13499_s6 }
   0x8   :  { %13533 = sst [smem:[#allocation32_spill]] %s13500_s7 }
   0x9   :  { %13534 = sst [smem:[#allocation33_spill]] %s13501_s8 }
   0xa   :  { %29 = vsyncpa [#allocation4], 0 }
   0xb   :  { %30 = vsyncpa [#allocation3], 0  ;;  %s72_s27 = sshll.u32 %s13511_s18, 4  ;;  %s6416_s28 = smov [#allocation2]   ;;  %s73_s27 = int_to_ptr.vmem [resolvable:$true] %s72_s27 }
   0xc   :  { %75 = dma.vmem_to_smem %s73_s27, 16, %s6416_s28, [#allocation4]  }
   0xd   :  { %6412 = dma.done.wait [#allocation4], 16  }
   0xe   :  { %6413 = vsyncadd [#allocation4], 4294967280 }
   0xf   :  { %90 = sfence }
  0x10   :  { %s13535_s29 = sld [smem:[#allocation30_spill]]  ;;  %vm106_vm0 = vcmask 261120   ;;  %v399_v18 = vld [vmem:[%s13502_s9 + $0x68] sm:$0xff]  ;;  %v398_v22 = vld [vmem:[%s13502_s9 + $0x60] sm:$0xff]  ;;  %v702_v40 = vld [vmem:[%s13504_s11 + $0x1f0] sm:$0xff]  ;;  %vm726_vm1 = vcmask 130048  }
  0x11   :  { %s13536_s25 = sld [smem:[#allocation33_spill]]  ;;  %v395_v23 = vld [vmem:[%s13502_s9 + $0x48] sm:$0xff]  ;;  %v394_v26 = vld [vmem:[%s13502_s9 + $0x40] sm:$0xff]  ;;  %v698_v44 = vld [vmem:[%s13504_s11 + $0x1d0] sm:$0xff] }
  0x12   :  { %s13537_s30 = sld [smem:[#allocation25_spill]]  ;;  %v391_v27 = vld [vmem:[%s13502_s9 + $0x28] sm:$0xff]  ;;  %v390_v30 = vld [vmem:[%s13502_s9 + $0x20] sm:$0xff]  ;;  %v400_v48 = vld [vmem:[%s13502_s9 + $0x70] sm:$0xff] }
  0x13   :  { %s13538_s4 = sld [smem:[#allocation31_spill]]  ;;  %v387_v31 = vld [vmem:[%s13502_s9 + $0x8] sm:$0xff]  ;;  %v708_v34 = vld [vmem:[%s13504_s11 + $0x220] sm:$0xff]  ;;  %v694_v49 = vld [vmem:[%s13504_s11 + $0x1b0] sm:$0xff] }
  0x14   :  { %s13539_s2 = sld [smem:[#allocation26_spill]]  ;;  %v386_v35 = vld [vmem:[%s13502_s9] sm:$0xff]  ;;  %v396_v52 = vld [vmem:[%s13502_s9 + $0x50] sm:$0xff]  ;;  %v401_v55 = vld [vmem:[%s13502_s9 + $0x78] sm:$0xff] }
  0x15   :  { %v704_v38 = vld [vmem:[%s13504_s11 + $0x200] sm:$0xff]  ;;  %v690_v53 = vld [vmem:[%s13504_s11 + $0x190] sm:$0xff]  ;;  %s13540_s26 = sld [smem:[#allocation27_spill]]  ;;  %v397_v59 = vld [vmem:[%s13502_s9 + $0x58] sm:$0xff] }
  0x16   :  { %v99_v0 = vld [vmem:[%s13535_s29 + $0x30] sm:$0xff]  ;;  %v100_v1 = vld [vmem:[%s13535_s29 + $0x38] sm:$0xff]  ;;  %v97_v4 = vld [vmem:[%s13535_s29 + $0x20] sm:$0xff]  ;;  %s13594_s6 = sld [smem:[#allocation28_spill]] }
  0x17   :  { %v291_v2 = vld [vmem:[%s13536_s25 + $0x68] sm:$0xff]  ;;  %122 = vmatpush.msra.mxu3 %v99_v0  ;;  %142 = vmatpush.msra.mxu2 %v100_v1  ;;  %v290_v3 = vld [vmem:[%s13536_s25 + $0x60] sm:$0xff]  ;;  %v95_v8 = vld [vmem:[%s13535_s29 + $0x10] sm:$0xff]  ;;  %s11572_s28 = sld [smem:[#allocation2 + $0xc]] }
  0x18   :  { %v98_v5 = vld [vmem:[%s13535_s29 + $0x28] sm:$0xff]  ;;  %338 = vmatpush.msra.mxu1 %v291_v2  ;;  %318 = vmatpush.msra.mxu0 %v290_v3  ;;  %v286_v7 = vld [vmem:[%s13536_s25 + $0x40] sm:$0xff]  ;;  %v96_v9 = vld [vmem:[%s13535_s29 + $0x18] sm:$0xff]  ;;  %s11580_s7 = sld [smem:[#allocation2 + $0xd]] }
  0x19   :  { %v287_v6 = vld [vmem:[%s13536_s25 + $0x48] sm:$0xff]  ;;  %123 = vmatpush.msra.mxu3 %v97_v4  ;;  %143 = vmatpush.msra.mxu2 %v98_v5  ;;  %v282_v11 = vld [vmem:[%s13536_s25 + $0x20] sm:$0xff]  ;;  %v156_v17 = vld [vmem:[%s13538_s4 + $0x30] sm:$0xff]  ;;  %s11592_s18 = sld [smem:[#allocation2 + $0xf]] }
  0x1a   :  { %v283_v10 = vld [vmem:[%s13536_s25 + $0x28] sm:$0xff]  ;;  %339 = vmatpush.msra.mxu1 %v287_v6  ;;  %319 = vmatpush.msra.mxu0 %v286_v7  ;;  %v93_v12 = vld [vmem:[%s13535_s29] sm:$0xff]  ;;  %v157_v19 = vld [vmem:[%s13538_s4 + $0x38] sm:$0xff]  ;;  %s11825_s3 = sld [smem:[#allocation2 + $0x3]] }
  0x1b   :  { %v94_v13 = vld [vmem:[%s13535_s29 + $0x8] sm:$0xff]  ;;  %124 = vmatpush.msra.mxu3 %v95_v8  ;;  %144 = vmatpush.msra.mxu2 %v96_v9  ;;  %v91_v15 = vld [vmem:[%s13537_s30] sm:$0x3]  ;;  %v152_v25 = vld [vmem:[%s13538_s4 + $0x10] sm:$0xff]  ;;  %s11787_s29 = sld [smem:[#allocation2]] }
  0x1c   :  { %v279_v14 = vld [vmem:[%s13536_s25 + $0x8] sm:$0xff]  ;;  %340 = vmatpush.msra.mxu1 %v283_v10  ;;  %320 = vmatpush.msra.mxu0 %v282_v11  ;;  %v278_v16 = vld [vmem:[%s13536_s25] sm:$0xff]  ;;  %v153_v28 = vld [vmem:[%s13538_s4 + $0x18] sm:$0xff]  ;;  %s11841_s0 = sld [smem:[#allocation2 + $0x5]] }
  0x1d   :  { %125 = vmatpush.msra.mxu3 %v93_v12  ;;  %145 = vmatpush.msra.mxu2 %v94_v13  ;;  %v6610_v20 = vld [vmem:[%s13539_s2] sm:$0x3]  ;;  %v155_v24 = vld [vmem:[%s13538_s4 + $0x28] sm:$0xff]  ;;  %v292_v33 = vld [vmem:[%s13536_s25 + $0x70] sm:$0xff]  ;;  %s11803_s2 = sld [smem:[#allocation2 + $0x8]] }
  0x1e   :  { %341 = vmatpush.msra.mxu1 %v279_v14  ;;  %5199 = vmatmul.msk.f32.vlgmr.msra.gmra.mxu3 %vm106_vm0, %v91_v15  ;;  %v154_v21 = vld [vmem:[%s13538_s4 + $0x20] sm:$0xff]  ;;  %v151_v32 = vld [vmem:[%s13538_s4 + $0x8] sm:$0xff]  ;;  %v288_v36 = vld [vmem:[%s13536_s25 + $0x50] sm:$0xff]  ;;  %s12063_s5 = sld [smem:[#allocation2 + $0x10]] }
  0x1f   :  { %5200 = vmatmul.msk.f32.vlgmr.msra.gmra.mxu2 %vm106_vm0, %v91_v15  ;;  %321 = vmatpush.msra.mxu0 %v278_v16  ;;  %v150_v29 = vld [vmem:[%s13538_s4] sm:$0xff]  ;;  %v293_v37 = vld [vmem:[%s13536_s25 + $0x78] sm:$0xff]  ;;  %v284_v41 = vld [vmem:[%s13536_s25 + $0x30] sm:$0xff]  ;;  %s12071_s27 = sld [smem:[#allocation2 + $0x11]] }
  0x20   :  { %170 = vmatpush.msrb.mxu2 %v156_v17  ;;  %434 = vmatpush.msrb.mxu1 %v399_v18  ;;  %v700_v39 = vld [vmem:[%s13504_s11 + $0x1e0] sm:$0xff]  ;;  %v289_v42 = vld [vmem:[%s13536_s25 + $0x58] sm:$0xff]  ;;  %v280_v45 = vld [vmem:[%s13536_s25 + $0x10] sm:$0xff]  ;;  %s12101_s1 = sld [smem:[#allocation2 + $0x15]] }
  0x21   :  { %190 = vmatpush.msrb.mxu3 %v157_v19  ;;  %5203 = vmatmul.msk.f32.vlgmr.msra.gmra.mxu0 %vm106_vm0, %v6610_v20  ;;  %v696_v43 = vld [vmem:[%s13504_s11 + $0x1c0] sm:$0xff]  ;;  %v285_v46 = vld [vmem:[%s13536_s25 + $0x38] sm:$0xff]  ;;  %v392_v57 = vld [vmem:[%s13502_s9 + $0x30] sm:$0xff]  ;;  %s12146_s4 = sld [smem:[#allocation2 + $0x17]] }
  0x22   :  { %171 = vmatpush.msrb.mxu2 %v154_v21  ;;  %5204 = vmatmul.msk.f32.vlgmr.msra.gmra.mxu1 %vm106_vm0, %v6610_v20  ;;  %v692_v47 = vld [vmem:[%s13504_s11 + $0x1a0] sm:$0xff]  ;;  %v281_v50 = vld [vmem:[%s13536_s25 + $0x18] sm:$0xff]  ;;  %v686_v58 = vld [vmem:[%s13504_s11 + $0x170] sm:$0xff]  ;;  %s11529_s25 = sld [smem:[#allocation2 + $0xb]] }
  0x23   :  { %414 = vmatpush.msrb.mxu0 %v398_v22  ;;  %435 = vmatpush.msrb.mxu1 %v395_v23  ;;  %v688_v51 = vld [vmem:[%s13504_s11 + $0x180] sm:$0xff]  ;;  %v388_v61 = vld [vmem:[%s13502_s9 + $0x10] sm:$0xff]  ;;  %v393_v63 = vld [vmem:[%s13502_s9 + $0x38] sm:$0xff] }
  0x24   :  { %191 = vmatpush.msrb.mxu3 %v155_v24  ;;  %172 = vmatpush.msrb.mxu2 %v152_v25  ;;  %v638_v54 = vld [vmem:[%s13540_s26] sm:$0xf]  ;;  %v682_v62 = vld [vmem:[%s13504_s11 + $0x150] sm:$0xff]  ;;  %v701_v1 = vld [vmem:[%s13504_s11 + $0x1e8] sm:$0xff]  ;;  %s11564_s26 = sld [smem:[#allocation2 + $0xe]] }
  0x25   :  { %415 = vmatpush.msrb.mxu0 %v394_v26  ;;  %436 = vmatpush.msrb.mxu1 %v391_v27  ;;  %v684_v56 = vld [vmem:[%s13504_s11 + $0x160] sm:$0xff]  ;;  %722 = vst [vmem:[#allocation1] ss:$4 sm:$0xff] %v638_v54  ;;  %v678_v2 = vld [vmem:[%s13504_s11 + $0x130] sm:$0xff]  ;;  %v389_v3 = vld [vmem:[%s13502_s9 + $0x18] sm:$0xff]  ;;  %s13541_s9 = sld [smem:[#allocation32_spill]] }
  0x26   :  { %192 = vmatpush.msrb.mxu3 %v153_v28  ;;  %173 = vmatpush.msrb.mxu2 %v150_v29  ;;  %v680_v60 = vld [vmem:[%s13504_s11 + $0x140] sm:$0xff]  ;;  %v697_v5 = vld [vmem:[%s13504_s11 + $0x1c8] sm:$0xff]  ;;  %v674_v8 = vld [vmem:[%s13504_s11 + $0x110] sm:$0xff] }
  0x27   :  { %416 = vmatpush.msrb.mxu0 %v390_v30  ;;  %437 = vmatpush.msrb.mxu1 %v387_v31  ;;  %v676_v0 = vld [vmem:[%s13504_s11 + $0x120] sm:$0xff]  ;;  %v693_v10 = vld [vmem:[%s13504_s11 + $0x1a8] sm:$0xff]  ;;  %v670_v12 = vld [vmem:[%s13504_s11 + $0xf0] sm:$0xff] }
  0x28   :  { %193 = vmatpush.msrb.mxu3 %v151_v32  ;;  %358 = vmatpush.msra.mxu2 %v292_v33  ;;  %v672_v4 = vld [vmem:[%s13504_s11 + $0x100] sm:$0xff]  ;;  %v709_v11 = vld [vmem:[%s13504_s11 + $0x228] sm:$0xff]  ;;  %v666_v16 = vld [vmem:[%s13504_s11 + $0xd0] sm:$0xff] }
  0x29   :  { %763 = vmatpush.msra.mxu1 %v708_v34  ;;  %5201 = vmatmul.msk.f32.vlgmr.msrb.gmra.mxu2 %vm106_vm0, %v91_v15  ;;  %v668_v9 = vld [vmem:[%s13504_s11 + $0xe0] sm:$0xff]  ;;  %v689_v14 = vld [vmem:[%s13504_s11 + $0x188] sm:$0xff]  ;;  %v710_v19 = vld [vmem:[%s13504_s11 + $0x230] sm:$0xff] }
  0x2a   :  { %5202 = vmatmul.msk.f32.vlgmr.msrb.gmra.mxu3 %vm106_vm0, %v91_v15  ;;  %417 = vmatpush.msrb.mxu0 %v386_v35  ;;  %v664_v13 = vld [vmem:[%s13504_s11 + $0xc0] sm:$0xff]  ;;  %v705_v15 = vld [vmem:[%s13504_s11 + $0x208] sm:$0xff]  ;;  %v706_v23 = vld [vmem:[%s13504_s11 + $0x210] sm:$0xff] }
  0x2b   :  { %359 = vmatpush.msra.mxu2 %v288_v36  ;;  %378 = vmatpush.msra.mxu3 %v293_v37  ;;  %v660_v17 = vld [vmem:[%s13504_s11 + $0xa0] sm:$0xff]  ;;  %v685_v18 = vld [vmem:[%s13504_s11 + $0x168] sm:$0xff]  ;;  %v658_v24 = vld [vmem:[%s13504_s11 + $0x90] sm:$0xff] }
  0x2c   :  { %5207 = vmatmul.msk.f32.vlgmr.msrb.gmra.mxu0 %vm106_vm0, %v6610_v20  ;;  %764 = vmatpush.msra.mxu1 %v704_v38  ;;  %v6774_v6 = vld.sshfl [vmem:[#allocation1 + $0x8] sm:$0xff pattern:$0x73625140]  ;;  %v6776_v7 = vld.sshfl [vmem:[#allocation1] sm:$0xff pattern:$0x73625140] }
  0x2d   :  { %729 = vmatpush.msra.mxu0 %v700_v39  ;;  %5208 = vmatmul.msk.f32.vlgmr.msrb.gmra.mxu1 %vm106_vm0, %v6610_v20  ;;  %961 = vst [vmem:[#allocation1] ss:$4 sm:$0xff] %v638_v54  ;;  %v656_v21 = vld [vmem:[%s13504_s11 + $0x80] sm:$0xff]  ;;  %v681_v22 = vld [vmem:[%s13504_s11 + $0x148] sm:$0xff]  ;;  %v703_v26 = vld [vmem:[%s13504_s11 + $0x1f8] sm:$0xff] }
  0x2e   :  { %809 = vmatpush.msrb.mxu1 %v702_v40  ;;  %360 = vmatpush.msra.mxu2 %v284_v41  ;;  %v652_v25 = vld [vmem:[%s13504_s11 + $0x60] sm:$0xff]  ;;  %v677_v27 = vld [vmem:[%s13504_s11 + $0x128] sm:$0xff]  ;;  %v654_v28 = vld [vmem:[%s13504_s11 + $0x70] sm:$0xff] }
  0x2f   :  { %379 = vmatpush.msra.mxu3 %v289_v42  ;;  %730 = vmatpush.msra.mxu0 %v696_v43  ;;  %v648_v29 = vld [vmem:[%s13504_s11 + $0x40] sm:$0xff]  ;;  %v699_v30 = vld [vmem:[%s13504_s11 + $0x1d8] sm:$0xff]  ;;  %v673_v31 = vld [vmem:[%s13504_s11 + $0x108] sm:$0xff] }
  0x30   :  { %810 = vmatpush.msrb.mxu1 %v698_v44  ;;  %361 = vmatpush.msra.mxu2 %v280_v45  ;;  %v650_v32 = vld [vmem:[%s13504_s11 + $0x50] sm:$0xff]  ;;  %v644_v33 = vld [vmem:[%s13504_s11 + $0x20] sm:$0xff]  ;;  %v695_v34 = vld [vmem:[%s13504_s11 + $0x1b8] sm:$0xff] }
  0x31   :  { %380 = vmatpush.msra.mxu3 %v285_v46  ;;  %731 = vmatpush.msra.mxu0 %v692_v47  ;;  %v669_v35 = vld [vmem:[%s13504_s11 + $0xe8] sm:$0xff]  ;;  %v646_v36 = vld [vmem:[%s13504_s11 + $0x30] sm:$0xff]  ;;  %v640_v37 = vld [vmem:[%s13504_s11] sm:$0xff] }
  0x32   :  { %454 = vmatpush.msrb.mxu2 %v400_v48  ;;  %811 = vmatpush.msrb.mxu1 %v694_v49  ;;  %v691_v38 = vld [vmem:[%s13504_s11 + $0x198] sm:$0xff]  ;;  %v665_v39 = vld [vmem:[%s13504_s11 + $0xc8] sm:$0xff]  ;;  %v642_v40 = vld [vmem:[%s13504_s11 + $0x10] sm:$0xff] }
  0x33   :  { %381 = vmatpush.msra.mxu3 %v281_v50  ;;  %732 = vmatpush.msra.mxu0 %v688_v51  ;;  %v687_v41 = vld [vmem:[%s13504_s11 + $0x178] sm:$0xff]  ;;  %v661_v42 = vld [vmem:[%s13504_s11 + $0xa8] sm:$0xff] }
  0x34   :  { %5205 = vmatmul.msk.f32.vlgmr.msra.gmra.mxu2 %vm106_vm0, %v6610_v20  ;;  %5206 = vmatmul.msk.f32.vlgmr.msra.gmra.mxu3 %vm106_vm0, %v6610_v20  ;;  %v950_v43 = vld [vmem:[%s13505_s12 + $0x1e8] sm:$0xff]  ;;  %v683_v44 = vld [vmem:[%s13504_s11 + $0x158] sm:$0xff] }
  0x35   :  { %455 = vmatpush.msrb.mxu2 %v396_v52  ;;  %812 = vmatpush.msrb.mxu1 %v690_v53  ;;  %v711_v45 = vld [vmem:[%s13504_s11 + $0x238] sm:$0xff]  ;;  %v657_v46 = vld [vmem:[%s13504_s11 + $0x88] sm:$0xff]  ;;  %v957_v53 = vld [vmem:[%s13505_s12 + $0x220] sm:$0xff] }
  0x36   :  { %474 = vmatpush.msrb.mxu3 %v401_v55  ;;  %733 = vmatpush.msra.mxu0 %v684_v56  ;;  %v946_v47 = vld [vmem:[%s13505_s12 + $0x1c8] sm:$0xff]  ;;  %v679_v48 = vld [vmem:[%s13504_s11 + $0x138] sm:$0xff] }
  0x37   :  { %456 = vmatpush.msrb.mxu2 %v392_v57  ;;  %813 = vmatpush.msrb.mxu1 %v686_v58  ;;  %v707_v49 = vld [vmem:[%s13504_s11 + $0x218] sm:$0xff]  ;;  %v653_v50 = vld [vmem:[%s13504_s11 + $0x68] sm:$0xff] }
  0x38   :  { %475 = vmatpush.msrb.mxu3 %v397_v59  ;;  %734 = vmatpush.msra.mxu0 %v680_v60  ;;  %v942_v51 = vld [vmem:[%s13505_s12 + $0x1a8] sm:$0xff]  ;;  %v675_v52 = vld [vmem:[%s13504_s11 + $0x118] sm:$0xff] }
  0x39   :  { %457 = vmatpush.msrb.mxu2 %v388_v61  ;;  %814 = vmatpush.msrb.mxu1 %v682_v62  ;;  %v649_v54 = vld [vmem:[%s13504_s11 + $0x48] sm:$0xff]  ;;  %v671_v56 = vld [vmem:[%s13504_s11 + $0xf8] sm:$0xff] }
  0x3a   :  { %476 = vmatpush.msrb.mxu3 %v393_v63  ;;  %735 = vmatpush.msra.mxu0 %v676_v0  ;;  %v938_v55 = vld [vmem:[%s13505_s12 + $0x188] sm:$0xff]  ;;  %v667_v59 = vld [vmem:[%s13504_s11 + $0xd8] sm:$0xff]  ;;  %v949_v63 = vld [vmem:[%s13505_s12 + $0x1e0] sm:$0xff] }
  0x3b   :  { %769 = vmatpush.msra.mxu2 %v701_v1  ;;  %815 = vmatpush.msrb.mxu1 %v678_v2  ;;  %v645_v57 = vld [vmem:[%s13504_s11 + $0x28] sm:$0xff]  ;;  %v663_v62 = vld [vmem:[%s13504_s11 + $0xb8] sm:$0xff]  ;;  %v953_v1 = vld [vmem:[%s13505_s12 + $0x200] sm:$0xff] }
  0x3c   :  { %477 = vmatpush.msrb.mxu3 %v389_v3  ;;  %736 = vmatpush.msra.mxu0 %v672_v4  ;;  %v934_v58 = vld [vmem:[%s13505_s12 + $0x168] sm:$0xff]  ;;  %v659_v2 = vld [vmem:[%s13504_s11 + $0x98] sm:$0xff]  ;;  %v945_v3 = vld [vmem:[%s13505_s12 + $0x1c0] sm:$0xff] }
  0x3d   :  { %770 = vmatpush.msra.mxu2 %v697_v5  ;;  %5210 = vmatmul.msk.f32.vlgmr.msrb.gmra.mxu3 %vm106_vm0, %v6610_v20  ;;  %v641_v60 = vld [vmem:[%s13504_s11 + $0x8] sm:$0xff] }
  0x3e   :  { %5209 = vmatmul.msk.f32.vlgmr.msrb.gmra.mxu2 %vm106_vm0, %v6610_v20  ;;  %816 = vmatpush.msrb.mxu1 %v674_v8  ;;  %v662_v20 = vld [vmem:[%s13504_s11 + $0xb0] sm:$0xff]  ;;  %v930_v61 = vld [vmem:[%s13505_s12 + $0x148] sm:$0xff]  ;;  %v941_v8 = vld [vmem:[%s13505_s12 + $0x1a0] sm:$0xff] }
  0x3f   :  { %737 = vmatpush.msra.mxu0 %v668_v9  ;;  %771 = vmatpush.msra.mxu2 %v693_v10  ;;  %v926_v0 = vld [vmem:[%s13505_s12 + $0x128] sm:$0xff] }
  0x40   :  { %803 = vmatpush.msra.mxu3 %v709_v11  ;;  %817 = vmatpush.msrb.mxu1 %v670_v12  ;;  %v922_v4 = vld [vmem:[%s13505_s12 + $0x108] sm:$0xff]  ;;  %v651_v11 = vld [vmem:[%s13504_s11 + $0x58] sm:$0xff]  ;;  %v937_v12 = vld [vmem:[%s13505_s12 + $0x180] sm:$0xff] }
  0x41   :  { %738 = vmatpush.msra.mxu0 %v664_v13  ;;  %772 = vmatpush.msra.mxu2 %v689_v14  ;;  %v6976_v5 = vld.sshfl [vmem:[#allocation1 + $0x8] sm:$0xff pattern:$0x73625140] }
  0x42   :  { %804 = vmatpush.msra.mxu3 %v705_v15  ;;  %818 = vmatpush.msrb.mxu1 %v666_v16  ;;  %v918_v9 = vld [vmem:[%s13505_s12 + $0xe8] sm:$0xff]  ;;  %v647_v15 = vld [vmem:[%s13504_s11 + $0x38] sm:$0xff]  ;;  %v933_v16 = vld [vmem:[%s13505_s12 + $0x160] sm:$0xff] }
  0x43   :  { %739 = vmatpush.msra.mxu0 %v660_v17  ;;  %773 = vmatpush.msra.mxu2 %v685_v18  ;;  %v958_v10 = vld [vmem:[%s13505_s12 + $0x228] sm:$0xff]  ;;  %v959_v18 = vld [vmem:[%s13505_s12 + $0x230] sm:$0xff] }
  0x44   :  { %843 = vmatpush.msrb.mxu3 %v710_v19  ;;  %819 = vmatpush.msrb.mxu1 %v662_v20  ;;  %v914_v13 = vld [vmem:[%s13505_s12 + $0xc8] sm:$0xff]  ;;  %v643_v19 = vld [vmem:[%s13504_s11 + $0x18] sm:$0xff]  ;;  %v929_v20 = vld [vmem:[%s13505_s12 + $0x140] sm:$0xff] }
  0x45   :  { %740 = vmatpush.msra.mxu0 %v656_v21  ;;  %774 = vmatpush.msra.mxu2 %v681_v22  ;;  %v954_v14 = vld [vmem:[%s13505_s12 + $0x208] sm:$0xff]  ;;  %v951_v22 = vld [vmem:[%s13505_s12 + $0x1f0] sm:$0xff] }
  0x46   :  { %844 = vmatpush.msrb.mxu3 %v706_v23  ;;  %820 = vmatpush.msrb.mxu1 %v658_v24  ;;  %v910_v17 = vld [vmem:[%s13505_s12 + $0xa8] sm:$0xff]  ;;  %v955_v23 = vld [vmem:[%s13505_s12 + $0x210] sm:$0xff]  ;;  %v925_v24 = vld [vmem:[%s13505_s12 + $0x120] sm:$0xff] }
  0x47   :  { %5212 = vmatmul.msk.f32.vlgmr.msra.gmra.mxu3 %vm726_vm1, %v6774_v6  ;;  %741 = vmatpush.msra.mxu0 %v652_v25  ;;  %v906_v21 = vld [vmem:[%s13505_s12 + $0x88] sm:$0xff]  ;;  %v952_v25 = vld [vmem:[%s13505_s12 + $0x1f8] sm:$0xff] }
  0x48   :  { %849 = vmatpush.msra.mxu3 %v703_v26  ;;  %775 = vmatpush.msra.mxu2 %v677_v27  ;;  %v902_v26 = vld [vmem:[%s13505_s12 + $0x68] sm:$0xff]  ;;  %v947_v27 = vld [vmem:[%s13505_s12 + $0x1d0] sm:$0xff] }
  0x49   :  { %821 = vmatpush.msrb.mxu1 %v654_v28  ;;  %742 = vmatpush.msra.mxu0 %v648_v29  ;;  %v921_v28 = vld [vmem:[%s13505_s12 + $0x100] sm:$0xff]  ;;  %v898_v29 = vld [vmem:[%s13505_s12 + $0x48] sm:$0xff] }
  0x4a   :  { %850 = vmatpush.msra.mxu3 %v699_v30  ;;  %776 = vmatpush.msra.mxu2 %v673_v31  ;;  %v943_v30 = vld [vmem:[%s13505_s12 + $0x1b0] sm:$0xff]  ;;  %v917_v31 = vld [vmem:[%s13505_s12 + $0xe0] sm:$0xff] }
  0x4b   :  { %822 = vmatpush.msrb.mxu1 %v650_v32  ;;  %743 = vmatpush.msra.mxu0 %v644_v33  ;;  %v944_v32 = vld [vmem:[%s13505_s12 + $0x1b8] sm:$0xff]  ;;  %v894_v33 = vld [vmem:[%s13505_s12 + $0x28] sm:$0xff] }
  0x4c   :  { %851 = vmatpush.msra.mxu3 %v695_v34  ;;  %777 = vmatpush.msra.mxu2 %v669_v35  ;;  %v939_v34 = vld [vmem:[%s13505_s12 + $0x190] sm:$0xff]  ;;  %v913_v35 = vld [vmem:[%s13505_s12 + $0xc0] sm:$0xff] }
  0x4d   :  { %823 = vmatpush.msrb.mxu1 %v646_v36  ;;  %744 = vmatpush.msra.mxu0 %v640_v37  ;;  %v940_v36 = vld [vmem:[%s13505_s12 + $0x198] sm:$0xff]  ;;  %v890_v37 = vld [vmem:[%s13505_s12 + $0x8] sm:$0xff] }
  0x4e   :  { %852 = vmatpush.msra.mxu3 %v691_v38  ;;  %778 = vmatpush.msra.mxu2 %v665_v39  ;;  %v935_v38 = vld [vmem:[%s13505_s12 + $0x170] sm:$0xff]  ;;  %v909_v39 = vld [vmem:[%s13505_s12 + $0xa0] sm:$0xff] }
  0x4f   :  { %745 = vmatmul.f32.vlgmr.msra.gmra.mxu0 %v6776_v7  ;;  %824 = vmatpush.msrb.mxu1 %v642_v40  ;;  %v7085_v40 = vld.sshfl [vmem:[#allocation1] sm:$0xff pattern:$0x73625140] }
  0x50   :  { %853 = vmatpush.msra.mxu3 %v687_v41  ;;  %5211 = vmatmul.msk.f32.vlgmr.msra.gmra.mxu1 %vm726_vm1, %v6774_v6  ;;  %v936_v41 = vld [vmem:[%s13505_s12 + $0x178] sm:$0xff] }
  0x51   :  { %779 = vmatpush.msra.mxu2 %v661_v42  ;;  %1007 = vmatpush.msra.mxu1 %v950_v43  ;;  %v931_v42 = vld [vmem:[%s13505_s12 + $0x150] sm:$0xff]  ;;  %v905_v43 = vld [vmem:[%s13505_s12 + $0x80] sm:$0xff] }
  0x52   :  { %854 = vmatpush.msra.mxu3 %v683_v44  ;;  %883 = vmatpush.msrb.mxu0 %v711_v45  ;;  %v932_v44 = vld [vmem:[%s13505_s12 + $0x158] sm:$0xff]  ;;  %v927_v45 = vld [vmem:[%s13505_s12 + $0x130] sm:$0xff] }
  0x53   :  { %780 = vmatpush.msra.mxu2 %v657_v46  ;;  %1008 = vmatpush.msra.mxu1 %v946_v47  ;;  %v901_v46 = vld [vmem:[%s13505_s12 + $0x60] sm:$0xff]  ;;  %v928_v47 = vld [vmem:[%s13505_s12 + $0x138] sm:$0xff] }
  0x54   :  { %855 = vmatpush.msra.mxu3 %v679_v48  ;;  %884 = vmatpush.msrb.mxu0 %v707_v49  ;;  %v923_v48 = vld [vmem:[%s13505_s12 + $0x110] sm:$0xff]  ;;  %v897_v49 = vld [vmem:[%s13505_s12 + $0x40] sm:$0xff] }
  0x55   :  { %781 = vmatpush.msra.mxu2 %v653_v50  ;;  %1009 = vmatpush.msra.mxu1 %v942_v51  ;;  %v924_v50 = vld [vmem:[%s13505_s12 + $0x118] sm:$0xff]  ;;  %v919_v51 = vld [vmem:[%s13505_s12 + $0xf0] sm:$0xff] }
  0x56   :  { %856 = vmatpush.msra.mxu3 %v675_v52  ;;  %1001 = vmatpush.msra.mxu0 %v957_v53  ;;  %v893_v52 = vld [vmem:[%s13505_s12 + $0x20] sm:$0xff]  ;;  %v920_v53 = vld [vmem:[%s13505_s12 + $0xf8] sm:$0xff] }
  0x57   :  { %782 = vmatpush.msra.mxu2 %v649_v54  ;;  %1010 = vmatpush.msra.mxu1 %v938_v55  ;;  %v915_v54 = vld [vmem:[%s13505_s12 + $0xd0] sm:$0xff]  ;;  %v889_v55 = vld [vmem:[%s13505_s12] sm:$0xff] }
  0x58   :  { %857 = vmatpush.msra.mxu3 %v671_v56  ;;  %5214 = vmatmul.msk.f32.vlgmr.msrb.gmra.mxu0 %vm726_vm1, %v6774_v6  ;;  %v916_v56 = vld [vmem:[%s13505_s12 + $0xd8] sm:$0xff] }
  0x59   :  { %783 = vmatpush.msra.mxu2 %v645_v57  ;;  %1011 = vmatpush.msra.mxu1 %v934_v58  ;;  %v911_v57 = vld [vmem:[%s13505_s12 + $0xb0] sm:$0xff]  ;;  %v912_v58 = vld [vmem:[%s13505_s12 + $0xb8] sm:$0xff] }
  0x5a   :  { %5213 = vmatmul.msk.f32.vlgmr.msrb.gmra.mxu3 %vm726_vm1, %v6774_v6  ;;  %825 = vmatmul.f32.vlgmr.msrb.gmra.mxu1 %v6776_v7  ;;  %v655_v6 = vld [vmem:[%s13504_s11 + $0x78] sm:$0xff]  ;;  %s11795_s11 = sld [smem:[#allocation2 + $0x2]] }
  0x5b   :  { %858 = vmatpush.msra.mxu3 %v667_v59  ;;  %784 = vmatpush.msra.mxu2 %v641_v60  ;;  %v960_v59 = vld [vmem:[%s13505_s12 + $0x238] sm:$0xff]  ;;  %v907_v60 = vld [vmem:[%s13505_s12 + $0x90] sm:$0xff] }
  0x5c   :  { %1012 = vmatpush.msra.mxu1 %v930_v61  ;;  %785 = vmatmul.f32.vlgmr.msra.gmra.mxu2 %v6776_v7  ;;  %v908_v61 = vld [vmem:[%s13505_s12 + $0x98] sm:$0xff] }
  0x5d   :  { %859 = vmatpush.msra.mxu3 %v663_v62  ;;  %967 = vmatpush.msrb.mxu2 %v949_v63  ;;  %v956_v62 = vld [vmem:[%s13505_s12 + $0x218] sm:$0xff]  ;;  %v903_v63 = vld [vmem:[%s13505_s12 + $0x70] sm:$0xff] }
  0x5e   :  { %1013 = vmatpush.msra.mxu1 %v926_v0  ;;  %1002 = vmatpush.msra.mxu0 %v953_v1  ;;  %v904_v0 = vld [vmem:[%s13505_s12 + $0x78] sm:$0xff]  ;;  %v899_v1 = vld [vmem:[%s13505_s12 + $0x50] sm:$0xff] }
  0x5f   :  { %860 = vmatpush.msra.mxu3 %v659_v2  ;;  %968 = vmatpush.msrb.mxu2 %v945_v3  ;;  %v900_v2 = vld [vmem:[%s13505_s12 + $0x58] sm:$0xff]  ;;  %v895_v3 = vld [vmem:[%s13505_s12 + $0x30] sm:$0xff] }
  0x60   :  { %1014 = vmatpush.msra.mxu1 %v922_v4  ;;  %5215 = vmatmul.msk.f32.vlgmr.msra.gmra.mxu0 %vm726_vm1, %v6976_v5  ;;  %v896_v4 = vld [vmem:[%s13505_s12 + $0x38] sm:$0xff] }
  0x61   :  { %861 = vmatpush.msra.mxu3 %v655_v6  ;;  %969 = vmatpush.msrb.mxu2 %v941_v8  ;;  %v891_v6 = vld [vmem:[%s13505_s12 + $0x10] sm:$0xff]  ;;  %v892_v8 = vld [vmem:[%s13505_s12 + $0x18] sm:$0xff] }
  0x62   :  { %1015 = vmatpush.msra.mxu1 %v918_v9  ;;  %1041 = vmatpush.msrb.mxu0 %v958_v10  ;;  %v1314_v10 = vld [vmem:[%s13507_s14 + $0xf0] sm:$0xff] }
  0x63   :  { %862 = vmatpush.msra.mxu3 %v651_v11  ;;  %970 = vmatpush.msrb.mxu2 %v937_v12  ;;  %v1313_v12 = vld [vmem:[%s13507_s14 + $0xe8] sm:$0xff] }
  0x64   :  { %1016 = vmatpush.msra.mxu1 %v914_v13  ;;  %1042 = vmatpush.msrb.mxu0 %v954_v14  ;;  %v1312_v13 = vld [vmem:[%s13507_s14 + $0xe0] sm:$0xff] }
  0x65   :  { %863 = vmatpush.msra.mxu3 %v647_v15  ;;  %971 = vmatpush.msrb.mxu2 %v933_v16  ;;  %v1311_v15 = vld [vmem:[%s13507_s14 + $0xd8] sm:$0xff]  ;;  %v1310_v16 = vld [vmem:[%s13507_s14 + $0xd0] sm:$0xff] }
  0x66   :  { %1017 = vmatpush.msra.mxu1 %v910_v17  ;;  %1081 = vmatpush.msra.mxu0 %v959_v18  ;;  %v1309_v18 = vld [vmem:[%s13507_s14 + $0xc8] sm:$0xff] }
  0x67   :  { %864 = vmatpush.msra.mxu3 %v643_v19  ;;  %972 = vmatpush.msrb.mxu2 %v929_v20  ;;  %v1308_v20 = vld [vmem:[%s13507_s14 + $0xc0] sm:$0xff] }
  0x68   :  { %865 = vmatmul.f32.vlgmr.msra.gmra.mxu3 %v6776_v7  ;;  %1018 = vmatpush.msra.mxu1 %v906_v21  ;;  %v948_v7 = vld [vmem:[%s13505_s12 + $0x1d8] sm:$0xff]  ;;  %s11809_s12 = sld [smem:[#allocation2 + $0x4]] }
  0x69   :  { %1047 = vmatpush.msrb.mxu3 %v951_v22  ;;  %1082 = vmatpush.msra.mxu0 %v955_v23  ;;  %v1307_v21 = vld [vmem:[%s13507_s14 + $0xb8] sm:$0xff] }
  0x6a   :  { %973 = vmatpush.msrb.mxu2 %v925_v24  ;;  %5216 = vmatmul.msk.f32.vlgmr.msrb.gmra.mxu0 %vm726_vm1, %v6976_v5  ;;  %v1299_v23 = vld [vmem:[%s13507_s14 + $0x78] sm:$0xff]  ;;  %v1306_v24 = vld [vmem:[%s13507_s14 + $0xb0] sm:$0xff] }
  0x6b   :  { %1087 = vmatpush.msrb.mxu0 %v952_v25  ;;  %1019 = vmatpush.msra.mxu1 %v902_v26  ;;  %v1298_v25 = vld [vmem:[%s13507_s14 + $0x70] sm:$0xff]  ;;  %v1305_v26 = vld [vmem:[%s13507_s14 + $0xa8] sm:$0xff] }
  0x6c   :  { %1048 = vmatpush.msrb.mxu3 %v947_v27  ;;  %974 = vmatpush.msrb.mxu2 %v921_v28  ;;  %v1297_v27 = vld [vmem:[%s13507_s14 + $0x68] sm:$0xff] }
  0x6d   :  { %1088 = vmatpush.msrb.mxu0 %v948_v7  ;;  %1020 = vmatpush.msra.mxu1 %v898_v29  ;;  %v1304_v7 = vld [vmem:[%s13507_s14 + $0xa0] sm:$0xff] }
  0x6e   :  { %1049 = vmatpush.msrb.mxu3 %v943_v30  ;;  %975 = vmatpush.msrb.mxu2 %v917_v31  ;;  %v1296_v30 = vld [vmem:[%s13507_s14 + $0x60] sm:$0xff]  ;;  %v1347_v31 = vld [vmem:[%s13507_s14 + $0x1f8] sm:$0xff] }
  0x6f   :  { %1089 = vmatpush.msrb.mxu0 %v944_v32  ;;  %1021 = vmatpush.msra.mxu1 %v894_v33  ;;  %v1303_v33 = vld [vmem:[%s13507_s14 + $0x98] sm:$0xff] }
  0x70   :  { %1050 = vmatpush.msrb.mxu3 %v939_v34  ;;  %976 = vmatpush.msrb.mxu2 %v913_v35  ;;  %v1295_v34 = vld [vmem:[%s13507_s14 + $0x58] sm:$0xff]  ;;  %v1346_v35 = vld [vmem:[%s13507_s14 + $0x1f0] sm:$0xff] }
  0x71   :  { %1090 = vmatpush.msrb.mxu0 %v940_v36  ;;  %1022 = vmatpush.msra.mxu1 %v890_v37  ;;  %v1302_v36 = vld [vmem:[%s13507_s14 + $0x90] sm:$0xff] }
  0x72   :  { %1051 = vmatpush.msrb.mxu3 %v935_v38  ;;  %977 = vmatpush.msrb.mxu2 %v909_v39  ;;  %v1294_v38 = vld [vmem:[%s13507_s14 + $0x50] sm:$0xff]  ;;  %v1345_v39 = vld [vmem:[%s13507_s14 + $0x1e8] sm:$0xff] }
  0x73   :  { %1023 = vmatmul.f32.vlgmr.msra.gmra.mxu1 %v7085_v40  ;;  %1091 = vmatpush.msrb.mxu0 %v936_v41  ;;  %v1331_v41 = vld [vmem:[%s13507_s14 + $0x178] sm:$0xff] }
  0x74   :  { %1052 = vmatpush.msrb.mxu3 %v931_v42  ;;  %978 = vmatpush.msrb.mxu2 %v905_v43  ;;  %v1293_v42 = vld [vmem:[%s13507_s14 + $0x48] sm:$0xff]  ;;  %v1344_v43 = vld [vmem:[%s13507_s14 + $0x1e0] sm:$0xff] }
  0x75   :  { %1092 = vmatpush.msrb.mxu0 %v932_v44  ;;  %1351 = vmatpush.msrb.mxu1 %v1299_v23 }
  0x76   :  { %1053 = vmatpush.msrb.mxu3 %v927_v45  ;;  %979 = vmatpush.msrb.mxu2 %v901_v46  ;;  %v1300_v45 = vld [vmem:[%s13507_s14 + $0x80] sm:$0xff]  ;;  %v1330_v46 = vld [vmem:[%s13507_s14 + $0x170] sm:$0xff] }
  0x77   :  { %1093 = vmatpush.msrb.mxu0 %v928_v47  ;;  %1352 = vmatpush.msrb.mxu1 %v1298_v25  ;;  %v1292_v47 = vld [vmem:[%s13507_s14 + $0x40] sm:$0xff] }
  0x78   :  { %1054 = vmatpush.msrb.mxu3 %v923_v48  ;;  %980 = vmatpush.msrb.mxu2 %v897_v49  ;;  %v1343_v48 = vld [vmem:[%s13507_s14 + $0x1d8] sm:$0xff] }
  0x79   :  { %1094 = vmatpush.msrb.mxu0 %v924_v50  ;;  %1353 = vmatpush.msrb.mxu1 %v1297_v27  ;;  %v1462_v49 = vld [vmem:[%s13508_s15 + $0xf8] sm:$0xff]  ;;  %v1329_v50 = vld [vmem:[%s13507_s14 + $0x168] sm:$0xff] }
  0x7a   :  { %1055 = vmatpush.msrb.mxu3 %v919_v51  ;;  %981 = vmatpush.msrb.mxu2 %v893_v52  ;;  %v1291_v52 = vld [vmem:[%s13507_s14 + $0x38] sm:$0xff] }
  0x7b   :  { %1095 = vmatpush.msrb.mxu0 %v920_v53  ;;  %1354 = vmatpush.msrb.mxu1 %v1296_v30  ;;  %v1342_v53 = vld [vmem:[%s13507_s14 + $0x1d0] sm:$0xff]  ;;  %v1337_v30 = vld [vmem:[%s13507_s14 + $0x1a8] sm:$0xff] }
  0x7c   :  { %1056 = vmatpush.msrb.mxu3 %v915_v54  ;;  %982 = vmatpush.msrb.mxu2 %v889_v55  ;;  %v1461_v54 = vld [vmem:[%s13508_s15 + $0xf0] sm:$0xff] }
  0x7d   :  { %1096 = vmatpush.msrb.mxu0 %v916_v56  ;;  %983 = vmatmul.f32.vlgmr.msrb.gmra.mxu2 %v7085_v40  ;;  %v1328_v56 = vld [vmem:[%s13507_s14 + $0x160] sm:$0xff] }
  0x7e   :  { %1057 = vmatpush.msrb.mxu3 %v911_v57  ;;  %5217 = vmatmul.msk.f32.vlgmr.msra.gmra.mxu0 %vm726_vm1, %v6976_v5  ;;  %v1290_v57 = vld [vmem:[%s13507_s14 + $0x30] sm:$0xff] }
  0x7f   :  { %1097 = vmatpush.msrb.mxu0 %v912_v58  ;;  %1121 = vmatpush.msra.mxu2 %v960_v59  ;;  %v1341_v58 = vld [vmem:[%s13507_s14 + $0x1c8] sm:$0xff] }
  0x80   :  { %1058 = vmatpush.msrb.mxu3 %v907_v60  ;;  %1355 = vmatpush.msrb.mxu1 %v1295_v34  ;;  %v1460_v59 = vld [vmem:[%s13508_s15 + $0xe8] sm:$0xff]  ;;  %v7334_v60 = vld [vmem:[%s13506_s13] sm:$0xf]  ;;  %s11521_s13 = sld [smem:[#allocation2 + $0x7]] }
  0x81   :  { %1098 = vmatpush.msrb.mxu0 %v908_v61  ;;  %1122 = vmatpush.msra.mxu2 %v956_v62  ;;  %v1327_v61 = vld [vmem:[%s13507_s14 + $0x158] sm:$0xff] }
  0x82   :  { %1059 = vmatpush.msrb.mxu3 %v903_v63  ;;  %1356 = vmatpush.msrb.mxu1 %v1294_v38  ;;  %v1289_v63 = vld [vmem:[%s13507_s14 + $0x28] sm:$0xff]  ;;  %v1336_v38 = vld [vmem:[%s13507_s14 + $0x1a0] sm:$0xff] }
  0x83   :  { %1099 = vmatpush.msrb.mxu0 %v904_v0  ;;  %v1340_v0 = vld [vmem:[%s13507_s14 + $0x1c0] sm:$0xff] }
  0x84   :  { %1060 = vmatpush.msrb.mxu3 %v899_v1  ;;  %1357 = vmatpush.msrb.mxu1 %v1293_v42  ;;  %v1459_v1 = vld [vmem:[%s13508_s15 + $0xe0] sm:$0xff]  ;;  %v1322_v42 = vld [vmem:[%s13507_s14 + $0x130] sm:$0xff] }
  0x85   :  { %1100 = vmatpush.msrb.mxu0 %v900_v2  ;;  %5218 = vmatmul.msk.f32.vlgmr.msra.gmra.mxu2 %vm726_vm1, %v6976_v5  ;;  %v1315_v5 = vld [vmem:[%s13507_s14 + $0xf8] sm:$0xff]  ;;  %v7351_v2 = vld [vmem:[%s13503_s10] sm:$0xf] }
  0x86   :  { %1061 = vmatpush.msrb.mxu3 %v895_v3  ;;  %1371 = vmatpush.msrb.mxu2 %v1315_v5  ;;  %v714_v3 = vperm.slane %v7334_v60, 1  ;;  %v1288_v5 = vld [vmem:[%s13507_s14 + $0x20] sm:$0xff]  ;;  %v295_v23 = vperm.slane %v7351_v2, 0 }
  0x87   :  { %1101 = vmatpush.msrb.mxu0 %v896_v4  ;;  %1358 = vmatpush.msrb.mxu1 %v1292_v47 }
  0x88   :  { %1062 = vmatpush.msrb.mxu3 %v891_v6  ;;  %1372 = vmatpush.msrb.mxu2 %v1314_v10  ;;  %v1326_v6 = vld [vmem:[%s13507_s14 + $0x150] sm:$0xff]  ;;  %v1339_v10 = vld [vmem:[%s13507_s14 + $0x1b8] sm:$0xff] }
  0x89   :  { %1063 = vmatmul.f32.vlgmr.msrb.gmra.mxu3 %v7085_v40  ;;  %1102 = vmatpush.msrb.mxu0 %v892_v8  ;;  %v296_v8 = vperm.slane %v7351_v2, 1 }
  0x8a   :  { %1103 = vmatmul.f32.vlgmr.msrb.gmra.mxu0 %v7085_v40  ;;  %1373 = vmatpush.msrb.mxu2 %v1313_v12  ;;  %v1301_v40 = vld [vmem:[%s13507_s14 + $0x88] sm:$0xff]  ;;  %v1458_v12 = vld [vmem:[%s13508_s15 + $0xd8] sm:$0xff] }
  0x8b   :  { %1411 = vmatpush.msra.mxu0 %v1347_v31  ;;  %1391 = vmatpush.msra.mxu3 %v1331_v41  ;;  %v1456_v31 = vld [vmem:[%s13508_s15 + $0xc8] sm:$0xff] }
  0x8c   :  { %1374 = vmatpush.msrb.mxu2 %v1312_v13  ;;  %1359 = vmatpush.msrb.mxu1 %v1291_v52  ;;  %v1325_v13 = vld [vmem:[%s13507_s14 + $0x148] sm:$0xff]  ;;  %v1334_v52 = vld [vmem:[%s13507_s14 + $0x190] sm:$0xff] }
  0x8d   :  { %1412 = vmatpush.msra.mxu0 %v1346_v35  ;;  %1392 = vmatpush.msra.mxu3 %v1330_v46 }
  0x8e   :  { %1375 = vmatpush.msrb.mxu2 %v1311_v15  ;;  %1360 = vmatpush.msrb.mxu1 %v1290_v57  ;;  %v713_v15 = vperm.slane %v7334_v60, 0  ;;  %v1320_v57 = vld [vmem:[%s13507_s14 + $0x120] sm:$0xff] }
  0x8f   :  { %1413 = vmatpush.msra.mxu0 %v1345_v39  ;;  %1393 = vmatpush.msra.mxu3 %v1329_v50  ;;  %v1455_v39 = vld [vmem:[%s13508_s15 + $0xc0] sm:$0xff] }
  0x90   :  { %1376 = vmatpush.msrb.mxu2 %v1310_v16  ;;  %1361 = vmatpush.msrb.mxu1 %v1289_v63  ;;  %v716_v63 = vperm.slane %v7334_v60, 3 }
  0x91   :  { %1414 = vmatpush.msra.mxu0 %v1344_v43  ;;  %1394 = vmatpush.msra.mxu3 %v1328_v56 }
  0x92   :  { %1377 = vmatpush.msrb.mxu2 %v1309_v18  ;;  %1362 = vmatpush.msrb.mxu1 %v1288_v5  ;;  %v1287_v18 = vld [vmem:[%s13507_s14 + $0x18] sm:$0xff] }
  0x93   :  { %1415 = vmatpush.msra.mxu0 %v1343_v48  ;;  %1395 = vmatpush.msra.mxu3 %v1327_v61  ;;  %v1321_v48 = vld [vmem:[%s13507_s14 + $0x128] sm:$0xff] }
  0x94   :  { %1378 = vmatpush.msrb.mxu2 %v1308_v20  ;;  %v1338_v20 = vld [vmem:[%s13507_s14 + $0x1b0] sm:$0xff]  ;;  %1363 = vmatpush.msrb.mxu1 %v1287_v18  ;;  %v1333_v61 = vld [vmem:[%s13507_s14 + $0x188] sm:$0xff] }
  0x95   :  { %1416 = vmatpush.msra.mxu0 %v1342_v53  ;;  %1396 = vmatpush.msra.mxu3 %v1326_v6  ;;  %v1453_v53 = vld [vmem:[%s13508_s15 + $0xb0] sm:$0xff]  ;;  %v7468_v6 = vld [vmem:[%s13541_s9] sm:$0x3]  ;;  %s13604_s9 = sld [smem:[#allocation29_spill]] }
  0x96   :  { %1379 = vmatpush.msrb.mxu2 %v1307_v21  ;;  %v1457_v21 = vld [vmem:[%s13508_s15 + $0xd0] sm:$0xff]  ;;  %v103_v18 = vperm.slane %v7468_v6, 1 }
  0x97   :  { %1417 = vmatpush.msra.mxu0 %v1341_v58  ;;  %1397 = vmatpush.msra.mxu3 %v1325_v13  ;;  %v1445_v58 = vld [vmem:[%s13508_s15 + $0x70] sm:$0xff]  ;;  %v1451_v13 = vld [vmem:[%s13508_s15 + $0xa0] sm:$0xff] }
  0x98   :  { %1380 = vmatpush.msrb.mxu2 %v1306_v24 }
  0x99   :  { %1418 = vmatpush.msra.mxu0 %v1340_v0  ;;  %v1319_v0 = vld [vmem:[%s13507_s14 + $0x118] sm:$0xff] }
  0x9a   :  { %1381 = vmatpush.msrb.mxu2 %v1305_v26  ;;  %v1324_v26 = vld [vmem:[%s13507_s14 + $0x140] sm:$0xff] }
  0x9b   :  { %1419 = vmatpush.msra.mxu0 %v1339_v10  ;;  %1398 = vmatpush.msra.mxu3 %v1324_v26  ;;  %v1450_v26 = vld [vmem:[%s13508_s15 + $0x98] sm:$0xff] }
  0x9c   :  { %1382 = vmatpush.msrb.mxu2 %v1304_v7  ;;  %v1286_v7 = vld [vmem:[%s13507_s14 + $0x10] sm:$0xff] }
  0x9d   :  { %1420 = vmatpush.msra.mxu0 %v1338_v20  ;;  %1364 = vmatpush.msrb.mxu1 %v1286_v7  ;;  %v1318_v20 = vld [vmem:[%s13507_s14 + $0x110] sm:$0xff]  ;;  %v1317_v7 = vld [vmem:[%s13507_s14 + $0x108] sm:$0xff] }
  0x9e   :  { %v7209_v17 = vpop.f32.mrf.mxu0  ;;  %1383 = vmatpush.msrb.mxu2 %v1303_v33 }
  0x9f   :  { %v7252_v32 = vpop.f32.mrf.mxu1  ;;  %1421 = vmatpush.msra.mxu0 %v1337_v30  ;;  %v1442_v30 = vld [vmem:[%s13508_s15 + $0x58] sm:$0xff] }
  0xa0   :  { %1384 = vmatpush.msrb.mxu2 %v1302_v36  ;;  %v344_v27 = vadd.f32 %v7252_v32, %v296_v8  ;;  %v1323_v32 = vld [vmem:[%s13507_s14 + $0x138] sm:$0xff]  ;;  %v1285_v36 = vld [vmem:[%s13507_s14 + $0x8] sm:$0xff] }
  0xa1   :  { %v7185_v9 = vpop.f32.mrf.mxu3  ;;  %1399 = vmatpush.msra.mxu3 %v1323_v32  ;;  %1365 = vmatpush.msrb.mxu1 %v1285_v36  ;;  %v1449_v36 = vld [vmem:[%s13508_s15 + $0x90] sm:$0xff] }
  0xa2   :  { %v7193_v11 = vpop.f32.mrf.mxu2  ;;  %1385 = vmatpush.msrb.mxu2 %v1301_v40  ;;  %v324_v40 = vadd.f32 %v7209_v17, %v295_v23  ;;  %1422 = vmatpush.msra.mxu0 %v1336_v38  ;;  %v483_v43 = vsub.f32 0.0, %v344_v27  ;;  %v1454_v17 = vld [vmem:[%s13508_s15 + $0xb8] sm:$0xff] }
  0xa3   :  { %1400 = vmatpush.msra.mxu3 %v1322_v42  ;;  %v148_v38 = vadd.f32 %v7193_v11, %v103_v18 }
  0xa4   :  { %1386 = vmatpush.msrb.mxu2 %v1300_v45  ;;  %v1335_v45 = vld [vmem:[%s13507_s14 + $0x198] sm:$0xff] }
  0xa5   :  { %1423 = vmatpush.msra.mxu0 %v1335_v45  ;;  %1401 = vmatpush.msra.mxu3 %v1321_v48 }
  0xa6   :  { %1515 = vmatpush.msra.mxu2 %v1462_v49  ;;  %v1446_v49 = vld [vmem:[%s13508_s15 + $0x78] sm:$0xff] }
  0xa7   :  { %1424 = vmatpush.msra.mxu0 %v1334_v52  ;;  %1402 = vmatpush.msra.mxu3 %v1320_v57  ;;  %v1477_v52 = vld [vmem:[%s13508_s15 + $0x170] sm:$0xff]  ;;  %v1490_v57 = vld [vmem:[%s13508_s15 + $0x1d8] sm:$0xff] }
  0xa8   :  { %1516 = vmatpush.msra.mxu2 %v1461_v54  ;;  %v482_v54 = vsub.f32 0.0, %v324_v40 }
  0xa9   :  { %v7239_v28 = vpop.f32.mrf.mxu0  ;;  %1425 = vmatpush.msra.mxu0 %v1333_v61  ;;  %1403 = vmatpush.msra.mxu3 %v1319_v0 }
  0xaa   :  { %v7317_v55 = vpop.f32.mrf.mxu1  ;;  %1517 = vmatpush.msra.mxu2 %v1460_v59  ;;  %v488_v59 = vmul.f32 1.442695, %v483_v43  ;;  %v1448_v43 = vld [vmem:[%s13508_s15 + $0x88] sm:$0xff] }
  0xab   :  { %1404 = vmatpush.msra.mxu3 %v1318_v20  ;;  %v440_v32 = vadd.f32 %v7317_v55, %v296_v8  ;;  %v1316_v55 = vld [vmem:[%s13507_s14 + $0x100] sm:$0xff]  ;;  %v1441_v8 = vld [vmem:[%s13508_s15 + $0x50] sm:$0xff] }
  0xac   :  { %v7214_v19 = vpop.f32.mrf.mxu2  ;;  %1518 = vmatpush.msra.mxu2 %v1459_v1  ;;  %v1444_v1 = vld [vmem:[%s13508_s15 + $0x68] sm:$0xff]  ;;  %v1475_v20 = vld [vmem:[%s13508_s15 + $0x160] sm:$0xff] }
  0xad   :  { %v7201_v14 = vpop.f32.mrf.mxu3  ;;  %1405 = vmatpush.msra.mxu3 %v1317_v7  ;;  %v1488_v7 = vld [vmem:[%s13508_s15 + $0x1c8] sm:$0xff] }
  0xae   :  { %1519 = vmatpush.msra.mxu2 %v1458_v12  ;;  %v1332_v12 = vld [vmem:[%s13507_s14 + $0x180] sm:$0xff] }
  0xaf   :  { %1426 = vmatpush.msra.mxu0 %v1332_v12  ;;  %1406 = vmatpush.msra.mxu3 %v1316_v55  ;;  %v1489_v12 = vld [vmem:[%s13508_s15 + $0x1d0] sm:$0xff] }
  0xb0   :  { %1520 = vmatpush.msra.mxu2 %v1457_v21  ;;  %v1443_v21 = vld [vmem:[%s13508_s15 + $0x60] sm:$0xff] }
  0xb2   :  { %1521 = vmatpush.msra.mxu2 %v1456_v31  ;;  %v1493_v31 = vld [vmem:[%s13508_s15 + $0x1f0] sm:$0xff] }
  0xb4   :  { %1522 = vmatpush.msra.mxu2 %v1455_v39 }
  0xb6   :  { %1523 = vmatpush.msra.mxu2 %v1454_v17 }
  0xb7   :  { %v7222_v22 = vpop.f32.mrf.mxu3  ;;  %v7244_v29 = vpop.f32.mrf.mxu2 }
  0xb8   :  { %1524 = vmatpush.msra.mxu2 %v1453_v53  ;;  %v102_v53 = vperm.slane %v7468_v6, 0 }
  0xba   :  { %v176_v55 = vadd.f32 %v7214_v19, %v102_v53  ;;  %v1485_v19 = vld [vmem:[%s13508_s15 + $0x1b0] sm:$0xff] }
  0xc0   :  { %v7266_v37 = vpop.f32.mrf.mxu3 }
  0xc1   :  { %v7306_v51 = vpop.f32.mrf.mxu2 }
  0xca   :  { %v806_v62 = vpop.f32.mrf.mxu3 }
  0xcc   :  { %v7286_v44 = vpop.f32.mrf.mxu0 }
  0xcd   :  { %v766_v24 = vpop.f32.mrf.mxu1  ;;  %v747_v34 = vadd.f32 %v7286_v44, %v713_v15  ;;  %v1284_v44 = vld [vmem:[%s13507_s14] sm:$0xff] }
  0xce   :  { %1366 = vmatpush.msrb.mxu1 %v1284_v44  ;;  %v1478_v44 = vld [vmem:[%s13508_s15 + $0x178] sm:$0xff] }
  0xcf   :  { %v767_v50 = vadd.f32 %v766_v24, %v747_v34  ;;  %v1494_v24 = vld [vmem:[%s13508_s15 + $0x1f8] sm:$0xff]  ;;  %1535 = vmatpush.msrb.mxu3 %v1478_v44 }
  0xd0   :  { %1495 = vmatpush.msra.mxu1 %v1446_v49  ;;  %1555 = vmatpush.msrb.mxu0 %v1494_v24  ;;  %v559_v49 = vsub.f32 0.0, %v440_v32  ;;  %v1473_v32 = vld [vmem:[%s13508_s15 + $0x150] sm:$0xff] }
  0xd1   :  { %v1127_v5 = vsub.f32 0.0, %v767_v50  ;;  %1536 = vmatpush.msrb.mxu3 %v1477_v52  ;;  %v1433_v52 = vld [vmem:[%s13508_s15 + $0x10] sm:$0xff] }
  0xd2   :  { %1496 = vmatpush.msra.mxu1 %v1445_v58  ;;  %1556 = vmatpush.msrb.mxu0 %v1493_v31 }
  0xd3   :  { %v1131_v34 = vmul.f32 1.442695, %v1127_v5  ;;  %v564_v5 = vmul.f32 1.442695, %v559_v49 }
  0xd4   :  { %1497 = vmatpush.msra.mxu1 %v1444_v1  ;;  %v1476_v1 = vld [vmem:[%s13508_s15 + $0x168] sm:$0xff] }
  0xd5   :  { %v7354_v4 = vpop.f32.mrf.mxu0  ;;  %1537 = vmatpush.msrb.mxu3 %v1476_v1  ;;  %v1483_v1 = vld [vmem:[%s13508_s15 + $0x1a0] sm:$0xff] }
  0xd6   :  { %1498 = vmatpush.msra.mxu1 %v1443_v21 }
  0xd7   :  { %v826_v56 = vpop.f32.mrf.mxu1  ;;  %1538 = vmatpush.msrb.mxu3 %v1475_v20  ;;  %v1431_v20 = vld [vmem:[%s13508_s15] sm:$0xff] }
  0xd8   :  { %1499 = vmatpush.msra.mxu1 %v1442_v30  ;;  %v196_v30 = vadd.f32 %v7201_v14, %v103_v18 }
  0xda   :  { %1500 = vmatpush.msra.mxu1 %v1441_v8  ;;  %v237_v8 = vsub.f32 0.0, %v196_v30  ;;  %v1481_v30 = vld [vmem:[%s13508_s15 + $0x190] sm:$0xff] }
  0xdd   :  { %v7406_v35 = vpop.f32.mrf.mxu3  ;;  %v7432_v47 = vpop.f32.mrf.mxu0 }
  0xdf   :  { %v786_v16 = vpop.f32.mrf.mxu2 }
  0xe0   :  { %v787_v25 = vadd.f32 %v786_v16, %v714_v3  ;;  %v486_v16 = vmul.f32 1.442695, %v482_v54  ;;  %v199_v54 = vsub.f32 0.0, %v148_v38 }
  0xe2   :  { %v807_v33 = vadd.f32 %v806_v62, %v787_v25  ;;  %v1452_v62 = vld [vmem:[%s13508_s15 + $0xa8] sm:$0xff]  ;;  %v715_v25 = vperm.slane %v7334_v60, 2 }
  0xe3   :  { %1525 = vmatpush.msra.mxu2 %v1452_v62 }
  0xe4   :  { %v1128_v41 = vsub.f32 0.0, %v807_v33  ;;  %v827_v42 = vadd.f32 %v826_v56, %v715_v25  ;;  %v1439_v56 = vld [vmem:[%s13508_s15 + $0x40] sm:$0xff] }
  0xe5   :  { %1526 = vmatpush.msra.mxu2 %v1451_v13  ;;  %v128_v13 = vadd.f32 %v7185_v9, %v102_v53  ;;  %v1437_v9 = vld [vmem:[%s13508_s15 + $0x30] sm:$0xff]  ;;  %v1484_v53 = vld [vmem:[%s13508_s15 + $0x1a8] sm:$0xff] }
  0xe6   :  { %v1133_v46 = vmul.f32 1.442695, %v1128_v41  ;;  %v1492_v41 = vld [vmem:[%s13508_s15 + $0x1e8] sm:$0xff]  ;;  %v847_v58 = vadd.f32 %v7406_v35, %v827_v42  ;;  %v1438_v35 = vld [vmem:[%s13508_s15 + $0x38] sm:$0xff] }
  0xe7   :  { %1527 = vmatpush.msra.mxu2 %v1450_v26  ;;  %v1044_v40 = vpop.f32.mrf.mxu0  ;;  %1557 = vmatpush.msrb.mxu0 %v1492_v41  ;;  %v420_v26 = vadd.f32 %v7239_v28, %v295_v23  ;;  %v1474_v28 = vld [vmem:[%s13508_s15 + $0x158] sm:$0xff]  ;;  %v1436_v23 = vld [vmem:[%s13508_s15 + $0x28] sm:$0xff]  ;;  %v198_v14 = vsub.f32 0.0, %v128_v13  ;;  %v298_v13 = vperm.slane %v7351_v2, 3 }
  0xe8   :  { %5704 = vpow2.f32 %v1133_v46  ;;  %v1491_v46 = vld [vmem:[%s13508_s15 + $0x1e0] sm:$0xff]  ;;  %1539 = vmatpush.msrb.mxu3 %v1474_v28  ;;  %v1472_v41 = vld [vmem:[%s13508_s15 + $0x148] sm:$0xff] }
  0xe9   :  { %5706 = vpow2.f32 %v488_v59  ;;  %1528 = vmatpush.msra.mxu2 %v1449_v36  ;;  %1558 = vmatpush.msrb.mxu0 %v1491_v46 }
  0xea   :  { %5708 = vpow2.f32 %v486_v16  ;;  %v202_v16 = vmul.f32 1.442695, %v199_v54  ;;  %1540 = vmatpush.msrb.mxu3 %v1473_v32 }
  0xeb   :  { %v866_v10 = vpop.f32.mrf.mxu3  ;;  %5710 = vpow2.f32 %v1131_v34  ;;  %1529 = vmatpush.msra.mxu2 %v1448_v43  ;;  %1559 = vmatpush.msrb.mxu0 %v1490_v57  ;;  %v558_v34 = vsub.f32 0.0, %v420_v26  ;;  %v1434_v43 = vld [vmem:[%s13508_s15 + $0x18] sm:$0xff]  ;;  %v240_v57 = vmul.f32 1.442695, %v237_v8  ;;  %v1480_v8 = vld [vmem:[%s13508_s15 + $0x188] sm:$0xff] }
  0xec   :  { %v867_v27 = vadd.f32 %v866_v10, %v716_v63  ;;  %1541 = vmatpush.msrb.mxu3 %v1472_v41 }
  0xed   :  { %1560 = vmatpush.msrb.mxu0 %v1489_v12  ;;  %v297_v12 = vperm.slane %v7351_v2, 2 }
  0xee   :  { %v5705_v33 = vpop.eup %5704  ;;  %v887_v17 = vadd.f32 %v7354_v4, %v867_v27  ;;  %v1447_v4 = vld [vmem:[%s13508_s15 + $0x80] sm:$0xff]  ;;  %v1129_v27 = vsub.f32 0.0, %v847_v58 }
  0xef   :  { %v7529_v45 = vadd.f32 1.0, %v5705_v33  ;;  %v5707_v48 = vpop.eup %5706  ;;  %1530 = vmatpush.msra.mxu2 %v1447_v4  ;;  %1561 = vmatpush.msrb.mxu0 %v1488_v7  ;;  %v1487_v33 = vld [vmem:[%s13508_s15 + $0x1c0] sm:$0xff]  ;;  %v1468_v7 = vld [vmem:[%s13508_s15 + $0x128] sm:$0xff] }
  0xf0   :  { %v1024_v39 = vpop.f32.mrf.mxu1  ;;  %v5709_v61 = vpop.eup %5708  ;;  %v7552_v62 = vadd.f32 1.0, %v5707_v48  ;;  %v1130_v0 = vsub.f32 0.0, %v887_v17  ;;  %v1135_v36 = vmul.f32 1.442695, %v1129_v27  ;;  %v200_v17 = vmul.f32 1.442695, %v198_v14 }
  0xf1   :  { %v1025_v11 = vadd.f32 %v1024_v39, %v714_v3  ;;  %v1440_v3 = vld [vmem:[%s13508_s15 + $0x48] sm:$0xff]  ;;  %5712 = vrcp.f32 %v7529_v45  ;;  %v5711_v21 = vpop.eup %5710  ;;  %v7568_v24 = vadd.f32 1.0, %v5709_v61  ;;  %1562 = vmatpush.msrb.mxu0 %v1487_v33  ;;  %v1435_v39 = vld [vmem:[%s13508_s15 + $0x20] sm:$0xff]  ;;  %vm1163_vm2 = vweird.f32 %v7529_v45 }
  0xf2   :  { %1501 = vmatpush.msra.mxu1 %v1440_v3  ;;  %v1137_v31 = vmul.f32 1.442695, %v1130_v0  ;;  %v7594_v18 = vadd.f32 1.0, %v5711_v21  ;;  %v1471_v48 = vld [vmem:[%s13508_s15 + $0x140] sm:$0xff]  ;;  %v1432_v0 = vld [vmem:[%s13508_s15 + $0x8] sm:$0xff]  ;;  %v1482_v21 = vld [vmem:[%s13508_s15 + $0x198] sm:$0xff]  ;;  %vm518_vm15 = vweird.f32 %v7552_v62 }
  0xf3   :  { %v1045_v50 = vadd.f32 %v1044_v40, %v1025_v11  ;;  %v1486_v40 = vld [vmem:[%s13508_s15 + $0x1b8] sm:$0xff]  ;;  %1542 = vmatpush.msrb.mxu3 %v1471_v48  ;;  %v524_v41 = vand.u32 2147483648, %v7552_v62 }
  0xf4   :  { %1502 = vmatpush.msra.mxu1 %v1439_v56  ;;  %1563 = vmatpush.msrb.mxu0 %v1486_v40  ;;  %v236_v56 = vsub.f32 0.0, %v176_v55  ;;  %v1467_v55 = vld [vmem:[%s13508_s15 + $0x120] sm:$0xff]  ;;  %vm1148_vm10 = vweird.f32 %v7594_v18  ;;  %v1152_v2 = vand.u32 2147483647, %v7594_v18 }
  0xf5   :  { %v1204_v59 = vsub.f32 0.0, %v1045_v50  ;;  %v562_v50 = vmul.f32 1.442695, %v558_v34 }
  0xf6   :  { %1503 = vmatpush.msra.mxu1 %v1438_v35  ;;  %1564 = vmatpush.msrb.mxu0 %v1485_v19  ;;  %vm7839_vm13 = vcmp.eq.f32.partialorder %v1152_v2, 8.507059e+37 }
  0xf7   :  { %v1209_v10 = vmul.f32 1.442695, %v1204_v59  ;;  %v7592_v6 = vpop.eup %5712 }
  0xf8   :  { %1504 = vmatpush.msra.mxu1 %v1437_v9  ;;  %v1159_v11 = vmul.f32 %v7592_v6, %v7529_v45  ;;  %1565 = vmatpush.msrb.mxu0 %v1484_v53  ;;  %v7670_v9 = vmul.f32 1.442695, %v236_v56  ;;  %vm1164_vm3 = vweird.f32 %v7592_v6  ;;  %v1169_v56 = vand.u32 2147483648, %v7529_v45 }
  0xf9   :  { %5714 = vpow2.f32 %v1209_v10  ;;  %vm7745_vm5 = vmor %vm1163_vm2, %vm1164_vm3 }
  0xfa   :  { %5716 = vrcp.f32 %v7552_v62  ;;  %1505 = vmatpush.msra.mxu1 %v1436_v23  ;;  %v1160_v61 = vsub.f32 1.0, %v1159_v11  ;;  %1566 = vmatpush.msrb.mxu0 %v1483_v1  ;;  %v7704_v11 = vadd.f32 %v7222_v22, %v298_v13  ;;  %v1466_v22 = vld [vmem:[%s13508_s15 + $0x118] sm:$0xff] }
  0xfb   :  { %5718 = vpow2.f32 %v564_v5  ;;  %v7600_v38 = vpop.f32.mrf.mxu0 }
  0xfc   :  { %5720 = vpow2.f32 %v202_v16  ;;  %1506 = vmatpush.msra.mxu1 %v1435_v39  ;;  %1567 = vmatpush.msrb.mxu0 %v1482_v21  ;;  %v1161_v32 = vmul.f32 %v7592_v6, %v1160_v61 }
  0xfd   :  { %5722 = vrcp.f32 %v7568_v24 }
  0xfe   :  { %5724 = vpow2.f32 %v1137_v31  ;;  %1507 = vmatpush.msra.mxu1 %v1434_v43  ;;  %1568 = vmatpush.msrb.mxu0 %v1481_v30 }
  0xff   :  { %v5715_v42 = vpop.eup %5714  ;;  %5726 = vrcp.f32 %v7594_v18 }
 0x100   :  { %v7620_v44 = vpop.eup %5716  ;;  %v7623_v3 = vadd.f32 1.0, %v5715_v42  ;;  %v984_v46 = vpop.f32.mrf.mxu2  ;;  %5728 = vpow2.f32 %v1135_v36  ;;  %1508 = vmatpush.msra.mxu1 %v1433_v52  ;;  %v7701_v42 = vadd.f32 %v7244_v29, %v297_v12  ;;  %1569 = vmatpush.msrb.mxu0 %v1480_v8  ;;  %v1677_v8 = vld [vmem:[%s13512_s19 + $0x1f8] sm:$0xff] }
 0x101   :  { %v5719_v49 = vpop.eup %5718  ;;  %v985_v4 = vadd.f32 %v984_v46, %v713_v15  ;;  %v1470_v15 = vld [vmem:[%s13508_s15 + $0x138] sm:$0xff]  ;;  %v7651_v10 = vmul.f32 %v7620_v44, %v7552_v62  ;;  %vm519_vm0 = vweird.f32 %v7620_v44 }
 0x102   :  { %v5721_v54 = vpop.eup %5720  ;;  %5730 = vrcp.f32 %v7623_v3  ;;  %1543 = vmatpush.msrb.mxu3 %v1470_v15  ;;  %v7653_v35 = vadd.f32 1.0, %v5719_v49  ;;  %1509 = vmatpush.msra.mxu1 %v1432_v0  ;;  %v1162_v49 = vadd.f32 %v7592_v6, %v1161_v32  ;;  %v1465_v15 = vld [vmem:[%s13508_s15 + $0x110] sm:$0xff]  ;;  %v1243_v0 = vand.u32 2147483647, %v7623_v3 }
 0x103   :  { %v7640_v58 = vpop.eup %5722  ;;  %v1005_v59 = vadd.f32 %v7432_v47, %v985_v4  ;;  %5732 = vpow2.f32 %v200_v17  ;;  %v1469_v47 = vld [vmem:[%s13508_s15 + $0x130] sm:$0xff]  ;;  %v7668_v27 = vadd.f32 1.0, %v5721_v54  ;;  %v515_v36 = vsub.f32 1.0, %v7651_v10 }
 0x104   :  { %v5725_v5 = vpop.eup %5724  ;;  %5734 = vpow2.f32 %v562_v50  ;;  %1544 = vmatpush.msrb.mxu3 %v1469_v47  ;;  %1510 = vmatpush.msra.mxu1 %v1431_v20  ;;  %v7680_v28 = vmul.f32 %v7640_v58, %v7568_v24  ;;  %v1479_v50 = vld [vmem:[%s13508_s15 + $0x180] sm:$0xff]  ;;  %v1167_v54 = vand.u32 2147483647, %v7529_v45  ;;  %vm1239_vm6 = vweird.f32 %v7623_v3 }
 0x105   :  { %v1203_v16 = vsub.f32 0.0, %v1005_v59  ;;  %v7666_v26 = vpop.eup %5726  ;;  %5736 = vpow2.f32 %v240_v57  ;;  %v7682_v23 = vadd.f32 1.0, %v5725_v5  ;;  %v1245_v57 = vand.u32 2147483648, %v7623_v3  ;;  %1570 = vmatpush.msrb.mxu0 %v1479_v50 }
 0x106   :  { %v5729_v31 = vpop.eup %5728  ;;  %1545 = vmatpush.msrb.mxu3 %v1468_v7  ;;  %5738 = vrcp.f32 %v7653_v35  ;;  %v1144_v19 = vmul.f32 %v7666_v26, %v7594_v18  ;;  %v480_v5 = vadd.f32 %v7266_v37, %v298_v13  ;;  %v1166_v37 = vsel %vm7745_vm5, %v7592_v6, %v1162_v49 }
 0x107   :  { %v1207_v33 = vmul.f32 1.442695, %v1203_v16  ;;  %v1104_v14 = vpop.f32.mrf.mxu0  ;;  %v7712_v17 = vadd.f32 1.0, %v5729_v31  ;;  %v1170_v7 = vor.u32 1.1754944e-38, %v1169_v56  ;;  %v1246_v30 = vor.u32 1.1754944e-38, %v1245_v57 }
 0x108   :  { %v7685_v34 = vpop.eup %5730  ;;  %v1105_v39 = vadd.f32 %v1104_v14, %v716_v63  ;;  %v1124_v40 = vpop.f32.mrf.mxu2  ;;  %1546 = vmatpush.msrb.mxu3 %v1467_v55  ;;  %v1145_v47 = vsub.f32 1.0, %v1144_v19  ;;  %vm1168_vm8 = vcmp.eq.f32.partialorder %v1167_v54, 8.507059e+37  ;;  %vm1244_vm9 = vcmp.eq.f32.partialorder %v1243_v0, 8.507059e+37 }
 0x109   :  { %v1235_v63 = vmul.f32 %v7685_v34, %v7623_v3  ;;  %5740 = vpow2.f32 %v1207_v33  ;;  %v7708_v43 = vpop.eup %5732  ;;  %vm1240_vm4 = vweird.f32 %v7685_v34  ;;  %v484_v3 = vsub.f32 0.0, %v7701_v42 }
 0x10a   :  { %v1125_v46 = vadd.f32 %v1124_v40, %v1105_v39  ;;  %v5735_v29 = vpop.eup %5734  ;;  %5742 = vrcp.f32 %v7682_v23  ;;  %1547 = vmatpush.msrb.mxu3 %v1466_v22  ;;  %vm1241_vm7 = vmor %vm1239_vm6, %vm1240_vm4  ;;  %v1171_v14 = vsel %vm1168_vm8, %v1170_v7, %v1166_v37  ;;  %v522_v22 = vand.u32 2147483647, %v7552_v62 }
 0x10b   :  { %v1236_v48 = vsub.f32 1.0, %v1235_v63  ;;  %v7724_v4 = vpop.eup %5736  ;;  %5744 = vrcp.f32 %v7712_v17  ;;  %v7770_v39 = vadd.f32 1.0, %v5735_v29  ;;  %v1146_v63 = vmul.f32 %v7666_v26, %v1145_v47 }
 0x10c   :  { %v1206_v52 = vsub.f32 0.0, %v1125_v46  ;;  %v1064_v53 = vpop.f32.mrf.mxu3  ;;  %1548 = vmatpush.msrb.mxu3 %v1465_v15  ;;  %v7737_v1 = vpop.eup %5738  ;;  %v516_v46 = vmul.f32 %v7620_v44, %v515_v36  ;;  %v561_v29 = vsub.f32 0.0, %v480_v5  ;;  %vm1149_vm11 = vweird.f32 %v7666_v26 }
 0x10d   :  { %v1065_v59 = vadd.f32 %v1064_v53, %v715_v25  ;;  %v1237_v61 = vmul.f32 %v7685_v34, %v1236_v48  ;;  %v1464_v25 = vld [vmem:[%s13508_s15 + $0x108] sm:$0xff]  ;;  %v1676_v48 = vld [vmem:[%s13512_s19 + $0x1f0] sm:$0xff]  ;;  %v490_v49 = vmul.f32 1.442695, %v484_v3  ;;  %v460_v10 = vadd.f32 %v7306_v51, %v297_v12  ;;  %vm7812_vm12 = vmor %vm1148_vm10, %vm1149_vm11 }
 0x10e   :  { %v1213_v16 = vmul.f32 1.442695, %v1206_v52  ;;  %1549 = vmatpush.msrb.mxu3 %v1464_v25  ;;  %v1154_v36 = vand.u32 2147483648, %v7594_v18  ;;  %v7796_v50 = vor.u32 1.1754944e-38, %v524_v41  ;;  %v1675_v53 = vld [vmem:[%s13512_s19 + $0x1e8] sm:$0xff]  ;;  %v1147_v54 = vadd.f32 %v7666_v26, %v1146_v63  ;;  %v1674_v18 = vld [vmem:[%s13512_s19 + $0x1e0] sm:$0xff] }
 0x10f   :  { %v5741_v20 = vpop.eup %5740  ;;  %v1085_v21 = vadd.f32 %v7600_v38, %v1065_v59  ;;  %v1238_v13 = vadd.f32 %v7685_v34, %v1237_v61  ;;  %v1463_v38 = vld [vmem:[%s13508_s15 + $0x100] sm:$0xff]  ;;  %v7817_v57 = vadd.f32 %v7620_v44, %v516_v46  ;;  %v598_v15 = vand.u32 2147483647, %v7653_v35  ;;  %v1671_v63 = vld [vmem:[%s13512_s19 + $0x1c8] sm:$0xff]  ;;  %v1669_v41 = vld [vmem:[%s13512_s19 + $0x1b8] sm:$0xff] }
 0x110   :  { %v7758_v45 = vadd.f32 1.0, %v5741_v20  ;;  %5746 = vpow2.f32 %v1213_v16  ;;  %v7765_v31 = vpop.eup %5742  ;;  %1550 = vmatpush.msrb.mxu3 %v1463_v38  ;;  %v568_v59 = vmul.f32 1.442695, %v561_v29  ;;  %v600_v0 = vand.u32 2147483648, %v7653_v35  ;;  %v1673_v20 = vld [vmem:[%s13512_s19 + $0x1d8] sm:$0xff] }
 0x111   :  { %v1205_v6 = vsub.f32 0.0, %v1085_v21  ;;  %v1242_v33 = vsel %vm1241_vm7, %v7685_v34, %v1238_v13  ;;  %v7776_v19 = vpop.eup %5744  ;;  %v485_v34 = vsub.f32 0.0, %v7704_v11  ;;  %v1189_v42 = vmul.f32 %v7765_v31, %v7682_v23 }
 0x112   :  { %5748 = vrcp.f32 %v7758_v45  ;;  %v1247_v32 = vsel %vm1244_vm9, %v1246_v30, %v1242_v33  ;;  %v7829_v5 = vmul.f32 %v7737_v1, %v7653_v35  ;;  %v560_v47 = vsub.f32 0.0, %v460_v10 }
 0x113   :  { %v1211_v40 = vmul.f32 1.442695, %v1205_v6  ;;  %v1280_v55 = vmax.f32 %v1171_v14, %v1247_v32  ;;  %v492_v12 = vmul.f32 1.442695, %v485_v34  ;;  %v1190_v56 = vsub.f32 1.0, %v1189_v42 }
 0x114   :  { %v1155_v16 = vor.u32 1.1754944e-38, %v1154_v36  ;;  %v1174_v25 = vmul.f32 %v7776_v19, %v7712_v17  ;;  %v1151_v21 = vsel %vm7812_vm12, %v7666_v26, %v1147_v54  ;;  %v1230_v30 = vand.u32 2147483648, %v7758_v45  ;;  %v1672_v26 = vld [vmem:[%s13512_s19 + $0x1d0] sm:$0xff] }
 0x115   :  { %5750 = vpow2.f32 %v1211_v40  ;;  %1387 = vmatmul.f32.vlgmr.msrb.gmra.mxu2 %v1280_v55  ;;  %v1191_v38 = vmul.f32 %v7765_v31, %v1190_v56  ;;  %v1228_v3 = vand.u32 2147483647, %v7758_v45  ;;  %v591_v14 = vsub.f32 1.0, %v7829_v5  ;;  %v1661_v56 = vld [vmem:[%s13512_s19 + $0x178] sm:$0xff] }
 0x116   :  { %v5747_v11 = vpop.eup %5746  ;;  %1730 = vmatpush.msrb.mxu2 %v1677_v8  ;;  %5752 = vrcp.f32 %v7770_v39  ;;  %v566_v32 = vmul.f32 1.442695, %v560_v47  ;;  %v1156_v40 = vsel %vm7839_vm13, %v1155_v16, %v1151_v21  ;;  %v1175_v8 = vsub.f32 1.0, %v1174_v25  ;;  %v1660_v25 = vld [vmem:[%s13512_s19 + $0x170] sm:$0xff] }
 0x117   :  { %v7799_v52 = vadd.f32 1.0, %v5747_v11  ;;  %vm1224_vm2 = vweird.f32 %v7758_v45  ;;  %v1199_v42 = vand.u32 2147483648, %v7682_v23  ;;  %v1192_v11 = vadd.f32 %v7765_v31, %v1191_v38  ;;  %v1662_v38 = vld [vmem:[%s13512_s19 + $0x180] sm:$0xff] }
 0x118   :  { %v7806_v51 = vpop.eup %5748  ;;  %1731 = vmatpush.msrb.mxu2 %v1676_v48  ;;  %v1231_v48 = vor.u32 1.1754944e-38, %v1230_v30  ;;  %vm1194_vm4 = vweird.f32 %v7765_v31  ;;  %vm594_vm5 = vweird.f32 %v7653_v35  ;;  %vm1229_vm6 = vcmp.eq.f32.partialorder %v1228_v3, 8.507059e+37 }
 0x119   :  { %v1220_v61 = vmul.f32 %v7806_v51, %v7758_v45  ;;  %5754 = vrcp.f32 %v7799_v52  ;;  %vm1225_vm14 = vweird.f32 %v7806_v51  ;;  %v1670_v45 = vld [vmem:[%s13512_s19 + $0x1c0] sm:$0xff]  ;;  %vm1269_vm7 = vweird.f32 %v7799_v52 }
 0x11a   :  { %5756 = vpow2.f32 %v490_v49  ;;  %1732 = vmatpush.msrb.mxu2 %v1675_v53  ;;  %vm1226_vm3 = vmor %vm1224_vm2, %vm1225_vm14  ;;  %v1275_v10 = vand.u32 2147483648, %v7799_v52  ;;  %v1273_v2 = vand.u32 2147483647, %v7799_v52  ;;  %vm1193_vm9 = vweird.f32 %v7682_v23 }
 0x11b   :  { %v5751_v60 = vpop.eup %5750  ;;  %v1221_v13 = vsub.f32 1.0, %v1220_v61  ;;  %5758 = vpow2.f32 %v492_v12  ;;  %v1176_v61 = vmul.f32 %v7776_v19, %v1175_v8  ;;  %vm7903_vm10 = vmor %vm1193_vm9, %vm1194_vm4  ;;  %vm1178_vm11 = vweird.f32 %v7712_v17 }
 0x11c   :  { %v7843_v7 = vadd.f32 1.0, %v5751_v60  ;;  %1733 = vmatpush.msrb.mxu2 %v1674_v18  ;;  %v7847_v6 = vpop.eup %5752  ;;  %5760 = vpow2.f32 %v568_v59  ;;  %v1197_v59 = vand.u32 2147483647, %v7682_v23  ;;  %v592_v16 = vmul.f32 %v7737_v1, %v591_v14  ;;  %v1668_v60 = vld [vmem:[%s13512_s19 + $0x1b0] sm:$0xff] }
 0x11d   :  { %1531 = vmatmul.f32.vlgmr.msra.gmra.mxu2 %v1280_v55  ;;  %v1222_v33 = vmul.f32 %v7806_v51, %v1221_v13  ;;  %v1276_v37 = vor.u32 1.1754944e-38, %v1275_v10  ;;  %vm1179_vm13 = vweird.f32 %v7776_v19  ;;  %v1200_v13 = vor.u32 1.1754944e-38, %v1199_v42  ;;  %v1709_v10 = vld [vmem:[%s13512_s19 + $0x2f8] sm:$0xff] }
 0x11e   :  { %5762 = vrcp.f32 %v7843_v7  ;;  %1734 = vmatpush.msrb.mxu2 %v1673_v20  ;;  %v1196_v20 = vsel %vm7903_vm10, %v7765_v31, %v1192_v11  ;;  %vm7932_vm14 = vcmp.eq.f32.partialorder %v1273_v2, 8.507059e+37  ;;  %v1184_v31 = vand.u32 2147483648, %v7712_v17  ;;  %vm7958_vm4 = vmor %vm1178_vm11, %vm1179_vm13 }
 0x11f   :  { %v7861_v55 = vpop.eup %5754  ;;  %v1223_v34 = vadd.f32 %v7806_v51, %v1222_v33  ;;  %5764 = vpow2.f32 %v566_v32  ;;  %vm7939_vm2 = vcmp.eq.f32.partialorder %v522_v22, 8.507059e+37  ;;  %v1659_v33 = vld [vmem:[%s13512_s19 + $0x168] sm:$0xff]  ;;  %v1177_v3 = vadd.f32 %v7776_v19, %v1176_v61  ;;  %v1708_v61 = vld [vmem:[%s13512_s19 + $0x2f0] sm:$0xff] }
 0x120   :  { %v7869_v46 = vpop.eup %5756  ;;  %v1265_v29 = vmul.f32 %v7861_v55, %v7799_v52  ;;  %1735 = vmatpush.msrb.mxu2 %v1672_v26  ;;  %vm1270_vm8 = vweird.f32 %v7861_v55  ;;  %v1667_v26 = vld [vmem:[%s13512_s19 + $0x1a8] sm:$0xff]  ;;  %v1182_v14 = vand.u32 2147483647, %v7712_v17  ;;  %v1258_v17 = vand.u32 2147483647, %v7843_v7 }
 0x121   :  { %v1227_v49 = vsel %vm1226_vm3, %v7806_v51, %v1223_v34  ;;  %v7884_v36 = vpop.eup %5758  ;;  %vm7926_vm12 = vmor %vm1269_vm7, %vm1270_vm8  ;;  %vm1198_vm3 = vcmp.eq.f32.partialorder %v1197_v59, 8.507059e+37  ;;  %v1666_v34 = vld [vmem:[%s13512_s19 + $0x1a0] sm:$0xff]  ;;  %v1185_v62 = vor.u32 1.1754944e-38, %v1184_v31  ;;  %v1181_v2 = vsel %vm7958_vm4, %v7776_v19, %v1177_v3  ;;  %v1645_v3 = vld [vmem:[%s13512_s19 + $0xf8] sm:$0xff] }
 0x122   :  { %v1266_v53 = vsub.f32 1.0, %v1265_v29  ;;  %1736 = vmatpush.msrb.mxu2 %v1671_v63  ;;  %v1232_v54 = vsel %vm1229_vm6, %v1231_v48, %v1227_v49  ;;  %v5761_v12 = vpop.eup %5760  ;;  %v1201_v22 = vsel %vm1198_vm3, %v1200_v13, %v1196_v20  ;;  %v1260_v63 = vand.u32 2147483648, %v7843_v7  ;;  %vm7976_vm8 = vmor %vm518_vm15, %vm519_vm0  ;;  %v1658_v49 = vld [vmem:[%s13512_s19 + $0x160] sm:$0xff]  ;;  %v1663_v20 = vld [vmem:[%s13512_s19 + $0x188] sm:$0xff] }
 0x123   :  { %v7891_v51 = vmax.f32 %v1156_v40, %v1232_v54  ;;  %vm595_vm6 = vweird.f32 %v7737_v1  ;;  %v7980_v11 = vadd.f32 1.0, %v5761_v12  ;;  %v1665_v54 = vld [vmem:[%s13512_s19 + $0x198] sm:$0xff]  ;;  %vm7997_vm15 = vcmp.eq.f32.partialorder %v1182_v14, 8.507059e+37  ;;  %v1652_v29 = vld [vmem:[%s13512_s19 + $0x130] sm:$0xff] }
 0x124   :  { %v7899_v18 = vpop.eup %5762  ;;  %1737 = vmatpush.msrb.mxu2 %v1670_v45  ;;  %v1267_v47 = vmul.f32 %v7861_v55, %v1266_v53  ;;  %v593_v53 = vadd.f32 %v7737_v1, %v592_v16  ;;  %vm1254_vm0 = vweird.f32 %v7843_v7  ;;  %vm8007_vm9 = vmor %vm594_vm5, %vm595_vm6  ;;  %v8013_v59 = vmul.f32 %v7847_v6, %v7770_v39  ;;  %v1664_v16 = vld [vmem:[%s13512_s19 + $0x190] sm:$0xff] }
 0x125   :  { %v1250_v23 = vmul.f32 %v7899_v18, %v7843_v7  ;;  %1367 = vmatmul.f32.vlgmr.msrb.gmra.mxu1 %v7891_v51  ;;  %vm1255_vm7 = vweird.f32 %v7899_v18  ;;  %v5765_v48 = vpop.eup %5764  ;;  %v8016_v19 = vadd.f32 1.0, %v7884_v36  ;;  %v1657_v7 = vld [vmem:[%s13512_s19 + $0x158] sm:$0xff]  ;;  %v521_v36 = vsel %vm7976_vm8, %v7620_v44, %v7817_v57  ;;  %v1656_v57 = vld [vmem:[%s13512_s19 + $0x150] sm:$0xff] }
 0x126   :  { %1738 = vmatpush.msrb.mxu2 %v1669_v41  ;;  %1710 = vmatpush.msrb.mxu1 %v1661_v56  ;;  %v1268_v30 = vadd.f32 %v7861_v55, %v1267_v47  ;;  %vm8027_vm5 = vmor %vm1254_vm0, %vm1255_vm7  ;;  %v1261_v47 = vor.u32 1.1754944e-38, %v1260_v63  ;;  %vm1259_vm10 = vcmp.eq.f32.partialorder %v1258_v17, 8.507059e+37  ;;  %vm8043_vm11 = vcmp.eq.f32.partialorder %v598_v15, 8.507059e+37  ;;  %v1704_v63 = vld [vmem:[%s13512_s19 + $0x2d0] sm:$0xff]  ;;  %v1690_v17 = vld [vmem:[%s13512_s19 + $0x260] sm:$0xff] }
 0x127   :  { %v1251_v32 = vsub.f32 1.0, %v1250_v23  ;;  %v601_v44 = vor.u32 1.1754944e-38, %v600_v0  ;;  %5766 = vrcp.f32 %v7980_v11  ;;  %v1186_v15 = vsel %vm7997_vm15, %v1185_v62, %v1181_v2  ;;  %v1651_v2 = vld [vmem:[%s13512_s19 + $0x128] sm:$0xff] }
 0x128   :  { %1739 = vmatpush.msrb.mxu2 %v1668_v60  ;;  %1711 = vmatpush.msrb.mxu1 %v1660_v25  ;;  %v1272_v40 = vsel %vm7926_vm12, %v7861_v55, %v1268_v30  ;;  %v597_v35 = vsel %vm8007_vm9, %v7737_v1, %v593_v53  ;;  %5768 = vrcp.f32 %v7668_v27  ;;  %v8063_v0 = vadd.f32 1.0, %v5765_v48  ;;  %v1693_v1 = vld [vmem:[%s13512_s19 + $0x278] sm:$0xff]  ;;  %v1650_v60 = vld [vmem:[%s13512_s19 + $0x120] sm:$0xff] }
 0x129   :  { %v1277_v42 = vsel %vm7932_vm14, %v1276_v37, %v1272_v40  ;;  %v1252_v55 = vmul.f32 %v7899_v18, %v1251_v32  ;;  %v8071_v21 = vadd.f32 1.0, %v7724_v4  ;;  %5770 = vrcp.f32 %v8016_v19  ;;  %v1655_v37 = vld [vmem:[%s13512_s19 + $0x148] sm:$0xff]  ;;  %v1706_v4 = vld [vmem:[%s13512_s19 + $0x2e0] sm:$0xff] }
 0x12a   :  { %1740 = vmatpush.msrb.mxu2 %v1667_v26  ;;  %1712 = vmatpush.msrb.mxu1 %v1659_v33  ;;  %v7982_v45 = vmax.f32 %v1201_v22, %v1277_v42  ;;  %v500_v13 = vsub.f32 1.0, %v7680_v28  ;;  %v8082_v30 = vadd.f32 1.0, %v7869_v46  ;;  %v526_v31 = vsel %vm7939_vm2, %v7796_v50, %v521_v36  ;;  %v1692_v26 = vld [vmem:[%s13512_s19 + $0x270] sm:$0xff]  ;;  %v1654_v50 = vld [vmem:[%s13512_s19 + $0x140] sm:$0xff]  ;;  %v1705_v33 = vld [vmem:[%s13512_s19 + $0x2d8] sm:$0xff] }
 0x12b   :  { %v1253_v41 = vadd.f32 %v7899_v18, %v1252_v55  ;;  %v602_v28 = vsel %vm8043_vm11, %v601_v44, %v597_v35  ;;  %v576_v46 = vsub.f32 1.0, %v8013_v59  ;;  %5772 = vpow2.f32 %v7670_v9  ;;  %v1691_v32 = vld [vmem:[%s13512_s19 + $0x268] sm:$0xff]  ;;  %v1653_v22 = vld [vmem:[%s13512_s19 + $0x138] sm:$0xff] }
 0x12c   :  { %1741 = vmatpush.msrb.mxu2 %v1666_v34  ;;  %1427 = vmatmul.f32.vlgmr.msra.gmra.mxu0 %v7982_v45  ;;  %5774 = vrcp.f32 %v8063_v0  ;;  %v635_v9 = vmax.f32 %v526_v31, %v602_v28  ;;  %v501_v40 = vmul.f32 %v7640_v58, %v500_v13  ;;  %v1644_v34 = vld [vmem:[%s13512_s19 + $0xf0] sm:$0xff]  ;;  %vm503_vm12 = vweird.f32 %v7568_v24  ;;  %v1689_v59 = vld [vmem:[%s13512_s19 + $0x258] sm:$0xff]  ;;  %v1687_v31 = vld [vmem:[%s13512_s19 + $0x248] sm:$0xff] }
 0x12d   :  { %1713 = vmatpush.msrb.mxu1 %v1658_v49  ;;  %1770 = vmatpush.msra.mxu0 %v1709_v10  ;;  %v1257_v23 = vsel %vm8027_vm5, %v7899_v18, %v1253_v41  ;;  %v1707_v18 = vld [vmem:[%s13512_s19 + $0x2e8] sm:$0xff]  ;;  %v8105_v52 = vpop.eup %5766  ;;  %5776 = vrcp.f32 %v8071_v21  ;;  %v577_v42 = vmul.f32 %v7847_v6, %v576_v46  ;;  %vm504_vm13 = vweird.f32 %v7640_v58  ;;  %v1700_v28 = vld [vmem:[%s13512_s19 + $0x2b0] sm:$0xff] }
 0x12e   :  { %1742 = vmatpush.msrb.mxu2 %v1665_v54  ;;  %1511 = vmatmul.f32.vlgmr.msra.gmra.mxu1 %v7891_v51  ;;  %v1262_v25 = vsel %vm1259_vm10, %v1261_v47, %v1257_v23  ;;  %v8114_v14 = vpop.eup %5768  ;;  %5778 = vrcp.f32 %v8082_v30  ;;  %v8136_v55 = vmul.f32 %v8105_v52, %v7980_v11  ;;  %v1643_v49 = vld [vmem:[%s13512_s19 + $0xe8] sm:$0xff]  ;;  %v507_v10 = vand.u32 2147483647, %v7568_v24  ;;  %vm8179_vm3 = vmor %vm503_vm12, %vm504_vm13 }
 0x12f   :  { %1714 = vmatpush.msrb.mxu1 %v1657_v7  ;;  %1771 = vmatpush.msra.mxu0 %v1708_v61  ;;  %v8065_v51 = vmax.f32 %v1186_v15, %v1262_v25  ;;  %v8125_v8 = vpop.eup %5770  ;;  %v509_v62 = vand.u32 2147483648, %v7568_v24  ;;  %vm579_vm14 = vweird.f32 %v7770_v39  ;;  %vm580_vm2 = vweird.f32 %v7847_v6  ;;  %v1702_v7 = vld [vmem:[%s13512_s19 + $0x2c0] sm:$0xff]  ;;  %v1637_v61 = vld [vmem:[%s13512_s19 + $0xb8] sm:$0xff] }
 0x130   :  { %1743 = vmatpush.msrb.mxu2 %v1664_v16  ;;  %v8160_v54 = vmul.f32 %v8125_v8, %v8016_v19  ;;  %v502_v12 = vadd.f32 %v7640_v58, %v501_v40  ;;  %v585_v41 = vand.u32 2147483648, %v7770_v39  ;;  %v578_v5 = vadd.f32 %v7847_v6, %v577_v42  ;;  %v1642_v24 = vld [vmem:[%s13512_s19 + $0xe0] sm:$0xff]  ;;  %vm8201_vm4 = vmor %vm579_vm14, %vm580_vm2 }
 0x131   :  { %1715 = vmatpush.msrb.mxu1 %v1656_v57  ;;  %1772 = vmatpush.msra.mxu0 %v1707_v18  ;;  %v5773_v48 = vpop.eup %5772  ;;  %v583_v47 = vand.u32 2147483647, %v7770_v39  ;;  %v8188_v16 = vadd.f32 1.0, %v7708_v43  ;;  %v621_v23 = vsub.f32 1.0, %v8136_v55  ;;  %v8207_v43 = vmul.f32 %v8114_v14, %v7668_v27  ;;  %v1688_v18 = vld [vmem:[%s13512_s19 + $0x250] sm:$0xff]  ;;  %v1701_v39 = vld [vmem:[%s13512_s19 + $0x2b8] sm:$0xff] }
 0x132   :  { %1407 = vmatmul.f32.vlgmr.msra.gmra.mxu3 %v8065_v51  ;;  %1744 = vmatpush.msrb.mxu2 %v1663_v20  ;;  %v8156_v53 = vpop.eup %5774  ;;  %vm8220_vm6 = vcmp.eq.f32.partialorder %v507_v10, 8.507059e+37  ;;  %v510_v25 = vor.u32 1.1754944e-38, %v509_v62  ;;  %v8224_v35 = vadd.f32 1.0, %v5773_v48  ;;  %v545_v20 = vsub.f32 1.0, %v8160_v54  ;;  %v1685_v48 = vld [vmem:[%s13512_s19 + $0x238] sm:$0xff]  ;;  %v1646_v10 = vld [vmem:[%s13512_s19 + $0x100] sm:$0xff] }
 0x133   :  { %1750 = vmatpush.msra.mxu3 %v1693_v1  ;;  %1716 = vmatpush.msrb.mxu1 %v1655_v37  ;;  %v8167_v56 = vpop.eup %5776  ;;  %v8211_v57 = vmul.f32 %v8156_v53, %v8063_v0  ;;  %v1649_v1 = vld [vmem:[%s13512_s19 + $0x118] sm:$0xff]  ;;  %v506_v37 = vsel %vm8179_vm3, %v7640_v58, %v502_v12  ;;  %v586_v13 = vor.u32 1.1754944e-38, %v585_v41  ;;  %v582_v58 = vsel %vm8201_vm4, %v7847_v6, %v578_v5 }
 0x134   :  { %1773 = vmatpush.msra.mxu0 %v1706_v4  ;;  %1745 = vmatpush.msrb.mxu2 %v1662_v38  ;;  %v8185_v36 = vpop.eup %5778  ;;  %v8238_v4 = vmul.f32 %v8167_v56, %v8071_v21  ;;  %vm8253_vm7 = vcmp.eq.f32.partialorder %v583_v47, 8.507059e+37  ;;  %5780 = vrcp.f32 %v8188_v16  ;;  %v511_v40 = vsel %vm8220_vm6, %v510_v25, %v506_v37  ;;  %v1697_v12 = vld [vmem:[%s13512_s19 + $0x298] sm:$0xff]  ;;  %v1682_v37 = vld [vmem:[%s13512_s19 + $0x220] sm:$0xff] }
 0x135   :  { %1751 = vmatpush.msra.mxu3 %v1692_v26  ;;  %1571 = vmatmul.f32.vlgmr.msrb.gmra.mxu0 %v7982_v45  ;;  %v1703_v45 = vld [vmem:[%s13512_s19 + $0x2c8] sm:$0xff]  ;;  %v8242_v38 = vmul.f32 %v8185_v36, %v8082_v30  ;;  %v1640_v26 = vld [vmem:[%s13512_s19 + $0xd0] sm:$0xff]  ;;  %v606_v6 = vsub.f32 1.0, %v8211_v57  ;;  %v232_v42 = vand.u32 2147483648, %v7668_v27  ;;  %v223_v55 = vsub.f32 1.0, %v8207_v43  ;;  %v1694_v43 = vld [vmem:[%s13512_s19 + $0x280] sm:$0xff] }
 0x136   :  { %1717 = vmatpush.msrb.mxu1 %v1654_v50  ;;  %1746 = vmatmul.f32.vlgmr.msrb.gmra.mxu2 %v635_v9  ;;  %v1648_v50 = vld [vmem:[%s13512_s19 + $0x110] sm:$0xff]  ;;  %v622_v9 = vmul.f32 %v8105_v52, %v621_v23  ;;  %5782 = vrcp.f32 %v8224_v35  ;;  %vm625_vm8 = vweird.f32 %v8105_v52  ;;  %vm533_vm15 = vweird.f32 %v8082_v30 }
 0x137   :  { %1774 = vmatpush.msra.mxu0 %v1705_v33  ;;  %1810 = vmatpush.msra.mxu2 %v1645_v3  ;;  %v1686_v33 = vld [vmem:[%s13512_s19 + $0x240] sm:$0xff]  ;;  %v1699_v3 = vld [vmem:[%s13512_s19 + $0x2a8] sm:$0xff]  ;;  %v537_v54 = vand.u32 2147483647, %v8082_v30  ;;  %vm226_vm0 = vweird.f32 %v7668_v27  ;;  %vm548_vm9 = vweird.f32 %v8016_v19  ;;  %vm549_vm5 = vweird.f32 %v8125_v8 }
 0x138   :  { %1752 = vmatpush.msra.mxu3 %v1691_v32  ;;  %1718 = vmatpush.msrb.mxu1 %v1653_v22  ;;  %v1639_v32 = vld [vmem:[%s13512_s19 + $0xc8] sm:$0xff]  ;;  %v8301_v62 = vadd.f32 %v8105_v52, %v622_v9  ;;  %vm624_vm10 = vweird.f32 %v7980_v11  ;;  %v628_v47 = vand.u32 2147483647, %v7980_v11  ;;  %v554_v44 = vand.u32 2147483648, %v8016_v19  ;;  %vm8368_vm14 = vmor %vm548_vm9, %vm549_vm5 }
 0x139   :  { %1775 = vmatpush.msra.mxu0 %v1704_v63  ;;  %1811 = vmatpush.msra.mxu2 %v1644_v34  ;;  %v1647_v22 = vld [vmem:[%s13512_s19 + $0x108] sm:$0xff]  ;;  %v587_v63 = vsel %vm8253_vm7, %v586_v13, %v582_v58  ;;  %v546_v34 = vmul.f32 %v8125_v8, %v545_v20  ;;  %vm8336_vm11 = vmor %vm624_vm10, %vm625_vm8  ;;  %vm609_vm12 = vweird.f32 %v8063_v0  ;;  %vm610_vm13 = vweird.f32 %v8156_v53  ;;  %v1628_v13 = vld [vmem:[%s13512_s19 + $0x70] sm:$0xff] }
 0x13a   :  { %1753 = vmatpush.msra.mxu3 %v1690_v17  ;;  %1719 = vmatpush.msrb.mxu1 %v1652_v29  ;;  %v261_v17 = vsub.f32 1.0, %v8238_v4  ;;  %v530_v29 = vsub.f32 1.0, %v8242_v38  ;;  %v634_v41 = vmax.f32 %v511_v40, %v587_v63  ;;  %v8325_v23 = vpop.eup %5780  ;;  %v552_v15 = vand.u32 2147483647, %v8016_v19  ;;  %v1635_v19 = vld [vmem:[%s13512_s19 + $0xa8] sm:$0xff]  ;;  %vm8390_vm4 = vmor %vm609_vm12, %vm610_vm13 }
 0x13b   :  { %1776 = vmatpush.msra.mxu0 %v1703_v45  ;;  %1812 = vmatpush.msra.mxu2 %v1643_v49  ;;  %v1698_v45 = vld [vmem:[%s13512_s19 + $0x2a0] sm:$0xff]  ;;  %v8320_v5 = vadd.f32 %v8125_v8, %v546_v34  ;;  %v627_v25 = vsel %vm8336_vm11, %v8105_v52, %v8301_v62  ;;  %v615_v20 = vand.u32 2147483648, %v8063_v0  ;;  %vm534_vm2 = vweird.f32 %v8185_v36  ;;  %v1627_v9 = vld [vmem:[%s13512_s19 + $0x68] sm:$0xff]  ;;  %v1680_v34 = vld [vmem:[%s13512_s19 + $0x210] sm:$0xff] }
 0x13c   :  { %1551 = vmatmul.f32.vlgmr.msrb.gmra.mxu3 %v8065_v51  ;;  %1720 = vmatpush.msrb.mxu1 %v1651_v2  ;;  %v1641_v51 = vld [vmem:[%s13512_s19 + $0xd8] sm:$0xff]  ;;  %v1638_v49 = vld [vmem:[%s13512_s19 + $0xc0] sm:$0xff]  ;;  %v1684_v2 = vld [vmem:[%s13512_s19 + $0x230] sm:$0xff]  ;;  %vm629_vm3 = vcmp.eq.f32.partialorder %v628_v47, 8.507059e+37  ;;  %v539_v46 = vand.u32 2147483648, %v8082_v30  ;;  %vm227_vm6 = vweird.f32 %v8114_v14  ;;  %vm553_vm7 = vcmp.eq.f32.partialorder %v552_v15, 8.507059e+37 }
 0x13d   :  { %1754 = vmatpush.msra.mxu3 %v1689_v59  ;;  %1777 = vmatpush.msra.mxu0 %v1702_v7  ;;  %v630_v59 = vand.u32 2147483648, %v7980_v11  ;;  %v607_v7 = vmul.f32 %v8156_v53, %v606_v6  ;;  %v531_v11 = vmul.f32 %v8185_v36, %v530_v29  ;;  %v551_v58 = vsel %vm8368_vm14, %v8125_v8, %v8320_v5  ;;  %v1681_v8 = vld [vmem:[%s13512_s19 + $0x218] sm:$0xff]  ;;  %vm8415_vm8 = vmor %vm533_vm15, %vm534_vm2  ;;  %v1679_v62 = vld [vmem:[%s13512_s19 + $0x208] sm:$0xff] }
 0x13e   :  { %1813 = vmatpush.msra.mxu2 %v1642_v24  ;;  %1721 = vmatpush.msrb.mxu1 %v1650_v60  ;;  %v1683_v24 = vld [vmem:[%s13512_s19 + $0x228] sm:$0xff]  ;;  %v1629_v60 = vld [vmem:[%s13512_s19 + $0x78] sm:$0xff]  ;;  %v555_v6 = vor.u32 1.1754944e-38, %v554_v44  ;;  %vm8421_vm9 = vcmp.eq.f32.partialorder %v537_v54, 8.507059e+37  ;;  %v616_v40 = vor.u32 1.1754944e-38, %v615_v20  ;;  %vm265_vm5 = vweird.f32 %v8167_v56  ;;  %vm8455_vm10 = vmor %vm226_vm0, %vm227_vm6 }
 0x13f   :  { %1755 = vmatpush.msra.mxu3 %v1688_v18  ;;  %1778 = vmatpush.msra.mxu0 %v1701_v39  ;;  %v1696_v18 = vld [vmem:[%s13512_s19 + $0x290] sm:$0xff]  ;;  %v631_v4 = vor.u32 1.1754944e-38, %v630_v59  ;;  %v608_v38 = vadd.f32 %v8156_v53, %v607_v7  ;;  %vm264_vm11 = vweird.f32 %v8071_v21  ;;  %v233_v44 = vor.u32 1.1754944e-38, %v232_v42  ;;  %v1630_v15 = vld [vmem:[%s13512_s19 + $0x80] sm:$0xff] }
 0x140   :  { %1814 = vmatpush.msra.mxu2 %v1641_v51  ;;  %1722 = vmatpush.msrb.mxu1 %v1649_v1  ;;  %v1636_v39 = vld [vmem:[%s13512_s19 + $0xb0] sm:$0xff]  ;;  %v262_v51 = vmul.f32 %v8167_v56, %v261_v17  ;;  %v8356_v1 = vpop.eup %5782  ;;  %vm8472_vm0 = vmor %vm264_vm11, %vm265_vm5  ;;  %vm249_vm14 = vweird.f32 %v8224_v35  ;;  %vm211_vm6 = vweird.f32 %v8188_v16 }
 0x141   :  { %1756 = vmatpush.msra.mxu3 %v1687_v31  ;;  %1779 = vmatpush.msra.mxu0 %v1700_v28  ;;  %v613_v31 = vand.u32 2147483647, %v8063_v0  ;;  %v1695_v28 = vld [vmem:[%s13512_s19 + $0x288] sm:$0xff]  ;;  %v632_v0 = vsel %vm629_vm3, %v631_v4, %v627_v25  ;;  %v612_v17 = vsel %vm8390_vm4, %v8156_v53, %v608_v38  ;;  %v1632_v59 = vld [vmem:[%s13512_s19 + $0x90] sm:$0xff]  ;;  %v245_v47 = vmul.f32 %v8356_v1, %v8224_v35 }
 0x142   :  { %1815 = vmatpush.msra.mxu2 %v1640_v26  ;;  %1723 = vmatpush.msrb.mxu1 %v1648_v50  ;;  %v224_v50 = vmul.f32 %v8114_v14, %v223_v55  ;;  %v263_v63 = vadd.f32 %v8167_v56, %v262_v51  ;;  %v556_v55 = vsel %vm553_vm7, %v555_v6, %v551_v58  ;;  %v1620_v52 = vld [vmem:[%s13512_s19 + $0x30] sm:$0xff]  ;;  %v1619_v38 = vld [vmem:[%s13512_s19 + $0x28] sm:$0xff]  ;;  %vm250_vm2 = vweird.f32 %v8356_v1 }
 0x143   :  { %1757 = vmatpush.msra.mxu3 %v1686_v33  ;;  %1780 = vmatpush.msra.mxu0 %v1699_v3  ;;  %v532_v33 = vadd.f32 %v8185_v36, %v531_v11  ;;  %v1634_v3 = vld [vmem:[%s13512_s19 + $0xa0] sm:$0xff]  ;;  %vm8432_vm15 = vcmp.eq.f32.partialorder %v613_v31, 8.507059e+37  ;;  %v637_v29 = vmax.f32 %v556_v55, %v632_v0  ;;  %v246_v25 = vsub.f32 1.0, %v245_v47  ;;  %vm8527_vm3 = vmor %vm249_vm14, %vm250_vm2  ;;  %v1840_v30 = vld [vmem:[%s13512_s19 + $0x350] sm:$0xff] }
 0x144   :  { %1816 = vmatpush.msra.mxu2 %v1639_v32  ;;  %1724 = vmatpush.msrb.mxu1 %v1647_v22  ;;  %v225_v53 = vadd.f32 %v8114_v14, %v224_v50  ;;  %v617_v7 = vsel %vm8432_vm15, %v616_v40, %v612_v17  ;;  %v267_v5 = vsel %vm8472_vm0, %v8167_v56, %v263_v63  ;;  %v1631_v56 = vld [vmem:[%s13512_s19 + $0x88] sm:$0xff]  ;;  %v1617_v50 = vld [vmem:[%s13512_s19 + $0x18] sm:$0xff]  ;;  %vm212_vm4 = vweird.f32 %v8325_v23  ;;  %v1842_v55 = vld [vmem:[%s13512_s19 + $0x360] sm:$0xff] }
 0x145   :  { %1758 = vmatpush.msra.mxu3 %v1685_v48  ;;  %1781 = vmatpush.msra.mxu0 %v1698_v45  ;;  %v1626_v48 = vld [vmem:[%s13512_s19 + $0x60] sm:$0xff]  ;;  %v1633_v45 = vld [vmem:[%s13512_s19 + $0x98] sm:$0xff]  ;;  %v536_v54 = vsel %vm8415_vm8, %v8185_v36, %v532_v33  ;;  %v247_v4 = vmul.f32 %v8356_v1, %v246_v25  ;;  %v215_v0 = vand.u32 2147483647, %v8188_v16  ;;  %vm213_vm8 = vmor %vm211_vm6, %vm212_vm4  ;;  %vm2029_vm2 = vcmask 523264  }
 0x146   :  { %1817 = vmatpush.msra.mxu2 %v1638_v49  ;;  %1725 = vmatpush.msrb.mxu1 %v1646_v10  ;;  %v540_v49 = vor.u32 1.1754944e-38, %v539_v46  ;;  %v270_v10 = vand.u32 2147483648, %v8071_v21  ;;  %v1625_v36 = vld [vmem:[%s13512_s19 + $0x58] sm:$0xff]  ;;  %v253_v46 = vand.u32 2147483647, %v8224_v35  ;;  %v1961_v47 = vld [vmem:[%s13510_s17 + $0x2d0] sm:$0xff] }
 0x147   :  { %1759 = vmatpush.msra.mxu3 %v1684_v2  ;;  %1782 = vmatpush.msra.mxu0 %v1697_v12  ;;  %v230_v12 = vand.u32 2147483647, %v7668_v27  ;;  %v1623_v27 = vld [vmem:[%s13512_s19 + $0x48] sm:$0xff]  ;;  %v248_v58 = vadd.f32 %v8356_v1, %v247_v4  ;;  %v1845_v63 = vld [vmem:[%s13512_s19 + $0x378] sm:$0xff]  ;;  %v1836_v2 = vld [vmem:[%s13512_s19 + $0x330] sm:$0xff] }
 0x148   :  { %1818 = vmatpush.msra.mxu2 %v1637_v61  ;;  %1726 = vmatmul.f32.vlgmr.msrb.gmra.mxu1 %v634_v41  ;;  %v268_v41 = vand.u32 2147483647, %v8071_v21  ;;  %v1678_v21 = vld [vmem:[%s13512_s19 + $0x200] sm:$0xff]  ;;  %v271_v57 = vor.u32 1.1754944e-38, %v270_v10  ;;  %vm254_vm7 = vcmp.eq.f32.partialorder %v253_v46, 8.507059e+37  ;;  %v1841_v17 = vld [vmem:[%s13512_s19 + $0x358] sm:$0xff] }
 0x149   :  { %1760 = vmatpush.msra.mxu3 %v1683_v24  ;;  %1790 = vmatpush.msra.mxu1 %v1629_v60  ;;  %v1624_v24 = vld [vmem:[%s13512_s19 + $0x50] sm:$0xff]  ;;  %v541_v60 = vsel %vm8421_vm9, %v540_v49, %v536_v54  ;;  %vm231_vm12 = vcmp.eq.f32.partialorder %v230_v12, 8.507059e+37  ;;  %v252_v33 = vsel %vm8527_vm3, %v8356_v1, %v248_v58  ;;  %vm216_vm9 = vcmp.eq.f32.partialorder %v215_v0, 8.507059e+37  ;;  %v1899_v49 = vld [vmem:[%s13510_s17 + $0xe0] sm:$0xff] }
 0x14a   :  { %1783 = vmatpush.msra.mxu0 %v1696_v18  ;;  %1819 = vmatpush.msra.mxu2 %v1636_v39  ;;  %v636_v11 = vmax.f32 %v541_v60, %v617_v7  ;;  %v229_v18 = vsel %vm8455_vm10, %v8114_v14, %v225_v53  ;;  %vm269_vm13 = vcmp.eq.f32.partialorder %v268_v41, 8.507059e+37  ;;  %v207_v39 = vmul.f32 %v8325_v23, %v8188_v16  ;;  %v1622_v14 = vld [vmem:[%s13512_s19 + $0x40] sm:$0xff]  ;;  %v1837_v53 = vld [vmem:[%s13512_s19 + $0x338] sm:$0xff]  ;;  %v1897_v54 = vld [vmem:[%s13510_s17 + $0xd0] sm:$0xff] }
 0x14b   :  { %1761 = vmatpush.msra.mxu3 %v1682_v37  ;;  %1791 = vmatpush.msra.mxu1 %v1628_v13  ;;  %v272_v42 = vsel %vm269_vm13, %v271_v57, %v267_v5  ;;  %v234_v20 = vsel %vm231_vm12, %v233_v44, %v229_v18  ;;  %v1621_v13 = vld [vmem:[%s13512_s19 + $0x38] sm:$0xff]  ;;  %v5701_v10 = vld [vmem:[%s13509_s16] ss:$0 sm:$0xff]  ;;  %v1835_v41 = vld [vmem:[%s13512_s19 + $0x328] sm:$0xff]  ;;  %s11513_s16 = sld [smem:[#allocation2 + $0xa]] }
 0x14c   :  { %1784 = vmatpush.msra.mxu0 %v1695_v28  ;;  %1820 = vmatpush.msra.mxu2 %v1635_v19  ;;  %v275_v51 = vmax.f32 %v234_v20, %v272_v42  ;;  %v208_v37 = vsub.f32 1.0, %v207_v39  ;;  %v255_v28 = vand.u32 2147483648, %v8224_v35  ;;  %v1618_v19 = vld [vmem:[%s13512_s19 + $0x20] sm:$0xff]  ;;  %v1616_v35 = vld [vmem:[%s13512_s19 + $0x10] sm:$0xff]  ;;  %v1833_v60 = vld [vmem:[%s13512_s19 + $0x318] sm:$0xff] }
 0x14d   :  { %1762 = vmatpush.msra.mxu3 %v1681_v8  ;;  %1792 = vmatpush.msra.mxu1 %v1627_v9  ;;  %v217_v9 = vand.u32 2147483648, %v8188_v16  ;;  %v1614_v16 = vld [vmem:[%s13512_s19] sm:$0xff]  ;;  %v1893_v7 = vld [vmem:[%s13510_s17 + $0xb0] sm:$0xff] }
 0x14e   :  { %1785 = vmatpush.msra.mxu0 %v1694_v43  ;;  %1821 = vmatpush.msra.mxu2 %v1634_v3  ;;  %v209_v31 = vmul.f32 %v8325_v23, %v208_v37  ;;  %v256_v6 = vor.u32 1.1754944e-38, %v255_v28  ;;  %v1615_v43 = vld [vmem:[%s13512_s19 + $0x8] sm:$0xff]  ;;  %v1895_v12 = vld [vmem:[%s13510_s17 + $0xc0] sm:$0xff]  ;;  %v1933_v5 = vld [vmem:[%s13510_s17 + $0x1f0] sm:$0xff] }
 0x14f   :  { %1763 = vmatpush.msra.mxu3 %v1680_v34  ;;  %1786 = vmatmul.f32.vlgmr.msra.gmra.mxu0 %v637_v29  ;;  %v218_v32 = vor.u32 1.1754944e-38, %v217_v9  ;;  %v1843_v34 = vld [vmem:[%s13512_s19 + $0x368] sm:$0xff]  ;;  %v1901_v29 = vld [vmem:[%s13510_s17 + $0xf0] sm:$0xff]  ;;  %v1834_v61 = vld [vmem:[%s13512_s19 + $0x320] sm:$0xff] }
 0x150   :  { %1793 = vmatpush.msra.mxu1 %v1626_v48  ;;  %1822 = vmatpush.msra.mxu2 %v1633_v45  ;;  %v210_v8 = vadd.f32 %v8325_v23, %v209_v31  ;;  %v257_v22 = vsel %vm254_vm7, %v256_v6, %v252_v33  ;;  %v1839_v48 = vld [vmem:[%s13512_s19 + $0x348] sm:$0xff]  ;;  %v1838_v45 = vld [vmem:[%s13512_s19 + $0x340] sm:$0xff]  ;;  %v1889_v42 = vld [vmem:[%s13510_s17 + $0x90] sm:$0xff] }
 0x151   :  { %1764 = vmatpush.msra.mxu3 %v1679_v62  ;;  %2032 = vmatpush.msrb.mxu0 %v1901_v29  ;;  %v1931_v25 = vld [vmem:[%s13510_s17 + $0x1e0] sm:$0xff]  ;;  %v1957_v4 = vld [vmem:[%s13510_s17 + $0x2b0] sm:$0xff] }
 0x152   :  { %1794 = vmatpush.msra.mxu1 %v1625_v36  ;;  %1823 = vmatpush.msra.mxu2 %v1632_v59  ;;  %v214_v3 = vsel %vm213_vm8, %v8325_v23, %v210_v8  ;;  %v1844_v23 = vld [vmem:[%s13512_s19 + $0x370] sm:$0xff]  ;;  %v1887_v20 = vld [vmem:[%s13510_s17 + $0x80] sm:$0xff]  ;;  %vm5143_vm8 = vcmask 123904  }
 0x153   :  { %1765 = vmatpush.msra.mxu3 %v1678_v21  ;;  %v219_v40 = vsel %vm216_vm9, %v218_v32, %v214_v3  ;;  %2033 = vmatpush.msrb.mxu0 %v1899_v49  ;;  %v1965_v36 = vld [vmem:[%s13510_s17 + $0x2f0] sm:$0xff]  ;;  %v1963_v21 = vld [vmem:[%s13510_s17 + $0x2e0] sm:$0xff]  ;;  %vm5180_vm9 = vcmask 9216  }
 0x154   :  { %1795 = vmatpush.msra.mxu1 %v1624_v24  ;;  %1766 = vmatmul.f32.vlgmr.msra.gmra.mxu3 %v636_v11  ;;  %v274_v1 = vmax.f32 %v219_v40, %v257_v22  ;;  %v1891_v24 = vld [vmem:[%s13510_s17 + $0xa0] sm:$0xff]  ;;  %v1997_v26 = vld [vmem:[%s13510_s17 + $0x3f0] sm:$0xff] }
 0x155   :  { %1824 = vmatpush.msra.mxu2 %v1631_v56  ;;  %1846 = vmatpush.msrb.mxu3 %v1845_v63  ;;  %v1830_v31 = vld [vmem:[%s13512_s19 + $0x300] sm:$0xff]  ;;  %v1925_v8 = vld [vmem:[%s13510_s17 + $0x1b0] sm:$0xff] }
 0x156   :  { %1796 = vmatpush.msra.mxu1 %v1623_v27  ;;  %2034 = vmatpush.msrb.mxu0 %v1897_v54  ;;  %v1927_v28 = vld [vmem:[%s13510_s17 + $0x1c0] sm:$0xff]  ;;  %v1953_v9 = vld [vmem:[%s13510_s17 + $0x290] sm:$0xff] }
 0x157   :  { %1825 = vmatpush.msra.mxu2 %v1630_v15  ;;  %1847 = vmatpush.msrb.mxu3 %v1844_v23  ;;  %v1832_v15 = vld [vmem:[%s13512_s19 + $0x310] sm:$0xff]  ;;  %v1883_v46 = vld [vmem:[%s13510_s17 + $0x60] sm:$0xff] }
 0x158   :  { %1797 = vmatpush.msra.mxu1 %v1622_v14  ;;  %1826 = vmatmul.f32.vlgmr.msra.gmra.mxu2 %v275_v51  ;;  %v1959_v14 = vld [vmem:[%s13510_s17 + $0x2c0] sm:$0xff]  ;;  %v1831_v51 = vld [vmem:[%s13512_s19 + $0x308] sm:$0xff]  ;;  %v1949_v63 = vld [vmem:[%s13510_s17 + $0x270] sm:$0xff] }
 0x159   :  { %1848 = vmatpush.msrb.mxu3 %v1843_v34  ;;  %2072 = vmatpush.msrb.mxu2 %v1965_v36  ;;  %v1995_v0 = vld [vmem:[%s13510_s17 + $0x3e0] sm:$0xff]  ;;  %v1877_v34 = vld [vmem:[%s13510_s17 + $0x30] sm:$0xff] }
 0x15a   :  { %1798 = vmatpush.msra.mxu1 %v1621_v13  ;;  %2035 = vmatpush.msrb.mxu0 %v1895_v12  ;;  %v1951_v3 = vld [vmem:[%s13510_s17 + $0x280] sm:$0xff]  ;;  %v1989_v49 = vld [vmem:[%s13510_s17 + $0x3b0] sm:$0xff] }
 0x15b   :  { %1849 = vmatpush.msrb.mxu3 %v1842_v55  ;;  %2073 = vmatpush.msrb.mxu2 %v1963_v21  ;;  %v1879_v22 = vld [vmem:[%s13510_s17 + $0x40] sm:$0xff]  ;;  %v1941_v21 = vld [vmem:[%s13510_s17 + $0x230] sm:$0xff] }
 0x15c   :  { %1799 = vmatpush.msra.mxu1 %v1620_v52  ;;  %2036 = vmatpush.msrb.mxu0 %v1893_v7  ;;  %v1929_v52 = vld [vmem:[%s13510_s17 + $0x1d0] sm:$0xff]  ;;  %v1991_v55 = vld [vmem:[%s13510_s17 + $0x3c0] sm:$0xff] }
 0x15d   :  { %1850 = vmatpush.msrb.mxu3 %v1841_v17  ;;  %2074 = vmatpush.msrb.mxu2 %v1961_v47  ;;  %v1919_v17 = vld [vmem:[%s13510_s17 + $0x180] sm:$0xff]  ;;  %v1985_v7 = vld [vmem:[%s13510_s17 + $0x390] sm:$0xff] }
 0x15e   :  { %1800 = vmatpush.msra.mxu1 %v1619_v38  ;;  %2037 = vmatpush.msrb.mxu0 %v1891_v24  ;;  %v1885_v38 = vld [vmem:[%s13510_s17 + $0x70] sm:$0xff]  ;;  %v1987_v12 = vld [vmem:[%s13510_s17 + $0x3a0] sm:$0xff] }
 0x15f   :  { %1851 = vmatpush.msrb.mxu3 %v1840_v30  ;;  %2075 = vmatpush.msrb.mxu2 %v1959_v14  ;;  %v1947_v30 = vld [vmem:[%s13510_s17 + $0x260] sm:$0xff] }
 0x160   :  { %1801 = vmatpush.msra.mxu1 %v1618_v19  ;;  %2038 = vmatpush.msrb.mxu0 %v1889_v42  ;;  %v1955_v19 = vld [vmem:[%s13510_s17 + $0x2a0] sm:$0xff] }
 0x161   :  { %1852 = vmatpush.msrb.mxu3 %v1839_v48  ;;  %2076 = vmatpush.msrb.mxu2 %v1957_v4  ;;  %v1943_v36 = vld [vmem:[%s13510_s17 + $0x240] sm:$0xff]  ;;  %v1905_v4 = vld [vmem:[%s13510_s17 + $0x110] sm:$0xff] }
 0x162   :  { %1802 = vmatpush.msra.mxu1 %v1617_v50  ;;  %2039 = vmatpush.msrb.mxu0 %v1887_v20  ;;  %v1983_v47 = vld [vmem:[%s13510_s17 + $0x380] sm:$0xff] }
 0x163   :  { %1853 = vmatpush.msrb.mxu3 %v1838_v45  ;;  %2077 = vmatpush.msrb.mxu2 %v1955_v19  ;;  %v1875_v45 = vld [vmem:[%s13510_s17 + $0x20] sm:$0xff]  ;;  %v1932_v19 = vld [vmem:[%s13510_s17 + $0x1e8] sm:$0xff] }
 0x164   :  { %1803 = vmatpush.msra.mxu1 %v1616_v35  ;;  %2040 = vmatpush.msrb.mxu0 %v1885_v38  ;;  %v1881_v35 = vld [vmem:[%s13510_s17 + $0x50] sm:$0xff]  ;;  %v1911_v24 = vld [vmem:[%s13510_s17 + $0x140] sm:$0xff] }
 0x165   :  { %1854 = vmatpush.msrb.mxu3 %v1837_v53  ;;  %2078 = vmatpush.msrb.mxu2 %v1953_v9  ;;  %v1907_v20 = vld [vmem:[%s13510_s17 + $0x120] sm:$0xff]  ;;  %v2005_v38 = vld [vmem:[%s13510_s17 + $0x430] sm:$0xff]  ;;  %v1930_v9 = vld [vmem:[%s13510_s17 + $0x1d8] sm:$0xff] }
 0x166   :  { %1804 = vmatpush.msra.mxu1 %v1615_v43  ;;  %2041 = vmatpush.msrb.mxu0 %v1883_v46  ;;  %v1923_v43 = vld [vmem:[%s13510_s17 + $0x1a0] sm:$0xff] }
 0x167   :  { %1855 = vmatpush.msrb.mxu3 %v1836_v2  ;;  %2079 = vmatpush.msrb.mxu2 %v1951_v3  ;;  %v1873_v2 = vld [vmem:[%s13510_s17 + $0x10] sm:$0xff]  ;;  %v2003_v46 = vld [vmem:[%s13510_s17 + $0x420] sm:$0xff] }
 0x168   :  { %1805 = vmatpush.msra.mxu1 %v1614_v16  ;;  %v1993_v16 = vld [vmem:[%s13510_s17 + $0x3d0] sm:$0xff]  ;;  %2042 = vmatpush.msrb.mxu0 %v1881_v35 }
 0x169   :  { %1806 = vmatmul.f32.vlgmr.msra.gmra.mxu1 %v274_v1  ;;  %1856 = vmatpush.msrb.mxu3 %v1835_v41  ;;  %v1921_v1 = vld [vmem:[%s13510_s17 + $0x190] sm:$0xff]  ;;  %v1915_v41 = vld [vmem:[%s13510_s17 + $0x160] sm:$0xff] }
 0x16a   :  { %2052 = vmatpush.msrb.mxu1 %v1933_v5  ;;  %2043 = vmatpush.msrb.mxu0 %v1879_v22  ;;  %v2013_v5 = vld [vmem:[%s13510_s17 + $0x470] sm:$0xff]  ;;  %v1999_v22 = vld [vmem:[%s13510_s17 + $0x400] sm:$0xff] }
 0x16b   :  { %1857 = vmatpush.msrb.mxu3 %v1834_v61  ;;  %2080 = vmatpush.msrb.mxu2 %v1949_v63  ;;  %v1913_v61 = vld [vmem:[%s13510_s17 + $0x150] sm:$0xff] }
 0x16c   :  { %2053 = vmatpush.msrb.mxu1 %v1931_v25  ;;  %2044 = vmatpush.msrb.mxu0 %v1877_v34  ;;  %v1979_v25 = vld [vmem:[%s13510_s17 + $0x360] sm:$0xff]  ;;  %v1969_v63 = vld [vmem:[%s13510_s17 + $0x310] sm:$0xff] }
 0x16d   :  { %1858 = vmatpush.msrb.mxu3 %v1833_v60  ;;  %2081 = vmatpush.msrb.mxu2 %v1947_v30  ;;  %v1939_v60 = vld [vmem:[%s13510_s17 + $0x220] sm:$0xff]  ;;  %v1966_v30 = vld [vmem:[%s13510_s17 + $0x2f8] sm:$0xff] }
 0x16e   :  { %2054 = vmatpush.msrb.mxu1 %v1929_v52  ;;  %2045 = vmatpush.msrb.mxu0 %v1875_v45  ;;  %v1934_v52 = vld [vmem:[%s13510_s17 + $0x1f8] sm:$0xff]  ;;  %v1967_v45 = vld [vmem:[%s13510_s17 + $0x300] sm:$0xff] }
 0x16f   :  { %1859 = vmatpush.msrb.mxu3 %v1832_v15  ;;  %v2009_v15 = vld [vmem:[%s13510_s17 + $0x450] sm:$0xff] }
 0x170   :  { %2055 = vmatpush.msrb.mxu1 %v1927_v28  ;;  %2046 = vmatpush.msrb.mxu0 %v1873_v2  ;;  %v1924_v2 = vld [vmem:[%s13510_s17 + $0x1a8] sm:$0xff] }
 0x171   :  { %1860 = vmatpush.msrb.mxu3 %v1831_v51  ;;  %v1935_v51 = vld [vmem:[%s13510_s17 + $0x200] sm:$0xff] }
 0x172   :  { %2056 = vmatpush.msrb.mxu1 %v1925_v8  ;;  %v1902_v8 = vld [vmem:[%s13510_s17 + $0xf8] sm:$0xff] }
 0x173   :  { %1861 = vmatpush.msrb.mxu3 %v1830_v31  ;;  %v1975_v31 = vld [vmem:[%s13510_s17 + $0x340] sm:$0xff] }
 0x174   :  { %2057 = vmatpush.msrb.mxu1 %v1923_v43  ;;  %v1900_v43 = vld [vmem:[%s13510_s17 + $0xe8] sm:$0xff] }
 0x175   :  { %2092 = vmatpush.msra.mxu3 %v1997_v26 }
 0x176   :  { %2058 = vmatpush.msrb.mxu1 %v1921_v1 }
 0x177   :  { %2093 = vmatpush.msra.mxu3 %v1995_v0 }
 0x178   :  { %2059 = vmatpush.msrb.mxu1 %v1919_v17  ;;  %v1926_v17 = vld [vmem:[%s13510_s17 + $0x1b8] sm:$0xff] }
 0x179   :  { %2094 = vmatpush.msra.mxu3 %v1993_v16 }
 0x17b   :  { %2095 = vmatpush.msra.mxu3 %v1991_v55 }
 0x17d   :  { %2096 = vmatpush.msra.mxu3 %v1989_v49  ;;  %v1896_v49 = vld [vmem:[%s13510_s17 + $0xc8] sm:$0xff] }
 0x17f   :  { %2097 = vmatpush.msra.mxu3 %v1987_v12  ;;  %v1964_v12 = vld [vmem:[%s13510_s17 + $0x2e8] sm:$0xff] }
 0x181   :  { %2098 = vmatpush.msra.mxu3 %v1985_v7  ;;  %v1894_v7 = vld [vmem:[%s13510_s17 + $0xb8] sm:$0xff] }
 0x183   :  { %2099 = vmatpush.msra.mxu3 %v1983_v47  ;;  %v8924_v47 = vld [vmem:[%s13594_s6 + $0x8] sm:$0x3] }
 0x184   :  { %2019 = vst [vmem:[#allocation1 + $0x20] ss:$4 sm:$0xff] %v8924_v47 }
 0x198   :  { %v1388_v44 = vpop.f32.mrf.mxu2 }
 0x1a0   :  { %v1532_v50 = vpop.f32.mrf.mxu2 }
 0x1a2   :  { %v1368_v62 = vpop.f32.mrf.mxu1 }
 0x1a3   :  { %v1369_v59 = vadd.f32 %v5701_v10, %v1368_v62  ;;  %v1945_v62 = vld [vmem:[%s13510_s17 + $0x250] sm:$0xff] }
 0x1a4   :  { %2082 = vmatpush.msrb.mxu2 %v1945_v62 }
 0x1a5   :  { %v1389_v57 = vadd.f32 %v1388_v44, %v1369_v59  ;;  %v1871_v59 = vld [vmem:[%s13510_s17] sm:$0xff] }
 0x1a6   :  { %2083 = vmatpush.msrb.mxu2 %v1943_v36  ;;  %2047 = vmatpush.msrb.mxu0 %v1871_v59  ;;  %v2011_v44 = vld [vmem:[%s13510_s17 + $0x460] sm:$0xff] }
 0x1a8   :  { %2084 = vmatpush.msrb.mxu2 %v1941_v21  ;;  %2120 = vmatpush.msra.mxu0 %v2013_v5  ;;  %v1962_v5 = vld [vmem:[%s13510_s17 + $0x2d8] sm:$0xff] }
 0x1a9   :  { %v1428_v18 = vpop.f32.mrf.mxu0 }
 0x1aa   :  { %2085 = vmatpush.msrb.mxu2 %v1939_v60  ;;  %2121 = vmatpush.msra.mxu0 %v2011_v44  ;;  %v1892_v60 = vld [vmem:[%s13510_s17 + $0xa8] sm:$0xff] }
 0x1ab   :  { %v1512_v39 = vpop.f32.mrf.mxu1 }
 0x1ac   :  { %v1513_v37 = vadd.f32 %v5701_v10, %v1512_v39  ;;  %v1917_v10 = vld [vmem:[%s13510_s17 + $0x170] sm:$0xff]  ;;  %2122 = vmatpush.msra.mxu0 %v2009_v15  ;;  %v1918_v15 = vld [vmem:[%s13510_s17 + $0x178] sm:$0xff] }
 0x1ad   :  { %2060 = vmatpush.msrb.mxu1 %v1917_v10  ;;  %v1937_v39 = vld [vmem:[%s13510_s17 + $0x210] sm:$0xff] }
 0x1ae   :  { %v1533_v6 = vadd.f32 %v1532_v50, %v1513_v37  ;;  %2086 = vmatpush.msrb.mxu2 %v1937_v39  ;;  %v2007_v37 = vld [vmem:[%s13510_s17 + $0x440] sm:$0xff]  ;;  %v1973_v50 = vld [vmem:[%s13510_s17 + $0x330] sm:$0xff]  ;;  %v1998_v39 = vld [vmem:[%s13510_s17 + $0x3f8] sm:$0xff] }
 0x1af   :  { %2061 = vmatpush.msrb.mxu1 %v1915_v41  ;;  %2123 = vmatpush.msra.mxu0 %v2007_v37  ;;  %v1994_v37 = vld [vmem:[%s13510_s17 + $0x3d8] sm:$0xff] }
 0x1b0   :  { %2087 = vmatpush.msrb.mxu2 %v1935_v51  ;;  %v1916_v51 = vld [vmem:[%s13510_s17 + $0x168] sm:$0xff]  ;;  %v2014_v41 = vld [vmem:[%s13510_s17 + $0x478] sm:$0xff] }
 0x1b1   :  { %2062 = vmatpush.msrb.mxu1 %v1913_v61  ;;  %2124 = vmatpush.msra.mxu0 %v2005_v38  ;;  %v8970_v38 = vld.sshfl [vmem:[#allocation1 + $0x20] sm:$0xff pattern:$0x73625140] }
 0x1b2   :  { %v1572_v40 = vpop.f32.mrf.mxu0  ;;  %2152 = vmatpush.msra.mxu2 %v1934_v52  ;;  %v1886_v52 = vld [vmem:[%s13510_s17 + $0x78] sm:$0xff]  ;;  %2379 = vst [vmem:[#allocation1 + $0x20] ss:$4 sm:$0xff] %v8924_v47 }
 0x1b3   :  { %2063 = vmatpush.msrb.mxu1 %v1911_v24  ;;  %2125 = vmatpush.msra.mxu0 %v2003_v46  ;;  %v1912_v46 = vld [vmem:[%s13510_s17 + $0x148] sm:$0xff] }
 0x1b4   :  { %2153 = vmatpush.msra.mxu2 %v1932_v19  ;;  %v1884_v19 = vld [vmem:[%s13510_s17 + $0x68] sm:$0xff] }
 0x1b5   :  { %v1408_v11 = vpop.f32.mrf.mxu3 }
 0x1b6   :  { %v1409_v56 = vadd.f32 %v1408_v11, %v1389_v57  ;;  %v1981_v57 = vld [vmem:[%s13510_s17 + $0x370] sm:$0xff]  ;;  %v8768_v11 = vld [vmem:[%s13594_s6] sm:$0xff]  ;;  %2154 = vmatpush.msra.mxu2 %v1930_v9  ;;  %v1988_v9 = vld [vmem:[%s13510_s17 + $0x3a8] sm:$0xff]  ;;  %s11504_s6 = sld [smem:[#allocation2 + $0x6]] }
 0x1b7   :  { %2017 = vst [vmem:[#allocation1] ss:$4 sm:$0xff] %v8768_v11  ;;  %2100 = vmatpush.msra.mxu3 %v1981_v57 }
 0x1b8   :  { %v1429_v27 = vadd.f32 %v1428_v18, %v1409_v56  ;;  %v1909_v18 = vld [vmem:[%s13510_s17 + $0x130] sm:$0xff] }
 0x1b9   :  { %2064 = vmatpush.msrb.mxu1 %v1909_v18  ;;  %2101 = vmatpush.msra.mxu3 %v1979_v25  ;;  %v1996_v25 = vld [vmem:[%s13510_s17 + $0x3e8] sm:$0xff] }
 0x1ba   :  { %v1575_v13 = vsub.f32 0.0, %v1429_v27 }
 0x1bb   :  { %2065 = vmatpush.msrb.mxu1 %v1907_v20  ;;  %v1888_v20 = vld [vmem:[%s13510_s17 + $0x88] sm:$0xff] }
 0x1bc   :  { %v1576_v58 = vmul.f32 1.442695, %v1575_v13  ;;  %v1977_v13 = vld [vmem:[%s13510_s17 + $0x350] sm:$0xff] }
 0x1bd   :  { %2102 = vmatpush.msra.mxu3 %v1977_v13  ;;  %2066 = vmatpush.msrb.mxu1 %v1905_v4  ;;  %v1956_v13 = vld [vmem:[%s13510_s17 + $0x2a8] sm:$0xff]  ;;  %v1914_v4 = vld [vmem:[%s13510_s17 + $0x158] sm:$0xff] }
 0x1be   :  { %5784 = vpow2.f32 %v1576_v58  ;;  %v1903_v58 = vld [vmem:[%s13510_s17 + $0x100] sm:$0xff]  ;;  %v8823_v26 = vld.sshfl [vmem:[#allocation1 + $0x10] sm:$0xff pattern:$0x73625140] }
 0x1bf   :  { %v1552_v33 = vpop.f32.mrf.mxu3  ;;  %2103 = vmatpush.msra.mxu3 %v1975_v31  ;;  %2067 = vmatpush.msrb.mxu1 %v1903_v58  ;;  %v8855_v16 = vld.sshfl [vmem:[#allocation1] sm:$0xff pattern:$0x73625140]  ;;  %v8859_v1 = vld.sshfl [vmem:[#allocation1 + $0x18] sm:$0xff pattern:$0x73625140] }
 0x1c0   :  { %v1553_v32 = vadd.f32 %v1552_v33, %v1533_v6  ;;  %v2001_v6 = vld [vmem:[%s13510_s17 + $0x410] sm:$0xff]  ;;  %2088 = vmatmul.f32.vlgmr.msrb.gmra.mxu2 %v8823_v26  ;;  %v1971_v33 = vld [vmem:[%s13510_s17 + $0x320] sm:$0xff]  ;;  %2048 = vmatmul.f32.vlgmr.msrb.gmra.mxu0 %v8855_v16  ;;  %v1992_v31 = vld [vmem:[%s13510_s17 + $0x3c8] sm:$0xff] }
 0x1c1   :  { %2104 = vmatpush.msra.mxu3 %v1973_v50  ;;  %2132 = vmatpush.msra.mxu1 %v1902_v8  ;;  %v1990_v58 = vld [vmem:[%s13510_s17 + $0x3b8] sm:$0xff]  ;;  %v1952_v50 = vld [vmem:[%s13510_s17 + $0x288] sm:$0xff] }
 0x1c2   :  { %v1573_v23 = vadd.f32 %v1572_v40, %v1553_v32  ;;  %v1928_v32 = vld [vmem:[%s13510_s17 + $0x1c8] sm:$0xff]  ;;  %2126 = vmatpush.msra.mxu0 %v2001_v6  ;;  %v1882_v8 = vld [vmem:[%s13510_s17 + $0x58] sm:$0xff] }
 0x1c3   :  { %v8857_v40 = vld.sshfl [vmem:[#allocation1 + $0x8] sm:$0xff pattern:$0x73625140]  ;;  %2105 = vmatpush.msra.mxu3 %v1971_v33  ;;  %2133 = vmatpush.msra.mxu1 %v1900_v43  ;;  %v1910_v6 = vld [vmem:[%s13510_s17 + $0x138] sm:$0xff] }
 0x1c4   :  { %v5785_v29 = vpop.eup %5784  ;;  %v1594_v48 = vsub.f32 0.0, %v1573_v23  ;;  %v1898_v23 = vld [vmem:[%s13510_s17 + $0xd8] sm:$0xff]  ;;  %2377 = vst [vmem:[#allocation1] ss:$4 sm:$0xff] %v8768_v11  ;;  %2155 = vmatpush.msra.mxu2 %v1928_v32  ;;  %2127 = vmatpush.msra.mxu0 %v1999_v22  ;;  %v1908_v43 = vld [vmem:[%s13510_s17 + $0x128] sm:$0xff] }
 0x1c5   :  { %v8714_v53 = vadd.f32 1.0, %v5785_v29  ;;  %2068 = vmatmul.f32.vlgmr.msrb.gmra.mxu1 %v8857_v40  ;;  %2106 = vmatpush.msra.mxu3 %v1969_v63  ;;  %v1986_v33 = vld [vmem:[%s13510_s17 + $0x398] sm:$0xff]  ;;  %v1984_v22 = vld [vmem:[%s13510_s17 + $0x388] sm:$0xff] }
 0x1c6   :  { %v1595_v54 = vmul.f32 1.442695, %v1594_v48  ;;  %2134 = vmatpush.msra.mxu1 %v1898_v23  ;;  %2156 = vmatpush.msra.mxu2 %v1926_v17  ;;  %v1878_v32 = vld [vmem:[%s13510_s17 + $0x38] sm:$0xff]  ;;  %v1904_v17 = vld [vmem:[%s13510_s17 + $0x108] sm:$0xff] }
 0x1c7   :  { %5786 = vrcp.f32 %v8714_v53  ;;  %vm1584_vm5 = vweird.f32 %v8714_v53  ;;  %v1590_v29 = vand.u32 2147483648, %v8714_v53  ;;  %v1588_v10 = vand.u32 2147483647, %v8714_v53  ;;  %2172 = vmatpush.msrb.mxu0 %v1966_v30  ;;  %2107 = vmatpush.msra.mxu3 %v1967_v45  ;;  %v1906_v63 = vld [vmem:[%s13510_s17 + $0x118] sm:$0xff]  ;;  %v1944_v30 = vld [vmem:[%s13510_s17 + $0x248] sm:$0xff] }
 0x1c8   :  { %5788 = vpow2.f32 %v1595_v54  ;;  %2135 = vmatpush.msra.mxu1 %v1896_v49  ;;  %2157 = vmatpush.msra.mxu2 %v1924_v2  ;;  %v1946_v23 = vld [vmem:[%s13510_s17 + $0x258] sm:$0xff]  ;;  %v1940_v2 = vld [vmem:[%s13510_s17 + $0x228] sm:$0xff] }
 0x1c9   :  { %v1591_v61 = vor.u32 1.1754944e-38, %v1590_v29  ;;  %2173 = vmatpush.msrb.mxu0 %v1964_v12  ;;  %vm1589_vm13 = vcmp.eq.f32.partialorder %v1588_v10, 8.507059e+37  ;;  %v1980_v29 = vld [vmem:[%s13510_s17 + $0x368] sm:$0xff]  ;;  %v1874_v45 = vld [vmem:[%s13510_s17 + $0x18] sm:$0xff] }
 0x1ca   :  { %2136 = vmatpush.msra.mxu1 %v1894_v7  ;;  %5219 = vmatmul.msk.f32.vlgmr.msra.gmra.mxu0 %vm2029_vm2, %v8970_v38  ;;  %v1942_v49 = vld [vmem:[%s13510_s17 + $0x238] sm:$0xff]  ;;  %v1976_v12 = vld [vmem:[%s13510_s17 + $0x348] sm:$0xff] }
 0x1cb   :  { %2174 = vmatpush.msrb.mxu0 %v1962_v5  ;;  %v1978_v10 = vld [vmem:[%s13510_s17 + $0x358] sm:$0xff]  ;;  %v1972_v5 = vld [vmem:[%s13510_s17 + $0x328] sm:$0xff] }
 0x1cc   :  { %2137 = vmatpush.msra.mxu1 %v1892_v60  ;;  %v1974_v7 = vld [vmem:[%s13510_s17 + $0x338] sm:$0xff]  ;;  %v5243_v60 = vld [vmem:[%s13510_s17 + $0x530] sm:$0xff] }
 0x1cd   :  { %v8770_v56 = vpop.eup %5786 }
 0x1ce   :  { %v5789_v27 = vpop.eup %5788  ;;  %v1580_v42 = vmul.f32 %v8770_v56, %v8714_v53  ;;  %vm1585_vm15 = vweird.f32 %v8770_v56  ;;  %v1922_v53 = vld [vmem:[%s13510_s17 + $0x198] sm:$0xff] }
 0x1cf   :  { %v8787_v14 = vadd.f32 1.0, %v5789_v27  ;;  %vm8901_vm11 = vmor %vm1584_vm5, %vm1585_vm15  ;;  %2158 = vmatpush.msra.mxu2 %v1922_v53  ;;  %v1960_v27 = vld [vmem:[%s13510_s17 + $0x2c8] sm:$0xff] }
 0x1d0   :  { %v1581_v28 = vsub.f32 1.0, %v1580_v42  ;;  %v1890_v42 = vld [vmem:[%s13510_s17 + $0x98] sm:$0xff]  ;;  %2175 = vmatpush.msrb.mxu0 %v1960_v27  ;;  %v2012_v53 = vld [vmem:[%s13510_s17 + $0x468] sm:$0xff] }
 0x1d1   :  { %5790 = vrcp.f32 %v8787_v14  ;;  %v1609_v48 = vand.u32 2147483648, %v8787_v14  ;;  %v1607_v54 = vand.u32 2147483647, %v8787_v14  ;;  %vm1603_vm0 = vweird.f32 %v8787_v14  ;;  %2138 = vmatpush.msra.mxu1 %v1890_v42  ;;  %v1968_v27 = vld [vmem:[%s13510_s17 + $0x308] sm:$0xff]  ;;  %v2006_v42 = vld [vmem:[%s13510_s17 + $0x438] sm:$0xff] }
 0x1d2   :  { %v1582_v35 = vmul.f32 %v8770_v56, %v1581_v28  ;;  %v1954_v28 = vld [vmem:[%s13510_s17 + $0x298] sm:$0xff] }
 0x1d3   :  { %v1610_v21 = vor.u32 1.1754944e-38, %v1609_v48  ;;  %vm1608_vm14 = vcmp.eq.f32.partialorder %v1607_v54, 8.507059e+37  ;;  %2139 = vmatpush.msra.mxu1 %v1888_v20  ;;  %v5251_v48 = vld [vmem:[%s13510_s17 + $0x570] sm:$0xff]  ;;  %v1872_v54 = vld [vmem:[%s13510_s17 + $0x8] sm:$0xff]  ;;  %v5313_v20 = vld [vmem:[%s13510_s17 + $0x760] sm:$0xff] }
 0x1d4   :  { %v1583_v34 = vadd.f32 %v8770_v56, %v1582_v35  ;;  %v1950_v35 = vld [vmem:[%s13510_s17 + $0x278] sm:$0xff] }
 0x1d5   :  { %2140 = vmatpush.msra.mxu1 %v1886_v52  ;;  %v5311_v52 = vld [vmem:[%s13510_s17 + $0x750] sm:$0xff] }
 0x1d6   :  { %v1587_v36 = vsel %vm8901_vm11, %v8770_v56, %v1583_v34  ;;  %v1920_v56 = vld [vmem:[%s13510_s17 + $0x188] sm:$0xff]  ;;  %v1982_v34 = vld [vmem:[%s13510_s17 + $0x378] sm:$0xff] }
 0x1d7   :  { %v8838_v0 = vpop.eup %5790  ;;  %v1592_v44 = vsel %vm1589_vm13, %v1591_v61, %v1587_v36  ;;  %2159 = vmatpush.msra.mxu2 %v1920_v56  ;;  %2141 = vmatpush.msra.mxu1 %v1884_v19  ;;  %v5247_v36 = vld [vmem:[%s13510_s17 + $0x550] sm:$0xff]  ;;  %v5245_v61 = vld [vmem:[%s13510_s17 + $0x540] sm:$0xff]  ;;  %v2008_v56 = vld [vmem:[%s13510_s17 + $0x448] sm:$0xff] }
 0x1d8   :  { %v1599_v3 = vmul.f32 %v8838_v0, %v8787_v14  ;;  %vm1604_vm10 = vweird.f32 %v8838_v0  ;;  %v1958_v14 = vld [vmem:[%s13510_s17 + $0x2b8] sm:$0xff]  ;;  %v2000_v19 = vld [vmem:[%s13510_s17 + $0x408] sm:$0xff] }
 0x1d9   :  { %vm1605_vm12 = vmor %vm1603_vm0, %vm1604_vm10  ;;  %2160 = vmatpush.msra.mxu2 %v1918_v15  ;;  %2176 = vmatpush.msrb.mxu0 %v1958_v14  ;;  %v5315_v15 = vld [vmem:[%s13510_s17 + $0x770] sm:$0xff] }
 0x1da   :  { %v1600_v55 = vsub.f32 1.0, %v1599_v3  ;;  %2142 = vmatpush.msra.mxu1 %v1882_v8  ;;  %v1948_v3 = vld [vmem:[%s13510_s17 + $0x268] sm:$0xff]  ;;  %v5279_v14 = vld [vmem:[%s13510_s17 + $0x650] sm:$0xff] }
 0x1db   :  { %2161 = vmatpush.msra.mxu2 %v1916_v51  ;;  %2177 = vmatpush.msrb.mxu0 %v1956_v13  ;;  %v2004_v51 = vld [vmem:[%s13510_s17 + $0x428] sm:$0xff]  ;;  %v5277_v13 = vld [vmem:[%s13510_s17 + $0x640] sm:$0xff]  ;;  %v5347_v8 = vld [vmem:[%s13510_s17 + $0x870] sm:$0xff] }
 0x1dc   :  { %v1601_v62 = vmul.f32 %v8838_v0, %v1600_v55  ;;  %v1876_v55 = vld [vmem:[%s13510_s17 + $0x28] sm:$0xff] }
 0x1dd   :  { %2162 = vmatpush.msra.mxu2 %v1914_v4  ;;  %2178 = vmatpush.msrb.mxu0 %v1954_v28  ;;  %v2002_v4 = vld [vmem:[%s13510_s17 + $0x418] sm:$0xff]  ;;  %v5275_v28 = vld [vmem:[%s13510_s17 + $0x630] sm:$0xff] }
 0x1de   :  { %v1602_v59 = vadd.f32 %v8838_v0, %v1601_v62  ;;  %v5249_v62 = vld [vmem:[%s13510_s17 + $0x560] sm:$0xff] }
 0x1df   :  { %2163 = vmatpush.msra.mxu2 %v1912_v46  ;;  %2179 = vmatpush.msrb.mxu0 %v1952_v50  ;;  %v5273_v46 = vld [vmem:[%s13510_s17 + $0x620] sm:$0xff]  ;;  %v5307_v50 = vld [vmem:[%s13510_s17 + $0x730] sm:$0xff] }
 0x1e0   :  { %v1606_v24 = vsel %vm1605_vm12, %v8838_v0, %v1602_v59  ;;  %v1880_v0 = vld [vmem:[%s13510_s17 + $0x48] sm:$0xff]  ;;  %v1938_v59 = vld [vmem:[%s13510_s17 + $0x218] sm:$0xff] }
 0x1e1   :  { %v1611_v57 = vsel %vm1608_vm14, %v1610_v21, %v1606_v24  ;;  %2164 = vmatpush.msra.mxu2 %v1910_v6  ;;  %2180 = vmatpush.msrb.mxu0 %v1950_v35  ;;  %v1936_v21 = vld [vmem:[%s13510_s17 + $0x208] sm:$0xff]  ;;  %v2010_v24 = vld [vmem:[%s13510_s17 + $0x458] sm:$0xff]  ;;  %v5345_v6 = vld [vmem:[%s13510_s17 + $0x860] sm:$0xff] }
 0x1e2   :  { %v1613_v18 = vmax.f32 %v1592_v44, %v1611_v57  ;;  %2143 = vmatpush.msra.mxu1 %v1880_v0  ;;  %v5283_v44 = vld [vmem:[%s13510_s17 + $0x670] sm:$0xff]  ;;  %v1970_v57 = vld [vmem:[%s13510_s17 + $0x318] sm:$0xff]  ;;  %v5229_v35 = vld [vmem:[%s13510_s17 + $0x4c0] sm:$0xff] }
 0x1e3   :  { %2165 = vmatpush.msra.mxu2 %v1908_v43  ;;  %2181 = vmatpush.msrb.mxu0 %v1948_v3  ;;  %v5269_v0 = vld [vmem:[%s13510_s17 + $0x600] sm:$0xff]  ;;  %v5343_v43 = vld [vmem:[%s13510_s17 + $0x850] sm:$0xff] }
 0x1e4   :  { %1862 = vmatmul.f32.vlgmr.msrb.gmra.mxu3 %v1613_v18  ;;  %2144 = vmatpush.msra.mxu1 %v1878_v32  ;;  %v5241_v18 = vld [vmem:[%s13510_s17 + $0x520] sm:$0xff]  ;;  %v5227_v3 = vld [vmem:[%s13510_s17 + $0x4b0] sm:$0xff] }
 0x1e5   :  { %2192 = vmatpush.msrb.mxu3 %v1998_v39  ;;  %2166 = vmatpush.msra.mxu2 %v1906_v63  ;;  %v5281_v39 = vld [vmem:[%s13510_s17 + $0x660] sm:$0xff]  ;;  %v5267_v32 = vld [vmem:[%s13510_s17 + $0x5f0] sm:$0xff] }
 0x1e6   :  { %2182 = vmatpush.msrb.mxu0 %v1946_v23  ;;  %2145 = vmatpush.msra.mxu1 %v1876_v55  ;;  %v5225_v63 = vld [vmem:[%s13510_s17 + $0x4a0] sm:$0xff]  ;;  %v5299_v55 = vld [vmem:[%s13510_s17 + $0x6f0] sm:$0xff] }
 0x1e7   :  { %2193 = vmatpush.msrb.mxu3 %v1996_v25  ;;  %2167 = vmatpush.msra.mxu2 %v1904_v17  ;;  %v5239_v25 = vld [vmem:[%s13510_s17 + $0x510] sm:$0xff]  ;;  %v5265_v23 = vld [vmem:[%s13510_s17 + $0x5e0] sm:$0xff] }
 0x1e8   :  { %2183 = vmatpush.msrb.mxu0 %v1944_v30  ;;  %2146 = vmatpush.msra.mxu1 %v1874_v45  ;;  %v5339_v17 = vld [vmem:[%s13510_s17 + $0x830] sm:$0xff]  ;;  %v5337_v45 = vld [vmem:[%s13510_s17 + $0x820] sm:$0xff] }
 0x1e9   :  { %2194 = vmatpush.msrb.mxu3 %v1994_v37  ;;  %2391 = vmatpush.msrb.mxu2 %v5251_v48  ;;  %v5237_v37 = vld [vmem:[%s13510_s17 + $0x500] sm:$0xff]  ;;  %v5223_v30 = vld [vmem:[%s13510_s17 + $0x490] sm:$0xff] }
 0x1ea   :  { %2184 = vmatpush.msrb.mxu0 %v1942_v49  ;;  %2147 = vmatpush.msra.mxu1 %v1872_v54  ;;  %v5297_v48 = vld [vmem:[%s13510_s17 + $0x6e0] sm:$0xff] }
 0x1eb   :  { %2195 = vmatpush.msrb.mxu3 %v1992_v31  ;;  %2392 = vmatpush.msrb.mxu2 %v5249_v62  ;;  %v5235_v31 = vld [vmem:[%s13510_s17 + $0x4f0] sm:$0xff]  ;;  %v9240_v49 = vld.sshfl [vmem:[#allocation1] sm:$0xff pattern:$0x73625140] }
 0x1ec   :  { %2108 = vmatmul.f32.vlgmr.msra.gmra.mxu3 %v8859_v1  ;;  %2185 = vmatpush.msrb.mxu0 %v1940_v2  ;;  %v9246_v62 = vld.sshfl [vmem:[#allocation1 + $0x18] sm:$0xff pattern:$0x73625140]  ;;  %v5221_v54 = vld [vmem:[%s13510_s17 + $0x480] sm:$0xff] }
 0x1ed   :  { %2196 = vmatpush.msrb.mxu3 %v1990_v58  ;;  %2220 = vmatpush.msrb.mxu1 %v2014_v41  ;;  %v5233_v58 = vld [vmem:[%s13510_s17 + $0x4e0] sm:$0xff]  ;;  %v5335_v41 = vld [vmem:[%s13510_s17 + $0x810] sm:$0xff] }
 0x1ee   :  { %2393 = vmatpush.msrb.mxu2 %v5247_v36  ;;  %2186 = vmatpush.msrb.mxu0 %v1938_v59  ;;  %v5261_v2 = vld [vmem:[%s13510_s17 + $0x5c0] sm:$0xff]  ;;  %v5363_v36 = vld [vmem:[%s13510_s17 + $0x8f0] sm:$0xff] }
 0x1ef   :  { %2197 = vmatpush.msrb.mxu3 %v1988_v9  ;;  %2221 = vmatpush.msrb.mxu1 %v2012_v53  ;;  %v5231_v9 = vld [vmem:[%s13510_s17 + $0x4d0] sm:$0xff]  ;;  %v5333_v53 = vld [vmem:[%s13510_s17 + $0x800] sm:$0xff] }
 0x1f0   :  { %2394 = vmatpush.msrb.mxu2 %v5245_v61  ;;  %2187 = vmatpush.msrb.mxu0 %v1936_v21  ;;  %v5259_v59 = vld [vmem:[%s13510_s17 + $0x5b0] sm:$0xff]  ;;  %v5361_v61 = vld [vmem:[%s13510_s17 + $0x8e0] sm:$0xff] }
 0x1f1   :  { %2198 = vmatpush.msrb.mxu3 %v1986_v33  ;;  %2222 = vmatpush.msrb.mxu1 %v2010_v24  ;;  %v5303_v33 = vld [vmem:[%s13510_s17 + $0x710] sm:$0xff]  ;;  %v5257_v21 = vld [vmem:[%s13510_s17 + $0x5a0] sm:$0xff] }
 0x1f2   :  { %2395 = vmatpush.msrb.mxu2 %v5243_v60  ;;  %2411 = vmatpush.msra.mxu0 %v5283_v44  ;;  %v5331_v24 = vld [vmem:[%s13510_s17 + $0x7f0] sm:$0xff] }
 0x1f3   :  { %2199 = vmatpush.msrb.mxu3 %v1984_v22  ;;  %2223 = vmatpush.msrb.mxu1 %v2008_v56  ;;  %v5301_v22 = vld [vmem:[%s13510_s17 + $0x700] sm:$0xff]  ;;  %v5359_v60 = vld [vmem:[%s13510_s17 + $0x8d0] sm:$0xff] }
 0x1f4   :  { %2396 = vmatpush.msrb.mxu2 %v5241_v18  ;;  %2412 = vmatpush.msra.mxu0 %v5281_v39  ;;  %v5255_v44 = vld [vmem:[%s13510_s17 + $0x590] sm:$0xff]  ;;  %v5329_v56 = vld [vmem:[%s13510_s17 + $0x7e0] sm:$0xff] }
 0x1f5   :  { %2200 = vmatpush.msrb.mxu3 %v1982_v34  ;;  %2224 = vmatpush.msrb.mxu1 %v2006_v42  ;;  %v9217_v34 = vld.sshfl [vmem:[#allocation1 + $0x20] sm:$0xff pattern:$0x73625140]  ;;  %v5327_v42 = vld [vmem:[%s13510_s17 + $0x7d0] sm:$0xff] }
 0x1f6   :  { %2397 = vmatpush.msrb.mxu2 %v5239_v25  ;;  %2413 = vmatpush.msra.mxu0 %v5279_v14  ;;  %2738 = vst [vmem:[#allocation1 + $0x20] ss:$4 sm:$0xff] %v8924_v47  ;;  %v5357_v18 = vld [vmem:[%s13510_s17 + $0x8c0] sm:$0xff]  ;;  %v5252_v25 = vld [vmem:[%s13510_s17 + $0x578] sm:$0xff] }
 0x1f7   :  { %2201 = vmatpush.msrb.mxu3 %v1980_v29  ;;  %2168 = vmatmul.f32.vlgmr.msra.gmra.mxu2 %v8857_v40  ;;  %v5309_v40 = vld [vmem:[%s13510_s17 + $0x740] sm:$0xff]  ;;  %v5263_v29 = vld [vmem:[%s13510_s17 + $0x5d0] sm:$0xff] }
 0x1f8   :  { %2225 = vmatpush.msrb.mxu1 %v2004_v51  ;;  %2398 = vmatpush.msrb.mxu2 %v5237_v37  ;;  %v5253_v39 = vld [vmem:[%s13510_s17 + $0x580] sm:$0xff]  ;;  %v5250_v37 = vld [vmem:[%s13510_s17 + $0x568] sm:$0xff] }
 0x1f9   :  { %2202 = vmatpush.msrb.mxu3 %v1978_v10  ;;  %2414 = vmatpush.msra.mxu0 %v5277_v13  ;;  %v9242_v10 = vld.sshfl [vmem:[#allocation1 + $0x10] sm:$0xff pattern:$0x73625140]  ;;  %v5285_v14 = vld [vmem:[%s13510_s17 + $0x680] sm:$0xff]  ;;  %v5284_v13 = vld [vmem:[%s13510_s17 + $0x678] sm:$0xff] }
 0x1fa   :  { %2226 = vmatpush.msrb.mxu1 %v2002_v4  ;;  %2399 = vmatpush.msrb.mxu2 %v5235_v31  ;;  %v5353_v51 = vld [vmem:[%s13510_s17 + $0x8a0] sm:$0xff]  ;;  %v5351_v4 = vld [vmem:[%s13510_s17 + $0x890] sm:$0xff]  ;;  %v5248_v31 = vld [vmem:[%s13510_s17 + $0x558] sm:$0xff] }
 0x1fb   :  { %2203 = vmatpush.msrb.mxu3 %v1976_v12  ;;  %2415 = vmatpush.msra.mxu0 %v5275_v28  ;;  %v5295_v12 = vld [vmem:[%s13510_s17 + $0x6d0] sm:$0xff]  ;;  %v5282_v28 = vld [vmem:[%s13510_s17 + $0x668] sm:$0xff] }
 0x1fc   :  { %2148 = vmatmul.f32.vlgmr.msra.gmra.mxu1 %v8855_v16  ;;  %v5271_v16 = vld [vmem:[%s13510_s17 + $0x610] sm:$0xff]  ;;  %2400 = vmatpush.msrb.mxu2 %v5233_v58  ;;  %v5246_v58 = vld [vmem:[%s13510_s17 + $0x548] sm:$0xff] }
 0x1fd   :  { %2204 = vmatpush.msrb.mxu3 %v1974_v7  ;;  %2227 = vmatpush.msrb.mxu1 %v2000_v19  ;;  %v5293_v7 = vld [vmem:[%s13510_s17 + $0x6c0] sm:$0xff] }
 0x1fe   :  { %2416 = vmatpush.msra.mxu0 %v5273_v46  ;;  %2401 = vmatpush.msrb.mxu2 %v5231_v9  ;;  %v5349_v19 = vld [vmem:[%s13510_s17 + $0x880] sm:$0xff]  ;;  %v5280_v46 = vld [vmem:[%s13510_s17 + $0x658] sm:$0xff] }
 0x1ff   :  { %2205 = vmatpush.msrb.mxu3 %v1972_v5  ;;  %2451 = vmatpush.msra.mxu1 %v5347_v8  ;;  %v5291_v5 = vld [vmem:[%s13510_s17 + $0x6b0] sm:$0xff]  ;;  %v5244_v9 = vld [vmem:[%s13510_s17 + $0x538] sm:$0xff] }
 0x200   :  { %2417 = vmatpush.msra.mxu0 %v5271_v16  ;;  %2402 = vmatpush.msrb.mxu2 %v5229_v35  ;;  %v5319_v8 = vld [vmem:[%s13510_s17 + $0x790] sm:$0xff]  ;;  %v5278_v16 = vld [vmem:[%s13510_s17 + $0x648] sm:$0xff] }
 0x201   :  { %2206 = vmatpush.msrb.mxu3 %v1970_v57  ;;  %2188 = vmatmul.f32.vlgmr.msrb.gmra.mxu0 %v8823_v26  ;;  %v5341_v26 = vld [vmem:[%s13510_s17 + $0x840] sm:$0xff]  ;;  %v5242_v35 = vld [vmem:[%s13510_s17 + $0x528] sm:$0xff] }
 0x202   :  { %2452 = vmatpush.msra.mxu1 %v5345_v6  ;;  %2418 = vmatpush.msra.mxu0 %v5269_v0  ;;  %v5289_v57 = vld [vmem:[%s13510_s17 + $0x6a0] sm:$0xff]  ;;  %v5276_v0 = vld [vmem:[%s13510_s17 + $0x638] sm:$0xff] }
 0x203   :  { %2207 = vmatpush.msrb.mxu3 %v1968_v27  ;;  %2403 = vmatpush.msrb.mxu2 %v5227_v3  ;;  %v5287_v27 = vld [vmem:[%s13510_s17 + $0x690] sm:$0xff]  ;;  %v5317_v6 = vld [vmem:[%s13510_s17 + $0x780] sm:$0xff]  ;;  %v5240_v3 = vld [vmem:[%s13510_s17 + $0x518] sm:$0xff] }
 0x204   :  { %2208 = vmatmul.f32.vlgmr.msrb.gmra.mxu3 %v8859_v1  ;;  %v5305_v1 = vld [vmem:[%s13510_s17 + $0x720] sm:$0xff]  ;;  %2453 = vmatpush.msra.mxu1 %v5343_v43  ;;  %v5344_v43 = vld [vmem:[%s13510_s17 + $0x858] sm:$0xff] }
 0x205   :  { %2431 = vmatpush.msra.mxu3 %v5315_v15  ;;  %2419 = vmatpush.msra.mxu0 %v5267_v32  ;;  %v5355_v15 = vld [vmem:[%s13510_s17 + $0x8b0] sm:$0xff]  ;;  %v5274_v32 = vld [vmem:[%s13510_s17 + $0x628] sm:$0xff] }
 0x206   :  { %5220 = vmatmul.msk.f32.vlgmr.msrb.gmra.mxu1 %vm2029_vm2, %v8970_v38  ;;  %2404 = vmatpush.msrb.mxu2 %v5225_v63  ;;  %v9244_v38 = vld.sshfl [vmem:[#allocation1 + $0x8] sm:$0xff pattern:$0x73625140] }
 0x207   :  { %2432 = vmatpush.msra.mxu3 %v5313_v20  ;;  %2454 = vmatpush.msra.mxu1 %v5341_v26  ;;  %2736 = vst [vmem:[#allocation1] ss:$4 sm:$0xff] %v8768_v11  ;;  %v5325_v20 = vld [vmem:[%s13510_s17 + $0x7c0] sm:$0xff]  ;;  %v5342_v26 = vld [vmem:[%s13510_s17 + $0x848] sm:$0xff] }
 0x208   :  { %2420 = vmatpush.msra.mxu0 %v5265_v23  ;;  %2405 = vmatpush.msrb.mxu2 %v5223_v30  ;;  %v5238_v63 = vld [vmem:[%s13510_s17 + $0x508] sm:$0xff]  ;;  %v5272_v23 = vld [vmem:[%s13510_s17 + $0x618] sm:$0xff] }
 0x209   :  { %2433 = vmatpush.msra.mxu3 %v5311_v52  ;;  %2455 = vmatpush.msra.mxu1 %v5339_v17  ;;  %v5323_v52 = vld [vmem:[%s13510_s17 + $0x7b0] sm:$0xff]  ;;  %v5340_v17 = vld [vmem:[%s13510_s17 + $0x838] sm:$0xff] }
 0x20a   :  { %2421 = vmatpush.msra.mxu0 %v5263_v29  ;;  %2406 = vmatpush.msrb.mxu2 %v5221_v54  ;;  %v5236_v30 = vld [vmem:[%s13510_s17 + $0x4f8] sm:$0xff]  ;;  %v5270_v29 = vld [vmem:[%s13510_s17 + $0x608] sm:$0xff] }
 0x20b   :  { %2434 = vmatpush.msra.mxu3 %v5309_v40  ;;  %2456 = vmatpush.msra.mxu1 %v5337_v45  ;;  %v5321_v40 = vld [vmem:[%s13510_s17 + $0x7a0] sm:$0xff]  ;;  %v5338_v45 = vld [vmem:[%s13510_s17 + $0x828] sm:$0xff] }
 0x20c   :  { %2422 = vmatpush.msra.mxu0 %v5261_v2  ;;  %2479 = vmatpush.msra.mxu2 %v5363_v36  ;;  %v5234_v54 = vld [vmem:[%s13510_s17 + $0x4e8] sm:$0xff]  ;;  %v5268_v2 = vld [vmem:[%s13510_s17 + $0x5f8] sm:$0xff] }
 0x20d   :  { %2435 = vmatpush.msra.mxu3 %v5307_v50  ;;  %2457 = vmatpush.msra.mxu1 %v5335_v41  ;;  %v5348_v50 = vld [vmem:[%s13510_s17 + $0x878] sm:$0xff] }
 0x20e   :  { %2423 = vmatpush.msra.mxu0 %v5259_v59  ;;  %2480 = vmatpush.msra.mxu2 %v5361_v61  ;;  %v5336_v41 = vld [vmem:[%s13510_s17 + $0x818] sm:$0xff]  ;;  %v5266_v59 = vld [vmem:[%s13510_s17 + $0x5e8] sm:$0xff] }
 0x20f   :  { %2436 = vmatpush.msra.mxu3 %v5305_v1  ;;  %2458 = vmatpush.msra.mxu1 %v5333_v53  ;;  %v5346_v1 = vld [vmem:[%s13510_s17 + $0x868] sm:$0xff]  ;;  %v5232_v36 = vld [vmem:[%s13510_s17 + $0x4d8] sm:$0xff] }
 0x210   :  { %2424 = vmatpush.msra.mxu0 %v5257_v21  ;;  %2481 = vmatpush.msra.mxu2 %v5359_v60  ;;  %v5334_v53 = vld [vmem:[%s13510_s17 + $0x808] sm:$0xff]  ;;  %v5264_v21 = vld [vmem:[%s13510_s17 + $0x5d8] sm:$0xff] }
 0x211   :  { %2437 = vmatpush.msra.mxu3 %v5303_v33  ;;  %2459 = vmatpush.msra.mxu1 %v5331_v24  ;;  %v5316_v33 = vld [vmem:[%s13510_s17 + $0x778] sm:$0xff]  ;;  %v5230_v61 = vld [vmem:[%s13510_s17 + $0x4c8] sm:$0xff] }
 0x212   :  { %2425 = vmatpush.msra.mxu0 %v5255_v44  ;;  %2482 = vmatpush.msra.mxu2 %v5357_v18  ;;  %v5332_v24 = vld [vmem:[%s13510_s17 + $0x7f8] sm:$0xff]  ;;  %v5262_v44 = vld [vmem:[%s13510_s17 + $0x5c8] sm:$0xff] }
 0x213   :  { %2438 = vmatpush.msra.mxu3 %v5301_v22  ;;  %2460 = vmatpush.msra.mxu1 %v5329_v56  ;;  %v5314_v22 = vld [vmem:[%s13510_s17 + $0x768] sm:$0xff]  ;;  %v5228_v60 = vld [vmem:[%s13510_s17 + $0x4b8] sm:$0xff] }
 0x214   :  { %2426 = vmatpush.msra.mxu0 %v5253_v39  ;;  %2483 = vmatpush.msra.mxu2 %v5355_v15  ;;  %v5330_v56 = vld [vmem:[%s13510_s17 + $0x7e8] sm:$0xff]  ;;  %v5260_v39 = vld [vmem:[%s13510_s17 + $0x5b8] sm:$0xff] }
 0x215   :  { %2439 = vmatpush.msra.mxu3 %v5299_v55  ;;  %2461 = vmatpush.msra.mxu1 %v5327_v42  ;;  %v5312_v55 = vld [vmem:[%s13510_s17 + $0x758] sm:$0xff]  ;;  %v5226_v18 = vld [vmem:[%s13510_s17 + $0x4a8] sm:$0xff] }
 0x216   :  { %2491 = vmatpush.msrb.mxu0 %v5252_v25  ;;  %2484 = vmatpush.msra.mxu2 %v5353_v51  ;;  %v5328_v42 = vld [vmem:[%s13510_s17 + $0x7d8] sm:$0xff]  ;;  %v5258_v25 = vld [vmem:[%s13510_s17 + $0x5a8] sm:$0xff] }
 0x217   :  { %2440 = vmatpush.msra.mxu3 %v5297_v48  ;;  %2462 = vmatpush.msra.mxu1 %v5325_v20  ;;  %v5310_v48 = vld [vmem:[%s13510_s17 + $0x748] sm:$0xff]  ;;  %v5224_v15 = vld [vmem:[%s13510_s17 + $0x498] sm:$0xff] }
 0x218   :  { %2492 = vmatpush.msrb.mxu0 %v5250_v37  ;;  %2485 = vmatpush.msra.mxu2 %v5351_v4  ;;  %v5326_v20 = vld [vmem:[%s13510_s17 + $0x7c8] sm:$0xff]  ;;  %v5256_v37 = vld [vmem:[%s13510_s17 + $0x598] sm:$0xff] }
 0x219   :  { %2441 = vmatpush.msra.mxu3 %v5295_v12  ;;  %2463 = vmatpush.msra.mxu1 %v5323_v52  ;;  %v5308_v12 = vld [vmem:[%s13510_s17 + $0x738] sm:$0xff]  ;;  %v5222_v51 = vld [vmem:[%s13510_s17 + $0x488] sm:$0xff] }
 0x21a   :  { %2493 = vmatpush.msrb.mxu0 %v5248_v31  ;;  %2407 = vmatmul.f32.vlgmr.msrb.gmra.mxu2 %v9240_v49  ;;  %v5324_v52 = vld [vmem:[%s13510_s17 + $0x7b8] sm:$0xff]  ;;  %v5254_v31 = vld [vmem:[%s13510_s17 + $0x588] sm:$0xff] }
 0x21b   :  { %2442 = vmatpush.msra.mxu3 %v5293_v7  ;;  %2464 = vmatpush.msra.mxu1 %v5321_v40  ;;  %v5306_v7 = vld [vmem:[%s13510_s17 + $0x728] sm:$0xff]  ;;  %v5364_v4 = vld [vmem:[%s13510_s17 + $0x8f8] sm:$0xff] }
 0x21c   :  { %2486 = vmatpush.msra.mxu2 %v5349_v19  ;;  %2494 = vmatpush.msrb.mxu0 %v5246_v58  ;;  %v5322_v40 = vld [vmem:[%s13510_s17 + $0x7a8] sm:$0xff]  ;;  %v5397_v58 = vld [vmem:[%s13510_s17 + $0x9f0] sm:$0xff] }
 0x21d   :  { %2443 = vmatpush.msra.mxu3 %v5291_v5  ;;  %2465 = vmatpush.msra.mxu1 %v5319_v8  ;;  %v5304_v5 = vld [vmem:[%s13510_s17 + $0x718] sm:$0xff]  ;;  %v5362_v19 = vld [vmem:[%s13510_s17 + $0x8e8] sm:$0xff] }
 0x21e   :  { %2551 = vmatpush.msrb.mxu2 %v5348_v50  ;;  %2495 = vmatpush.msrb.mxu0 %v5244_v9  ;;  %v5320_v50 = vld [vmem:[%s13510_s17 + $0x798] sm:$0xff]  ;;  %v5395_v9 = vld [vmem:[%s13510_s17 + $0x9e0] sm:$0xff] }
 0x21f   :  { %2444 = vmatpush.msra.mxu3 %v5289_v57  ;;  %2466 = vmatpush.msra.mxu1 %v5317_v6  ;;  %v5302_v57 = vld [vmem:[%s13510_s17 + $0x708] sm:$0xff]  ;;  %v5360_v8 = vld [vmem:[%s13510_s17 + $0x8d8] sm:$0xff]  ;;  %v9546_v6 = vpop.f32.mrf.mxu1 }
 0x220   :  { %2552 = vmatpush.msrb.mxu2 %v5346_v1  ;;  %2496 = vmatpush.msrb.mxu0 %v5242_v35  ;;  %v5318_v1 = vld [vmem:[%s13510_s17 + $0x788] sm:$0xff]  ;;  %13597 = vst [vmem:[#allocation8_spill] sm:$0xff] %v9546_v6 }
 0x221   :  { %2445 = vmatpush.msra.mxu3 %v5287_v27  ;;  %2531 = vmatpush.msrb.mxu1 %v5316_v33  ;;  %v5300_v27 = vld [vmem:[%s13510_s17 + $0x6f8] sm:$0xff]  ;;  %v5358_v35 = vld [vmem:[%s13510_s17 + $0x8c8] sm:$0xff]  ;;  %v9554_v33 = vpop.f32.mrf.mxu2 }
 0x222   :  { %2553 = vmatpush.msrb.mxu2 %v5344_v43  ;;  %2497 = vmatpush.msrb.mxu0 %v5240_v3  ;;  %13598 = vst [vmem:[#allocation9_spill] sm:$0xff] %v9554_v33  ;;  %v5461_v43 = vld [vmem:[%s13510_s17 + $0xbf0] sm:$0xff]  ;;  %v5288_v3 = vld [vmem:[%s13510_s17 + $0x698] sm:$0xff] }
 0x223   :  { %2446 = vmatpush.msra.mxu3 %v5285_v14  ;;  %2427 = vmatmul.f32.vlgmr.msra.gmra.mxu0 %v9244_v38  ;;  %v5298_v14 = vld [vmem:[%s13510_s17 + $0x6e8] sm:$0xff] }
 0x224   :  { %2447 = vmatmul.f32.vlgmr.msra.gmra.mxu3 %v9242_v10  ;;  %5365 = vmatmul.msk.f32.vlgmr.msra.gmra.mxu2 %vm2029_vm2, %v9217_v34 }
 0x225   :  { %2511 = vmatpush.msrb.mxu3 %v5284_v13  ;;  %2532 = vmatpush.msrb.mxu1 %v5314_v22  ;;  %v5296_v13 = vld [vmem:[%s13510_s17 + $0x6d8] sm:$0xff]  ;;  %v5391_v22 = vld [vmem:[%s13510_s17 + $0x9c0] sm:$0xff] }
 0x226   :  { %2554 = vmatpush.msrb.mxu2 %v5342_v26  ;;  %2498 = vmatpush.msrb.mxu0 %v5238_v63  ;;  %v5459_v26 = vld [vmem:[%s13510_s17 + $0xbe0] sm:$0xff]  ;;  %v5286_v63 = vld [vmem:[%s13510_s17 + $0x688] sm:$0xff] }
 0x227   :  { %2512 = vmatpush.msrb.mxu3 %v5282_v28  ;;  %2533 = vmatpush.msrb.mxu1 %v5312_v55  ;;  %v5294_v28 = vld [vmem:[%s13510_s17 + $0x6c8] sm:$0xff]  ;;  %v5389_v55 = vld [vmem:[%s13510_s17 + $0x9b0] sm:$0xff] }
 0x228   :  { %2555 = vmatpush.msrb.mxu2 %v5340_v17  ;;  %2499 = vmatpush.msrb.mxu0 %v5236_v30  ;;  %v5429_v17 = vld [vmem:[%s13510_s17 + $0xaf0] sm:$0xff] }
 0x229   :  { %2513 = vmatpush.msrb.mxu3 %v5280_v46  ;;  %2467 = vmatmul.f32.vlgmr.msra.gmra.mxu1 %v9246_v62  ;;  %v5292_v46 = vld [vmem:[%s13510_s17 + $0x6b8] sm:$0xff]  ;;  %v5457_v30 = vld [vmem:[%s13510_s17 + $0xbd0] sm:$0xff] }
 0x22a   :  { %2534 = vmatpush.msrb.mxu1 %v5310_v48  ;;  %2556 = vmatpush.msrb.mxu2 %v5338_v45  ;;  %v9592_v48 = vpop.f32.mrf.mxu1  ;;  %v5387_v45 = vld [vmem:[%s13510_s17 + $0x9a0] sm:$0xff] }
 0x22b   :  { %2514 = vmatpush.msrb.mxu3 %v5278_v16  ;;  %2500 = vmatpush.msrb.mxu0 %v5234_v54  ;;  %v5290_v16 = vld [vmem:[%s13510_s17 + $0x6a8] sm:$0xff]  ;;  %13600 = vst [vmem:[#allocation11_spill] sm:$0xff] %v9592_v48  ;;  %v5427_v54 = vld [vmem:[%s13510_s17 + $0xae0] sm:$0xff] }
 0x22c   :  { %2535 = vmatpush.msrb.mxu1 %v5308_v12  ;;  %2557 = vmatpush.msrb.mxu2 %v5336_v41  ;;  %v5455_v12 = vld [vmem:[%s13510_s17 + $0xbc0] sm:$0xff]  ;;  %v5350_v41 = vld [vmem:[%s13510_s17 + $0x888] sm:$0xff] }
 0x22d   :  { %2515 = vmatpush.msrb.mxu3 %v5276_v0  ;;  %2501 = vmatpush.msrb.mxu0 %v5232_v36  ;;  %v5393_v0 = vld [vmem:[%s13510_s17 + $0x9d0] sm:$0xff] }
 0x22e   :  { %2536 = vmatpush.msrb.mxu1 %v5306_v7  ;;  %2558 = vmatpush.msrb.mxu2 %v5334_v53  ;;  %v5385_v36 = vld [vmem:[%s13510_s17 + $0x990] sm:$0xff]  ;;  %v5423_v53 = vld [vmem:[%s13510_s17 + $0xac0] sm:$0xff] }
 0x22f   :  { %2516 = vmatpush.msrb.mxu3 %v5274_v32  ;;  %2502 = vmatpush.msrb.mxu0 %v5230_v61  ;;  %v5356_v32 = vld [vmem:[%s13510_s17 + $0x8b8] sm:$0xff]  ;;  %v5453_v7 = vld [vmem:[%s13510_s17 + $0xbb0] sm:$0xff]  ;;  %v5451_v61 = vld [vmem:[%s13510_s17 + $0xba0] sm:$0xff] }
 0x230   :  { %2537 = vmatpush.msrb.mxu1 %v5304_v5  ;;  %2559 = vmatpush.msrb.mxu2 %v5332_v24  ;;  %v5381_v5 = vld [vmem:[%s13510_s17 + $0x970] sm:$0xff] }
 0x231   :  { %2517 = vmatpush.msrb.mxu3 %v5272_v23  ;;  %2503 = vmatpush.msrb.mxu0 %v5228_v60  ;;  %v5354_v23 = vld [vmem:[%s13510_s17 + $0x8a8] sm:$0xff]  ;;  %v5421_v24 = vld [vmem:[%s13510_s17 + $0xab0] sm:$0xff] }
 0x232   :  { %2538 = vmatpush.msrb.mxu1 %v5302_v57  ;;  %2560 = vmatpush.msrb.mxu2 %v5330_v56  ;;  %v5449_v60 = vld [vmem:[%s13510_s17 + $0xb90] sm:$0xff]  ;;  %v5379_v57 = vld [vmem:[%s13510_s17 + $0x960] sm:$0xff] }
 0x233   :  { %2518 = vmatpush.msrb.mxu3 %v5270_v29  ;;  %2504 = vmatpush.msrb.mxu0 %v5226_v18  ;;  %v5352_v29 = vld [vmem:[%s13510_s17 + $0x898] sm:$0xff]  ;;  %v5419_v18 = vld [vmem:[%s13510_s17 + $0xaa0] sm:$0xff] }
 0x234   :  { %2539 = vmatpush.msrb.mxu1 %v5300_v27  ;;  %2561 = vmatpush.msrb.mxu2 %v5328_v42  ;;  %v5447_v42 = vld [vmem:[%s13510_s17 + $0xb80] sm:$0xff] }
 0x235   :  { %2519 = vmatpush.msrb.mxu3 %v5268_v2  ;;  %2505 = vmatpush.msrb.mxu0 %v5224_v15  ;;  %v9600_v2 = vpop.f32.mrf.mxu2  ;;  %v5487_v15 = vld [vmem:[%s13510_s17 + $0xcc0] sm:$0xff] }
 0x236   :  { %2540 = vmatpush.msrb.mxu1 %v5298_v14  ;;  %2562 = vmatpush.msrb.mxu2 %v5326_v20  ;;  %13601 = vst [vmem:[#allocation12_spill] sm:$0xff] %v9600_v2  ;;  %v5417_v14 = vld [vmem:[%s13510_s17 + $0xa90] sm:$0xff]  ;;  %v6266_v2 = vld [vmem:[%s13510_s17 + $0xda0] sm:$0xff] }
 0x237   :  { %2520 = vmatpush.msrb.mxu3 %v5266_v59  ;;  %2506 = vmatpush.msrb.mxu0 %v5222_v51  ;;  %v5425_v59 = vld [vmem:[%s13510_s17 + $0xad0] sm:$0xff] }
 0x238   :  { %2541 = vmatpush.msrb.mxu1 %v5296_v13  ;;  %2563 = vmatpush.msrb.mxu2 %v5324_v52  ;;  %v5445_v51 = vld [vmem:[%s13510_s17 + $0xb70] sm:$0xff]  ;;  %v5375_v13 = vld [vmem:[%s13510_s17 + $0x940] sm:$0xff] }
 0x239   :  { %2521 = vmatpush.msrb.mxu3 %v5264_v21  ;;  %2579 = vmatpush.msra.mxu0 %v5364_v4  ;;  %v5491_v21 = vld [vmem:[%s13510_s17 + $0xce0] sm:$0xff] }
 0x23a   :  { %2542 = vmatpush.msrb.mxu1 %v5294_v28  ;;  %2564 = vmatpush.msrb.mxu2 %v5322_v40  ;;  %v5415_v52 = vld [vmem:[%s13510_s17 + $0xa80] sm:$0xff]  ;;  %v5373_v28 = vld [vmem:[%s13510_s17 + $0x930] sm:$0xff] }
 0x23b   :  { %2522 = vmatpush.msrb.mxu3 %v5262_v44  ;;  %2580 = vmatpush.msra.mxu0 %v5362_v19  ;;  %v5489_v44 = vld [vmem:[%s13510_s17 + $0xcd0] sm:$0xff]  ;;  %v5443_v4 = vld [vmem:[%s13510_s17 + $0xb60] sm:$0xff] }
 0x23c   :  { %2543 = vmatpush.msrb.mxu1 %v5292_v46  ;;  %2565 = vmatpush.msrb.mxu2 %v5320_v50  ;;  %v5413_v40 = vld [vmem:[%s13510_s17 + $0xa70] sm:$0xff]  ;;  %v5371_v46 = vld [vmem:[%s13510_s17 + $0x920] sm:$0xff] }
 0x23d   :  { %2523 = vmatpush.msrb.mxu3 %v5260_v39  ;;  %2581 = vmatpush.msra.mxu0 %v5360_v8  ;;  %v5441_v19 = vld [vmem:[%s13510_s17 + $0xb50] sm:$0xff]  ;;  %v5411_v50 = vld [vmem:[%s13510_s17 + $0xa60] sm:$0xff] }
 0x23e   :  { %2544 = vmatpush.msrb.mxu1 %v5290_v16  ;;  %2566 = vmatpush.msrb.mxu2 %v5318_v1  ;;  %v5439_v8 = vld [vmem:[%s13510_s17 + $0xb40] sm:$0xff]  ;;  %v5369_v1 = vld [vmem:[%s13510_s17 + $0x910] sm:$0xff] }
 0x23f   :  { %2524 = vmatpush.msrb.mxu3 %v5258_v25  ;;  %2582 = vmatpush.msra.mxu0 %v5358_v35  ;;  %v5377_v25 = vld [vmem:[%s13510_s17 + $0x950] sm:$0xff]  ;;  %v9713_v16 = vld.sshfl [vmem:[#allocation1 + $0x20] sm:$0xff pattern:$0x73625140] }
 0x240   :  { %2790 = vmatpush.msra.mxu2 %v5461_v43  ;;  %2545 = vmatpush.msrb.mxu1 %v5288_v3  ;;  %v5409_v35 = vld [vmem:[%s13510_s17 + $0xa50] sm:$0xff]  ;;  %3097 = vst [vmem:[#allocation1 + $0x20] ss:$4 sm:$0xff] %v8924_v47  ;;  %v5367_v3 = vld [vmem:[%s13510_s17 + $0x900] sm:$0xff] }
 0x241   :  { %2525 = vmatpush.msrb.mxu3 %v5256_v37  ;;  %2583 = vmatpush.msra.mxu0 %v5356_v32  ;;  %v5485_v37 = vld [vmem:[%s13510_s17 + $0xcb0] sm:$0xff]  ;;  %v5407_v32 = vld [vmem:[%s13510_s17 + $0xa40] sm:$0xff]  ;;  %v9738_v47 = vld.sshfl [vmem:[#allocation1 + $0x8] sm:$0xff pattern:$0x73625140] }
 0x242   :  { %2791 = vmatpush.msra.mxu2 %v5459_v26  ;;  %2546 = vmatpush.msrb.mxu1 %v5286_v63  ;;  %v2069_v56 = vpop.f32.mrf.mxu1  ;;  %v5477_v43 = vld [vmem:[%s13510_s17 + $0xc70] sm:$0xff]  ;;  %v9740_v63 = vld.sshfl [vmem:[#allocation1 + $0x18] sm:$0xff pattern:$0x73625140] }
 0x243   :  { %2526 = vmatpush.msrb.mxu3 %v5254_v31  ;;  %2584 = vmatpush.msra.mxu0 %v5354_v23  ;;  %v2089_v27 = vpop.f32.mrf.mxu2  ;;  %v5483_v31 = vld [vmem:[%s13510_s17 + $0xca0] sm:$0xff]  ;;  %v9736_v26 = vld.sshfl [vmem:[#allocation1 + $0x10] sm:$0xff pattern:$0x73625140] }
 0x244   :  { %2527 = vmatmul.f32.vlgmr.msrb.gmra.mxu3 %v9244_v38  ;;  %v9590_v38 = vpop.f32.mrf.mxu0  ;;  %2770 = vmatpush.msra.mxu1 %v5429_v17  ;;  %v5435_v23 = vld [vmem:[%s13510_s17 + $0xb20] sm:$0xff] }
 0x245   :  { %2750 = vmatpush.msra.mxu3 %v5397_v58  ;;  %13599 = vst [vmem:[#allocation10_spill] sm:$0xff] %v9590_v38  ;;  %2792 = vmatpush.msra.mxu2 %v5457_v30  ;;  %v5481_v58 = vld [vmem:[%s13510_s17 + $0xc90] sm:$0xff]  ;;  %v12262_v38 = vstv %s12146_s4 }
 0x246   :  { %2585 = vmatpush.msra.mxu0 %v5352_v29  ;;  %2567 = vmatmul.f32.vlgmr.msrb.gmra.mxu2 %v9246_v62  ;;  %v5383_v62 = vld [vmem:[%s13510_s17 + $0x980] sm:$0xff]  ;;  %v5509_v30 = vld [vmem:[%s13510_s17 + $0xd70] sm:$0xff] }
 0x247   :  { %2751 = vmatpush.msra.mxu3 %v5395_v9  ;;  %2507 = vmatmul.f32.vlgmr.msrb.gmra.mxu0 %v9240_v49  ;;  %v5493_v49 = vld [vmem:[%s13510_s17 + $0xcf0] sm:$0xff]  ;;  %v5479_v9 = vld [vmem:[%s13510_s17 + $0xc80] sm:$0xff] }
 0x248   :  { %2771 = vmatpush.msra.mxu1 %v5427_v54  ;;  %2793 = vmatpush.msra.mxu2 %v5455_v12  ;;  %v5405_v29 = vld [vmem:[%s13510_s17 + $0xa30] sm:$0xff]  ;;  %v5507_v54 = vld [vmem:[%s13510_s17 + $0xd60] sm:$0xff] }
 0x249   :  { %2752 = vmatpush.msra.mxu3 %v5393_v0  ;;  %2586 = vmatpush.msra.mxu0 %v5350_v41  ;;  %v5437_v0 = vld [vmem:[%s13510_s17 + $0xb30] sm:$0xff]  ;;  %v5403_v12 = vld [vmem:[%s13510_s17 + $0xa20] sm:$0xff] }
 0x24a   :  { %2772 = vmatpush.msra.mxu1 %v5425_v59  ;;  %2794 = vmatpush.msra.mxu2 %v5453_v7  ;;  %v5431_v41 = vld [vmem:[%s13510_s17 + $0xb00] sm:$0xff]  ;;  %v5505_v59 = vld [vmem:[%s13510_s17 + $0xd50] sm:$0xff]  ;;  %v5430_v7 = vld [vmem:[%s13510_s17 + $0xaf8] sm:$0xff] }
 0x24b   :  { %2753 = vmatpush.msra.mxu3 %v5391_v22  ;;  %2810 = vmatpush.msrb.mxu0 %v5493_v49  ;;  %v9734_v22 = vld.sshfl [vmem:[#allocation1] sm:$0xff pattern:$0x73625140]  ;;  %v5401_v49 = vld [vmem:[%s13510_s17 + $0xa10] sm:$0xff] }
 0x24c   :  { %2547 = vmatmul.f32.vlgmr.msrb.gmra.mxu1 %v9242_v10  ;;  %2795 = vmatpush.msra.mxu2 %v5451_v61  ;;  %v2049_v10 = vpop.f32.mrf.mxu0  ;;  %3095 = vst [vmem:[#allocation1] ss:$4 sm:$0xff] %v8768_v11  ;;  %v5473_v11 = vld [vmem:[%s13510_s17 + $0xc50] sm:$0xff]  ;;  %v5428_v61 = vld [vmem:[%s13510_s17 + $0xae8] sm:$0xff] }
 0x24d   :  { %2754 = vmatpush.msra.mxu3 %v5389_v55  ;;  %2773 = vmatpush.msra.mxu1 %v5423_v53  ;;  %v2070_v39 = vadd.f32 %v2069_v56, %v2049_v10  ;;  %v5475_v55 = vld [vmem:[%s13510_s17 + $0xc60] sm:$0xff]  ;;  %v5426_v10 = vld [vmem:[%s13510_s17 + $0xad8] sm:$0xff]  ;;  %v5465_v56 = vld [vmem:[%s13510_s17 + $0xc10] sm:$0xff] }
 0x24e   :  { %2811 = vmatpush.msrb.mxu0 %v5491_v21  ;;  %2796 = vmatpush.msra.mxu2 %v5449_v60  ;;  %v5503_v53 = vld [vmem:[%s13510_s17 + $0xd40] sm:$0xff]  ;;  %v5501_v60 = vld [vmem:[%s13510_s17 + $0xd30] sm:$0xff] }
 0x24f   :  { %2755 = vmatpush.msra.mxu3 %v5387_v45  ;;  %2774 = vmatpush.msra.mxu1 %v5421_v24  ;;  %v9665_v20 = vadd.f32 %v2089_v27, %v2070_v39  ;;  %v5433_v45 = vld [vmem:[%s13510_s17 + $0xb10] sm:$0xff]  ;;  %v5399_v21 = vld [vmem:[%s13510_s17 + $0xa00] sm:$0xff]  ;;  %v5396_v39 = vld [vmem:[%s13510_s17 + $0x9e8] sm:$0xff] }
 0x250   :  { %2812 = vmatpush.msrb.mxu0 %v5489_v44  ;;  %2797 = vmatpush.msra.mxu2 %v5447_v42  ;;  %v5398_v44 = vld [vmem:[%s13510_s17 + $0x9f8] sm:$0xff]  ;;  %v5424_v27 = vld [vmem:[%s13510_s17 + $0xac8] sm:$0xff]  ;;  %v5463_v42 = vld [vmem:[%s13510_s17 + $0xc00] sm:$0xff] }
 0x251   :  { %2756 = vmatpush.msra.mxu3 %v5385_v36  ;;  %5366 = vmatmul.msk.f32.vlgmr.msra.gmra.mxu0 %vm2029_vm2, %v9217_v34  ;;  %v9681_v34 = vpop.f32.mrf.mxu3  ;;  %v5471_v36 = vld [vmem:[%s13510_s17 + $0xc40] sm:$0xff] }
 0x252   :  { %2775 = vmatpush.msra.mxu1 %v5419_v18  ;;  %2813 = vmatpush.msrb.mxu0 %v5487_v15  ;;  %13602 = vst [vmem:[#allocation13_spill] sm:$0xff] %v9681_v34  ;;  %v5499_v18 = vld [vmem:[%s13510_s17 + $0xd20] sm:$0xff]  ;;  %v5497_v15 = vld [vmem:[%s13510_s17 + $0xd10] sm:$0xff] }
 0x253   :  { %2757 = vmatpush.msra.mxu3 %v5383_v62  ;;  %2798 = vmatpush.msra.mxu2 %v5445_v51  ;;  %v5469_v62 = vld [vmem:[%s13510_s17 + $0xc30] sm:$0xff]  ;;  %v5392_v51 = vld [vmem:[%s13510_s17 + $0x9c8] sm:$0xff] }
 0x254   :  { %2776 = vmatpush.msra.mxu1 %v5417_v14  ;;  %2814 = vmatpush.msrb.mxu0 %v5485_v37  ;;  %v5422_v14 = vld [vmem:[%s13510_s17 + $0xab8] sm:$0xff]  ;;  %v5495_v37 = vld [vmem:[%s13510_s17 + $0xd00] sm:$0xff] }
 0x255   :  { %2758 = vmatpush.msra.mxu3 %v5381_v5  ;;  %2799 = vmatpush.msra.mxu2 %v5443_v4  ;;  %v5467_v5 = vld [vmem:[%s13510_s17 + $0xc20] sm:$0xff]  ;;  %v5494_v4 = vld [vmem:[%s13510_s17 + $0xcf8] sm:$0xff] }
 0x256   :  { %2777 = vmatpush.msra.mxu1 %v5415_v52  ;;  %2815 = vmatpush.msrb.mxu0 %v5483_v31  ;;  %v5460_v52 = vld [vmem:[%s13510_s17 + $0xbe8] sm:$0xff]  ;;  %v5390_v31 = vld [vmem:[%s13510_s17 + $0x9b8] sm:$0xff] }
 0x257   :  { %2759 = vmatpush.msra.mxu3 %v5379_v57  ;;  %2800 = vmatpush.msra.mxu2 %v5441_v19  ;;  %v5492_v19 = vld [vmem:[%s13510_s17 + $0xce8] sm:$0xff] }
 0x258   :  { %2778 = vmatpush.msra.mxu1 %v5413_v40  ;;  %2816 = vmatpush.msrb.mxu0 %v5481_v58  ;;  %v5458_v40 = vld [vmem:[%s13510_s17 + $0xbd8] sm:$0xff]  ;;  %v5388_v58 = vld [vmem:[%s13510_s17 + $0x9a8] sm:$0xff] }
 0x259   :  { %2760 = vmatpush.msra.mxu3 %v5377_v25  ;;  %2801 = vmatpush.msra.mxu2 %v5439_v8  ;;  %v5394_v25 = vld [vmem:[%s13510_s17 + $0x9d8] sm:$0xff] }
 0x25a   :  { %2779 = vmatpush.msra.mxu1 %v5411_v50  ;;  %2817 = vmatpush.msrb.mxu0 %v5479_v9  ;;  %v5456_v50 = vld [vmem:[%s13510_s17 + $0xbc8] sm:$0xff]  ;;  %v5490_v8 = vld [vmem:[%s13510_s17 + $0xcd8] sm:$0xff] }
 0x25b   :  { %2761 = vmatpush.msra.mxu3 %v5375_v13  ;;  %2802 = vmatpush.msra.mxu2 %v5437_v0  ;;  %v5420_v13 = vld [vmem:[%s13510_s17 + $0xaa8] sm:$0xff]  ;;  %v5386_v9 = vld [vmem:[%s13510_s17 + $0x998] sm:$0xff] }
 0x25c   :  { %2780 = vmatpush.msra.mxu1 %v5409_v35  ;;  %2818 = vmatpush.msrb.mxu0 %v5477_v43  ;;  %v5454_v35 = vld [vmem:[%s13510_s17 + $0xbb8] sm:$0xff]  ;;  %v5488_v0 = vld [vmem:[%s13510_s17 + $0xcc8] sm:$0xff] }
 0x25d   :  { %2762 = vmatpush.msra.mxu3 %v5373_v28  ;;  %2803 = vmatpush.msra.mxu2 %v5435_v23  ;;  %v5418_v28 = vld [vmem:[%s13510_s17 + $0xa98] sm:$0xff]  ;;  %v5384_v43 = vld [vmem:[%s13510_s17 + $0x988] sm:$0xff] }
 0x25e   :  { %2781 = vmatpush.msra.mxu1 %v5407_v32  ;;  %2819 = vmatpush.msrb.mxu0 %v5475_v55  ;;  %v5452_v32 = vld [vmem:[%s13510_s17 + $0xba8] sm:$0xff]  ;;  %v5486_v23 = vld [vmem:[%s13510_s17 + $0xcb8] sm:$0xff] }
 0x25f   :  { %2763 = vmatpush.msra.mxu3 %v5371_v46  ;;  %2804 = vmatpush.msra.mxu2 %v5433_v45  ;;  %v5416_v46 = vld [vmem:[%s13510_s17 + $0xa88] sm:$0xff]  ;;  %v5382_v55 = vld [vmem:[%s13510_s17 + $0x978] sm:$0xff]  ;;  %v9915_v45 = vpop.f32.mrf.mxu0 }
 0x260   :  { %2782 = vmatpush.msra.mxu1 %v5405_v29  ;;  %2820 = vmatpush.msrb.mxu0 %v5473_v11  ;;  %v5450_v29 = vld [vmem:[%s13510_s17 + $0xb98] sm:$0xff]  ;;  %v5484_v11 = vld [vmem:[%s13510_s17 + $0xca8] sm:$0xff] }
 0x261   :  { %2764 = vmatpush.msra.mxu3 %v5369_v1  ;;  %2805 = vmatpush.msra.mxu2 %v5431_v41  ;;  %v5414_v1 = vld [vmem:[%s13510_s17 + $0xa78] sm:$0xff]  ;;  %v5448_v41 = vld [vmem:[%s13510_s17 + $0xb88] sm:$0xff] }
 0x262   :  { %2783 = vmatpush.msra.mxu1 %v5403_v12  ;;  %2821 = vmatpush.msrb.mxu0 %v5471_v36  ;;  %v5408_v12 = vld [vmem:[%s13510_s17 + $0xa48] sm:$0xff]  ;;  %v5482_v36 = vld [vmem:[%s13510_s17 + $0xc98] sm:$0xff] }
 0x263   :  { %2765 = vmatpush.msra.mxu3 %v5367_v3  ;;  %2870 = vmatpush.msrb.mxu2 %v5430_v7  ;;  %v5412_v3 = vld [vmem:[%s13510_s17 + $0xa68] sm:$0xff]  ;;  %v5406_v7 = vld [vmem:[%s13510_s17 + $0xa38] sm:$0xff] }
 0x264   :  { %2784 = vmatpush.msra.mxu1 %v5401_v49  ;;  %2822 = vmatpush.msrb.mxu0 %v5469_v62  ;;  %v5446_v62 = vld [vmem:[%s13510_s17 + $0xb78] sm:$0xff] }
 0x265   :  { %2838 = vmatpush.msrb.mxu3 %v5509_v30  ;;  %2871 = vmatpush.msrb.mxu2 %v5428_v61  ;;  %v5410_v30 = vld [vmem:[%s13510_s17 + $0xa58] sm:$0xff] }
 0x266   :  { %2785 = vmatpush.msra.mxu1 %v5399_v21  ;;  %2823 = vmatpush.msrb.mxu0 %v5467_v5  ;;  %v5376_v21 = vld [vmem:[%s13510_s17 + $0x948] sm:$0xff] }
 0x267   :  { %v9748_v17 = vpop.f32.mrf.mxu3  ;;  %2839 = vmatpush.msrb.mxu3 %v5507_v54  ;;  %2872 = vmatpush.msrb.mxu2 %v5426_v10  ;;  %v5380_v54 = vld [vmem:[%s13510_s17 + $0x968] sm:$0xff]  ;;  %v5374_v10 = vld [vmem:[%s13510_s17 + $0x938] sm:$0xff] }
 0x268   :  { %13603 = vst [vmem:[#allocation14_spill] sm:$0xff] %v9748_v17  ;;  %2850 = vmatpush.msrb.mxu1 %v5398_v44  ;;  %2824 = vmatpush.msrb.mxu0 %v5465_v56  ;;  %v5404_v5 = vld [vmem:[%s13510_s17 + $0xa28] sm:$0xff]  ;;  %v5478_v44 = vld [vmem:[%s13510_s17 + $0xc78] sm:$0xff] }
 0x269   :  { %2840 = vmatpush.msrb.mxu3 %v5505_v59  ;;  %2873 = vmatpush.msrb.mxu2 %v5424_v27  ;;  %v5378_v59 = vld [vmem:[%s13510_s17 + $0x958] sm:$0xff] }
 0x26a   :  { %2851 = vmatpush.msrb.mxu1 %v5396_v39  ;;  %2825 = vmatpush.msrb.mxu0 %v5463_v42  ;;  %v5402_v56 = vld [vmem:[%s13510_s17 + $0xa18] sm:$0xff]  ;;  %v5476_v39 = vld [vmem:[%s13510_s17 + $0xc68] sm:$0xff] }
 0x26b   :  { %2841 = vmatpush.msrb.mxu3 %v5503_v53  ;;  %2874 = vmatpush.msrb.mxu2 %v5422_v14  ;;  %v5480_v53 = vld [vmem:[%s13510_s17 + $0xc88] sm:$0xff] }
 0x26c   :  { %2852 = vmatpush.msrb.mxu1 %v5394_v25  ;;  %2766 = vmatmul.f32.vlgmr.msra.gmra.mxu3 %v9734_v22  ;;  %v5372_v42 = vld [vmem:[%s13510_s17 + $0x928] sm:$0xff] }
 0x26d   :  { %2842 = vmatpush.msrb.mxu3 %v5501_v60  ;;  %2875 = vmatpush.msrb.mxu2 %v5420_v13  ;;  %v5444_v60 = vld [vmem:[%s13510_s17 + $0xb68] sm:$0xff]  ;;  %v5370_v13 = vld [vmem:[%s13510_s17 + $0x918] sm:$0xff] }
 0x26e   :  { %2853 = vmatpush.msrb.mxu1 %v5392_v51  ;;  %2806 = vmatmul.f32.vlgmr.msra.gmra.mxu2 %v9736_v26  ;;  %v5474_v51 = vld [vmem:[%s13510_s17 + $0xc58] sm:$0xff] }
 0x26f   :  { %v2109_v24 = vpop.f32.mrf.mxu3  ;;  %2843 = vmatpush.msrb.mxu3 %v5499_v18  ;;  %2876 = vmatpush.msrb.mxu2 %v5418_v28  ;;  %v5442_v18 = vld [vmem:[%s13510_s17 + $0xb58] sm:$0xff] }
 0x270   :  { %v9806_v57 = vadd.f32 %v2109_v24, %v9665_v20  ;;  %v5462_v20 = vld [vmem:[%s13510_s17 + $0xbf8] sm:$0xff]  ;;  %2854 = vmatpush.msrb.mxu1 %v5390_v31  ;;  %2826 = vmatmul.f32.vlgmr.msrb.gmra.mxu0 %v9740_v63  ;;  %v5472_v31 = vld [vmem:[%s13510_s17 + $0xc48] sm:$0xff] }
 0x271   :  { %2844 = vmatpush.msrb.mxu3 %v5497_v15  ;;  %2890 = vmatpush.msra.mxu0 %v5462_v20  ;;  %v5400_v15 = vld [vmem:[%s13510_s17 + $0xa08] sm:$0xff] }
 0x272   :  { %2855 = vmatpush.msrb.mxu1 %v5388_v58  ;;  %2877 = vmatpush.msrb.mxu2 %v5416_v46  ;;  %v5440_v20 = vld [vmem:[%s13510_s17 + $0xb48] sm:$0xff] }
 0x273   :  { %2845 = vmatpush.msrb.mxu3 %v5495_v37  ;;  %2891 = vmatpush.msra.mxu0 %v5460_v52  ;;  %v5543_v37 = vld [vmem:[%s13510_s17 + $0xe70] sm:$0xff]  ;;  %v5436_v46 = vld [vmem:[%s13510_s17 + $0xb28] sm:$0xff] }
 0x274   :  { %2856 = vmatpush.msrb.mxu1 %v5386_v9  ;;  %2878 = vmatpush.msrb.mxu2 %v5414_v1  ;;  %v5539_v9 = vld [vmem:[%s13510_s17 + $0xe50] sm:$0xff]  ;;  %v5434_v1 = vld [vmem:[%s13510_s17 + $0xb18] sm:$0xff] }
 0x275   :  { %2910 = vmatpush.msra.mxu3 %v5494_v4  ;;  %2892 = vmatpush.msra.mxu0 %v5458_v40  ;;  %v5438_v4 = vld [vmem:[%s13510_s17 + $0xb38] sm:$0xff]  ;;  %v5541_v40 = vld [vmem:[%s13510_s17 + $0xe60] sm:$0xff] }
 0x276   :  { %2786 = vmatmul.f32.vlgmr.msra.gmra.mxu1 %v9738_v47  ;;  %5511 = vmatmul.msk.f32.vlgmr.msrb.gmra.mxu3 %vm2029_vm2, %v9713_v16 }
 0x277   :  { %2911 = vmatpush.msra.mxu3 %v5492_v19  ;;  %2893 = vmatpush.msra.mxu0 %v5456_v50  ;;  %v5368_v19 = vld [vmem:[%s13510_s17 + $0x908] sm:$0xff]  ;;  %v5470_v50 = vld [vmem:[%s13510_s17 + $0xc38] sm:$0xff] }
 0x278   :  { %2857 = vmatpush.msrb.mxu1 %v5384_v43  ;;  %2879 = vmatpush.msrb.mxu2 %v5412_v3  ;;  %v5537_v43 = vld [vmem:[%s13510_s17 + $0xe40] sm:$0xff]  ;;  %v5432_v3 = vld [vmem:[%s13510_s17 + $0xb08] sm:$0xff] }
 0x279   :  { %2912 = vmatpush.msra.mxu3 %v5490_v8  ;;  %2894 = vmatpush.msra.mxu0 %v5454_v35  ;;  %v2149_v49 = vpop.f32.mrf.mxu1  ;;  %v5510_v8 = vld [vmem:[%s13510_s17 + $0xd78] sm:$0xff]  ;;  %v5468_v35 = vld [vmem:[%s13510_s17 + $0xc28] sm:$0xff] }
 0x27a   :  { %2858 = vmatpush.msrb.mxu1 %v5382_v55  ;;  %2880 = vmatpush.msrb.mxu2 %v5410_v30  ;;  %v2169_v61 = vpop.f32.mrf.mxu2  ;;  %v5535_v55 = vld [vmem:[%s13510_s17 + $0xe30] sm:$0xff] }
 0x27b   :  { %2913 = vmatpush.msra.mxu3 %v5488_v0  ;;  %2895 = vmatpush.msra.mxu0 %v5452_v32  ;;  %v2170_v24 = vadd.f32 %v2169_v61, %v2149_v49  ;;  %v5508_v0 = vld [vmem:[%s13510_s17 + $0xd68] sm:$0xff]  ;;  %v5466_v32 = vld [vmem:[%s13510_s17 + $0xc18] sm:$0xff]  ;;  %v5575_v30 = vld [vmem:[%s13510_s17 + $0xf70] sm:$0xff] }
 0x27c   :  { %2859 = vmatpush.msrb.mxu1 %v5380_v54  ;;  %2881 = vmatpush.msrb.mxu2 %v5408_v12  ;;  %v5533_v54 = vld [vmem:[%s13510_s17 + $0xe20] sm:$0xff] }
 0x27d   :  { %2914 = vmatpush.msra.mxu3 %v5486_v23  ;;  %2896 = vmatpush.msra.mxu0 %v5450_v29  ;;  %v5506_v23 = vld [vmem:[%s13510_s17 + $0xd58] sm:$0xff]  ;;  %v5464_v29 = vld [vmem:[%s13510_s17 + $0xc08] sm:$0xff]  ;;  %v5573_v12 = vld [vmem:[%s13510_s17 + $0xf60] sm:$0xff] }
 0x27e   :  { %2860 = vmatpush.msrb.mxu1 %v5378_v59  ;;  %2882 = vmatpush.msrb.mxu2 %v5406_v7  ;;  %v2189_v27 = vpop.f32.mrf.mxu0  ;;  %v5531_v59 = vld [vmem:[%s13510_s17 + $0xe10] sm:$0xff]  ;;  %v5605_v49 = vld [vmem:[%s13510_s17 + $0x1060] sm:$0xff] }
 0x27f   :  { %2915 = vmatpush.msra.mxu3 %v5484_v11  ;;  %2897 = vmatpush.msra.mxu0 %v5448_v41  ;;  %v2190_v25 = vadd.f32 %v2189_v27, %v2170_v24  ;;  %v5504_v11 = vld [vmem:[%s13510_s17 + $0xd48] sm:$0xff]  ;;  %v5607_v41 = vld [vmem:[%s13510_s17 + $0x1070] sm:$0xff]  ;;  %v5569_v61 = vld [vmem:[%s13510_s17 + $0xf40] sm:$0xff] }
 0x280   :  { %2861 = vmatpush.msrb.mxu1 %v5376_v21  ;;  %2883 = vmatpush.msrb.mxu2 %v5404_v5  ;;  %v5571_v7 = vld [vmem:[%s13510_s17 + $0xf50] sm:$0xff]  ;;  %v5498_v5 = vld [vmem:[%s13510_s17 + $0xd18] sm:$0xff] }
 0x281   :  { %2916 = vmatpush.msra.mxu3 %v5482_v36  ;;  %2898 = vmatpush.msra.mxu0 %v5446_v62  ;;  %v5502_v36 = vld [vmem:[%s13510_s17 + $0xd38] sm:$0xff]  ;;  %v5500_v62 = vld [vmem:[%s13510_s17 + $0xd28] sm:$0xff]  ;;  %v5603_v21 = vld [vmem:[%s13510_s17 + $0x1050] sm:$0xff] }
 0x282   :  { %2862 = vmatpush.msrb.mxu1 %v5374_v10  ;;  %2884 = vmatpush.msrb.mxu2 %v5402_v56  ;;  %v5527_v24 = vld [vmem:[%s13510_s17 + $0xdf0] sm:$0xff]  ;;  %v5525_v10 = vld [vmem:[%s13510_s17 + $0xde0] sm:$0xff] }
 0x283   :  { %2917 = vmatpush.msra.mxu3 %v5480_v53  ;;  %2899 = vmatpush.msra.mxu0 %v5444_v60  ;;  %v2229_v28 = vpop.f32.mrf.mxu1  ;;  %v5529_v53 = vld [vmem:[%s13510_s17 + $0xe00] sm:$0xff]  ;;  %v5567_v60 = vld [vmem:[%s13510_s17 + $0xf30] sm:$0xff] }
 0x284   :  { %2863 = vmatpush.msrb.mxu1 %v5372_v42  ;;  %2885 = vmatpush.msrb.mxu2 %v5400_v15  ;;  %v5565_v56 = vld [vmem:[%s13510_s17 + $0xf20] sm:$0xff]  ;;  %v5523_v27 = vld [vmem:[%s13510_s17 + $0xdd0] sm:$0xff] }
 0x285   :  { %2918 = vmatpush.msra.mxu3 %v5478_v44  ;;  %2900 = vmatpush.msra.mxu0 %v5442_v18  ;;  %v5496_v44 = vld [vmem:[%s13510_s17 + $0xd08] sm:$0xff]  ;;  %v5599_v18 = vld [vmem:[%s13510_s17 + $0x1030] sm:$0xff]  ;;  %v5637_v42 = vld [vmem:[%s13510_s17 + $0x1160] sm:$0xff] }
 0x286   :  { %3109 = vmatpush.msra.mxu2 %v5543_v37  ;;  %2864 = vmatpush.msrb.mxu1 %v5370_v13  ;;  %v5521_v15 = vld [vmem:[%s13510_s17 + $0xdc0] sm:$0xff]  ;;  %v5559_v37 = vld [vmem:[%s13510_s17 + $0xef0] sm:$0xff] }
 0x287   :  { %v2209_v14 = vpop.f32.mrf.mxu3  ;;  %2919 = vmatpush.msra.mxu3 %v5476_v39  ;;  %2901 = vmatpush.msra.mxu0 %v5440_v20  ;;  %v5639_v39 = vld [vmem:[%s13510_s17 + $0x1170] sm:$0xff]  ;;  %v5593_v13 = vld [vmem:[%s13510_s17 + $0x1000] sm:$0xff] }
 0x288   :  { %v2210_v52 = vadd.f32 %v2209_v14, %v2190_v25  ;;  %3110 = vmatpush.msra.mxu2 %v5541_v40  ;;  %2865 = vmatpush.msrb.mxu1 %v5368_v19  ;;  %v5561_v25 = vld [vmem:[%s13510_s17 + $0xf00] sm:$0xff]  ;;  %v5595_v14 = vld [vmem:[%s13510_s17 + $0x1010] sm:$0xff] }
 0x289   :  { %2920 = vmatpush.msra.mxu3 %v5474_v51  ;;  %2902 = vmatpush.msra.mxu0 %v5438_v4  ;;  %v5635_v20 = vld [vmem:[%s13510_s17 + $0x1150] sm:$0xff]  ;;  %v10149_v4 = vld [vmem:[%s13604_s9 + $0x8] sm:$0x3]  ;;  %v5557_v40 = vld [vmem:[%s13510_s17 + $0xee0] sm:$0xff] }
 0x28a   :  { %v9999_v58 = vadd.f32 %v2229_v28, %v2210_v52  ;;  %2938 = vmatpush.msra.mxu1 %v5510_v8  ;;  %3111 = vmatpush.msra.mxu2 %v5539_v9  ;;  %v5519_v51 = vld [vmem:[%s13510_s17 + $0xdb0] sm:$0xff]  ;;  %v5517_v28 = vld [vmem:[%s13510_s17 + $0xda0] sm:$0xff] }
 0x28b   :  { %2921 = vmatpush.msra.mxu3 %v5472_v31  ;;  %2903 = vmatpush.msra.mxu0 %v5436_v46  ;;  %v10151_v31 = vld.sshfl [vmem:[#allocation1 + $0x20] sm:$0xff pattern:$0x73625140]  ;;  %v5591_v19 = vld [vmem:[%s13510_s17 + $0xff0] sm:$0xff] }
 0x28c   :  { %2939 = vmatpush.msra.mxu1 %v5508_v0  ;;  %3112 = vmatpush.msra.mxu2 %v5537_v43  ;;  %3313 = vst [vmem:[#allocation1 + $0x20] ss:$4 sm:$0xff] %v10149_v4  ;;  %v5631_v46 = vld [vmem:[%s13510_s17 + $0x1130] sm:$0xff]  ;;  %v5513_v43 = vld [vmem:[%s13510_s17 + $0xd80] sm:$0xff] }
 0x28d   :  { %2922 = vmatpush.msra.mxu3 %v5470_v50  ;;  %2904 = vmatpush.msra.mxu0 %v5434_v1  ;;  %v5515_v50 = vld [vmem:[%s13510_s17 + $0xd90] sm:$0xff]  ;;  %v5629_v1 = vld [vmem:[%s13510_s17 + $0x1120] sm:$0xff] }
 0x28e   :  { %2940 = vmatpush.msra.mxu1 %v5506_v23  ;;  %3113 = vmatpush.msra.mxu2 %v5535_v55  ;;  %v5555_v8 = vld [vmem:[%s13510_s17 + $0xed0] sm:$0xff] }
 0x28f   :  { %2923 = vmatpush.msra.mxu3 %v5468_v35  ;;  %2905 = vmatpush.msra.mxu0 %v5432_v3  ;;  %v5553_v3 = vld [vmem:[%s13510_s17 + $0xec0] sm:$0xff]  ;;  %v5627_v23 = vld [vmem:[%s13510_s17 + $0x1110] sm:$0xff] }
 0x290   :  { %2941 = vmatpush.msra.mxu1 %v5504_v11  ;;  %3114 = vmatpush.msra.mxu2 %v5533_v54  ;;  %v5585_v11 = vld [vmem:[%s13510_s17 + $0xfc0] sm:$0xff] }
 0x291   :  { %2924 = vmatpush.msra.mxu3 %v5466_v32  ;;  %3129 = vmatpush.msrb.mxu0 %v5575_v30  ;;  %v5587_v32 = vld [vmem:[%s13510_s17 + $0xfd0] sm:$0xff]  ;;  %v5625_v54 = vld [vmem:[%s13510_s17 + $0x1100] sm:$0xff] }
 0x292   :  { %2942 = vmatpush.msra.mxu1 %v5502_v36  ;;  %3115 = vmatpush.msra.mxu2 %v5531_v59  ;;  %v5655_v30 = vld [vmem:[%s13510_s17 + $0x11f0] sm:$0xff]  ;;  %v5549_v36 = vld [vmem:[%s13510_s17 + $0xea0] sm:$0xff] }
 0x293   :  { %2925 = vmatpush.msra.mxu3 %v5464_v29  ;;  %3130 = vmatpush.msrb.mxu0 %v5573_v12  ;;  %v5551_v29 = vld [vmem:[%s13510_s17 + $0xeb0] sm:$0xff] }
 0x294   :  { %2886 = vmatmul.f32.vlgmr.msrb.gmra.mxu2 %v9738_v47  ;;  %2943 = vmatpush.msra.mxu1 %v5500_v62  ;;  %v5601_v47 = vld [vmem:[%s13510_s17 + $0x1040] sm:$0xff]  ;;  %v5623_v62 = vld [vmem:[%s13510_s17 + $0x10f0] sm:$0xff] }
 0x295   :  { %3149 = vmatpush.msrb.mxu3 %v5607_v41  ;;  %3131 = vmatpush.msrb.mxu0 %v5571_v7  ;;  %v5653_v41 = vld [vmem:[%s13510_s17 + $0x11e0] sm:$0xff] }
 0x296   :  { %3116 = vmatpush.msra.mxu2 %v5529_v53  ;;  %2944 = vmatpush.msra.mxu1 %v5498_v5  ;;  %v5651_v53 = vld [vmem:[%s13510_s17 + $0x11d0] sm:$0xff]  ;;  %v5581_v5 = vld [vmem:[%s13510_s17 + $0xfa0] sm:$0xff] }
 0x297   :  { %3150 = vmatpush.msrb.mxu3 %v5605_v49  ;;  %3132 = vmatpush.msrb.mxu0 %v5569_v61  ;;  %v5583_v49 = vld [vmem:[%s13510_s17 + $0xfb0] sm:$0xff] }
 0x298   :  { %3117 = vmatpush.msra.mxu2 %v5527_v24  ;;  %2866 = vmatmul.f32.vlgmr.msrb.gmra.mxu1 %v9734_v22  ;;  %v5563_v22 = vld [vmem:[%s13510_s17 + $0xf10] sm:$0xff]  ;;  %v5621_v24 = vld [vmem:[%s13510_s17 + $0x10e0] sm:$0xff] }
 0x299   :  { %3151 = vmatpush.msrb.mxu3 %v5603_v21  ;;  %3133 = vmatpush.msrb.mxu0 %v5567_v60  ;;  %v5547_v61 = vld [vmem:[%s13510_s17 + $0xe90] sm:$0xff]  ;;  %v5649_v60 = vld [vmem:[%s13510_s17 + $0x11c0] sm:$0xff] }
 0x29a   :  { %2926 = vmatmul.f32.vlgmr.msra.gmra.mxu3 %v9740_v63  ;;  %2945 = vmatpush.msra.mxu1 %v5496_v44  ;;  %v5597_v63 = vld [vmem:[%s13510_s17 + $0x1020] sm:$0xff]  ;;  %v5579_v44 = vld [vmem:[%s13510_s17 + $0xf90] sm:$0xff] }
 0x29b   :  { %3152 = vmatpush.msrb.mxu3 %v5601_v47  ;;  %3118 = vmatpush.msra.mxu2 %v5525_v10  ;;  %v5545_v47 = vld [vmem:[%s13510_s17 + $0xe80] sm:$0xff]  ;;  %v5619_v10 = vld [vmem:[%s13510_s17 + $0x10d0] sm:$0xff] }
 0x29c   :  { %3134 = vmatpush.msrb.mxu0 %v5565_v56  ;;  %3169 = vmatpush.msrb.mxu1 %v5639_v39  ;;  %v5647_v56 = vld [vmem:[%s13510_s17 + $0x11b0] sm:$0xff]  ;;  %v5577_v39 = vld [vmem:[%s13510_s17 + $0xf80] sm:$0xff] }
 0x29d   :  { %3153 = vmatpush.msrb.mxu3 %v5599_v18  ;;  %3119 = vmatpush.msra.mxu2 %v5523_v27  ;;  %v2408_v52 = vpop.f32.mrf.mxu2  ;;  %v5544_v18 = vld [vmem:[%s13510_s17 + $0xe78] sm:$0xff]  ;;  %v5617_v27 = vld [vmem:[%s13510_s17 + $0x10c0] sm:$0xff] }
 0x29e   :  { %3135 = vmatpush.msrb.mxu0 %v5563_v22  ;;  %3170 = vmatpush.msrb.mxu1 %v5637_v42  ;;  %v5645_v22 = vld [vmem:[%s13510_s17 + $0x11a0] sm:$0xff]  ;;  %v5576_v42 = vld [vmem:[%s13510_s17 + $0xf78] sm:$0xff] }
 0x29f   :  { %2906 = vmatmul.f32.vlgmr.msra.gmra.mxu0 %v9736_v26  ;;  %3154 = vmatpush.msrb.mxu3 %v5597_v63  ;;  %v5633_v26 = vld [vmem:[%s13510_s17 + $0x1140] sm:$0xff]  ;;  %v5542_v63 = vld [vmem:[%s13510_s17 + $0xe68] sm:$0xff] }
 0x2a0   :  { %3120 = vmatpush.msra.mxu2 %v5521_v15  ;;  %3136 = vmatpush.msrb.mxu0 %v5561_v25  ;;  %v2428_v9 = vpop.f32.mrf.mxu0  ;;  %v5615_v15 = vld [vmem:[%s13510_s17 + $0x10b0] sm:$0xff] }
 0x2a1   :  { %3155 = vmatpush.msrb.mxu3 %v5595_v14  ;;  %3171 = vmatpush.msrb.mxu1 %v5635_v20  ;;  %v2429_v35 = vadd.f32 %v2428_v9, %v2408_v52  ;;  %v5643_v25 = vld [vmem:[%s13510_s17 + $0x1190] sm:$0xff]  ;;  %v5540_v14 = vld [vmem:[%s13510_s17 + $0xe58] sm:$0xff]  ;;  %v10272_v20 = vld.sshfl [vmem:[#allocation1] sm:$0xff pattern:$0x73625140] }
 0x2a2   :  { %3121 = vmatpush.msra.mxu2 %v5519_v51  ;;  %3137 = vmatpush.msrb.mxu0 %v5559_v37  ;;  %v5574_v51 = vld [vmem:[%s13510_s17 + $0xf68] sm:$0xff]  ;;  %v5613_v37 = vld [vmem:[%s13510_s17 + $0x10a0] sm:$0xff]  ;;  %v5572_v52 = vld [vmem:[%s13510_s17 + $0xf58] sm:$0xff] }
 0x2a3   :  { %5512 = vmatmul.msk.f32.vlgmr.msra.gmra.mxu1 %vm2029_vm2, %v9713_v16  ;;  %3156 = vmatpush.msrb.mxu3 %v5593_v13  ;;  %v5589_v16 = vld [vmem:[%s13510_s17 + $0xfe0] sm:$0xff] }
 0x2a4   :  { %3172 = vmatpush.msrb.mxu1 %v5633_v26  ;;  %3122 = vmatpush.msra.mxu2 %v5517_v28  ;;  %v5641_v13 = vld [vmem:[%s13510_s17 + $0x1180] sm:$0xff]  ;;  %v5538_v26 = vld [vmem:[%s13510_s17 + $0xe48] sm:$0xff]  ;;  %v5640_v28 = vld [vmem:[%s13510_s17 + $0x1178] sm:$0xff] }
 0x2a5   :  { %3138 = vmatpush.msrb.mxu0 %v5557_v40  ;;  %3157 = vmatpush.msrb.mxu3 %v5591_v19  ;;  %v5611_v40 = vld [vmem:[%s13510_s17 + $0x1090] sm:$0xff]  ;;  %v5536_v19 = vld [vmem:[%s13510_s17 + $0xe38] sm:$0xff]  ;;  %v5609_v9 = vld [vmem:[%s13510_s17 + $0x1080] sm:$0xff] }
 0x2a6   :  { %3173 = vmatpush.msrb.mxu1 %v5631_v46  ;;  %3123 = vmatpush.msra.mxu2 %v5515_v50  ;;  %v2468_v12 = vpop.f32.mrf.mxu1  ;;  %v10299_v46 = vld.sshfl [vmem:[#allocation1 + $0x10] sm:$0xff pattern:$0x73625140]  ;;  %v5570_v50 = vld [vmem:[%s13510_s17 + $0xf48] sm:$0xff] }
 0x2a7   :  { %v2448_v0 = vpop.f32.mrf.mxu3  ;;  %3139 = vmatpush.msrb.mxu0 %v5555_v8  ;;  %3158 = vmatpush.msrb.mxu3 %v5589_v16  ;;  %v2488_v7 = vpop.f32.mrf.mxu2  ;;  %v5638_v8 = vld [vmem:[%s13510_s17 + $0x1168] sm:$0xff] }
 0x2a8   :  { %v2449_v55 = vadd.f32 %v2448_v0, %v2429_v35  ;;  %3174 = vmatpush.msrb.mxu1 %v5629_v1  ;;  %3124 = vmatpush.msra.mxu2 %v5513_v43  ;;  %v5534_v16 = vld [vmem:[%s13510_s17 + $0xe28] sm:$0xff]  ;;  %v5568_v1 = vld [vmem:[%s13510_s17 + $0xf38] sm:$0xff] }
 0x2a9   :  { %3140 = vmatpush.msrb.mxu0 %v5553_v3  ;;  %3159 = vmatpush.msrb.mxu3 %v5587_v32  ;;  %v5608_v35 = vld [vmem:[%s13510_s17 + $0x1078] sm:$0xff]  ;;  %v10326_v3 = vld.sshfl [vmem:[#allocation1 + $0x8] sm:$0xff pattern:$0x73625140] }
 0x2aa   :  { %3175 = vmatpush.msrb.mxu1 %v5627_v23  ;;  %v2469_v59 = vadd.f32 %v2468_v12, %v2449_v55  ;;  %3197 = vmatpush.msrb.mxu2 %v5655_v30  ;;  %v5636_v0 = vld [vmem:[%s13510_s17 + $0x1158] sm:$0xff]  ;;  %v5566_v32 = vld [vmem:[%s13510_s17 + $0xf28] sm:$0xff] }
 0x2ab   :  { %3141 = vmatpush.msrb.mxu0 %v5551_v29  ;;  %3160 = vmatpush.msrb.mxu3 %v5585_v11  ;;  %v5532_v43 = vld [vmem:[%s13510_s17 + $0xe18] sm:$0xff]  ;;  %v5606_v23 = vld [vmem:[%s13510_s17 + $0x1068] sm:$0xff] }
 0x2ac   :  { %3176 = vmatpush.msrb.mxu1 %v5625_v54  ;;  %v10222_v21 = vadd.f32 %v2488_v7, %v2469_v59  ;;  %3198 = vmatpush.msrb.mxu2 %v5653_v41  ;;  %v5634_v55 = vld [vmem:[%s13510_s17 + $0x1148] sm:$0xff]  ;;  %v5564_v29 = vld [vmem:[%s13510_s17 + $0xf18] sm:$0xff] }
 0x2ad   :  { %3142 = vmatpush.msrb.mxu0 %v5549_v36  ;;  %3161 = vmatpush.msrb.mxu3 %v5583_v49  ;;  %v5530_v30 = vld [vmem:[%s13510_s17 + $0xe08] sm:$0xff]  ;;  %v5604_v11 = vld [vmem:[%s13510_s17 + $0x1058] sm:$0xff] }
 0x2ae   :  { %3177 = vmatpush.msrb.mxu1 %v5623_v62  ;;  %3199 = vmatpush.msrb.mxu2 %v5651_v53  ;;  %v5632_v54 = vld [vmem:[%s13510_s17 + $0x1138] sm:$0xff]  ;;  %v5562_v36 = vld [vmem:[%s13510_s17 + $0xf08] sm:$0xff] }
 0x2af   :  { %3143 = vmatpush.msrb.mxu0 %v5547_v61  ;;  %3162 = vmatpush.msrb.mxu3 %v5581_v5  ;;  %v5528_v12 = vld [vmem:[%s13510_s17 + $0xdf8] sm:$0xff]  ;;  %v5602_v59 = vld [vmem:[%s13510_s17 + $0x1048] sm:$0xff] }
 0x2b0   :  { %3178 = vmatpush.msrb.mxu1 %v5621_v24  ;;  %3200 = vmatpush.msrb.mxu2 %v5649_v60  ;;  %v10355_v41 = vld.sshfl [vmem:[#allocation1 + $0x18] sm:$0xff pattern:$0x73625140]  ;;  %v5630_v7 = vld [vmem:[%s13510_s17 + $0x1128] sm:$0xff] }
 0x2b1   :  { %3144 = vmatpush.msrb.mxu0 %v5545_v47  ;;  %3163 = vmatpush.msrb.mxu3 %v5579_v44  ;;  %v5526_v49 = vld [vmem:[%s13510_s17 + $0xde8] sm:$0xff]  ;;  %v5560_v62 = vld [vmem:[%s13510_s17 + $0xef8] sm:$0xff] }
 0x2b2   :  { %3179 = vmatpush.msrb.mxu1 %v5619_v10  ;;  %3201 = vmatpush.msrb.mxu2 %v5647_v56  ;;  %v5600_v53 = vld [vmem:[%s13510_s17 + $0x1038] sm:$0xff]  ;;  %v5558_v60 = vld [vmem:[%s13510_s17 + $0xee8] sm:$0xff] }
 0x2b3   :  { %3209 = vmatpush.msra.mxu0 %v5544_v18  ;;  %3164 = vmatpush.msrb.mxu3 %v5577_v39  ;;  %v5628_v61 = vld [vmem:[%s13510_s17 + $0x1118] sm:$0xff]  ;;  %v5598_v44 = vld [vmem:[%s13510_s17 + $0x1028] sm:$0xff] }
 0x2b4   :  { %3180 = vmatpush.msrb.mxu1 %v5617_v27  ;;  %3202 = vmatpush.msrb.mxu2 %v5645_v22  ;;  %v5524_v24 = vld [vmem:[%s13510_s17 + $0xdd8] sm:$0xff]  ;;  %v5626_v10 = vld [vmem:[%s13510_s17 + $0x1108] sm:$0xff] }
 0x2b5   :  { %3210 = vmatpush.msra.mxu0 %v5542_v63  ;;  %3229 = vmatpush.msra.mxu3 %v5576_v42  ;;  %v5522_v18 = vld [vmem:[%s13510_s17 + $0xdc8] sm:$0xff]  ;;  %v5556_v39 = vld [vmem:[%s13510_s17 + $0xed8] sm:$0xff] }
 0x2b6   :  { %3181 = vmatpush.msrb.mxu1 %v5615_v15  ;;  %3203 = vmatpush.msrb.mxu2 %v5643_v25  ;;  %v5596_v27 = vld [vmem:[%s13510_s17 + $0x1018] sm:$0xff]  ;;  %v5554_v42 = vld [vmem:[%s13510_s17 + $0xec8] sm:$0xff] }
 0x2b7   :  { %3211 = vmatpush.msra.mxu0 %v5540_v14  ;;  %3125 = vmatmul.f32.vlgmr.msra.gmra.mxu2 %v10272_v20  ;;  %v5624_v22 = vld [vmem:[%s13510_s17 + $0x10f8] sm:$0xff]  ;;  %v5594_v25 = vld [vmem:[%s13510_s17 + $0x1008] sm:$0xff] }
 0x2b8   :  { %3230 = vmatpush.msra.mxu3 %v5574_v51  ;;  %3182 = vmatpush.msrb.mxu1 %v5613_v37  ;;  %v5520_v63 = vld [vmem:[%s13510_s17 + $0xdb8] sm:$0xff]  ;;  %v5622_v14 = vld [vmem:[%s13510_s17 + $0x10e8] sm:$0xff] }
 0x2b9   :  { %3204 = vmatpush.msrb.mxu2 %v5641_v13  ;;  %3212 = vmatpush.msra.mxu0 %v5538_v26  ;;  %v5518_v13 = vld [vmem:[%s13510_s17 + $0xda8] sm:$0xff]  ;;  %v5552_v26 = vld [vmem:[%s13510_s17 + $0xeb8] sm:$0xff] }
 0x2ba   :  { %3231 = vmatpush.msra.mxu3 %v5572_v52  ;;  %3183 = vmatpush.msrb.mxu1 %v5611_v40  ;;  %v5592_v52 = vld [vmem:[%s13510_s17 + $0xff8] sm:$0xff] }
 0x2bb   :  { %3269 = vmatpush.msra.mxu2 %v5640_v28  ;;  %3213 = vmatpush.msra.mxu0 %v5536_v19  ;;  %v5620_v28 = vld [vmem:[%s13510_s17 + $0x10d8] sm:$0xff] }
 0x2bc   :  { %3165 = vmatmul.f32.vlgmr.msrb.gmra.mxu3 %v10299_v46  ;;  %3184 = vmatpush.msrb.mxu1 %v5609_v9  ;;  %v5516_v19 = vld [vmem:[%s13510_s17 + $0xd98] sm:$0xff]  ;;  %v5618_v9 = vld [vmem:[%s13510_s17 + $0x10c8] sm:$0xff] }
 0x2bd   :  { %3232 = vmatpush.msra.mxu3 %v5570_v50  ;;  %3270 = vmatpush.msra.mxu2 %v5638_v8  ;;  %v5550_v50 = vld [vmem:[%s13510_s17 + $0xea8] sm:$0xff] }
 0x2be   :  { %3214 = vmatpush.msra.mxu0 %v5534_v16  ;;  %3249 = vmatpush.msra.mxu1 %v5608_v35  ;;  %v5590_v8 = vld [vmem:[%s13510_s17 + $0xfe8] sm:$0xff]  ;;  %v5548_v35 = vld [vmem:[%s13510_s17 + $0xe98] sm:$0xff] }
 0x2bf   :  { %3233 = vmatpush.msra.mxu3 %v5568_v1  ;;  %3271 = vmatpush.msra.mxu2 %v5636_v0  ;;  %v5514_v1 = vld [vmem:[%s13510_s17 + $0xd88] sm:$0xff] }
 0x2c0   :  { %3215 = vmatpush.msra.mxu0 %v5532_v43  ;;  %5657 = vmatmul.msk.f32.vlgmr.msrb.gmra.mxu2 %vm2029_vm2, %v10151_v31  ;;  %v5588_v43 = vld [vmem:[%s13510_s17 + $0xfd8] sm:$0xff] }
 0x2c1   :  { %3145 = vmatmul.f32.vlgmr.msrb.gmra.mxu0 %v10326_v3  ;;  %3234 = vmatpush.msra.mxu3 %v5566_v32  ;;  %v5616_v32 = vld [vmem:[%s13510_s17 + $0x10b8] sm:$0xff] }
 0x2c2   :  { %3250 = vmatpush.msra.mxu1 %v5606_v23  ;;  %3272 = vmatpush.msra.mxu2 %v5634_v55  ;;  %v5656_v23 = vld [vmem:[%s13510_s17 + $0x11f8] sm:$0xff]  ;;  %v5546_v55 = vld [vmem:[%s13510_s17 + $0xe88] sm:$0xff] }
 0x2c3   :  { %3216 = vmatpush.msra.mxu0 %v5530_v30  ;;  %3235 = vmatpush.msra.mxu3 %v5564_v29  ;;  %v5586_v30 = vld [vmem:[%s13510_s17 + $0xfc8] sm:$0xff] }
 0x2c4   :  { %3251 = vmatpush.msra.mxu1 %v5604_v11  ;;  %3273 = vmatpush.msra.mxu2 %v5632_v54  ;;  %v2508_v5 = vpop.f32.mrf.mxu0  ;;  %v5614_v29 = vld [vmem:[%s13510_s17 + $0x10a8] sm:$0xff]  ;;  %v5584_v54 = vld [vmem:[%s13510_s17 + $0xfb8] sm:$0xff] }
 0x2c5   :  { %3217 = vmatpush.msra.mxu0 %v5528_v12  ;;  %3185 = vmatmul.f32.vlgmr.msrb.gmra.mxu1 %v10355_v41  ;;  %v5654_v11 = vld [vmem:[%s13510_s17 + $0x11e8] sm:$0xff]  ;;  %v5612_v12 = vld [vmem:[%s13510_s17 + $0x1098] sm:$0xff] }
 0x2c6   :  { %3236 = vmatpush.msra.mxu3 %v5562_v36  ;;  %3252 = vmatpush.msra.mxu1 %v5602_v59  ;;  %v5652_v36 = vld [vmem:[%s13510_s17 + $0x11d8] sm:$0xff]  ;;  %v5800_v59 = vld [vmem:[%s13510_s17 + $0xf0] sm:$0xff] }
 0x2c7   :  { %3274 = vmatpush.msra.mxu2 %v5630_v7  ;;  %v2528_v47 = vpop.f32.mrf.mxu3  ;;  %3218 = vmatpush.msra.mxu0 %v5526_v49  ;;  %v5582_v7 = vld [vmem:[%s13510_s17 + $0xfa8] sm:$0xff] }
 0x2c8   :  { %3237 = vmatpush.msra.mxu3 %v5560_v62  ;;  %v2529_v56 = vadd.f32 %v2528_v47, %v2508_v5  ;;  %3253 = vmatpush.msra.mxu1 %v5600_v53  ;;  %v5610_v49 = vld [vmem:[%s13510_s17 + $0x1088] sm:$0xff]  ;;  %v5801_v53 = vld [vmem:[%s13510_s17 + $0xe0] sm:$0xff]  ;;  %v5648_v5 = vld [vmem:[%s13510_s17 + $0x11b8] sm:$0xff] }
 0x2c9   :  { %3275 = vmatpush.msra.mxu2 %v5628_v61  ;;  %3219 = vmatpush.msra.mxu0 %v5524_v24  ;;  %v2548_v15 = vpop.f32.mrf.mxu1  ;;  %v2568_v37 = vpop.f32.mrf.mxu2  ;;  %v5650_v62 = vld [vmem:[%s13510_s17 + $0x11c8] sm:$0xff]  ;;  %v5580_v61 = vld [vmem:[%s13510_s17 + $0xf98] sm:$0xff]  ;;  %v5802_v24 = vld [vmem:[%s13510_s17 + $0xd0] sm:$0xff] }
 0x2ca   :  { %3238 = vmatpush.msra.mxu3 %v5558_v60  ;;  %3254 = vmatpush.msra.mxu1 %v5598_v44  ;;  %v2549_v51 = vadd.f32 %v2548_v15, %v2529_v56  ;;  %v5803_v60 = vld [vmem:[%s13510_s17 + $0x2f0] sm:$0xff]  ;;  %v5578_v47 = vld [vmem:[%s13510_s17 + $0xf88] sm:$0xff]  ;;  %v5804_v56 = vld [vmem:[%s13510_s17 + $0xc0] sm:$0xff] }
 0x2cb   :  { %3276 = vmatpush.msra.mxu2 %v5626_v10  ;;  %3220 = vmatpush.msra.mxu0 %v5522_v18  ;;  %v5646_v44 = vld [vmem:[%s13510_s17 + $0x11a8] sm:$0xff]  ;;  %v10514_v10 = vld [vmem:[%s13604_s9] sm:$0xff]  ;;  %s11833_s9 = sld [smem:[#allocation2 + $0x9]] }
 0x2cc   :  { %3239 = vmatpush.msra.mxu3 %v5556_v39  ;;  %3255 = vmatpush.msra.mxu1 %v5596_v27  ;;  %v2569_v40 = vadd.f32 %v2568_v37, %v2549_v51  ;;  %v5805_v18 = vld [vmem:[%s13510_s17 + $0x2e0] sm:$0xff]  ;;  %v5644_v39 = vld [vmem:[%s13510_s17 + $0x1198] sm:$0xff]  ;;  %3311 = vst [vmem:[#allocation1] ss:$4 sm:$0xff] %v10514_v10  ;;  %v5807_v27 = vld [vmem:[%s13510_s17 + $0x1f0] sm:$0xff] }
 0x2cd   :  { %3277 = vmatpush.msra.mxu2 %v5624_v22  ;;  %3221 = vmatpush.msra.mxu0 %v5520_v63  ;;  %v5808_v22 = vld [vmem:[%s13510_s17 + $0x2d0] sm:$0xff]  ;;  %v5642_v63 = vld [vmem:[%s13510_s17 + $0x1188] sm:$0xff]  ;;  %v5810_v15 = vld [vmem:[%s13510_s17 + $0x1e0] sm:$0xff] }
 0x2ce   :  { %3240 = vmatpush.msra.mxu3 %v5554_v42  ;;  %3256 = vmatpush.msra.mxu1 %v5594_v25  ;;  %v2588_v16 = vpop.f32.mrf.mxu0  ;;  %v5809_v42 = vld [vmem:[%s13510_s17 + $0xa0] sm:$0xff]  ;;  %v5815_v51 = vld [vmem:[%s13510_s17 + $0x3f0] sm:$0xff] }
 0x2cf   :  { %3278 = vmatpush.msra.mxu2 %v5622_v14  ;;  %3222 = vmatpush.msra.mxu0 %v5518_v13  ;;  %v10445_v0 = vadd.f32 %v2588_v16, %v2569_v40  ;;  %v5811_v25 = vld [vmem:[%s13510_s17 + $0x2c0] sm:$0xff]  ;;  %v5814_v14 = vld [vmem:[%s13510_s17 + $0x2b0] sm:$0xff] }
 0x2d0   :  { %3241 = vmatpush.msra.mxu3 %v5552_v26  ;;  %3257 = vmatpush.msra.mxu1 %v5592_v52  ;;  %v5816_v37 = vld [vmem:[%s13510_s17 + $0x80] sm:$0xff]  ;;  %v5822_v40 = vld [vmem:[%s13510_s17 + $0x290] sm:$0xff] }
 0x2d1   :  { %3279 = vmatpush.msra.mxu2 %v5620_v28  ;;  %3223 = vmatpush.msra.mxu0 %v5516_v19  ;;  %v5817_v13 = vld [vmem:[%s13510_s17 + $0x1c0] sm:$0xff]  ;;  %v5821_v28 = vld [vmem:[%s13510_s17 + $0x1b0] sm:$0xff] }
 0x2d2   :  { %3242 = vmatpush.msra.mxu3 %v5550_v50  ;;  %3258 = vmatpush.msra.mxu1 %v5590_v8  ;;  %v5818_v26 = vld [vmem:[%s13510_s17 + $0x2a0] sm:$0xff]  ;;  %v5823_v19 = vld [vmem:[%s13510_s17 + $0x3d0] sm:$0xff] }
 0x2d3   :  { %3280 = vmatpush.msra.mxu2 %v5618_v9  ;;  %3224 = vmatpush.msra.mxu0 %v5514_v1  ;;  %v5819_v52 = vld [vmem:[%s13510_s17 + $0x3e0] sm:$0xff] }
 0x2d4   :  { %3243 = vmatpush.msra.mxu3 %v5548_v35  ;;  %3259 = vmatpush.msra.mxu1 %v5588_v43  ;;  %v5824_v50 = vld [vmem:[%s13510_s17 + $0x60] sm:$0xff]  ;;  %v5829_v35 = vld [vmem:[%s13510_s17 + $0x190] sm:$0xff] }
 0x2d5   :  { %3281 = vmatpush.msra.mxu2 %v5616_v32  ;;  %3297 = vmatpush.msrb.mxu0 %v5656_v23  ;;  %v10589_v8 = vld.sshfl [vmem:[#allocation1 + $0x20] sm:$0xff pattern:$0x73625140]  ;;  %v10611_v32 = vld.sshfl [vmem:[#allocation1 + $0x10] sm:$0xff pattern:$0x73625140] }
 0x2d6   :  { %3244 = vmatpush.msra.mxu3 %v5546_v55  ;;  %3260 = vmatpush.msra.mxu1 %v5586_v30  ;;  %v5825_v9 = vld [vmem:[%s13510_s17 + $0x1a0] sm:$0xff]  ;;  %3527 = vst [vmem:[#allocation1 + $0x20] ss:$4 sm:$0xff] %v10149_v4  ;;  %v5830_v23 = vld [vmem:[%s13510_s17 + $0x270] sm:$0xff] }
 0x2d7   :  { %3282 = vmatpush.msra.mxu2 %v5614_v29  ;;  %3298 = vmatpush.msrb.mxu0 %v5654_v11  ;;  %v5826_v16 = vld [vmem:[%s13510_s17 + $0x280] sm:$0xff]  ;;  %v5831_v55 = vld [vmem:[%s13510_s17 + $0x3b0] sm:$0xff]  ;;  %v10619_v30 = vld.sshfl [vmem:[#allocation1 + $0x8] sm:$0xff pattern:$0x73625140] }
 0x2d8   :  { %3325 = vmatpush.msrb.mxu3 %v5800_v59  ;;  %3261 = vmatpush.msra.mxu1 %v5584_v54  ;;  %v5827_v1 = vld [vmem:[%s13510_s17 + $0x3c0] sm:$0xff]  ;;  %v10621_v29 = vld.sshfl [vmem:[#allocation1 + $0x18] sm:$0xff pattern:$0x73625140] }
 0x2d9   :  { %3283 = vmatpush.msra.mxu2 %v5612_v12  ;;  %3299 = vmatpush.msrb.mxu0 %v5652_v36  ;;  %v10609_v43 = vld.sshfl [vmem:[#allocation1] sm:$0xff pattern:$0x73625140] }
 0x2da   :  { %3326 = vmatpush.msrb.mxu3 %v5801_v53  ;;  %3262 = vmatpush.msra.mxu1 %v5582_v7  ;;  %v5832_v11 = vld [vmem:[%s13510_s17 + $0x40] sm:$0xff]  ;;  %3525 = vst [vmem:[#allocation1] ss:$4 sm:$0xff] %v10514_v10  ;;  %v5836_v7 = vld [vmem:[%s13510_s17 + $0x30] sm:$0xff] }
 0x2db   :  { %3284 = vmatpush.msra.mxu2 %v5610_v49  ;;  %3300 = vmatpush.msrb.mxu0 %v5650_v62  ;;  %v5833_v54 = vld [vmem:[%s13510_s17 + $0x180] sm:$0xff]  ;;  %v5837_v49 = vld [vmem:[%s13510_s17 + $0x170] sm:$0xff] }
 0x2dc   :  { %3327 = vmatpush.msrb.mxu3 %v5802_v24  ;;  %3263 = vmatpush.msra.mxu1 %v5580_v61  ;;  %v5834_v12 = vld [vmem:[%s13510_s17 + $0x260] sm:$0xff]  ;;  %v5838_v62 = vld [vmem:[%s13510_s17 + $0x250] sm:$0xff] }
 0x2dd   :  { %3365 = vmatpush.msrb.mxu2 %v5803_v60  ;;  %3301 = vmatpush.msrb.mxu0 %v5648_v5  ;;  %v5835_v36 = vld [vmem:[%s13510_s17 + $0x3a0] sm:$0xff]  ;;  %v5839_v53 = vld [vmem:[%s13510_s17 + $0x390] sm:$0xff] }
 0x2de   :  { %3245 = vmatmul.f32.vlgmr.msra.gmra.mxu3 %v10326_v3  ;;  %3264 = vmatpush.msra.mxu1 %v5578_v47  ;;  %v5806_v3 = vld [vmem:[%s13510_s17 + $0xb0] sm:$0xff]  ;;  %v5840_v61 = vld [vmem:[%s13510_s17 + $0x20] sm:$0xff] }
 0x2df   :  { %3328 = vmatpush.msrb.mxu3 %v5804_v56  ;;  %3366 = vmatpush.msrb.mxu2 %v5805_v18  ;;  %v5841_v5 = vld [vmem:[%s13510_s17 + $0x160] sm:$0xff]  ;;  %v5844_v18 = vld [vmem:[%s13510_s17 + $0x10] sm:$0xff] }
 0x2e0   :  { %3302 = vmatpush.msrb.mxu0 %v5646_v44  ;;  %3345 = vmatpush.msrb.mxu1 %v5807_v27  ;;  %v5842_v60 = vld [vmem:[%s13510_s17 + $0x240] sm:$0xff]  ;;  %v5847_v27 = vld [vmem:[%s13510_s17 + $0x370] sm:$0xff] }
 0x2e1   :  { %3329 = vmatpush.msrb.mxu3 %v5806_v3  ;;  %3367 = vmatpush.msrb.mxu2 %v5808_v22  ;;  %v5843_v47 = vld [vmem:[%s13510_s17 + $0x380] sm:$0xff]  ;;  %v5846_v3 = vld [vmem:[%s13510_s17 + $0x230] sm:$0xff] }
 0x2e2   :  { %3303 = vmatpush.msrb.mxu0 %v5644_v39  ;;  %3285 = vmatmul.f32.vlgmr.msra.gmra.mxu2 %v10355_v41  ;;  %v5813_v41 = vld [vmem:[%s13510_s17 + $0x1d0] sm:$0xff] }
 0x2e3   :  { %3225 = vmatmul.f32.vlgmr.msra.gmra.mxu0 %v10272_v20  ;;  %3330 = vmatpush.msrb.mxu3 %v5809_v42  ;;  %v5812_v20 = vld [vmem:[%s13510_s17 + $0x90] sm:$0xff]  ;;  %v5849_v42 = vld [vmem:[%s13510_s17 + $0x140] sm:$0xff] }
 0x2e4   :  { %3346 = vmatpush.msrb.mxu1 %v5810_v15  ;;  %3368 = vmatpush.msrb.mxu2 %v5811_v25  ;;  %v5845_v39 = vld [vmem:[%s13510_s17 + $0x150] sm:$0xff]  ;;  %v5850_v15 = vld [vmem:[%s13510_s17 + $0x220] sm:$0xff] }
 0x2e5   :  { %3304 = vmatpush.msrb.mxu0 %v5642_v63  ;;  %3331 = vmatpush.msrb.mxu3 %v5812_v20  ;;  %v5848_v63 = vld [vmem:[%s13510_s17] sm:$0xff] }
 0x2e6   :  { %3347 = vmatpush.msrb.mxu1 %v5813_v41  ;;  %3369 = vmatpush.msrb.mxu2 %v5814_v14  ;;  %v5851_v25 = vld [vmem:[%s13510_s17 + $0x360] sm:$0xff]  ;;  %v5852_v41 = vld [vmem:[%s13510_s17 + $0x470] sm:$0xff] }
 0x2e7   :  { %3385 = vmatpush.msra.mxu0 %v5815_v51  ;;  %3265 = vmatmul.f32.vlgmr.msra.gmra.mxu1 %v10299_v46  ;;  %v5820_v46 = vld [vmem:[%s13510_s17 + $0x70] sm:$0xff] }
 0x2e8   :  { %3332 = vmatpush.msrb.mxu3 %v5816_v37  ;;  %3348 = vmatpush.msrb.mxu1 %v5817_v13  ;;  %v5853_v14 = vld [vmem:[%s13510_s17 + $0x130] sm:$0xff] }
 0x2e9   :  { %3370 = vmatpush.msrb.mxu2 %v5818_v26  ;;  %3386 = vmatpush.msra.mxu0 %v5819_v52  ;;  %v5854_v13 = vld [vmem:[%s13510_s17 + $0x210] sm:$0xff]  ;;  %v5856_v52 = vld [vmem:[%s13510_s17 + $0x460] sm:$0xff] }
 0x2ea   :  { %3333 = vmatpush.msrb.mxu3 %v5820_v46  ;;  %3349 = vmatpush.msrb.mxu1 %v5821_v28  ;;  %v5855_v26 = vld [vmem:[%s13510_s17 + $0x350] sm:$0xff]  ;;  %v5857_v46 = vld [vmem:[%s13510_s17 + $0x120] sm:$0xff] }
 0x2eb   :  { %3371 = vmatpush.msrb.mxu2 %v5822_v40  ;;  %3387 = vmatpush.msra.mxu0 %v5823_v19  ;;  %v5858_v40 = vld [vmem:[%s13510_s17 + $0x200] sm:$0xff] }
 0x2ec   :  { %3334 = vmatpush.msrb.mxu3 %v5824_v50  ;;  %5658 = vmatmul.msk.f32.vlgmr.msrb.gmra.mxu0 %vm2029_vm2, %v10151_v31  ;;  %v5828_v31 = vld [vmem:[%s13510_s17 + $0x50] sm:$0xff]  ;;  %v5859_v19 = vld [vmem:[%s13510_s17 + $0x340] sm:$0xff] }
 0x2ed   :  { %3350 = vmatpush.msrb.mxu1 %v5825_v9  ;;  %3372 = vmatpush.msrb.mxu2 %v5826_v16  ;;  %v2827_v20 = vpop.f32.mrf.mxu0  ;;  %v5860_v50 = vld [vmem:[%s13510_s17 + $0x450] sm:$0xff]  ;;  %v5861_v9 = vld [vmem:[%s13510_s17 + $0x1f8] sm:$0xff] }
 0x2ee   :  { %3388 = vmatpush.msra.mxu0 %v5827_v1  ;;  %3335 = vmatpush.msrb.mxu3 %v5828_v31  ;;  %v5862_v16 = vld [vmem:[%s13510_s17 + $0x110] sm:$0xff]  ;;  %v5864_v31 = vld [vmem:[%s13510_s17 + $0x440] sm:$0xff] }
 0x2ef   :  { %3351 = vmatpush.msrb.mxu1 %v5829_v35  ;;  %3373 = vmatpush.msrb.mxu2 %v5830_v23  ;;  %v2767_v59 = vpop.f32.mrf.mxu3  ;;  %v5863_v1 = vld [vmem:[%s13510_s17 + $0x330] sm:$0xff]  ;;  %v5865_v35 = vld [vmem:[%s13510_s17 + $0x1e8] sm:$0xff]  ;;  %v5866_v23 = vld [vmem:[%s13510_s17 + $0x100] sm:$0xff] }
 0x2f0   :  { %3389 = vmatpush.msra.mxu0 %v5831_v55  ;;  %3336 = vmatpush.msrb.mxu3 %v5832_v11  ;;  %v5867_v55 = vld [vmem:[%s13510_s17 + $0x320] sm:$0xff]  ;;  %v5868_v11 = vld [vmem:[%s13510_s17 + $0x430] sm:$0xff] }
 0x2f1   :  { %3352 = vmatpush.msrb.mxu1 %v5833_v54  ;;  %3374 = vmatpush.msrb.mxu2 %v5834_v12  ;;  %v2807_v56 = vpop.f32.mrf.mxu2  ;;  %v5869_v54 = vld [vmem:[%s13510_s17 + $0xf8] sm:$0xff] }
 0x2f2   :  { %3390 = vmatpush.msra.mxu0 %v5835_v36  ;;  %3337 = vmatpush.msrb.mxu3 %v5836_v7  ;;  %v5870_v12 = vld [vmem:[%s13510_s17 + $0x1d8] sm:$0xff]  ;;  %v5871_v36 = vld [vmem:[%s13510_s17 + $0x310] sm:$0xff]  ;;  %v5873_v7 = vld [vmem:[%s13510_s17 + $0xe8] sm:$0xff] }
 0x2f3   :  { %3353 = vmatpush.msrb.mxu1 %v5837_v49  ;;  %3375 = vmatpush.msrb.mxu2 %v5838_v62  ;;  %v2787_v24 = vpop.f32.mrf.mxu1  ;;  %v5874_v49 = vld [vmem:[%s13510_s17 + $0x1c8] sm:$0xff]  ;;  %v5875_v62 = vld [vmem:[%s13510_s17 + $0x300] sm:$0xff] }
 0x2f4   :  { %3391 = vmatpush.msra.mxu0 %v5839_v53  ;;  %3338 = vmatpush.msrb.mxu3 %v5840_v61  ;;  %v2788_v44 = vadd.f32 %v2787_v24, %v2767_v59  ;;  %v5872_v59 = vld [vmem:[%s13510_s17 + $0x420] sm:$0xff]  ;;  %v5876_v53 = vld [vmem:[%s13510_s17 + $0x410] sm:$0xff]  ;;  %v5877_v61 = vld [vmem:[%s13510_s17 + $0xd8] sm:$0xff] }
 0x2f5   :  { %3354 = vmatpush.msrb.mxu1 %v5841_v5  ;;  %3376 = vmatpush.msrb.mxu2 %v5842_v60  ;;  %v5878_v5 = vld [vmem:[%s13510_s17 + $0x1b8] sm:$0xff]  ;;  %v5880_v60 = vld [vmem:[%s13510_s17 + $0x400] sm:$0xff] }
 0x2f6   :  { %3392 = vmatpush.msra.mxu0 %v5843_v47  ;;  %3339 = vmatpush.msrb.mxu3 %v5844_v18  ;;  %v2808_v22 = vadd.f32 %v2807_v56, %v2788_v44  ;;  %v5879_v24 = vld [vmem:[%s13510_s17 + $0x2f8] sm:$0xff]  ;;  %v5881_v47 = vld [vmem:[%s13510_s17 + $0xc8] sm:$0xff] }
 0x2f7   :  { %3355 = vmatpush.msrb.mxu1 %v5845_v39  ;;  %3377 = vmatpush.msrb.mxu2 %v5846_v3  ;;  %v5882_v44 = vld [vmem:[%s13510_s17 + $0x1a8] sm:$0xff]  ;;  %v5884_v18 = vld [vmem:[%s13510_s17 + $0x3f8] sm:$0xff] }
 0x2f8   :  { %3393 = vmatpush.msra.mxu0 %v5847_v27  ;;  %3340 = vmatpush.msrb.mxu3 %v5848_v63  ;;  %v2828_v51 = vadd.f32 %v2827_v20, %v2808_v22  ;;  %v5883_v56 = vld [vmem:[%s13510_s17 + $0x2e8] sm:$0xff]  ;;  %v5885_v39 = vld [vmem:[%s13510_s17 + $0xb8] sm:$0xff] }
 0x2f9   :  { %3356 = vmatpush.msrb.mxu1 %v5849_v42  ;;  %3378 = vmatpush.msrb.mxu2 %v5850_v15  ;;  %v2847_v37 = vpop.f32.mrf.mxu3  ;;  %v5886_v3 = vld [vmem:[%s13510_s17 + $0x198] sm:$0xff]  ;;  %v5888_v22 = vld [vmem:[%s13510_s17 + $0x3e8] sm:$0xff] }
 0x2fa   :  { %3394 = vmatpush.msra.mxu0 %v5851_v25  ;;  %3413 = vmatpush.msra.mxu3 %v5852_v41  ;;  %v10702_v28 = vadd.f32 %v2847_v37, %v2828_v51  ;;  %v5887_v27 = vld [vmem:[%s13510_s17 + $0x2d8] sm:$0xff]  ;;  %v5889_v63 = vld [vmem:[%s13510_s17 + $0xa8] sm:$0xff] }
 0x2fb   :  { %3357 = vmatpush.msrb.mxu1 %v5853_v14  ;;  %3379 = vmatpush.msrb.mxu2 %v5854_v13  ;;  %v5890_v42 = vld [vmem:[%s13510_s17 + $0x188] sm:$0xff]  ;;  %v5892_v25 = vld [vmem:[%s13510_s17 + $0x3d8] sm:$0xff] }
 0x2fc   :  { %3395 = vmatpush.msra.mxu0 %v5855_v26  ;;  %3414 = vmatpush.msra.mxu3 %v5856_v52  ;;  %v5891_v15 = vld [vmem:[%s13510_s17 + $0x2c8] sm:$0xff]  ;;  %v5893_v20 = vld [vmem:[%s13510_s17 + $0x98] sm:$0xff] }
 0x2fd   :  { %3358 = vmatpush.msrb.mxu1 %v5857_v46  ;;  %3380 = vmatpush.msrb.mxu2 %v5858_v40  ;;  %v5894_v41 = vld [vmem:[%s13510_s17 + $0x178] sm:$0xff]  ;;  %v5896_v51 = vld [vmem:[%s13510_s17 + $0x3c8] sm:$0xff] }
 0x2fe   :  { %3396 = vmatpush.msra.mxu0 %v5859_v19  ;;  %3415 = vmatpush.msra.mxu3 %v5860_v50  ;;  %v5895_v14 = vld [vmem:[%s13510_s17 + $0x2b8] sm:$0xff]  ;;  %v5897_v37 = vld [vmem:[%s13510_s17 + $0x88] sm:$0xff] }
 0x2ff   :  { %3445 = vmatpush.msra.mxu2 %v5861_v9  ;;  %3359 = vmatpush.msrb.mxu1 %v5862_v16  ;;  %v5898_v13 = vld [vmem:[%s13510_s17 + $0x168] sm:$0xff]  ;;  %v5900_v52 = vld [vmem:[%s13510_s17 + $0x3b8] sm:$0xff] }
 0x300   :  { %3397 = vmatpush.msra.mxu0 %v5863_v1  ;;  %3416 = vmatpush.msra.mxu3 %v5864_v31  ;;  %v5899_v26 = vld [vmem:[%s13510_s17 + $0x2a8] sm:$0xff]  ;;  %v5901_v46 = vld [vmem:[%s13510_s17 + $0x78] sm:$0xff] }
 0x301   :  { %3446 = vmatpush.msra.mxu2 %v5865_v35  ;;  %3341 = vmatmul.f32.vlgmr.msrb.gmra.mxu3 %v10609_v43  ;;  %v5902_v40 = vld [vmem:[%s13510_s17 + $0x158] sm:$0xff]  ;;  %v5904_v50 = vld [vmem:[%s13510_s17 + $0x3a8] sm:$0xff] }
 0x302   :  { %3360 = vmatpush.msrb.mxu1 %v5866_v23  ;;  %3398 = vmatpush.msra.mxu0 %v5867_v55  ;;  %v5903_v19 = vld [vmem:[%s13510_s17 + $0x298] sm:$0xff]  ;;  %v5905_v16 = vld [vmem:[%s13510_s17 + $0x68] sm:$0xff] }
 0x303   :  { %3417 = vmatpush.msra.mxu3 %v5868_v11  ;;  %3447 = vmatpush.msra.mxu2 %v5870_v12  ;;  %v5906_v1 = vld [vmem:[%s13510_s17 + $0x148] sm:$0xff]  ;;  %v5908_v23 = vld [vmem:[%s13510_s17 + $0x398] sm:$0xff] }
 0x304   :  { %3425 = vmatpush.msra.mxu1 %v5869_v54  ;;  %3399 = vmatpush.msra.mxu0 %v5871_v36  ;;  %v5907_v35 = vld [vmem:[%s13510_s17 + $0x288] sm:$0xff]  ;;  %v5909_v11 = vld [vmem:[%s13510_s17 + $0x58] sm:$0xff] }
 0x305   :  { %3418 = vmatpush.msra.mxu3 %v5872_v59  ;;  %3448 = vmatpush.msra.mxu2 %v5874_v49  ;;  %v5910_v54 = vld [vmem:[%s13510_s17 + $0x138] sm:$0xff]  ;;  %v5912_v36 = vld [vmem:[%s13510_s17 + $0x388] sm:$0xff] }
 0x306   :  { %3426 = vmatpush.msra.mxu1 %v5873_v7  ;;  %3381 = vmatmul.f32.vlgmr.msrb.gmra.mxu2 %v10611_v32  ;;  %v5911_v12 = vld [vmem:[%s13510_s17 + $0x278] sm:$0xff]  ;;  %v5913_v59 = vld [vmem:[%s13510_s17 + $0x48] sm:$0xff] }
 0x307   :  { %3400 = vmatpush.msra.mxu0 %v5875_v62  ;;  %3419 = vmatpush.msra.mxu3 %v5876_v53  ;;  %v5914_v7 = vld [vmem:[%s13510_s17 + $0x128] sm:$0xff]  ;;  %v5916_v53 = vld [vmem:[%s13510_s17 + $0x378] sm:$0xff] }
 0x308   :  { %3427 = vmatpush.msra.mxu1 %v5877_v61  ;;  %3449 = vmatpush.msra.mxu2 %v5878_v5  ;;  %v5915_v62 = vld [vmem:[%s13510_s17 + $0x268] sm:$0xff] }
 0x309   :  { %3465 = vmatpush.msrb.mxu0 %v5879_v24  ;;  %3420 = vmatpush.msra.mxu3 %v5880_v60  ;;  %v5917_v24 = vld [vmem:[%s13510_s17 + $0x38] sm:$0xff] }
 0x30a   :  { %3428 = vmatpush.msra.mxu1 %v5881_v47  ;;  %3450 = vmatpush.msra.mxu2 %v5882_v44  ;;  %v5918_v60 = vld [vmem:[%s13510_s17 + $0x118] sm:$0xff]  ;;  %v5920_v44 = vld [vmem:[%s13510_s17 + $0x368] sm:$0xff] }
 0x30b   :  { %3466 = vmatpush.msrb.mxu0 %v5883_v56  ;;  %3361 = vmatmul.f32.vlgmr.msrb.gmra.mxu1 %v10619_v30  ;;  %v5919_v47 = vld [vmem:[%s13510_s17 + $0x258] sm:$0xff] }
 0x30c   :  { %5659 = vmatmul.msk.f32.vlgmr.msra.gmra.mxu3 %vm2029_vm2, %v10589_v8  ;;  %3429 = vmatpush.msra.mxu1 %v5885_v39  ;;  %v5922_v39 = vld [vmem:[%s13510_s17 + $0x108] sm:$0xff] }
 0x30d   :  { %3485 = vmatpush.msrb.mxu3 %v5884_v18  ;;  %3451 = vmatpush.msra.mxu2 %v5886_v3  ;;  %v5921_v18 = vld [vmem:[%s13510_s17 + $0x28] sm:$0xff] }
 0x30e   :  { %3467 = vmatpush.msrb.mxu0 %v5887_v27  ;;  %3430 = vmatpush.msra.mxu1 %v5889_v63  ;;  %v5923_v27 = vld [vmem:[%s13510_s17 + $0x248] sm:$0xff] }
 0x30f   :  { %3486 = vmatpush.msrb.mxu3 %v5888_v22  ;;  %3452 = vmatpush.msra.mxu2 %v5890_v42  ;;  %v5924_v22 = vld [vmem:[%s13510_s17 + $0x358] sm:$0xff]  ;;  %v5925_v42 = vld [vmem:[%s13510_s17 + $0x570] sm:$0xff] }
 0x310   :  { %3468 = vmatpush.msrb.mxu0 %v5891_v15  ;;  %3431 = vmatpush.msra.mxu1 %v5893_v20  ;;  %v5926_v15 = vld [vmem:[%s13510_s17 + $0x18] sm:$0xff]  ;;  %v5928_v20 = vld [vmem:[%s13510_s17 + $0x348] sm:$0xff] }
 0x311   :  { %3401 = vmatmul.f32.vlgmr.msra.gmra.mxu0 %v10621_v29  ;;  %3487 = vmatpush.msrb.mxu3 %v5892_v25  ;;  %v5927_v25 = vld [vmem:[%s13510_s17 + $0x238] sm:$0xff] }
 0x312   :  { %3453 = vmatpush.msra.mxu2 %v5894_v41  ;;  %3469 = vmatpush.msrb.mxu0 %v5895_v14  ;;  %v5929_v41 = vld [vmem:[%s13510_s17 + $0x560] sm:$0xff]  ;;  %v5930_v14 = vld [vmem:[%s13510_s17 + $0x8] sm:$0xff] }
 0x313   :  { %3488 = vmatpush.msrb.mxu3 %v5896_v51  ;;  %3432 = vmatpush.msra.mxu1 %v5897_v37  ;;  %v5931_v51 = vld [vmem:[%s13510_s17 + $0x228] sm:$0xff]  ;;  %v5932_v37 = vld [vmem:[%s13510_s17 + $0x338] sm:$0xff] }
 0x314   :  { %3454 = vmatpush.msra.mxu2 %v5898_v13  ;;  %3470 = vmatpush.msrb.mxu0 %v5899_v26  ;;  %v5933_v13 = vld [vmem:[%s13510_s17 + $0x478] sm:$0xff]  ;;  %v5934_v26 = vld [vmem:[%s13510_s17 + $0x550] sm:$0xff] }
 0x315   :  { %3489 = vmatpush.msrb.mxu3 %v5900_v52  ;;  %3433 = vmatpush.msra.mxu1 %v5901_v46  ;;  %v2867_v9 = vpop.f32.mrf.mxu1  ;;  %v5935_v52 = vld [vmem:[%s13510_s17 + $0x218] sm:$0xff]  ;;  %v5936_v46 = vld [vmem:[%s13510_s17 + $0x328] sm:$0xff] }
 0x316   :  { %3455 = vmatpush.msra.mxu2 %v5902_v40  ;;  %3471 = vmatpush.msrb.mxu0 %v5903_v19  ;;  %v5937_v40 = vld [vmem:[%s13510_s17 + $0x468] sm:$0xff]  ;;  %v5938_v19 = vld [vmem:[%s13510_s17 + $0x540] sm:$0xff] }
 0x317   :  { %3490 = vmatpush.msrb.mxu3 %v5904_v50  ;;  %3434 = vmatpush.msra.mxu1 %v5905_v16  ;;  %v2887_v31 = vpop.f32.mrf.mxu2  ;;  %v5939_v50 = vld [vmem:[%s13510_s17 + $0x208] sm:$0xff]  ;;  %v5941_v16 = vld [vmem:[%s13510_s17 + $0x458] sm:$0xff] }
 0x318   :  { %3456 = vmatpush.msra.mxu2 %v5906_v1  ;;  %3472 = vmatpush.msrb.mxu0 %v5907_v35  ;;  %v2888_v55 = vadd.f32 %v2887_v31, %v2867_v9  ;;  %v5940_v9 = vld [vmem:[%s13510_s17 + $0x318] sm:$0xff]  ;;  %v5942_v1 = vld [vmem:[%s13510_s17 + $0x530] sm:$0xff]  ;;  %v5944_v31 = vld [vmem:[%s13510_s17 + $0x308] sm:$0xff] }
 0x319   :  { %3491 = vmatpush.msrb.mxu3 %v5908_v23  ;;  %3435 = vmatpush.msra.mxu1 %v5909_v11  ;;  %v5945_v35 = vld [vmem:[%s13510_s17 + $0x448] sm:$0xff]  ;;  %v5946_v23 = vld [vmem:[%s13510_s17 + $0x520] sm:$0xff]  ;;  %v5948_v11 = vld [vmem:[%s13510_s17 + $0x770] sm:$0xff] }
 0x31a   :  { %3457 = vmatpush.msra.mxu2 %v5910_v54  ;;  %3473 = vmatpush.msrb.mxu0 %v5911_v12  ;;  %v5949_v54 = vld [vmem:[%s13510_s17 + $0x438] sm:$0xff]  ;;  %v5950_v12 = vld [vmem:[%s13510_s17 + $0x510] sm:$0xff] }
 0x31b   :  { %3492 = vmatpush.msrb.mxu3 %v5912_v36  ;;  %3436 = vmatpush.msra.mxu1 %v5913_v59  ;;  %v5953_v36 = vld [vmem:[%s13510_s17 + $0x428] sm:$0xff]  ;;  %v5954_v59 = vld [vmem:[%s13510_s17 + $0x500] sm:$0xff] }
 0x31c   :  { %3458 = vmatpush.msra.mxu2 %v5914_v7  ;;  %v2907_v49 = vpop.f32.mrf.mxu0  ;;  %3474 = vmatpush.msrb.mxu0 %v5915_v62  ;;  %v5955_v7 = vld [vmem:[%s13510_s17 + $0x640] sm:$0xff]  ;;  %v5957_v62 = vld [vmem:[%s13510_s17 + $0x418] sm:$0xff] }
 0x31d   :  { %3493 = vmatpush.msrb.mxu3 %v5916_v53  ;;  %v2908_v61 = vadd.f32 %v2907_v49, %v2888_v55  ;;  %v2927_v5 = vpop.f32.mrf.mxu3  ;;  %3437 = vmatpush.msra.mxu1 %v5917_v24  ;;  %v5947_v55 = vld [vmem:[%s13510_s17 + $0x660] sm:$0xff]  ;;  %v5956_v49 = vld [vmem:[%s13510_s17 + $0x750] sm:$0xff]  ;;  %v5961_v24 = vld [vmem:[%s13510_s17 + $0x408] sm:$0xff] }
 0x31e   :  { %3459 = vmatpush.msra.mxu2 %v5918_v60  ;;  %3475 = vmatpush.msrb.mxu0 %v5919_v47  ;;  %v5958_v53 = vld [vmem:[%s13510_s17 + $0x4f0] sm:$0xff]  ;;  %v5962_v60 = vld [vmem:[%s13510_s17 + $0x4e0] sm:$0xff] }
 0x31f   :  { %3494 = vmatpush.msrb.mxu3 %v5920_v44  ;;  %v2928_v56 = vadd.f32 %v2927_v5, %v2908_v61  ;;  %3438 = vmatpush.msra.mxu1 %v5921_v18  ;;  %v11019_v61 = vld.sshfl [vmem:[#allocation1 + $0x20] sm:$0xff pattern:$0x73625140]  ;;  %v5964_v44 = vld [vmem:[%s13510_s17 + $0x730] sm:$0xff] }
 0x320   :  { %3460 = vmatpush.msra.mxu2 %v5922_v39  ;;  %v2947_v3 = vpop.f32.mrf.mxu1  ;;  %3476 = vmatpush.msrb.mxu0 %v5923_v27  ;;  %v5960_v5 = vld [vmem:[%s13510_s17 + $0x740] sm:$0xff]  ;;  %3741 = vst [vmem:[#allocation1 + $0x20] ss:$4 sm:$0xff] %v10149_v4  ;;  %v11047_v39 = vld.sshfl [vmem:[#allocation1 + $0x10] sm:$0xff pattern:$0x73625140] }
 0x321   :  { %3495 = vmatpush.msrb.mxu3 %v5924_v22  ;;  %v10911_v63 = vadd.f32 %v2947_v3, %v2928_v56  ;;  %3439 = vmatpush.msra.mxu1 %v5926_v15  ;;  %v5963_v47 = vld [vmem:[%s13510_s17 + $0x620] sm:$0xff]  ;;  %v5965_v56 = vld [vmem:[%s13510_s17 + $0x870] sm:$0xff]  ;;  %v11055_v27 = vld.sshfl [vmem:[#allocation1 + $0x8] sm:$0xff pattern:$0x73625140] }
 0x322   :  { %3539 = vmatpush.msrb.mxu2 %v5925_v42  ;;  %3477 = vmatpush.msrb.mxu0 %v5927_v25  ;;  %v11045_v18 = vld.sshfl [vmem:[#allocation1] sm:$0xff pattern:$0x73625140]  ;;  %v5966_v3 = vld [vmem:[%s13510_s17 + $0x4d0] sm:$0xff] }
 0x323   :  { %13605 = vst [vmem:[#allocation15_spill] sm:$0xff] %v10911_v63  ;;  %3496 = vmatpush.msrb.mxu3 %v5928_v20  ;;  %3440 = vmatpush.msra.mxu1 %v5930_v14  ;;  %v11057_v22 = vld.sshfl [vmem:[#allocation1 + $0x18] sm:$0xff pattern:$0x73625140]  ;;  %v5968_v42 = vld [vmem:[%s13510_s17 + $0x720] sm:$0xff]  ;;  %v5972_v14 = vld [vmem:[%s13510_s17 + $0x710] sm:$0xff] }
 0x324   :  { %3540 = vmatpush.msrb.mxu2 %v5929_v41  ;;  %3478 = vmatpush.msrb.mxu0 %v5931_v51  ;;  %v5969_v15 = vld [vmem:[%s13510_s17 + $0x860] sm:$0xff]  ;;  %3739 = vst [vmem:[#allocation1] ss:$4 sm:$0xff] %v10514_v10  ;;  %v5973_v51 = vld [vmem:[%s13510_s17 + $0x850] sm:$0xff] }
 0x325   :  { %3497 = vmatpush.msrb.mxu3 %v5932_v37  ;;  %3513 = vmatpush.msrb.mxu1 %v5933_v13  ;;  %v5970_v25 = vld [vmem:[%s13510_s17 + $0x4c0] sm:$0xff]  ;;  %v5974_v37 = vld [vmem:[%s13510_s17 + $0x4b0] sm:$0xff] }
 0x326   :  { %3541 = vmatpush.msrb.mxu2 %v5934_v26  ;;  %3479 = vmatpush.msrb.mxu0 %v5935_v52  ;;  %v5971_v20 = vld [vmem:[%s13510_s17 + $0x600] sm:$0xff]  ;;  %v5975_v13 = vld [vmem:[%s13510_s17 + $0x5f0] sm:$0xff] }
 0x327   :  { %3498 = vmatpush.msrb.mxu3 %v5936_v46  ;;  %3514 = vmatpush.msrb.mxu1 %v5937_v40  ;;  %v5976_v26 = vld [vmem:[%s13510_s17 + $0x700] sm:$0xff]  ;;  %v6278_v63 = vld [vmem:[%s13510_s17 + $0x11f0] sm:$0xff] }
 0x328   :  { %3542 = vmatpush.msrb.mxu2 %v5938_v19  ;;  %3480 = vmatpush.msrb.mxu0 %v5939_v50  ;;  %v5977_v52 = vld [vmem:[%s13510_s17 + $0x840] sm:$0xff] }
 0x329   :  { %3461 = vmatmul.f32.vlgmr.msra.gmra.mxu2 %v10619_v30  ;;  %3499 = vmatpush.msrb.mxu3 %v5940_v9  ;;  %v5943_v30 = vld [vmem:[%s13510_s17 + $0x670] sm:$0xff]  ;;  %v5978_v40 = vld [vmem:[%s13510_s17 + $0x4a0] sm:$0xff] }
 0x32a   :  { %3515 = vmatpush.msrb.mxu1 %v5941_v16  ;;  %3543 = vmatpush.msrb.mxu2 %v5942_v1  ;;  %v5979_v19 = vld [vmem:[%s13510_s17 + $0x5e0] sm:$0xff]  ;;  %v5980_v16 = vld [vmem:[%s13510_s17 + $0x6f0] sm:$0xff] }
 0x32b   :  { %3559 = vmatpush.msra.mxu0 %v5943_v30  ;;  %3500 = vmatpush.msrb.mxu3 %v5944_v31  ;;  %v5981_v1 = vld [vmem:[%s13510_s17 + $0x830] sm:$0xff] }
 0x32c   :  { %3516 = vmatpush.msrb.mxu1 %v5945_v35  ;;  %3544 = vmatpush.msrb.mxu2 %v5946_v23  ;;  %v5982_v30 = vld [vmem:[%s13510_s17 + $0x490] sm:$0xff]  ;;  %v5984_v23 = vld [vmem:[%s13510_s17 + $0x6e0] sm:$0xff] }
 0x32d   :  { %3560 = vmatpush.msra.mxu0 %v5947_v55  ;;  %3441 = vmatmul.f32.vlgmr.msra.gmra.mxu1 %v10609_v43  ;;  %v5951_v43 = vld [vmem:[%s13510_s17 + $0x650] sm:$0xff]  ;;  %v5985_v55 = vld [vmem:[%s13510_s17 + $0x820] sm:$0xff] }
 0x32e   :  { %3501 = vmatmul.f32.vlgmr.msrb.gmra.mxu3 %v10621_v29  ;;  %3517 = vmatpush.msrb.mxu1 %v5949_v54  ;;  %v5952_v29 = vld [vmem:[%s13510_s17 + $0x760] sm:$0xff]  ;;  %v5983_v31 = vld [vmem:[%s13510_s17 + $0x5d0] sm:$0xff] }
 0x32f   :  { %3579 = vmatpush.msra.mxu3 %v5948_v11  ;;  %3545 = vmatpush.msrb.mxu2 %v5950_v12  ;;  %v5986_v11 = vld [vmem:[%s13510_s17 + $0x480] sm:$0xff] }
 0x330   :  { %3561 = vmatpush.msra.mxu0 %v5951_v43  ;;  %3518 = vmatpush.msrb.mxu1 %v5953_v36  ;;  %v5987_v54 = vld [vmem:[%s13510_s17 + $0x5c0] sm:$0xff]  ;;  %v5988_v43 = vld [vmem:[%s13510_s17 + $0x6d0] sm:$0xff] }
 0x331   :  { %3580 = vmatpush.msra.mxu3 %v5952_v29  ;;  %3546 = vmatpush.msrb.mxu2 %v5954_v59  ;;  %v5989_v29 = vld [vmem:[%s13510_s17 + $0x810] sm:$0xff] }
 0x332   :  { %3562 = vmatpush.msra.mxu0 %v5955_v7  ;;  %3519 = vmatpush.msrb.mxu1 %v5957_v62  ;;  %v5990_v7 = vld [vmem:[%s13510_s17 + $0x8f0] sm:$0xff]  ;;  %v5992_v62 = vld [vmem:[%s13510_s17 + $0x6c0] sm:$0xff] }
 0x333   :  { %3481 = vmatmul.f32.vlgmr.msrb.gmra.mxu0 %v10611_v32  ;;  %3581 = vmatpush.msra.mxu3 %v5956_v49  ;;  %v5959_v32 = vld [vmem:[%s13510_s17 + $0x630] sm:$0xff] }
 0x334   :  { %3547 = vmatpush.msrb.mxu2 %v5958_v53  ;;  %3563 = vmatpush.msra.mxu0 %v5959_v32  ;;  %v5991_v49 = vld [vmem:[%s13510_s17 + $0x5b0] sm:$0xff]  ;;  %v5993_v53 = vld [vmem:[%s13510_s17 + $0x800] sm:$0xff] }
 0x335   :  { %3582 = vmatpush.msra.mxu3 %v5960_v5  ;;  %3520 = vmatpush.msrb.mxu1 %v5961_v24  ;;  %v5994_v5 = vld [vmem:[%s13510_s17 + $0x8e0] sm:$0xff] }
 0x336   :  { %3548 = vmatpush.msrb.mxu2 %v5962_v60  ;;  %3564 = vmatpush.msra.mxu0 %v5963_v47  ;;  %v5995_v24 = vld [vmem:[%s13510_s17 + $0x5a0] sm:$0xff]  ;;  %v5996_v60 = vld [vmem:[%s13510_s17 + $0x6b0] sm:$0xff] }
 0x337   :  { %5660 = vmatmul.msk.f32.vlgmr.msrb.gmra.mxu1 %vm2029_vm2, %v10589_v8  ;;  %3583 = vmatpush.msra.mxu3 %v5964_v44  ;;  %v5967_v8 = vld [vmem:[%s13510_s17 + $0x610] sm:$0xff] }
 0x338   :  { %3599 = vmatpush.msra.mxu1 %v5965_v56  ;;  %3549 = vmatpush.msrb.mxu2 %v5966_v3  ;;  %v5997_v47 = vld [vmem:[%s13510_s17 + $0x7f0] sm:$0xff]  ;;  %v6000_v3 = vld [vmem:[%s13510_s17 + $0x6a0] sm:$0xff] }
 0x339   :  { %3565 = vmatpush.msra.mxu0 %v5967_v8  ;;  %3584 = vmatpush.msra.mxu3 %v5968_v42  ;;  %v5998_v44 = vld [vmem:[%s13510_s17 + $0x8d0] sm:$0xff]  ;;  %v6001_v8 = vld [vmem:[%s13510_s17 + $0x7e0] sm:$0xff] }
 0x33a   :  { %3600 = vmatpush.msra.mxu1 %v5969_v15  ;;  %3550 = vmatpush.msrb.mxu2 %v5970_v25  ;;  %v3126_v41 = vpop.f32.mrf.mxu2  ;;  %v5999_v56 = vld [vmem:[%s13510_s17 + $0x590] sm:$0xff]  ;;  %v6002_v42 = vld [vmem:[%s13510_s17 + $0x8c0] sm:$0xff] }
 0x33b   :  { %3566 = vmatpush.msra.mxu0 %v5971_v20  ;;  %3585 = vmatpush.msra.mxu3 %v5972_v14  ;;  %v6003_v15 = vld [vmem:[%s13510_s17 + $0x580] sm:$0xff]  ;;  %v6004_v25 = vld [vmem:[%s13510_s17 + $0x690] sm:$0xff]  ;;  %v6007_v14 = vld [vmem:[%s13510_s17 + $0x578] sm:$0xff] }
 0x33c   :  { %3601 = vmatpush.msra.mxu1 %v5973_v51  ;;  %3551 = vmatpush.msrb.mxu2 %v5974_v37  ;;  %v6005_v20 = vld [vmem:[%s13510_s17 + $0x7d0] sm:$0xff]  ;;  %v6008_v51 = vld [vmem:[%s13510_s17 + $0x680] sm:$0xff] }
 0x33d   :  { %3567 = vmatpush.msra.mxu0 %v5975_v13  ;;  %3586 = vmatpush.msra.mxu3 %v5976_v26  ;;  %v6009_v37 = vld [vmem:[%s13510_s17 + $0x7c0] sm:$0xff]  ;;  %v6011_v26 = vld [vmem:[%s13510_s17 + $0x568] sm:$0xff] }
 0x33e   :  { %3602 = vmatpush.msra.mxu1 %v5977_v52  ;;  %v3146_v46 = vpop.f32.mrf.mxu0  ;;  %3552 = vmatpush.msrb.mxu2 %v5978_v40  ;;  %v6010_v13 = vld [vmem:[%s13510_s17 + $0x8a0] sm:$0xff]  ;;  %v6012_v52 = vld [vmem:[%s13510_s17 + $0x678] sm:$0xff]  ;;  %v6014_v40 = vld [vmem:[%s13510_s17 + $0x890] sm:$0xff] }
 0x33f   :  { %3568 = vmatpush.msra.mxu0 %v5979_v19  ;;  %v3147_v50 = vadd.f32 %v3146_v46, %v3126_v41  ;;  %v3166_v9 = vpop.f32.mrf.mxu3  ;;  %3587 = vmatpush.msra.mxu3 %v5980_v16  ;;  %v6006_v41 = vld [vmem:[%s13510_s17 + $0x8b0] sm:$0xff]  ;;  %v6015_v19 = vld [vmem:[%s13510_s17 + $0x558] sm:$0xff]  ;;  %v6018_v16 = vld [vmem:[%s13510_s17 + $0x880] sm:$0xff] }
 0x340   :  { %3603 = vmatpush.msra.mxu1 %v5981_v1  ;;  %3553 = vmatpush.msrb.mxu2 %v5982_v30  ;;  %v6013_v46 = vld [vmem:[%s13510_s17 + $0x7b0] sm:$0xff]  ;;  %v6019_v1 = vld [vmem:[%s13510_s17 + $0x548] sm:$0xff]  ;;  %v6020_v30 = vld [vmem:[%s13510_s17 + $0x658] sm:$0xff] }
 0x341   :  { %3569 = vmatpush.msra.mxu0 %v5983_v31  ;;  %v3167_v35 = vadd.f32 %v3166_v9, %v3147_v50  ;;  %3588 = vmatpush.msra.mxu3 %v5984_v23  ;;  %v6016_v50 = vld [vmem:[%s13510_s17 + $0x668] sm:$0xff]  ;;  %v6017_v9 = vld [vmem:[%s13510_s17 + $0x7a0] sm:$0xff]  ;;  %v6021_v31 = vld [vmem:[%s13510_s17 + $0x878] sm:$0xff] }
 0x342   :  { %3604 = vmatpush.msra.mxu1 %v5985_v55  ;;  %3554 = vmatpush.msrb.mxu2 %v5986_v11  ;;  %v3186_v12 = vpop.f32.mrf.mxu1  ;;  %v6023_v23 = vld [vmem:[%s13510_s17 + $0x538] sm:$0xff]  ;;  %v6024_v55 = vld [vmem:[%s13510_s17 + $0x648] sm:$0xff] }
 0x343   :  { %3570 = vmatpush.msra.mxu0 %v5987_v54  ;;  %3589 = vmatpush.msra.mxu3 %v5988_v43  ;;  %v3187_v36 = vadd.f32 %v3186_v12, %v3167_v35  ;;  %v3206_v59 = vpop.f32.mrf.mxu2  ;;  %v6022_v35 = vld [vmem:[%s13510_s17 + $0x790] sm:$0xff]  ;;  %v6025_v11 = vld [vmem:[%s13510_s17 + $0x868] sm:$0xff]  ;;  %v6026_v54 = vld [vmem:[%s13510_s17 + $0x780] sm:$0xff] }
 0x344   :  { %3605 = vmatpush.msra.mxu1 %v5989_v29  ;;  %3627 = vmatpush.msra.mxu2 %v5990_v7  ;;  %v6027_v12 = vld [vmem:[%s13510_s17 + $0x528] sm:$0xff]  ;;  %v6028_v43 = vld [vmem:[%s13510_s17 + $0x638] sm:$0xff] }
 0x345   :  { %3571 = vmatpush.msra.mxu0 %v5991_v49  ;;  %3590 = vmatpush.msra.mxu3 %v5992_v62  ;;  %v11138_v32 = vadd.f32 %v3206_v59, %v3187_v36  ;;  %v6029_v29 = vld [vmem:[%s13510_s17 + $0x778] sm:$0xff]  ;;  %v6032_v7 = vld [vmem:[%s13510_s17 + $0x628] sm:$0xff] }
 0x346   :  { %3606 = vmatpush.msra.mxu1 %v5993_v53  ;;  %3628 = vmatpush.msra.mxu2 %v5994_v5  ;;  %v6030_v36 = vld [vmem:[%s13510_s17 + $0x858] sm:$0xff]  ;;  %v6033_v49 = vld [vmem:[%s13510_s17 + $0x768] sm:$0xff] }
 0x347   :  { %13606 = vst [vmem:[#allocation16_spill] sm:$0xff] %v11138_v32  ;;  %3572 = vmatpush.msra.mxu0 %v5995_v24  ;;  %3591 = vmatpush.msra.mxu3 %v5996_v60  ;;  %v6031_v59 = vld [vmem:[%s13510_s17 + $0x518] sm:$0xff]  ;;  %v6034_v62 = vld [vmem:[%s13510_s17 + $0x848] sm:$0xff] }
 0x348   :  { %3607 = vmatpush.msra.mxu1 %v5997_v47  ;;  %3629 = vmatpush.msra.mxu2 %v5998_v44  ;;  %v6035_v53 = vld [vmem:[%s13510_s17 + $0x508] sm:$0xff]  ;;  %v6036_v5 = vld [vmem:[%s13510_s17 + $0x618] sm:$0xff] }
 0x349   :  { %3573 = vmatpush.msra.mxu0 %v5999_v56  ;;  %3592 = vmatpush.msra.mxu3 %v6000_v3  ;;  %v6037_v24 = vld [vmem:[%s13510_s17 + $0x758] sm:$0xff]  ;;  %v6040_v44 = vld [vmem:[%s13510_s17 + $0x608] sm:$0xff] }
 0x34a   :  { %3608 = vmatpush.msra.mxu1 %v6001_v8  ;;  %3630 = vmatpush.msra.mxu2 %v6002_v42  ;;  %v6038_v60 = vld [vmem:[%s13510_s17 + $0x838] sm:$0xff]  ;;  %v6041_v3 = vld [vmem:[%s13510_s17 + $0x748] sm:$0xff] }
 0x34b   :  { %3574 = vmatpush.msra.mxu0 %v6003_v15  ;;  %3555 = vmatmul.f32.vlgmr.msrb.gmra.mxu2 %v11045_v18  ;;  %v6039_v47 = vld [vmem:[%s13510_s17 + $0x4f8] sm:$0xff]  ;;  %v6042_v8 = vld [vmem:[%s13510_s17 + $0x828] sm:$0xff] }
 0x34c   :  { %3593 = vmatpush.msra.mxu3 %v6004_v25  ;;  %3609 = vmatpush.msra.mxu1 %v6005_v20  ;;  %v6043_v15 = vld [vmem:[%s13510_s17 + $0x4e8] sm:$0xff]  ;;  %v6044_v25 = vld [vmem:[%s13510_s17 + $0x5f8] sm:$0xff] }
 0x34d   :  { %3631 = vmatpush.msra.mxu2 %v6006_v41  ;;  %3639 = vmatpush.msrb.mxu0 %v6007_v14  ;;  %v6045_v41 = vld [vmem:[%s13510_s17 + $0x738] sm:$0xff] }
 0x34e   :  { %3594 = vmatpush.msra.mxu3 %v6008_v51  ;;  %3610 = vmatpush.msra.mxu1 %v6009_v37  ;;  %v6046_v14 = vld [vmem:[%s13510_s17 + $0x818] sm:$0xff]  ;;  %v6048_v37 = vld [vmem:[%s13510_s17 + $0x5e8] sm:$0xff] }
 0x34f   :  { %3632 = vmatpush.msra.mxu2 %v6010_v13  ;;  %3640 = vmatpush.msrb.mxu0 %v6011_v26  ;;  %v6047_v51 = vld [vmem:[%s13510_s17 + $0x4d8] sm:$0xff]  ;;  %v6049_v13 = vld [vmem:[%s13510_s17 + $0x728] sm:$0xff] }
 0x350   :  { %3595 = vmatmul.f32.vlgmr.msra.gmra.mxu3 %v11047_v39  ;;  %3611 = vmatpush.msra.mxu1 %v6013_v46  ;;  %v6050_v26 = vld [vmem:[%s13510_s17 + $0x808] sm:$0xff] }
 0x351   :  { %3659 = vmatpush.msrb.mxu3 %v6012_v52  ;;  %3633 = vmatpush.msra.mxu2 %v6014_v40  ;;  %v6051_v46 = vld [vmem:[%s13510_s17 + $0x4c8] sm:$0xff]  ;;  %v6052_v40 = vld [vmem:[%s13510_s17 + $0x5d8] sm:$0xff] }
 0x352   :  { %3641 = vmatpush.msrb.mxu0 %v6015_v19  ;;  %3612 = vmatpush.msra.mxu1 %v6017_v9  ;;  %v6053_v9 = vld [vmem:[%s13510_s17 + $0x718] sm:$0xff] }
 0x353   :  { %3660 = vmatpush.msrb.mxu3 %v6016_v50  ;;  %3634 = vmatpush.msra.mxu2 %v6018_v16  ;;  %v6054_v16 = vld [vmem:[%s13510_s17 + $0x7f8] sm:$0xff] }
 0x354   :  { %3642 = vmatpush.msrb.mxu0 %v6019_v1  ;;  %5661 = vmatmul.msk.f32.vlgmr.msra.gmra.mxu2 %vm2029_vm2, %v11019_v61  ;;  %v6055_v1 = vld [vmem:[%s13510_s17 + $0x4b8] sm:$0xff] }
 0x355   :  { %3575 = vmatmul.f32.vlgmr.msra.gmra.mxu0 %v11055_v27  ;;  %3661 = vmatpush.msrb.mxu3 %v6020_v30  ;;  %v6056_v30 = vld [vmem:[%s13510_s17 + $0x5c8] sm:$0xff] }
 0x356   :  { %3699 = vmatpush.msrb.mxu2 %v6021_v31  ;;  %3613 = vmatpush.msra.mxu1 %v6022_v35  ;;  %v6057_v35 = vld [vmem:[%s13510_s17 + $0x708] sm:$0xff] }
 0x357   :  { %3643 = vmatpush.msrb.mxu0 %v6023_v23  ;;  %3662 = vmatpush.msrb.mxu3 %v6024_v55  ;;  %v6058_v23 = vld [vmem:[%s13510_s17 + $0x7e8] sm:$0xff] }
 0x358   :  { %3700 = vmatpush.msrb.mxu2 %v6025_v11  ;;  %3614 = vmatpush.msra.mxu1 %v6026_v54  ;;  %v6059_v55 = vld [vmem:[%s13510_s17 + $0x4a8] sm:$0xff]  ;;  %v6060_v11 = vld [vmem:[%s13510_s17 + $0x5b8] sm:$0xff] }
 0x359   :  { %3644 = vmatpush.msrb.mxu0 %v6027_v12  ;;  %3615 = vmatmul.f32.vlgmr.msra.gmra.mxu1 %v11057_v22  ;;  %v6061_v12 = vld [vmem:[%s13510_s17 + $0x6f8] sm:$0xff] }
 0x35a   :  { %3663 = vmatpush.msrb.mxu3 %v6028_v43  ;;  %3679 = vmatpush.msrb.mxu1 %v6029_v29  ;;  %v6062_v43 = vld [vmem:[%s13510_s17 + $0x7d8] sm:$0xff] }
 0x35b   :  { %3701 = vmatpush.msrb.mxu2 %v6030_v36  ;;  %3645 = vmatpush.msrb.mxu0 %v6031_v59  ;;  %v6063_v36 = vld [vmem:[%s13510_s17 + $0x498] sm:$0xff]  ;;  %v6064_v59 = vld [vmem:[%s13510_s17 + $0x5a8] sm:$0xff] }
 0x35c   :  { %3664 = vmatpush.msrb.mxu3 %v6032_v7  ;;  %3680 = vmatpush.msrb.mxu1 %v6033_v49  ;;  %v6065_v7 = vld [vmem:[%s13510_s17 + $0x6e8] sm:$0xff] }
 0x35d   :  { %3702 = vmatpush.msrb.mxu2 %v6034_v62  ;;  %3646 = vmatpush.msrb.mxu0 %v6035_v53  ;;  %v6066_v49 = vld [vmem:[%s13510_s17 + $0x7c8] sm:$0xff]  ;;  %v6068_v53 = vld [vmem:[%s13510_s17 + $0x598] sm:$0xff] }
 0x35e   :  { %3665 = vmatpush.msrb.mxu3 %v6036_v5  ;;  %3681 = vmatpush.msrb.mxu1 %v6037_v24  ;;  %v6067_v62 = vld [vmem:[%s13510_s17 + $0x488] sm:$0xff]  ;;  %v6069_v5 = vld [vmem:[%s13510_s17 + $0x6d8] sm:$0xff] }
 0x35f   :  { %3703 = vmatpush.msrb.mxu2 %v6038_v60  ;;  %3647 = vmatpush.msrb.mxu0 %v6039_v47  ;;  %v6070_v24 = vld [vmem:[%s13510_s17 + $0x7b8] sm:$0xff]  ;;  %v6072_v47 = vld [vmem:[%s13510_s17 + $0x588] sm:$0xff] }
 0x360   :  { %3666 = vmatpush.msrb.mxu3 %v6040_v44  ;;  %v3226_v56 = vpop.f32.mrf.mxu0  ;;  %3682 = vmatpush.msrb.mxu1 %v6041_v3  ;;  %v6071_v60 = vld [vmem:[%s13510_s17 + $0x8f8] sm:$0xff]  ;;  %v6073_v44 = vld [vmem:[%s13510_s17 + $0x6c8] sm:$0xff] }
 0x361   :  { %3704 = vmatpush.msrb.mxu2 %v6042_v8  ;;  %v3246_v42 = vpop.f32.mrf.mxu3  ;;  %3648 = vmatpush.msrb.mxu0 %v6043_v15  ;;  %v6075_v3 = vld [vmem:[%s13510_s17 + $0x8e8] sm:$0xff]  ;;  %v6076_v8 = vld [vmem:[%s13510_s17 + $0x9f0] sm:$0xff]  ;;  %v6078_v15 = vld [vmem:[%s13510_s17 + $0x798] sm:$0xff] }
 0x362   :  { %3667 = vmatpush.msrb.mxu3 %v6044_v25  ;;  %v3247_v20 = vadd.f32 %v3246_v42, %v3226_v56  ;;  %3683 = vmatpush.msrb.mxu1 %v6045_v41  ;;  %v6074_v56 = vld [vmem:[%s13510_s17 + $0x7a8] sm:$0xff]  ;;  %v6077_v42 = vld [vmem:[%s13510_s17 + $0x6b8] sm:$0xff] }
 0x363   :  { %3705 = vmatpush.msrb.mxu2 %v6046_v14  ;;  %3649 = vmatpush.msrb.mxu0 %v6047_v51  ;;  %v6079_v25 = vld [vmem:[%s13510_s17 + $0x8d8] sm:$0xff]  ;;  %v6082_v41 = vld [vmem:[%s13510_s17 + $0x788] sm:$0xff]  ;;  %v6084_v51 = vld [vmem:[%s13510_s17 + $0x9d0] sm:$0xff] }
 0x364   :  { %3668 = vmatpush.msrb.mxu3 %v6048_v37  ;;  %3684 = vmatpush.msrb.mxu1 %v6049_v13  ;;  %v3266_v52 = vpop.f32.mrf.mxu1  ;;  %v6083_v14 = vld [vmem:[%s13510_s17 + $0x8c8] sm:$0xff]  ;;  %v6085_v37 = vld [vmem:[%s13510_s17 + $0xbf0] sm:$0xff]  ;;  %v6086_v13 = vld [vmem:[%s13510_s17 + $0x698] sm:$0xff] }
 0x365   :  { %3706 = vmatpush.msrb.mxu2 %v6050_v26  ;;  %3650 = vmatpush.msrb.mxu0 %v6051_v46  ;;  %v3267_v19 = vadd.f32 %v3266_v52, %v3247_v20  ;;  %v3286_v50 = vpop.f32.mrf.mxu2  ;;  %v6081_v20 = vld [vmem:[%s13510_s17 + $0x6a8] sm:$0xff]  ;;  %v6089_v26 = vld [vmem:[%s13510_s17 + $0xbe0] sm:$0xff] }
 0x366   :  { %3669 = vmatpush.msrb.mxu3 %v6052_v40  ;;  %3685 = vmatpush.msrb.mxu1 %v6053_v9  ;;  %v6090_v52 = vld [vmem:[%s13510_s17 + $0x688] sm:$0xff]  ;;  %v6092_v40 = vld [vmem:[%s13510_s17 + $0x9b0] sm:$0xff]  ;;  %v6095_v9 = vld [vmem:[%s13510_s17 + $0x898] sm:$0xff] }
 0x367   :  { %3707 = vmatpush.msrb.mxu2 %v6054_v16  ;;  %3651 = vmatpush.msrb.mxu0 %v6055_v1  ;;  %v3287_v31 = vadd.f32 %v3286_v50, %v3267_v19  ;;  %v6091_v46 = vld [vmem:[%s13510_s17 + $0x8a8] sm:$0xff]  ;;  %v6093_v19 = vld [vmem:[%s13510_s17 + $0xaf0] sm:$0xff]  ;;  %v6097_v16 = vld [vmem:[%s13510_s17 + $0xae0] sm:$0xff] }
 0x368   :  { %3670 = vmatpush.msrb.mxu3 %v6056_v30  ;;  %3686 = vmatpush.msrb.mxu1 %v6057_v35  ;;  %v6094_v50 = vld [vmem:[%s13510_s17 + $0xbd0] sm:$0xff]  ;;  %v6098_v1 = vld [vmem:[%s13510_s17 + $0xbc0] sm:$0xff]  ;;  %v6099_v30 = vld [vmem:[%s13510_s17 + $0x888] sm:$0xff] }
 0x369   :  { %3708 = vmatpush.msrb.mxu2 %v6058_v23  ;;  %3652 = vmatpush.msrb.mxu0 %v6059_v55  ;;  %v3306_v54 = vpop.f32.mrf.mxu0  ;;  %v6101_v35 = vld [vmem:[%s13510_s17 + $0xad0] sm:$0xff] }
 0x36a   :  { %3671 = vmatpush.msrb.mxu3 %v6060_v11  ;;  %3687 = vmatpush.msrb.mxu1 %v6061_v12  ;;  %v11353_v29 = vadd.f32 %v3306_v54, %v3287_v31  ;;  %v6100_v31 = vld [vmem:[%s13510_s17 + $0x990] sm:$0xff]  ;;  %v6104_v11 = vld [vmem:[%s13510_s17 + $0x980] sm:$0xff] }
 0x36b   :  { %3709 = vmatpush.msrb.mxu2 %v6062_v43  ;;  %3653 = vmatpush.msrb.mxu0 %v6063_v36  ;;  %v6102_v23 = vld [vmem:[%s13510_s17 + $0xbb0] sm:$0xff]  ;;  %v6106_v54 = vld [vmem:[%s13510_s17 + $0xba0] sm:$0xff] }
 0x36c   :  { %13607 = vst [vmem:[#allocation17_spill] sm:$0xff] %v11353_v29  ;;  %3672 = vmatpush.msrb.mxu3 %v6064_v59  ;;  %3688 = vmatpush.msrb.mxu1 %v6065_v7  ;;  %v6103_v55 = vld [vmem:[%s13510_s17 + $0xcf0] sm:$0xff]  ;;  %v6107_v12 = vld [vmem:[%s13510_s17 + $0xce0] sm:$0xff] }
 0x36d   :  { %3710 = vmatpush.msrb.mxu2 %v6066_v49  ;;  %3654 = vmatpush.msrb.mxu0 %v6067_v62  ;;  %v6108_v43 = vld [vmem:[%s13510_s17 + $0x970] sm:$0xff]  ;;  %v11502_v7 = vld.sshfl [vmem:[#allocation1 + $0x20] sm:$0xff pattern:$0x73625140] }
 0x36e   :  { %3673 = vmatpush.msrb.mxu3 %v6068_v53  ;;  %3689 = vmatpush.msrb.mxu1 %v6069_v5  ;;  %v6109_v36 = vld [vmem:[%s13510_s17 + $0xab0] sm:$0xff]  ;;  %3955 = vst [vmem:[#allocation1 + $0x20] ss:$4 sm:$0xff] %v10149_v4  ;;  %v6112_v53 = vld [vmem:[%s13510_s17 + $0x960] sm:$0xff] }
 0x36f   :  { %3711 = vmatpush.msrb.mxu2 %v6070_v24  ;;  %3727 = vmatpush.msra.mxu0 %v6071_v60  ;;  %v6110_v49 = vld [vmem:[%s13510_s17 + $0xb90] sm:$0xff]  ;;  %v6113_v5 = vld [vmem:[%s13510_s17 + $0xaa0] sm:$0xff] }
 0x370   :  { %3674 = vmatpush.msrb.mxu3 %v6072_v47  ;;  %3690 = vmatpush.msrb.mxu1 %v6073_v44  ;;  %v6111_v62 = vld [vmem:[%s13510_s17 + $0xcd0] sm:$0xff]  ;;  %v6114_v24 = vld [vmem:[%s13510_s17 + $0xb80] sm:$0xff] }
 0x371   :  { %3712 = vmatpush.msrb.mxu2 %v6074_v56  ;;  %3728 = vmatpush.msra.mxu0 %v6075_v3  ;;  %v6115_v4 = vld [vmem:[%s13510_s17 + $0xcc0] sm:$0xff]  ;;  %v6116_v60 = vld [vmem:[%s13510_s17 + $0x950] sm:$0xff] }
 0x372   :  { %3675 = vmatmul.f32.vlgmr.msrb.gmra.mxu3 %v11055_v27  ;;  %3691 = vmatpush.msrb.mxu1 %v6077_v42  ;;  %v6080_v27 = vld [vmem:[%s13510_s17 + $0x9e0] sm:$0xff]  ;;  %v6117_v47 = vld [vmem:[%s13510_s17 + $0xa90] sm:$0xff] }
 0x373   :  { %3753 = vmatpush.msra.mxu3 %v6076_v8  ;;  %3713 = vmatpush.msrb.mxu2 %v6078_v15  ;;  %v11537_v56 = vld.sshfl [vmem:[#allocation1] sm:$0xff pattern:$0x73625140]  ;;  %v11539_v3 = vld.sshfl [vmem:[#allocation1 + $0x10] sm:$0xff pattern:$0x73625140] }
 0x374   :  { %3729 = vmatpush.msra.mxu0 %v6079_v25  ;;  %3692 = vmatpush.msrb.mxu1 %v6081_v20  ;;  %v6118_v8 = vld [vmem:[%s13510_s17 + $0xb70] sm:$0xff]  ;;  %v11549_v20 = vld.sshfl [vmem:[#allocation1 + $0x18] sm:$0xff pattern:$0x73625140] }
 0x375   :  { %3754 = vmatpush.msra.mxu3 %v6080_v27  ;;  %3714 = vmatpush.msrb.mxu2 %v6082_v41  ;;  %v6119_v42 = vld [vmem:[%s13510_s17 + $0xcb0] sm:$0xff]  ;;  %v11547_v27 = vld.sshfl [vmem:[#allocation1 + $0x8] sm:$0xff pattern:$0x73625140]  ;;  %v6120_v41 = vld [vmem:[%s13510_s17 + $0x940] sm:$0xff] }
 0x376   :  { %3730 = vmatpush.msra.mxu0 %v6083_v14  ;;  %3715 = vmatmul.f32.vlgmr.msrb.gmra.mxu2 %v11057_v22  ;;  %v6088_v22 = vld [vmem:[%s13510_s17 + $0x9c0] sm:$0xff]  ;;  %3953 = vst [vmem:[#allocation1] ss:$4 sm:$0xff] %v10514_v10  ;;  %v6125_v10 = vld [vmem:[%s13510_s17 + $0xa70] sm:$0xff] }
 0x377   :  { %3655 = vmatmul.f32.vlgmr.msrb.gmra.mxu0 %v11045_v18  ;;  %3755 = vmatpush.msra.mxu3 %v6084_v51  ;;  %v6087_v18 = vld [vmem:[%s13510_s17 + $0x8b8] sm:$0xff]  ;;  %v6121_v14 = vld [vmem:[%s13510_s17 + $0xa80] sm:$0xff] }
 0x378   :  { %3793 = vmatpush.msra.mxu2 %v6085_v37  ;;  %3693 = vmatpush.msrb.mxu1 %v6086_v13  ;;  %v6122_v51 = vld [vmem:[%s13510_s17 + $0xb60] sm:$0xff] }
 0x379   :  { %3731 = vmatpush.msra.mxu0 %v6087_v18  ;;  %3756 = vmatpush.msra.mxu3 %v6088_v22  ;;  %v6123_v37 = vld [vmem:[%s13510_s17 + $0xca0] sm:$0xff]  ;;  %v6124_v18 = vld [vmem:[%s13510_s17 + $0x930] sm:$0xff] }
 0x37a   :  { %3794 = vmatpush.msra.mxu2 %v6089_v26  ;;  %3694 = vmatpush.msrb.mxu1 %v6090_v52  ;;  %v6126_v22 = vld [vmem:[%s13510_s17 + $0xb50] sm:$0xff] }
 0x37b   :  { %3732 = vmatpush.msra.mxu0 %v6091_v46  ;;  %3695 = vmatmul.f32.vlgmr.msrb.gmra.mxu1 %v11047_v39  ;;  %v6096_v39 = vld [vmem:[%s13510_s17 + $0x9a0] sm:$0xff]  ;;  %v6127_v26 = vld [vmem:[%s13510_s17 + $0xc90] sm:$0xff]  ;;  %v11584_v46 = vadd.f32 %v9915_v45, %v9806_v57 }
 0x37c   :  { %3757 = vmatpush.msra.mxu3 %v6092_v40  ;;  %3773 = vmatpush.msra.mxu1 %v6093_v19  ;;  %v6128_v40 = vld [vmem:[%s13510_s17 + $0x920] sm:$0xff] }
 0x37d   :  { %3795 = vmatpush.msra.mxu2 %v6094_v50  ;;  %3733 = vmatpush.msra.mxu0 %v6095_v9  ;;  %v6129_v19 = vld [vmem:[%s13510_s17 + $0xa60] sm:$0xff] }
 0x37e   :  { %3758 = vmatpush.msra.mxu3 %v6096_v39  ;;  %3774 = vmatpush.msra.mxu1 %v6097_v16  ;;  %v6130_v57 = vld [vmem:[%s13510_s17 + $0xb40] sm:$0xff]  ;;  %v11601_v39 = vstv %s11504_s6  ;;  %v6132_v16 = vld [vmem:[%s13510_s17 + $0x910] sm:$0xff]  ;;  %s12111_s6 = sld [smem:[#allocation2 + $0x16]] }
 0x37f   :  { %3796 = vmatpush.msra.mxu2 %v6098_v1  ;;  %3734 = vmatpush.msra.mxu0 %v6099_v30  ;;  %v6131_v45 = vld [vmem:[%s13510_s17 + $0xc80] sm:$0xff]  ;;  %v6133_v1 = vld [vmem:[%s13510_s17 + $0xa50] sm:$0xff] }
 0x380   :  { %3759 = vmatpush.msra.mxu3 %v6100_v31  ;;  %5662 = vmatmul.msk.f32.vlgmr.msra.gmra.mxu0 %vm2029_vm2, %v11019_v61  ;;  %v6105_v61 = vld [vmem:[%s13510_s17 + $0xac0] sm:$0xff]  ;;  %v11612_v31 = vstv %s11521_s13 }
 0x381   :  { %3775 = vmatpush.msra.mxu1 %v6101_v35  ;;  %3797 = vmatpush.msra.mxu2 %v6102_v23  ;;  %v11615_v35 = vstv %s11513_s16  ;;  %v11618_v23 = vstv %s11529_s25  ;;  %s11817_s25 = sld [smem:[#allocation2 + $0x1]] }
 0x382   :  { %3813 = vmatpush.msrb.mxu0 %v6103_v55  ;;  %3760 = vmatpush.msra.mxu3 %v6104_v11  ;;  %v6134_v55 = vld [vmem:[%s13510_s17 + $0xb30] sm:$0xff]  ;;  %s12085_s16 = sld [smem:[#allocation2 + $0x13]] }
 0x383   :  { %3776 = vmatpush.msra.mxu1 %v6105_v61  ;;  %3798 = vmatpush.msra.mxu2 %v6106_v54  ;;  %v6135_v11 = vld [vmem:[%s13510_s17 + $0xc70] sm:$0xff]  ;;  %v6136_v61 = vld [vmem:[%s13510_s17 + $0x900] sm:$0xff] }
 0x384   :  { %3814 = vmatpush.msrb.mxu0 %v6107_v12  ;;  %3761 = vmatpush.msra.mxu3 %v6108_v43  ;;  %v3342_v59 = vpop.f32.mrf.mxu3  ;;  %v6137_v54 = vld [vmem:[%s13510_s17 + $0xa40] sm:$0xff]  ;;  %v4513_v12 = vmul.f32 %v11601_v39, %v11584_v46  ;;  %v12222_v17 = vstv %s12111_s6 }
 0x385   :  { %3777 = vmatpush.msra.mxu1 %v6109_v36  ;;  %3799 = vmatpush.msra.mxu2 %v6110_v49  ;;  %v6138_v43 = vld [vmem:[%s13510_s17 + $0xb20] sm:$0xff]  ;;  %v4741_v49 = vmul.f32 %v11615_v35, %v11584_v46 }
 0x386   :  { %3815 = vmatpush.msrb.mxu0 %v6111_v62  ;;  %3762 = vmatpush.msra.mxu3 %v6112_v53  ;;  %v6139_v36 = vld [vmem:[%s13510_s17 + $0xc60] sm:$0xff]  ;;  %v6140_v53 = vld [vmem:[%s13510_s17 + $0xd70] sm:$0xff] }
 0x387   :  { %3778 = vmatpush.msra.mxu1 %v6113_v5  ;;  %3800 = vmatpush.msra.mxu2 %v6114_v24  ;;  %v6141_v5 = vld [vmem:[%s13510_s17 + $0xa30] sm:$0xff] }
 0x388   :  { %3816 = vmatpush.msrb.mxu0 %v6115_v4  ;;  %3763 = vmatpush.msra.mxu3 %v6116_v60  ;;  %v3362_v44 = vpop.f32.mrf.mxu1  ;;  %v6142_v24 = vld [vmem:[%s13510_s17 + $0xb10] sm:$0xff] }
 0x389   :  { %3779 = vmatpush.msra.mxu1 %v6117_v47  ;;  %3801 = vmatpush.msra.mxu2 %v6118_v8  ;;  %v3363_v15 = vadd.f32 %v3362_v44, %v3342_v59  ;;  %v3382_v25 = vpop.f32.mrf.mxu2  ;;  %v6143_v4 = vld [vmem:[%s13510_s17 + $0xc50] sm:$0xff]  ;;  %v11663_v44 = vstv %s11572_s28  ;;  %v11666_v8 = vstv %s11580_s7  ;;  %s12079_s28 = sld [smem:[#allocation2 + $0x14]] }
 0x38a   :  { %3817 = vmatpush.msrb.mxu0 %v6119_v42  ;;  %3764 = vmatpush.msra.mxu3 %v6120_v41  ;;  %v6144_v42 = vld [vmem:[%s13510_s17 + $0xd60] sm:$0xff]  ;;  %v11678_v41 = vstv %s11592_s18 }
 0x38b   :  { %3780 = vmatpush.msra.mxu1 %v6121_v14  ;;  %3802 = vmatpush.msra.mxu2 %v6122_v51  ;;  %v3383_v13 = vadd.f32 %v3382_v25, %v3363_v15  ;;  %v6145_v15 = vld [vmem:[%s13510_s17 + $0xa20] sm:$0xff]  ;;  %v11675_v25 = vstv %s11564_s26 }
 0x38c   :  { %3818 = vmatpush.msrb.mxu0 %v6123_v37  ;;  %3765 = vmatpush.msra.mxu3 %v6124_v18  ;;  %v6146_v14 = vld [vmem:[%s13510_s17 + $0xb00] sm:$0xff]  ;;  %v6148_v37 = vld [vmem:[%s13510_s17 + $0xd50] sm:$0xff]  ;;  %v4855_v18 = vmul.f32 %v11663_v44, %v11584_v46 }
 0x38d   :  { %3781 = vmatpush.msra.mxu1 %v6125_v10  ;;  %3803 = vmatpush.msra.mxu2 %v6126_v22  ;;  %v6147_v51 = vld [vmem:[%s13510_s17 + $0xc40] sm:$0xff]  ;;  %v6150_v22 = vld [vmem:[%s13510_s17 + $0xa10] sm:$0xff] }
 0x38e   :  { %3819 = vmatpush.msrb.mxu0 %v6127_v26  ;;  %v3402_v52 = vpop.f32.mrf.mxu0  ;;  %3766 = vmatpush.msra.mxu3 %v6128_v40  ;;  %v6151_v26 = vld [vmem:[%s13510_s17 + $0xc30] sm:$0xff] }
 0x38f   :  { %3782 = vmatpush.msra.mxu1 %v6129_v19  ;;  %v3403_v50 = vadd.f32 %v3402_v52, %v3383_v13  ;;  %v3422_v9 = vpop.f32.mrf.mxu3  ;;  %3804 = vmatpush.msra.mxu2 %v6130_v57  ;;  %v6149_v13 = vld [vmem:[%s13510_s17 + $0xaf8] sm:$0xff]  ;;  %v4969_v52 = vmul.f32 %v11675_v25, %v11584_v46  ;;  %v6152_v19 = vld [vmem:[%s13510_s17 + $0xd40] sm:$0xff] }
 0x390   :  { %3820 = vmatpush.msrb.mxu0 %v6131_v45  ;;  %3767 = vmatpush.msra.mxu3 %v6132_v16  ;;  %v6154_v57 = vld [vmem:[%s13510_s17 + $0xa00] sm:$0xff] }
 0x391   :  { %3783 = vmatpush.msra.mxu1 %v6133_v1  ;;  %v11609_v30 = vadd.f32 %v3422_v9, %v3403_v50  ;;  %3805 = vmatpush.msra.mxu2 %v6134_v55  ;;  %v6153_v50 = vld [vmem:[%s13510_s17 + $0xae8] sm:$0xff]  ;;  %v6155_v16 = vld [vmem:[%s13510_s17 + $0xc20] sm:$0xff]  ;;  %v6156_v1 = vld [vmem:[%s13510_s17 + $0xd30] sm:$0xff] }
 0x392   :  { %3821 = vmatpush.msrb.mxu0 %v6135_v11  ;;  %3768 = vmatpush.msra.mxu3 %v6136_v61  ;;  %v6157_v55 = vld [vmem:[%s13510_s17 + $0x9f8] sm:$0xff]  ;;  %v6159_v61 = vld [vmem:[%s13510_s17 + $0xc10] sm:$0xff] }
 0x393   :  { %3784 = vmatpush.msra.mxu1 %v6137_v54  ;;  %3806 = vmatpush.msra.mxu2 %v6138_v43  ;;  %v4516_v59 = vmul.f32 %v11612_v31, %v11609_v30  ;;  %v4744_v62 = vmul.f32 %v11618_v23, %v11609_v30  ;;  %v4858_v10 = vmul.f32 %v11666_v8, %v11609_v30  ;;  %v6158_v11 = vld [vmem:[%s13510_s17 + $0xad8] sm:$0xff]  ;;  %v6160_v54 = vld [vmem:[%s13510_s17 + $0xd20] sm:$0xff]  ;;  %v6162_v43 = vld [vmem:[%s13510_s17 + $0xac8] sm:$0xff] }
 0x394   :  { %3822 = vmatpush.msrb.mxu0 %v6139_v36  ;;  %3841 = vmatpush.msrb.mxu3 %v6140_v53  ;;  %v4972_v40 = vmul.f32 %v11678_v41, %v11609_v30  ;;  %v6163_v36 = vld [vmem:[%s13510_s17 + $0xc00] sm:$0xff]  ;;  %v6167_v53 = vld [vmem:[%s13510_s17 + $0xbf8] sm:$0xff] }
 0x395   :  { %3785 = vmatpush.msra.mxu1 %v6141_v5  ;;  %3807 = vmatpush.msra.mxu2 %v6142_v24  ;;  %v11658_v60 = vadd.f32 %v4516_v59, %v4513_v12  ;;  %v11660_v47 = vadd.f32 %v4744_v62, %v4741_v49  ;;  %v11712_v9 = vadd.f32 %v4858_v10, %v4855_v18  ;;  %v6161_v12 = vld [vmem:[%s13510_s17 + $0x9e8] sm:$0xff]  ;;  %v6164_v59 = vld [vmem:[%s13510_s17 + $0xd10] sm:$0xff]  ;;  %v6165_v49 = vld [vmem:[%s13510_s17 + $0x9d8] sm:$0xff] }
 0x396   :  { %3823 = vmatpush.msrb.mxu0 %v6143_v4  ;;  %3842 = vmatpush.msrb.mxu3 %v6144_v42  ;;  %v11718_v45 = vadd.f32 %v4972_v40, %v4969_v52  ;;  %v6166_v62 = vld [vmem:[%s13510_s17 + $0xab8] sm:$0xff]  ;;  %v6168_v5 = vld [vmem:[%s13510_s17 + $0xd00] sm:$0xff]  ;;  %v6169_v24 = vld [vmem:[%s13510_s17 + $0x9c8] sm:$0xff] }
 0x397   :  { %3786 = vmatpush.msra.mxu1 %v6145_v15  ;;  %3808 = vmatpush.msra.mxu2 %v6146_v14  ;;  %v6170_v4 = vld [vmem:[%s13510_s17 + $0xaa8] sm:$0xff]  ;;  %v6172_v15 = vld [vmem:[%s13510_s17 + $0xcf8] sm:$0xff] }
 0x398   :  { %3824 = vmatpush.msrb.mxu0 %v6147_v51  ;;  %3843 = vmatpush.msrb.mxu3 %v6148_v37  ;;  %v6171_v42 = vld [vmem:[%s13510_s17 + $0xbe8] sm:$0xff]  ;;  %v6173_v14 = vld [vmem:[%s13510_s17 + $0x9b8] sm:$0xff] }
 0x399   :  { %3873 = vmatpush.msrb.mxu2 %v6149_v13  ;;  %3787 = vmatpush.msra.mxu1 %v6150_v22  ;;  %v6174_v51 = vld [vmem:[%s13510_s17 + $0xa98] sm:$0xff]  ;;  %v6176_v13 = vld [vmem:[%s13510_s17 + $0xce8] sm:$0xff] }
 0x39a   :  { %3825 = vmatpush.msrb.mxu0 %v6151_v26  ;;  %3844 = vmatpush.msrb.mxu3 %v6152_v19  ;;  %v6175_v37 = vld [vmem:[%s13510_s17 + $0xbd8] sm:$0xff]  ;;  %v6177_v18 = vld [vmem:[%s13510_s17 + $0x9a8] sm:$0xff] }
 0x39b   :  { %3874 = vmatpush.msrb.mxu2 %v6153_v50  ;;  %3769 = vmatmul.f32.vlgmr.msra.gmra.mxu3 %v11537_v56  ;;  %v6178_v10 = vld [vmem:[%s13510_s17 + $0xa88] sm:$0xff]  ;;  %v6180_v26 = vld [vmem:[%s13510_s17 + $0xcd8] sm:$0xff] }
 0x39c   :  { %3788 = vmatpush.msra.mxu1 %v6154_v57  ;;  %3826 = vmatpush.msrb.mxu0 %v6155_v16  ;;  %v6179_v22 = vld [vmem:[%s13510_s17 + $0xbc8] sm:$0xff]  ;;  %v6181_v40 = vld [vmem:[%s13510_s17 + $0x998] sm:$0xff] }
 0x39d   :  { %3845 = vmatpush.msrb.mxu3 %v6156_v1  ;;  %3875 = vmatpush.msrb.mxu2 %v6158_v11  ;;  %v6182_v19 = vld [vmem:[%s13510_s17 + $0xa78] sm:$0xff]  ;;  %v6184_v16 = vld [vmem:[%s13510_s17 + $0xcc8] sm:$0xff] }
 0x39e   :  { %3853 = vmatpush.msrb.mxu1 %v6157_v55  ;;  %3827 = vmatpush.msrb.mxu0 %v6159_v61  ;;  %v6183_v57 = vld [vmem:[%s13510_s17 + $0xbb8] sm:$0xff]  ;;  %v6185_v55 = vld [vmem:[%s13510_s17 + $0x988] sm:$0xff] }
 0x39f   :  { %3846 = vmatpush.msrb.mxu3 %v6160_v54  ;;  %3876 = vmatpush.msrb.mxu2 %v6162_v43  ;;  %v6186_v11 = vld [vmem:[%s13510_s17 + $0xa68] sm:$0xff]  ;;  %v6188_v54 = vld [vmem:[%s13510_s17 + $0xcb8] sm:$0xff] }
 0x3a0   :  { %3854 = vmatpush.msrb.mxu1 %v6161_v12  ;;  %3809 = vmatmul.f32.vlgmr.msra.gmra.mxu2 %v11539_v3  ;;  %v6187_v61 = vld [vmem:[%s13510_s17 + $0xba8] sm:$0xff]  ;;  %v6189_v12 = vld [vmem:[%s13510_s17 + $0x978] sm:$0xff] }
 0x3a1   :  { %3828 = vmatpush.msrb.mxu0 %v6163_v36  ;;  %3847 = vmatpush.msrb.mxu3 %v6164_v59  ;;  %v6190_v43 = vld [vmem:[%s13510_s17 + $0xa58] sm:$0xff] }
 0x3a2   :  { %3855 = vmatpush.msrb.mxu1 %v6165_v49  ;;  %3877 = vmatpush.msrb.mxu2 %v6166_v62  ;;  %v6191_v59 = vld [vmem:[%s13510_s17 + $0xb98] sm:$0xff]  ;;  %v6192_v49 = vld [vmem:[%s13510_s17 + $0xca8] sm:$0xff] }
 0x3a3   :  { %3893 = vmatpush.msra.mxu0 %v6167_v53  ;;  %3848 = vmatpush.msrb.mxu3 %v6168_v5  ;;  %v6193_v5 = vld [vmem:[%s13510_s17 + $0x968] sm:$0xff] }
 0x3a4   :  { %3856 = vmatpush.msrb.mxu1 %v6169_v24  ;;  %3878 = vmatpush.msrb.mxu2 %v6170_v4  ;;  %v6194_v24 = vld [vmem:[%s13510_s17 + $0xa48] sm:$0xff] }
 0x3a5   :  { %3894 = vmatpush.msra.mxu0 %v6171_v42  ;;  %3789 = vmatmul.f32.vlgmr.msra.gmra.mxu1 %v11547_v27  ;;  %v6195_v4 = vld [vmem:[%s13510_s17 + $0xb88] sm:$0xff]  ;;  %v6196_v42 = vld [vmem:[%s13510_s17 + $0xc98] sm:$0xff] }
 0x3a6   :  { %5663 = vmatmul.msk.f32.vlgmr.msrb.gmra.mxu3 %vm2029_vm2, %v11502_v7  ;;  %3857 = vmatpush.msrb.mxu1 %v6173_v14  ;;  %v11868_v14 = vstv %s11787_s29 }
 0x3a7   :  { %3913 = vmatpush.msra.mxu3 %v6172_v15  ;;  %3879 = vmatpush.msrb.mxu2 %v6174_v51  ;;  %v11871_v51 = vstv %s11795_s11 }
 0x3a8   :  { %3895 = vmatpush.msra.mxu0 %v6175_v37  ;;  %3858 = vmatpush.msrb.mxu1 %v6177_v18  ;;  %v6197_v37 = vld [vmem:[%s13510_s17 + $0x958] sm:$0xff] }
 0x3a9   :  { %3914 = vmatpush.msra.mxu3 %v6176_v13  ;;  %3880 = vmatpush.msrb.mxu2 %v6178_v10  ;;  %v6198_v13 = vld [vmem:[%s13510_s17 + $0xa38] sm:$0xff]  ;;  %v4172_v10 = vmul.f32 %v11868_v14, %v9999_v58 }
 0x3aa   :  { %3896 = vmatpush.msra.mxu0 %v6179_v22  ;;  %v3442_v52 = vpop.f32.mrf.mxu1  ;;  %3859 = vmatpush.msrb.mxu1 %v6181_v40  ;;  %v4286_v22 = vmul.f32 %v11871_v51, %v9999_v58  ;;  %v6199_v40 = vld [vmem:[%s13510_s17 + $0xb78] sm:$0xff] }
 0x3ab   :  { %3829 = vmatmul.f32.vlgmr.msrb.gmra.mxu0 %v11549_v20  ;;  %3915 = vmatpush.msra.mxu3 %v6180_v26  ;;  %v4514_v26 = vmul.f32 %v11601_v39, %v9999_v58 }
 0x3ac   :  { %3881 = vmatpush.msrb.mxu2 %v6182_v19  ;;  %v3462_v50 = vpop.f32.mrf.mxu2  ;;  %3897 = vmatpush.msra.mxu0 %v6183_v57  ;;  %v6200_v19 = vld [vmem:[%s13510_s17 + $0xc88] sm:$0xff]  ;;  %v11895_v57 = vstv %s11803_s2 }
 0x3ad   :  { %3916 = vmatpush.msra.mxu3 %v6184_v16  ;;  %v3463_v1 = vadd.f32 %v3462_v50, %v3442_v52  ;;  %3860 = vmatpush.msrb.mxu1 %v6185_v55  ;;  %v11886_v52 = vstv %s11809_s12  ;;  %v4970_v16 = vmul.f32 %v11675_v25, %v9999_v58  ;;  %v6201_v55 = vld [vmem:[%s13510_s17 + $0x948] sm:$0xff]  ;;  %s12093_s12 = sld [smem:[#allocation2 + $0x12]] }
 0x3ae   :  { %3882 = vmatpush.msrb.mxu2 %v6186_v11  ;;  %3898 = vmatpush.msra.mxu0 %v6187_v61  ;;  %v6202_v11 = vld [vmem:[%s13510_s17 + $0xa28] sm:$0xff]  ;;  %v11908_v61 = vstv %s11817_s25  ;;  %s5189_s25 = sshll.u32 %s13517_s24, 4  ;;  %s5190_s25 = int_to_ptr.hbm [resolvable:$true] %s5189_s25 }
 0x3af   :  { %3917 = vmatpush.msra.mxu3 %v6188_v54  ;;  %3861 = vmatpush.msrb.mxu1 %v6189_v12  ;;  %v11911_v54 = vstv %s11825_s3  ;;  %v11914_v12 = vstv %s11833_s9 }
 0x3b0   :  { %3883 = vmatpush.msrb.mxu2 %v6190_v43  ;;  %v3482_v36 = vpop.f32.mrf.mxu0  ;;  %3899 = vmatpush.msra.mxu0 %v6191_v59  ;;  %v4628_v43 = vmul.f32 %v11895_v57, %v9999_v58  ;;  %v6204_v59 = vld [vmem:[%s13510_s17 + $0xc78] sm:$0xff] }
 0x3b1   :  { %3918 = vmatpush.msra.mxu3 %v6192_v49  ;;  %v3483_v62 = vadd.f32 %v3482_v36, %v3463_v1  ;;  %v3502_v53 = vpop.f32.mrf.mxu3  ;;  %3862 = vmatpush.msrb.mxu1 %v6193_v5  ;;  %v4400_v1 = vmul.f32 %v11886_v52, %v9999_v58  ;;  %v6203_v36 = vld [vmem:[%s13510_s17 + $0xb68] sm:$0xff]  ;;  %v11928_v5 = vstv %s11841_s0 }
 0x3b2   :  { %3884 = vmatpush.msrb.mxu2 %v6194_v24  ;;  %3900 = vmatpush.msra.mxu0 %v6195_v4  ;;  %v6205_v24 = vld [vmem:[%s13510_s17 + $0x938] sm:$0xff] }
 0x3b3   :  { %3919 = vmatpush.msra.mxu3 %v6196_v42  ;;  %v3503_v15 = vadd.f32 %v3502_v53, %v3483_v62  ;;  %3863 = vmatpush.msrb.mxu1 %v6197_v37  ;;  %v6206_v4 = vld [vmem:[%s13510_s17 + $0xa18] sm:$0xff] }
 0x3b4   :  { %3885 = vmatpush.msrb.mxu2 %v6198_v13  ;;  %v3522_v18 = vpop.f32.mrf.mxu1  ;;  %3901 = vmatpush.msra.mxu0 %v6199_v40  ;;  %v6207_v13 = vld [vmem:[%s13510_s17 + $0xb58] sm:$0xff] }
 0x3b5   :  { %3920 = vmatpush.msra.mxu3 %v6200_v19  ;;  %v3523_v50 = vadd.f32 %v3522_v18, %v3503_v15  ;;  %3864 = vmatpush.msrb.mxu1 %v6201_v55  ;;  %v6208_v18 = vld [vmem:[%s13510_s17 + $0xc68] sm:$0xff] }
 0x3b6   :  { %3886 = vmatpush.msrb.mxu2 %v6202_v11  ;;  %3902 = vmatpush.msra.mxu0 %v6203_v36  ;;  %v6209_v11 = vld [vmem:[%s13510_s17 + $0x928] sm:$0xff] }
 0x3b7   :  { %3921 = vmatpush.msra.mxu3 %v6204_v59  ;;  %v4175_v49 = vmul.f32 %v11908_v61, %v3523_v50  ;;  %v4289_v62 = vmul.f32 %v11911_v54, %v3523_v50  ;;  %v4517_v53 = vmul.f32 %v11612_v31, %v3523_v50  ;;  %3865 = vmatpush.msrb.mxu1 %v6205_v24  ;;  %v6210_v36 = vld [vmem:[%s13510_s17 + $0xa08] sm:$0xff] }
 0x3b8   :  { %3887 = vmatpush.msrb.mxu2 %v6206_v4  ;;  %v4973_v42 = vmul.f32 %v11678_v41, %v3523_v50  ;;  %v4403_v15 = vmul.f32 %v11928_v5, %v3523_v50  ;;  %v4631_v37 = vmul.f32 %v11914_v12, %v3523_v50  ;;  %3903 = vmatpush.msra.mxu0 %v6207_v13  ;;  %v6217_v4 = vld [vmem:[%s13510_s17 + $0xe60] sm:$0xff]  ;;  %v6219_v13 = vld [vmem:[%s13510_s17 + $0xb28] sm:$0xff] }
 0x3b9   :  { %3922 = vmatpush.msra.mxu3 %v6208_v18  ;;  %v11945_v40 = vadd.f32 %v4175_v49, %v4172_v10  ;;  %v11947_v19 = vadd.f32 %v4289_v62, %v4286_v22  ;;  %v11949_v55 = vadd.f32 %v4517_v53, %v4514_v26  ;;  %3866 = vmatpush.msrb.mxu1 %v6209_v11  ;;  %v6211_v22 = vld [vmem:[%s13510_s17 + $0xb48] sm:$0xff]  ;;  %v6212_v26 = vld [vmem:[%s13510_s17 + $0xc58] sm:$0xff]  ;;  %v6213_v49 = vld [vmem:[%s13510_s17 + $0xe70] sm:$0xff] }
 0x3ba   :  { %3888 = vmatpush.msrb.mxu2 %v6210_v36  ;;  %v11957_v59 = vadd.f32 %v4973_v42, %v4970_v16  ;;  %v11959_v24 = vadd.f32 %v4403_v15, %v4400_v1  ;;  %v11961_v10 = vadd.f32 %v4631_v37, %v4628_v43  ;;  %3904 = vmatpush.msra.mxu0 %v6211_v22  ;;  %v6214_v16 = vld [vmem:[%s13510_s17 + $0x918] sm:$0xff]  ;;  %v6216_v43 = vld [vmem:[%s13510_s17 + $0xc48] sm:$0xff] }
 0x3bb   :  { %3923 = vmatpush.msra.mxu3 %v6212_v26  ;;  %3867 = vmatpush.msrb.mxu1 %v6214_v16  ;;  %v6215_v1 = vld [vmem:[%s13510_s17 + $0xb38] sm:$0xff]  ;;  %v4742_v62 = vmul.f32 %v11615_v35, %v9999_v58  ;;  %v4745_v53 = vmul.f32 %v11618_v23, %v3523_v50  ;;  %v6218_v42 = vld [vmem:[%s13510_s17 + $0x908] sm:$0xff]  ;;  %v4856_v15 = vmul.f32 %v11663_v44, %v9999_v58  ;;  %v6222_v58 = vld [vmem:[%s13510_s17 + $0xe50] sm:$0xff] }
 0x3bc   :  { %3967 = vmatpush.msra.mxu2 %v6213_v49  ;;  %3905 = vmatpush.msra.mxu0 %v6215_v1  ;;  %v4859_v37 = vmul.f32 %v11666_v8, %v3523_v50  ;;  %v6220_v18 = vld [vmem:[%s13510_s17 + $0xc38] sm:$0xff]  ;;  %v6224_v26 = vld [vmem:[%s13510_s17 + $0xc28] sm:$0xff]  ;;  %v6226_v16 = vld [vmem:[%s13510_s17 + $0xe40] sm:$0xff] }
 0x3bd   :  { %3924 = vmatpush.msra.mxu3 %v6216_v43  ;;  %3868 = vmatpush.msrb.mxu1 %v6218_v42  ;;  %v11999_v11 = vadd.f32 %v4745_v53, %v4742_v62  ;;  %v6221_v36 = vld [vmem:[%s13510_s17 + $0xd78] sm:$0xff]  ;;  %v6225_v49 = vld [vmem:[%s13510_s17 + $0xd68] sm:$0xff]  ;;  %v6230_v53 = vld [vmem:[%s13510_s17 + $0xe30] sm:$0xff] }
 0x3be   :  { %3968 = vmatpush.msra.mxu2 %v6217_v4  ;;  %3906 = vmatpush.msra.mxu0 %v6219_v13  ;;  %v12007_v50 = vadd.f32 %v4859_v37, %v4856_v15  ;;  %v6223_v22 = vld [vmem:[%s13510_s17 + $0xb18] sm:$0xff]  ;;  %v6227_v1 = vld [vmem:[%s13510_s17 + $0xb08] sm:$0xff]  ;;  %v6234_v15 = vld [vmem:[%s13510_s17 + $0xe20] sm:$0xff] }
 0x3bf   :  { %3925 = vmatpush.msra.mxu3 %v6220_v18  ;;  %3941 = vmatpush.msra.mxu1 %v6221_v36  ;;  %v6228_v43 = vld [vmem:[%s13510_s17 + $0xc18] sm:$0xff]  ;;  %v6232_v4 = vld [vmem:[%s13510_s17 + $0xc08] sm:$0xff]  ;;  %v6235_v37 = vld [vmem:[%s13510_s17 + $0xf60] sm:$0xff] }
 0x3c0   :  { %3969 = vmatpush.msra.mxu2 %v6222_v58  ;;  %3907 = vmatpush.msra.mxu0 %v6223_v22  ;;  %v6229_v62 = vld [vmem:[%s13510_s17 + $0xd58] sm:$0xff]  ;;  %v6233_v42 = vld [vmem:[%s13510_s17 + $0xd48] sm:$0xff]  ;;  %v6236_v13 = vld [vmem:[%s13510_s17 + $0x1070] sm:$0xff] }
 0x3c1   :  { %3926 = vmatpush.msra.mxu3 %v6224_v26  ;;  %3942 = vmatpush.msra.mxu1 %v6225_v49  ;;  %v6237_v18 = vld [vmem:[%s13510_s17 + $0xd38] sm:$0xff]  ;;  %v6238_v36 = vld [vmem:[%s13510_s17 + $0xe10] sm:$0xff]  ;;  %v6241_v58 = vld [vmem:[%s13510_s17 + $0xd28] sm:$0xff] }
 0x3c2   :  { %3970 = vmatpush.msra.mxu2 %v6226_v16  ;;  %3908 = vmatpush.msra.mxu0 %v6227_v1  ;;  %v6242_v22 = vld [vmem:[%s13510_s17 + $0xe00] sm:$0xff]  ;;  %v6244_v49 = vld [vmem:[%s13510_s17 + $0x1050] sm:$0xff]  ;;  %v6245_v16 = vld [vmem:[%s13510_s17 + $0xd18] sm:$0xff] }
 0x3c3   :  { %3889 = vmatmul.f32.vlgmr.msrb.gmra.mxu2 %v11547_v27  ;;  %3927 = vmatpush.msra.mxu3 %v6228_v43  ;;  %v6231_v27 = vld [vmem:[%s13510_s17 + $0xf70] sm:$0xff]  ;;  %v6243_v26 = vld [vmem:[%s13510_s17 + $0xf40] sm:$0xff] }
 0x3c4   :  { %3943 = vmatpush.msra.mxu1 %v6229_v62  ;;  %3971 = vmatpush.msra.mxu2 %v6230_v53  ;;  %v6246_v1 = vld [vmem:[%s13510_s17 + $0xdf0] sm:$0xff]  ;;  %v6248_v43 = vld [vmem:[%s13510_s17 + $0x1040] sm:$0xff]  ;;  %v6249_v53 = vld [vmem:[%s13510_s17 + $0xd08] sm:$0xff] }
 0x3c5   :  { %3987 = vmatpush.msrb.mxu0 %v6231_v27  ;;  %3928 = vmatpush.msra.mxu3 %v6232_v4  ;;  %v6250_v27 = vld [vmem:[%s13510_s17 + $0xde0] sm:$0xff]  ;;  %v4174_v4 = vmul.f32 %v11908_v61, %v11609_v30 }
 0x3c6   :  { %3944 = vmatpush.msra.mxu1 %v6233_v42  ;;  %3972 = vmatpush.msra.mxu2 %v6234_v15  ;;  %v6251_v42 = vld [vmem:[%s13510_s17 + $0xf20] sm:$0xff]  ;;  %v4171_v15 = vmul.f32 %v11868_v14, %v11584_v46 }
 0x3c7   :  { %3988 = vmatpush.msrb.mxu0 %v6235_v37  ;;  %3869 = vmatmul.f32.vlgmr.msrb.gmra.mxu1 %v11537_v56  ;;  %v6239_v56 = vld [vmem:[%s13510_s17 + $0xf50] sm:$0xff]  ;;  %v4285_v37 = vmul.f32 %v11871_v51, %v11584_v46 }
 0x3c8   :  { %3929 = vmatmul.f32.vlgmr.msra.gmra.mxu3 %v11549_v20  ;;  %3945 = vmatpush.msra.mxu1 %v6237_v18  ;;  %v6240_v20 = vld [vmem:[%s13510_s17 + $0x1060] sm:$0xff]  ;;  %v6252_v18 = vld [vmem:[%s13510_s17 + $0x1030] sm:$0xff] }
 0x3c9   :  { %4007 = vmatpush.msrb.mxu3 %v6236_v13  ;;  %3973 = vmatpush.msra.mxu2 %v6238_v36  ;;  %v4288_v13 = vmul.f32 %v11911_v54, %v11609_v30  ;;  %v6253_v36 = vld [vmem:[%s13510_s17 + $0x1170] sm:$0xff] }
 0x3ca   :  { %3989 = vmatpush.msrb.mxu0 %v6239_v56  ;;  %3946 = vmatpush.msra.mxu1 %v6241_v58  ;;  %v4627_v56 = vmul.f32 %v11895_v57, %v11584_v46  ;;  %v4402_v58 = vmul.f32 %v11928_v5, %v11609_v30 }
 0x3cb   :  { %4008 = vmatpush.msrb.mxu3 %v6240_v20  ;;  %3974 = vmatpush.msra.mxu2 %v6242_v22  ;;  %v4630_v20 = vmul.f32 %v11914_v12, %v11609_v30  ;;  %v6254_v22 = vld [vmem:[%s13510_s17 + $0xdd0] sm:$0xff]  ;;  %v4399_v30 = vmul.f32 %v11886_v52, %v11584_v46  ;;  %v6258_v46 = vld [vmem:[%s13510_s17 + $0xdc0] sm:$0xff] }
 0x3cc   :  { %3990 = vmatpush.msrb.mxu0 %v6243_v26  ;;  %3947 = vmatpush.msra.mxu1 %v6245_v16  ;;  %v6255_v26 = vld [vmem:[%s13510_s17 + $0xf10] sm:$0xff] }
 0x3cd   :  { %3909 = vmatmul.f32.vlgmr.msra.gmra.mxu0 %v11539_v3  ;;  %4009 = vmatpush.msrb.mxu3 %v6244_v49  ;;  %v6247_v3 = vld [vmem:[%s13510_s17 + $0xf30] sm:$0xff] }
 0x3ce   :  { %3975 = vmatpush.msra.mxu2 %v6246_v1  ;;  %3991 = vmatpush.msrb.mxu0 %v6247_v3  ;;  %v3556_v62 = vpop.f32.mrf.mxu2  ;;  %v12144_v1 = vmul.f32 %v11868_v14, %v10222_v21  ;;  %v6256_v3 = vld [vmem:[%s13510_s17 + $0x1020] sm:$0xff] }
 0x3cf   :  { %4010 = vmatpush.msrb.mxu3 %v6248_v43  ;;  %3948 = vmatpush.msra.mxu1 %v6249_v53  ;;  %v6257_v43 = vld [vmem:[%s13510_s17 + $0x1160] sm:$0xff]  ;;  %v12158_v53 = vmul.f32 %v11871_v51, %v10222_v21 }
 0x3d0   :  { %3976 = vmatpush.msra.mxu2 %v6250_v27  ;;  %3992 = vmatpush.msrb.mxu0 %v6251_v42  ;;  %v12162_v27 = vmul.f32 %v11895_v57, %v10222_v21  ;;  %v6259_v42 = vld [vmem:[%s13510_s17 + $0xf00] sm:$0xff] }
 0x3d1   :  { %5664 = vmatmul.msk.f32.vlgmr.msra.gmra.mxu1 %vm2029_vm2, %v11502_v7  ;;  %4011 = vmatpush.msrb.mxu3 %v6252_v18 }
 0x3d2   :  { %4027 = vmatpush.msrb.mxu1 %v6253_v36  ;;  %v3576_v7 = vpop.f32.mrf.mxu0  ;;  %3977 = vmatpush.msra.mxu2 %v6254_v22  ;;  %v12175_v36 = vmul.f32 %v11886_v52, %v10222_v21  ;;  %v6261_v22 = vld [vmem:[%s13510_s17 + $0x1150] sm:$0xff] }
 0x3d3   :  { %3993 = vmatpush.msrb.mxu0 %v6255_v26  ;;  %v3577_v49 = vadd.f32 %v3576_v7, %v3556_v62  ;;  %v3596_v16 = vpop.f32.mrf.mxu3  ;;  %4012 = vmatpush.msrb.mxu3 %v6256_v3  ;;  %v4176_v62 = vadd.f32 %v4174_v4, %v4171_v15  ;;  %v12171_v4 = vstv %s12063_s5  ;;  %v4290_v15 = vadd.f32 %v4288_v13, %v4285_v37  ;;  %v6260_v7 = vld [vmem:[%s13510_s17 + $0x1010] sm:$0xff] }
 0x3d4   :  { %4028 = vmatpush.msrb.mxu1 %v6257_v43  ;;  %3978 = vmatpush.msra.mxu2 %v6258_v46  ;;  %v12184_v26 = vstv %s12071_s27  ;;  %v4404_v37 = vadd.f32 %v4402_v58, %v4399_v30  ;;  %v12188_v13 = vmul.f32 %v11601_v39, %v10222_v21  ;;  %v6263_v3 = vld [vmem:[%s13510_s17 + $0xef0] sm:$0xff]  ;;  %v12197_v46 = vstv %s12079_s28  ;;  %v6264_v30 = vld [vmem:[%s13510_s17 + $0x1000] sm:$0xff] }
 0x3d5   :  { %3994 = vmatpush.msrb.mxu0 %v6259_v42  ;;  %v3597_v18 = vadd.f32 %v3596_v16, %v3577_v49  ;;  %4013 = vmatpush.msrb.mxu3 %v6260_v7  ;;  %v4632_v49 = vadd.f32 %v4630_v20, %v4627_v56  ;;  %v6262_v16 = vld [vmem:[%s13510_s17 + $0xdb0] sm:$0xff]  ;;  %v12200_v56 = vstv %s12085_s16  ;;  %v12203_v20 = vstv %s12093_s12  ;;  %v6265_v42 = vld [vmem:[%s13510_s17 + $0x1140] sm:$0xff] }
 0x3d6   :  { %4029 = vmatpush.msrb.mxu1 %v6261_v22  ;;  %3979 = vmatpush.msra.mxu2 %v6262_v16  ;;  %v3616_v43 = vpop.f32.mrf.mxu1  ;;  %v12207_v58 = vmul.f32 %v11615_v35, %v10222_v21  ;;  %v12216_v16 = vadd.f32 %v12171_v4, %v4176_v62  ;;  %v12235_v62 = vmul.f32 %v11663_v44, %v10222_v21 }
 0x3d7   :  { %3995 = vmatpush.msrb.mxu0 %v6263_v3  ;;  %4014 = vmatpush.msrb.mxu3 %v6264_v30  ;;  %v3617_v7 = vadd.f32 %v3616_v43, %v3597_v18  ;;  %v3636_v22 = vpop.f32.mrf.mxu2  ;;  %v12219_v3 = vstv %s12101_s1  ;;  %v6267_v30 = vld [vmem:[%s13510_s17 + $0xee0] sm:$0xff]  ;;  %v12231_v18 = vadd.f32 %v12184_v26, %v4290_v15  ;;  %v12239_v43 = vmul.f32 %v11675_v25, %v10222_v21  ;;  %v6270_v21 = vld [vmem:[%s13510_s17 + $0xd90] sm:$0xff] }
 0x3d8   :  { %4030 = vmatpush.msrb.mxu1 %v6265_v42  ;;  %3980 = vmatpush.msra.mxu2 %v6266_v2  ;;  %v6268_v2 = vld [vmem:[%s13510_s17 + $0xff0] sm:$0xff]  ;;  %v12253_v48 = vadd.f32 %v12203_v20, %v4404_v37  ;;  %v12274_v37 = vadd.f32 %v12222_v17, %v11712_v9 }
 0x3d9   :  { %3996 = vmatpush.msrb.mxu0 %v6267_v30  ;;  %4015 = vmatpush.msrb.mxu3 %v6268_v2  ;;  %v6269_v42 = vld [vmem:[%s13510_s17 + $0x1130] sm:$0xff]  ;;  %v12247_v15 = vadd.f32 %v3636_v22, %v3617_v7  ;;  %v12250_v30 = vadd.f32 %v12197_v46, %v4632_v49  ;;  %v12266_v7 = vadd.f32 %v12200_v56, %v11658_v60  ;;  %v6272_v22 = vld [vmem:[%s13510_s17 + $0xfe0] sm:$0xff] }
 0x3da   :  { %4031 = vmatpush.msrb.mxu1 %v6269_v42  ;;  %3981 = vmatpush.msra.mxu2 %v6270_v21  ;;  %v6271_v2 = vld [vmem:[%s13510_s17 + $0xed0] sm:$0xff]  ;;  %v12270_v49 = vadd.f32 %v12219_v3, %v11660_v47  ;;  %v6273_v42 = vld [vmem:[%s13510_s17 + $0x1120] sm:$0xff] }
 0x3db   :  { %3997 = vmatpush.msrb.mxu0 %v6271_v2  ;;  %4016 = vmatpush.msrb.mxu3 %v6272_v22  ;;  %v4185_v47 = vmul.f32 %v11908_v61, %v12247_v15  ;;  %v4299_v21 = vmul.f32 %v11911_v54, %v12247_v15  ;;  %v4641_v9 = vmul.f32 %v11914_v12, %v12247_v15  ;;  %v6274_v2 = vld [vmem:[%s13510_s17 + $0xd80] sm:$0xff]  ;;  %v4637_v29 = vmax.f32 %v12250_v30, 0.0 }
 0x3dc   :  { %4032 = vmatpush.msrb.mxu1 %v6273_v42  ;;  %3982 = vmatpush.msra.mxu2 %v6274_v2  ;;  %v6275_v22 = vld [vmem:[%s13510_s17 + $0xec0] sm:$0xff]  ;;  %v4295_v42 = vmax.f32 %v12231_v18, 0.0  ;;  %v4413_v60 = vmul.f32 %v11928_v5, %v12247_v15  ;;  %v4527_v34 = vmul.f32 %v11612_v31, %v12247_v15  ;;  %v4755_v33 = vmul.f32 %v11618_v23, %v12247_v15  ;;  %v6276_v2 = vld [vmem:[%s13510_s17 + $0xfd0] sm:$0xff] }
 0x3dd   :  { %3998 = vmatpush.msrb.mxu0 %v6275_v22  ;;  %4017 = vmatpush.msrb.mxu3 %v6276_v2  ;;  %v6277_v22 = vld [vmem:[%s13510_s17 + $0x1110] sm:$0xff]  ;;  %v4187_v18 = vadd.f32 %v4185_v47, %v12144_v1  ;;  %v4301_v6 = vadd.f32 %v4299_v21, %v12158_v53  ;;  %v4643_v32 = vadd.f32 %v4641_v9, %v12162_v27  ;;  %v6280_v27 = vld [vmem:[%s13510_s17 + $0xfc0] sm:$0xff] }
 0x3de   :  { %4033 = vmatpush.msrb.mxu1 %v6277_v22  ;;  %4055 = vmatpush.msrb.mxu2 %v6278_v63  ;;  %v6279_v2 = vld [vmem:[%s13510_s17 + $0xeb0] sm:$0xff]  ;;  %v4409_v22 = vmax.f32 %v12253_v48, 0.0  ;;  %v4415_v1 = vadd.f32 %v4413_v60, %v12175_v36  ;;  %v4529_v53 = vadd.f32 %v4527_v34, %v12188_v13  ;;  %v4757_v30 = vadd.f32 %v4755_v33, %v12207_v58  ;;  %v6281_v63 = vld [vmem:[%s13510_s17 + $0x1100] sm:$0xff] }
 0x3df   :  { %3999 = vmatpush.msrb.mxu0 %v6279_v2  ;;  %4018 = vmatpush.msrb.mxu3 %v6280_v27  ;;  %v4189_v47 = vadd.f32 %v4187_v18, %v12171_v4  ;;  %v4303_v48 = vadd.f32 %v4301_v6, %v12184_v26  ;;  %v4645_v36 = vadd.f32 %v4643_v32, %v12197_v46  ;;  %v4523_v34 = vmax.f32 %v12266_v7, 0.0  ;;  %v6282_v33 = vld [vmem:[%s13510_s17 + $0x11e0] sm:$0xff]  ;;  %v6284_v7 = vld [vmem:[%s13510_s17 + $0xfb0] sm:$0xff] }
 0x3e0   :  { %4034 = vmatpush.msrb.mxu1 %v6281_v63  ;;  %4056 = vmatpush.msrb.mxu2 %v6282_v33  ;;  %v6283_v13 = vld [vmem:[%s13510_s17 + $0xea0] sm:$0xff]  ;;  %v4417_v58 = vadd.f32 %v4415_v1, %v12203_v20  ;;  %v4531_v60 = vadd.f32 %v4529_v53, %v12200_v56  ;;  %v4751_v6 = vmax.f32 %v12270_v49, 0.0  ;;  %v4759_v32 = vadd.f32 %v4757_v30, %v12219_v3  ;;  %v6285_v21 = vld [vmem:[%s13510_s17 + $0x10f0] sm:$0xff] }
 0x3e1   :  { %4000 = vmatpush.msrb.mxu0 %v6283_v13  ;;  %4019 = vmatpush.msrb.mxu3 %v6284_v7  ;;  %v4191_v9 = vmax.f32 %v4189_v47, 0.0  ;;  %v4305_v18 = vmax.f32 %v4303_v48, 0.0  ;;  %v4647_v2 = vmax.f32 %v4645_v36, 0.0  ;;  %v4869_v1 = vmul.f32 %v11666_v8, %v12247_v15  ;;  %v6286_v49 = vld [vmem:[%s13510_s17 + $0x11d0] sm:$0xff]  ;;  %v6288_v36 = vld [vmem:[%s13510_s17 + $0xfa0] sm:$0xff] }
 0x3e2   :  { %4035 = vmatpush.msrb.mxu1 %v6285_v21  ;;  %4057 = vmatpush.msrb.mxu2 %v6286_v49  ;;  %v6287_v53 = vld [vmem:[%s13510_s17 + $0xe90] sm:$0xff]  ;;  %v12356_v30 = vld.sshfl [vmem:[#allocation1] sm:$0xff pattern:$0x73625140]  ;;  %v4419_v27 = vmax.f32 %v4417_v58, 0.0  ;;  %v4533_v63 = vmax.f32 %v4531_v60, 0.0  ;;  %v4983_v48 = vmul.f32 %v11678_v41, %v12247_v15 }
 0x3e3   :  { %4001 = vmatpush.msrb.mxu0 %v6287_v53  ;;  %v4761_v47 = vmax.f32 %v4759_v32, 0.0  ;;  %4020 = vmatpush.msrb.mxu3 %v6288_v36  ;;  %v6289_v33 = vld [vmem:[%s13510_s17 + $0x10e0] sm:$0xff]  ;;  %v13608_v13 = vmax.f32 %v12216_v16, 0.0  ;;  %v12370_v58 = vmax.f32 %v4295_v42, %v4305_v18  ;;  %v12372_v60 = vmax.f32 %v4637_v29, %v4647_v2  ;;  %v6292_v29 = vld [vmem:[%s13510_s17 + $0xf90] sm:$0xff] }
 0x3e4   :  { %4036 = vmatpush.msrb.mxu1 %v6289_v33  ;;  %v6290_v15 = vld [vmem:[%s13510_s17 + $0x11c0] sm:$0xff]  ;;  %v12380_v21 = vmax.f32 %v4409_v22, %v4419_v27  ;;  %v12382_v49 = vmax.f32 %v4523_v34, %v4533_v63  ;;  %3983 = vmatmul.f32.vlgmr.msra.gmra.mxu2 %v12356_v30  ;;  %v4871_v42 = vadd.f32 %v4869_v1, %v12235_v62  ;;  %v6293_v22 = vld [vmem:[%s13510_s17 + $0x10d0] sm:$0xff]  ;;  %v6295_v62 = vld [vmem:[%s13510_s17 + $0xe78] sm:$0xff]  ;;  %v4865_v63 = vmax.f32 %v12274_v37, 0.0 }
 0x3e5   :  { %v12368_v7 = vmax.f32 %v13608_v13, %v4191_v9  ;;  %13609 = vst [vmem:[#allocation18_spill] sm:$0xff] %v12370_v58  ;;  %4058 = vmatpush.msrb.mxu2 %v6290_v15  ;;  %v6291_v32 = vld [vmem:[%s13510_s17 + $0xe80] sm:$0xff]  ;;  %v12384_v16 = vmax.f32 %v4751_v6, %v4761_v47  ;;  %4021 = vmatpush.msrb.mxu3 %v6292_v29  ;;  %v6294_v34 = vld [vmem:[%s13510_s17 + $0x11b0] sm:$0xff]  ;;  %v6299_v27 = vld [vmem:[%s13510_s17 + $0xe68] sm:$0xff] }
 0x3e6   :  { %13610 = vst [vmem:[#allocation19_spill] sm:$0xff] %v12372_v60  ;;  %4002 = vmatpush.msrb.mxu0 %v6291_v32  ;;  %v4977_v9 = vadd.f32 %v12262_v38, %v11718_v45  ;;  %v4985_v18 = vadd.f32 %v4983_v48, %v12239_v43  ;;  %4037 = vmatpush.msrb.mxu1 %v6293_v22  ;;  %v12400_v6 = vld.sshfl [vmem:[#allocation1 + $0x10] sm:$0xff pattern:$0x73625140]  ;;  %v6296_v45 = vld [vmem:[%s13510_s17 + $0xf80] sm:$0xff]  ;;  %v6300_v33 = vld [vmem:[%s13510_s17 + $0xf78] sm:$0xff] }
 0x3e7   :  { %13611 = vst [vmem:[#allocation20_spill] sm:$0xff] %v12380_v21  ;;  %4059 = vmatpush.msrb.mxu2 %v6294_v34  ;;  %4022 = vmatpush.msrb.mxu3 %v6296_v45  ;;  %v4873_v43 = vadd.f32 %v4871_v42, %v12222_v17  ;;  %v6297_v1 = vld [vmem:[%s13510_s17 + $0x10c0] sm:$0xff]  ;;  %v6301_v13 = vld [vmem:[%s13510_s17 + $0x10b0] sm:$0xff]  ;;  %v6303_v37 = vld [vmem:[%s13510_s17 + $0xe58] sm:$0xff] }
 0x3e8   :  { %13612 = vst [vmem:[#allocation21_spill] sm:$0xff] %v12382_v49  ;;  %4067 = vmatpush.msra.mxu0 %v6295_v62  ;;  %v4987_v2 = vadd.f32 %v4985_v18, %v12262_v38  ;;  %4038 = vmatpush.msrb.mxu1 %v6297_v1  ;;  %v6298_v53 = vld [vmem:[%s13510_s17 + $0x11a0] sm:$0xff]  ;;  %v4979_v48 = vmax.f32 %v4977_v9, 0.0  ;;  %v6302_v15 = vld [vmem:[%s13510_s17 + $0x1190] sm:$0xff]  ;;  %v6304_v18 = vld [vmem:[%s13510_s17 + $0xf68] sm:$0xff] }
 0x3e9   :  { %13613 = vst [vmem:[#allocation22_spill] sm:$0xff] %v12384_v16  ;;  %4060 = vmatpush.msrb.mxu2 %v6298_v53  ;;  %4023 = vmatmul.f32.vlgmr.msrb.gmra.mxu3 %v12400_v6  ;;  %v4875_v47 = vmax.f32 %v4873_v43, 0.0  ;;  %v12433_v32 = vld.sshfl [vmem:[#allocation1 + $0x8] sm:$0xff pattern:$0x73625140]  ;;  %v6305_v22 = vld [vmem:[%s13510_s17 + $0x10a0] sm:$0xff] }
 0x3ea   :  { %4068 = vmatpush.msra.mxu0 %v6299_v27  ;;  %v4989_v36 = vmax.f32 %v4987_v2, 0.0  ;;  %4087 = vmatpush.msra.mxu3 %v6300_v33  ;;  %v12435_v29 = vld.sshfl [vmem:[#allocation1 + $0x20] sm:$0xff pattern:$0x73625140]  ;;  %v6307_v62 = vld [vmem:[%s13510_s17 + $0xe48] sm:$0xff]  ;;  %v6308_v45 = vld [vmem:[%s13510_s17 + $0xf58] sm:$0xff] }
 0x3eb   :  { %4039 = vmatpush.msrb.mxu1 %v6301_v13  ;;  %4061 = vmatpush.msrb.mxu2 %v6302_v15  ;;  %v12437_v42 = vmax.f32 %v4865_v63, %v4875_v47  ;;  %v6306_v34 = vld [vmem:[%s13510_s17 + $0x1180] sm:$0xff]  ;;  %v6309_v43 = vld [vmem:[%s13510_s17 + $0x1178] sm:$0xff]  ;;  %v6310_v2 = vld [vmem:[%s13510_s17 + $0x1090] sm:$0xff] }
 0x3ec   :  { %4069 = vmatpush.msra.mxu0 %v6303_v37  ;;  %v12439_v9 = vmax.f32 %v4979_v48, %v4989_v36  ;;  %4088 = vmatpush.msra.mxu3 %v6304_v18  ;;  %v6311_v1 = vld [vmem:[%s13510_s17 + $0xe38] sm:$0xff]  ;;  %v6312_v27 = vld [vmem:[%s13510_s17 + $0xf48] sm:$0xff]  ;;  %v6314_v47 = vld [vmem:[%s13510_s17 + $0x1080] sm:$0xff] }
 0x3ed   :  { %13614 = vst [vmem:[#allocation23_spill] sm:$0xff] %v12437_v42  ;;  %4040 = vmatpush.msrb.mxu1 %v6305_v22  ;;  %4062 = vmatpush.msrb.mxu2 %v6306_v34  ;;  %v12468_v53 = vld.sshfl [vmem:[#allocation1 + $0x18] sm:$0xff pattern:$0x73625140]  ;;  %v6313_v63 = vld [vmem:[%s13510_s17 + $0x1168] sm:$0xff] }
 0x3ee   :  { %13615 = vst [vmem:[#allocation24_spill] sm:$0xff] %v12439_v9  ;;  %4070 = vmatpush.msra.mxu0 %v6307_v62  ;;  %5665 = vmatmul.msk.f32.vlgmr.msrb.gmra.mxu2 %vm2029_vm2, %v12435_v29  ;;  %v6315_v48 = vld [vmem:[%s13510_s17 + $0xe28] sm:$0xff]  ;;  %v6316_v36 = vld [vmem:[%s13510_s17 + $0xf38] sm:$0xff] }
 0x3ef   :  { %4003 = vmatmul.f32.vlgmr.msrb.gmra.mxu0 %v12433_v32  ;;  %4089 = vmatpush.msra.mxu3 %v6308_v45  ;;  %v6317_v13 = vld [vmem:[%s13510_s17 + $0x1078] sm:$0xff]  ;;  %v6320_v22 = vld [vmem:[%s13510_s17 + $0xf28] sm:$0xff] }
 0x3f0   :  { %4127 = vmatpush.msra.mxu2 %v6309_v43  ;;  %4041 = vmatpush.msrb.mxu1 %v6310_v2  ;;  %v6318_v15 = vld [vmem:[%s13510_s17 + $0x1158] sm:$0xff]  ;;  %v6321_v62 = vld [vmem:[%s13510_s17 + $0x1068] sm:$0xff] }
 0x3f1   :  { %4071 = vmatpush.msra.mxu0 %v6311_v1  ;;  %4090 = vmatpush.msra.mxu3 %v6312_v27  ;;  %v6319_v18 = vld [vmem:[%s13510_s17 + $0xe18] sm:$0xff]  ;;  %v6322_v45 = vld [vmem:[%s13510_s17 + $0x1148] sm:$0xff] }
 0x3f2   :  { %4128 = vmatpush.msra.mxu2 %v6313_v63  ;;  %4042 = vmatpush.msrb.mxu1 %v6314_v47  ;;  %v6323_v43 = vld [vmem:[%s13510_s17 + $0xe08] sm:$0xff]  ;;  %v6324_v2 = vld [vmem:[%s13510_s17 + $0xf18] sm:$0xff] }
 0x3f3   :  { %4072 = vmatpush.msra.mxu0 %v6315_v48  ;;  %4043 = vmatmul.f32.vlgmr.msrb.gmra.mxu1 %v12468_v53  ;;  %v6325_v1 = vld [vmem:[%s13510_s17 + $0x1058] sm:$0xff]  ;;  %v6328_v48 = vld [vmem:[%s13510_s17 + $0xf08] sm:$0xff] }
 0x3f4   :  { %4091 = vmatpush.msra.mxu3 %v6316_v36  ;;  %v3656_v33 = vpop.f32.mrf.mxu0  ;;  %4107 = vmatpush.msra.mxu1 %v6317_v13  ;;  %v6326_v27 = vld [vmem:[%s13510_s17 + $0x1138] sm:$0xff]  ;;  %v6329_v13 = vld [vmem:[%s13510_s17 + $0x1048] sm:$0xff] }
 0x3f5   :  { %4129 = vmatpush.msra.mxu2 %v6318_v15  ;;  %v3676_v37 = vpop.f32.mrf.mxu3  ;;  %4073 = vmatpush.msra.mxu0 %v6319_v18  ;;  %v6327_v47 = vld [vmem:[%s13510_s17 + $0xdf8] sm:$0xff]  ;;  %v6330_v15 = vld [vmem:[%s13510_s17 + $0x1128] sm:$0xff]  ;;  %v4298_v18 = vmul.f32 %v11871_v51, %v10445_v0 }
 0x3f6   :  { %4092 = vmatpush.msra.mxu3 %v6320_v22  ;;  %v3677_v34 = vadd.f32 %v3676_v37, %v3656_v33  ;;  %4108 = vmatpush.msra.mxu1 %v6321_v62  ;;  %v4184_v37 = vmul.f32 %v11868_v14, %v10445_v0  ;;  %v6331_v22 = vld [vmem:[%s13510_s17 + $0xde8] sm:$0xff]  ;;  %v6348_v21 = vld [vmem:[%s13510_s17 + $0xeb8] sm:$0xff] }
 0x3f7   :  { %4130 = vmatpush.msra.mxu2 %v6322_v45  ;;  %4074 = vmatpush.msra.mxu0 %v6323_v43  ;;  %v4526_v45 = vmul.f32 %v11601_v39, %v10445_v0  ;;  %v4982_v43 = vmul.f32 %v11675_v25, %v10445_v0  ;;  %v6347_v49 = vld [vmem:[%s13510_s17 + $0xda8] sm:$0xff] }
 0x3f8   :  { %4093 = vmatpush.msra.mxu3 %v6324_v2  ;;  %4109 = vmatpush.msra.mxu1 %v6325_v1  ;;  %v3696_v63 = vpop.f32.mrf.mxu1  ;;  %v6333_v2 = vld [vmem:[%s13510_s17 + $0x1038] sm:$0xff] }
 0x3f9   :  { %4131 = vmatpush.msra.mxu2 %v6326_v27  ;;  %4075 = vmatpush.msra.mxu0 %v6327_v47  ;;  %v3697_v36 = vadd.f32 %v3696_v63, %v3677_v34  ;;  %v3716_v33 = vpop.f32.mrf.mxu2  ;;  %v6332_v34 = vld [vmem:[%s13510_s17 + $0xef8] sm:$0xff]  ;;  %v12550_v27 = vadd.f32 %v12171_v4, %v11945_v40  ;;  %v4412_v63 = vmul.f32 %v11886_v52, %v10445_v0 }
 0x3fa   :  { %4094 = vmatpush.msra.mxu3 %v6328_v48  ;;  %4110 = vmatpush.msra.mxu1 %v6329_v13  ;;  %v6334_v1 = vld [vmem:[%s13510_s17 + $0x1118] sm:$0xff]  ;;  %v4640_v47 = vmul.f32 %v11895_v57, %v10445_v0  ;;  %v12564_v40 = vadd.f32 %v12184_v26, %v11947_v19  ;;  %v12568_v13 = vmul.f32 %v11615_v35, %v10445_v0 }
 0x3fb   :  { %4132 = vmatpush.msra.mxu2 %v6330_v15  ;;  %4076 = vmatpush.msra.mxu0 %v6331_v22  ;;  %v3717_v62 = vadd.f32 %v3716_v33, %v3697_v36  ;;  %v6335_v48 = vld [vmem:[%s13510_s17 + $0xdd8] sm:$0xff]  ;;  %v6336_v36 = vld [vmem:[%s13510_s17 + $0xee8] sm:$0xff]  ;;  %v12572_v15 = vmul.f32 %v11663_v44, %v10445_v0  ;;  %v12588_v0 = vadd.f32 %v12262_v38, %v11957_v59 }
 0x3fc   :  { %4095 = vmatpush.msra.mxu3 %v6332_v34  ;;  %4111 = vmatpush.msra.mxu1 %v6333_v2  ;;  %v6337_v22 = vld [vmem:[%s13510_s17 + $0x1028] sm:$0xff]  ;;  %v12584_v2 = vadd.f32 %v12200_v56, %v11949_v55  ;;  %v12602_v55 = vadd.f32 %v12197_v46, %v11961_v10  ;;  %v12606_v59 = vadd.f32 %v12219_v3, %v11999_v11 }
 0x3fd   :  { %4133 = vmatpush.msra.mxu2 %v6334_v1  ;;  %4077 = vmatpush.msra.mxu0 %v6335_v48  ;;  %v3736_v33 = vpop.f32.mrf.mxu0  ;;  %v6338_v34 = vld [vmem:[%s13510_s17 + $0x1108] sm:$0xff]  ;;  %v6340_v48 = vld [vmem:[%s13510_s17 + $0xed8] sm:$0xff] }
 0x3fe   :  { %4096 = vmatpush.msra.mxu3 %v6336_v36  ;;  %4112 = vmatpush.msra.mxu1 %v6337_v22  ;;  %v12580_v19 = vadd.f32 %v3736_v33, %v3717_v62  ;;  %v6339_v1 = vld [vmem:[%s13510_s17 + $0xdc8] sm:$0xff]  ;;  %v12598_v62 = vadd.f32 %v12203_v20, %v11959_v24  ;;  %v6341_v36 = vld [vmem:[%s13510_s17 + $0x1018] sm:$0xff]  ;;  %v4524_v42 = vmax.f32 %v12584_v2, 0.0 }
 0x3ff   :  { %4134 = vmatpush.msra.mxu2 %v6338_v34  ;;  %4078 = vmatpush.msra.mxu0 %v6339_v1  ;;  %v6342_v33 = vld [vmem:[%s13510_s17 + $0x10f8] sm:$0xff]  ;;  %v6344_v1 = vld [vmem:[%s13510_s17 + $0xec8] sm:$0xff] }
 0x400   :  { %4097 = vmatpush.msra.mxu3 %v6340_v48  ;;  %4113 = vmatpush.msra.mxu1 %v6341_v36  ;;  %v4186_v10 = vmul.f32 %v11908_v61, %v12580_v19  ;;  %v4300_v22 = vmul.f32 %v11911_v54, %v12580_v19  ;;  %v4528_v11 = vmul.f32 %v11612_v31, %v12580_v19  ;;  %v6343_v34 = vld [vmem:[%s13510_s17 + $0xdb8] sm:$0xff]  ;;  %v4296_v48 = vmax.f32 %v12564_v40, 0.0 }
 0x401   :  { %4135 = vmatpush.msra.mxu2 %v6342_v33  ;;  %4079 = vmatpush.msra.mxu0 %v6343_v34  ;;  %v4984_v36 = vmul.f32 %v11678_v41, %v12580_v19  ;;  %v4414_v33 = vmul.f32 %v11928_v5, %v12580_v19  ;;  %v4642_v24 = vmul.f32 %v11914_v12, %v12580_v19  ;;  %v6345_v34 = vld [vmem:[%s13510_s17 + $0x1008] sm:$0xff] }
 0x402   :  { %4098 = vmatpush.msra.mxu3 %v6344_v1  ;;  %4114 = vmatpush.msra.mxu1 %v6345_v34  ;;  %v6346_v1 = vld [vmem:[%s13510_s17 + $0x10e8] sm:$0xff]  ;;  %v4188_v40 = vadd.f32 %v4186_v10, %v4184_v37  ;;  %v4302_v9 = vadd.f32 %v4300_v22, %v4298_v18  ;;  %v4530_v16 = vadd.f32 %v4528_v11, %v4526_v45  ;;  %v4980_v34 = vmax.f32 %v12588_v0, 0.0  ;;  %v6349_v37 = vld [vmem:[%s13510_s17 + $0xff8] sm:$0xff] }
 0x403   :  { %4136 = vmatpush.msra.mxu2 %v6346_v1  ;;  %4080 = vmatpush.msra.mxu0 %v6347_v49  ;;  %v4986_v60 = vadd.f32 %v4984_v36, %v4982_v43  ;;  %v4416_v58 = vadd.f32 %v4414_v33, %v4412_v63  ;;  %v4644_v1 = vadd.f32 %v4642_v24, %v4640_v47  ;;  %v6350_v18 = vld [vmem:[%s13510_s17 + $0x10d8] sm:$0xff]  ;;  %v4410_v43 = vmax.f32 %v12598_v62, 0.0  ;;  %v6352_v47 = vld [vmem:[%s13510_s17 + $0xea8] sm:$0xff] }
 0x404   :  { %4099 = vmatpush.msra.mxu3 %v6348_v21  ;;  %4115 = vmatpush.msra.mxu1 %v6349_v37  ;;  %v4190_v49 = vadd.f32 %v4188_v40, %v12171_v4  ;;  %v4304_v45 = vadd.f32 %v4302_v9, %v12184_v26  ;;  %v4532_v21 = vadd.f32 %v4530_v16, %v12200_v56  ;;  %v6351_v63 = vld [vmem:[%s13510_s17 + $0xd98] sm:$0xff]  ;;  %v4638_v9 = vmax.f32 %v12602_v55, 0.0  ;;  %v6353_v62 = vld [vmem:[%s13510_s17 + $0xfe8] sm:$0xff] }
 0x405   :  { %4137 = vmatpush.msra.mxu2 %v6350_v18  ;;  %4081 = vmatpush.msra.mxu0 %v6351_v63  ;;  %v4988_v2 = vadd.f32 %v4986_v60, %v12262_v38  ;;  %v4418_v0 = vadd.f32 %v4416_v58, %v12203_v20  ;;  %v4646_v16 = vadd.f32 %v4644_v1, %v12197_v46  ;;  %v6354_v24 = vld [vmem:[%s13510_s17 + $0x10c8] sm:$0xff]  ;;  %v6356_v55 = vld [vmem:[%s13510_s17 + $0xe98] sm:$0xff] }
 0x406   :  { %4100 = vmatpush.msra.mxu3 %v6352_v47  ;;  %4116 = vmatpush.msra.mxu1 %v6353_v62  ;;  %v4192_v10 = vmax.f32 %v4190_v49, 0.0  ;;  %v4306_v22 = vmax.f32 %v4304_v45, 0.0  ;;  %v4534_v11 = vmax.f32 %v4532_v21, 0.0  ;;  %v4756_v58 = vmul.f32 %v11618_v23, %v12580_v19  ;;  %v6355_v60 = vld [vmem:[%s13510_s17 + $0xd88] sm:$0xff]  ;;  %v6357_v37 = vld [vmem:[%s13510_s17 + $0xfd8] sm:$0xff] }
 0x407   :  { %4138 = vmatpush.msra.mxu2 %v6354_v24  ;;  %4082 = vmatpush.msra.mxu0 %v6355_v60  ;;  %v4990_v36 = vmax.f32 %v4988_v2, 0.0  ;;  %v4420_v33 = vmax.f32 %v4418_v0, 0.0  ;;  %v4648_v40 = vmax.f32 %v4646_v16, 0.0  ;;  %v4870_v1 = vmul.f32 %v11666_v8, %v12580_v19  ;;  %v6358_v18 = vld [vmem:[%s13510_s17 + $0x10b8] sm:$0xff]  ;;  %v6360_v47 = vld [vmem:[%s13510_s17 + $0xe88] sm:$0xff] }
 0x408   :  { %4101 = vmatpush.msra.mxu3 %v6356_v55  ;;  %4117 = vmatpush.msra.mxu1 %v6357_v37  ;;  %v13616_v49 = vmax.f32 %v12550_v27, 0.0  ;;  %v12694_v21 = vmax.f32 %v4296_v48, %v4306_v22  ;;  %v12696_v63 = vmax.f32 %v4524_v42, %v4534_v11  ;;  %v6359_v19 = vld [vmem:[%s13510_s17 + $0x11f8] sm:$0xff]  ;;  %v6361_v42 = vld [vmem:[%s13510_s17 + $0xfc8] sm:$0xff]  ;;  %v4758_v16 = vadd.f32 %v4756_v58, %v12568_v13 }
 0x409   :  { %4139 = vmatpush.msra.mxu2 %v6358_v18  ;;  %4155 = vmatpush.msrb.mxu0 %v6359_v19  ;;  %v12704_v2 = vmax.f32 %v4980_v34, %v4990_v36  ;;  %v12706_v0 = vmax.f32 %v4410_v43, %v4420_v33  ;;  %v12708_v27 = vmax.f32 %v4638_v9, %v4648_v40  ;;  %v6362_v48 = vld [vmem:[%s13510_s17 + $0x10a8] sm:$0xff]  ;;  %v6364_v62 = vld [vmem:[%s13510_s17 + $0xfb8] sm:$0xff]  ;;  %v4752_v22 = vmax.f32 %v12606_v59, 0.0 }
 0x40a   :  { %v12692_v45 = vmax.f32 %v13616_v49, %v4192_v10  ;;  %4102 = vmatpush.msra.mxu3 %v6360_v47  ;;  %4118 = vmatpush.msra.mxu1 %v6361_v42  ;;  %v4864_v34 = vadd.f32 %v12222_v17, %v12007_v50  ;;  %v4872_v43 = vadd.f32 %v4870_v1, %v12572_v15  ;;  %v6363_v9 = vld [vmem:[%s13510_s17 + $0x11e8] sm:$0xff]  ;;  %v6365_v13 = vld [vmem:[%s13510_s17 + $0x1098] sm:$0xff] }
 0x40b   :  { %4140 = vmatpush.msra.mxu2 %v6362_v48  ;;  %4156 = vmatpush.msrb.mxu0 %v6363_v9  ;;  %v4760_v50 = vadd.f32 %v4758_v16, %v12219_v3  ;;  %v6366_v24 = vld [vmem:[%s13510_s17 + $0x11d8] sm:$0xff]  ;;  %v6368_v10 = vld [vmem:[%s13510_s17 + $0x1088] sm:$0xff]  ;;  %v4347_v48 = vld [vmem:[%s13512_s19 + $0x480] sm:$0xff] }
 0x40c   :  { %4103 = vmatmul.f32.vlgmr.msra.gmra.mxu3 %v12433_v32  ;;  %4119 = vmatpush.msra.mxu1 %v6364_v62  ;;  %v4874_v15 = vadd.f32 %v4872_v43, %v12222_v17  ;;  %v6367_v32 = vld [vmem:[%s13510_s17 + $0xfa8] sm:$0xff]  ;;  %v4866_v58 = vmax.f32 %v4864_v34, 0.0  ;;  %v6370_v36 = vld [vmem:[%s13510_s17 + $0xf98] sm:$0xff] }
 0x40d   :  { %4141 = vmatpush.msra.mxu2 %v6365_v13  ;;  %4157 = vmatpush.msrb.mxu0 %v6366_v24  ;;  %v4762_v11 = vmax.f32 %v4760_v50, 0.0  ;;  %v6369_v55 = vld [vmem:[%s13510_s17 + $0x11c8] sm:$0xff]  ;;  %v6371_v40 = vld [vmem:[%s13510_s17 + $0x11b8] sm:$0xff]  ;;  %v4309_v13 = vmul.f32 %v11871_v51, %v10702_v28  ;;  %v4651_v50 = vmul.f32 %v11895_v57, %v10702_v28  ;;  %v4537_v24 = vmul.f32 %v11601_v39, %v10702_v28 }
 0x40e   :  { %4120 = vmatpush.msra.mxu1 %v6367_v32  ;;  %v4876_v60 = vmax.f32 %v4874_v15, 0.0  ;;  %4083 = vmatmul.f32.vlgmr.msra.gmra.mxu0 %v12356_v30  ;;  %v6373_v30 = vld [vmem:[%s13510_s17 + $0x11a8] sm:$0xff]  ;;  %v6374_v1 = vld [vmem:[%s13510_s17 + $0x1198] sm:$0xff]  ;;  %v4423_v15 = vmul.f32 %v11886_v52, %v10702_v28  ;;  %v4765_v32 = vmul.f32 %v11615_v35, %v10702_v28 }
 0x40f   :  { %4142 = vmatpush.msra.mxu2 %v6368_v10  ;;  %4158 = vmatpush.msrb.mxu0 %v6369_v55  ;;  %v12750_v33 = vmax.f32 %v4752_v22, %v4762_v11  ;;  %v6375_v37 = vld [vmem:[%s13510_s17 + $0x1188] sm:$0xff]  ;;  %v4346_v62 = vld [vmem:[%s13512_s19 + $0x478] sm:$0xff]  ;;  %v4879_v10 = vmul.f32 %v11663_v44, %v10702_v28  ;;  %v4993_v22 = vmul.f32 %v11675_v25, %v10702_v28  ;;  %v4345_v11 = vld [vmem:[%s13512_s19 + $0x470] sm:$0xff] }
 0x410   :  { %4143 = vmatmul.f32.vlgmr.msra.gmra.mxu2 %v12468_v53  ;;  %4121 = vmatpush.msra.mxu1 %v6370_v36  ;;  %v12752_v59 = vmax.f32 %v4866_v58, %v4876_v60  ;;  %v6372_v53 = vld [vmem:[%s13510_s17 + $0xf88] sm:$0xff] }
 0x411   :  { %4159 = vmatpush.msrb.mxu0 %v6371_v40 }
 0x412   :  { %4122 = vmatpush.msra.mxu1 %v6372_v53 }
 0x413   :  { %4160 = vmatpush.msrb.mxu0 %v6373_v30  ;;  %4123 = vmatmul.f32.vlgmr.msra.gmra.mxu1 %v12400_v6  ;;  %v4348_v6 = vld [vmem:[%s13512_s19 + $0x488] sm:$0xff] }
 0x414   :  { %4354 = vmatpush.msrb.mxu2 %v4348_v6 }
 0x415   :  { %4161 = vmatpush.msrb.mxu0 %v6374_v1  ;;  %v4344_v1 = vld [vmem:[%s13512_s19 + $0x468] sm:$0xff] }
 0x416   :  { %4355 = vmatpush.msrb.mxu2 %v4347_v48 }
 0x417   :  { %4162 = vmatpush.msrb.mxu0 %v6375_v37  ;;  %v4343_v37 = vld [vmem:[%s13512_s19 + $0x460] sm:$0xff] }
 0x418   :  { %5666 = vmatmul.msk.f32.vlgmr.msrb.gmra.mxu0 %vm2029_vm2, %v12435_v29  ;;  %v4195_v29 = vmul.f32 %v11868_v14, %v10702_v28  ;;  %4356 = vmatpush.msrb.mxu2 %v4346_v62 }
 0x41a   :  { %4357 = vmatpush.msrb.mxu2 %v4345_v11 }
 0x41c   :  { %4358 = vmatpush.msrb.mxu2 %v4344_v1 }
 0x41e   :  { %v3770_v18 = vpop.f32.mrf.mxu3  ;;  %4359 = vmatpush.msrb.mxu2 %v4343_v37  ;;  %v13617_v37 = vld [vmem:[#allocation18_spill] sm:$0xff] }
 0x422   :  { %v3790_v49 = vpop.f32.mrf.mxu1 }
 0x423   :  { %v3791_v19 = vadd.f32 %v3790_v49, %v3770_v18  ;;  %v3810_v47 = vpop.f32.mrf.mxu2 }
 0x425   :  { %v3811_v42 = vadd.f32 %v3810_v47, %v3791_v19 }
 0x428   :  { %v3830_v16 = vpop.f32.mrf.mxu0 }
 0x429   :  { %v3831_v34 = vadd.f32 %v3830_v16, %v3811_v42  ;;  %v3850_v43 = vpop.f32.mrf.mxu3 }
 0x42b   :  { %v3851_v9 = vadd.f32 %v3850_v43, %v3831_v34  ;;  %v4342_v34 = vld [vmem:[%s13512_s19 + $0x458] sm:$0xff] }
 0x42c   :  { %v4234_v43 = vld [vmem:[%s13512_s19 + $0x3f8] sm:$0xff]  ;;  %4360 = vmatpush.msrb.mxu2 %v4342_v34 }
 0x42d   :  { %v4197_v58 = vmul.f32 %v11908_v61, %v3851_v9  ;;  %v4311_v60 = vmul.f32 %v11911_v54, %v3851_v9  ;;  %v4653_v55 = vmul.f32 %v11914_v12, %v3851_v9  ;;  %v4425_v36 = vmul.f32 %v11928_v5, %v3851_v9  ;;  %4240 = vmatpush.msrb.mxu3 %v4234_v43  ;;  %v13621_v34 = vld [vmem:[#allocation22_spill] sm:$0xff] }
 0x42e   :  { %v4539_v40 = vmul.f32 %v11612_v31, %v3851_v9  ;;  %v4767_v53 = vmul.f32 %v11618_v23, %v3851_v9  ;;  %v4881_v30 = vmul.f32 %v11666_v8, %v3851_v9  ;;  %v4995_v28 = vmul.f32 %v11678_v41, %v3851_v9 }
 0x42f   :  { %v4199_v18 = vadd.f32 %v4197_v58, %v4195_v29  ;;  %v4313_v49 = vadd.f32 %v4311_v60, %v4309_v13  ;;  %v4655_v19 = vadd.f32 %v4653_v55, %v4651_v50  ;;  %v4427_v47 = vadd.f32 %v4425_v36, %v4423_v15  ;;  %v4233_v50 = vld [vmem:[%s13512_s19 + $0x3f0] sm:$0xff] }
 0x430   :  { %v4541_v6 = vadd.f32 %v4539_v40, %v4537_v24  ;;  %v4769_v42 = vadd.f32 %v4767_v53, %v4765_v32  ;;  %v4883_v48 = vadd.f32 %v4881_v30, %v4879_v10  ;;  %v4997_v16 = vadd.f32 %v4995_v28, %v4993_v22  ;;  %v4341_v10 = vld [vmem:[%s13512_s19 + $0x450] sm:$0xff]  ;;  %v4232_v22 = vld [vmem:[%s13512_s19 + $0x3e8] sm:$0xff]  ;;  %4241 = vmatpush.msrb.mxu3 %v4233_v50  ;;  %v4231_v28 = vld [vmem:[%s13512_s19 + $0x3e0] sm:$0xff] }
 0x431   :  { %v4201_v9 = vadd.f32 %v4199_v18, %v12171_v4  ;;  %v4315_v29 = vadd.f32 %v4313_v49, %v12184_v26  ;;  %v4657_v62 = vadd.f32 %v4655_v19, %v12197_v46  ;;  %v4429_v13 = vadd.f32 %v4427_v47, %v12203_v20  ;;  %v4340_v30 = vld [vmem:[%s13512_s19 + $0x448] sm:$0xff]  ;;  %4361 = vmatpush.msrb.mxu2 %v4341_v10 }
 0x432   :  { %v4543_v15 = vadd.f32 %v4541_v6, %v12200_v56  ;;  %v4771_v24 = vadd.f32 %v4769_v42, %v12219_v3  ;;  %v4885_v32 = vadd.f32 %v4883_v48, %v12222_v17  ;;  %v4999_v55 = vadd.f32 %v4997_v16, %v12262_v38  ;;  %v13618_v49 = vld [vmem:[#allocation19_spill] sm:$0xff]  ;;  %4242 = vmatpush.msrb.mxu3 %v4232_v22  ;;  %v13619_v6 = vld [vmem:[#allocation20_spill] sm:$0xff]  ;;  %v13620_v48 = vld [vmem:[#allocation21_spill] sm:$0xff] }
 0x433   :  { %v4203_v11 = vmax.f32 %v4201_v9, 0.0  ;;  %v4317_v58 = vmax.f32 %v4315_v29, 0.0  ;;  %v4659_v60 = vmax.f32 %v4657_v62, 0.0  ;;  %v4431_v36 = vmax.f32 %v4429_v13, 0.0  ;;  %v4339_v9 = vld [vmem:[%s13512_s19 + $0x440] sm:$0xff]  ;;  %v4230_v29 = vld [vmem:[%s13512_s19 + $0x3d8] sm:$0xff]  ;;  %4362 = vmatpush.msrb.mxu2 %v4340_v30 }
 0x434   :  { %v4545_v40 = vmax.f32 %v4543_v15, 0.0  ;;  %v4773_v53 = vmax.f32 %v4771_v24, 0.0  ;;  %v4887_v47 = vmax.f32 %v4885_v32, 0.0  ;;  %v13623_v62 = vld [vmem:[#allocation23_spill] sm:$0xff]  ;;  %4243 = vmatpush.msrb.mxu3 %v4231_v28  ;;  %v13625_v50 = vld [vmem:[#allocation24_spill] sm:$0xff]  ;;  %v4338_v24 = vld [vmem:[%s13512_s19 + $0x438] sm:$0xff] }
 0x435   :  { %v12844_v1 = vmax.f32 %v12368_v7, %v4203_v11  ;;  %v12847_v18 = vmax.f32 %v13617_v37, %v4317_v58  ;;  %v12850_v19 = vmax.f32 %v13618_v49, %v4659_v60  ;;  %v12853_v42 = vmax.f32 %v13619_v6, %v4431_v36  ;;  %4363 = vmatpush.msrb.mxu2 %v4339_v9  ;;  %v4337_v32 = vld [vmem:[%s13512_s19 + $0x430] sm:$0xff]  ;;  %v4336_v10 = vld [vmem:[%s13512_s19 + $0x428] sm:$0xff]  ;;  %v4335_v22 = vld [vmem:[%s13512_s19 + $0x420] sm:$0xff] }
 0x436   :  { %v12856_v16 = vmax.f32 %v13620_v48, %v4545_v40  ;;  %v12859_v43 = vmax.f32 %v13621_v34, %v4773_v53  ;;  %v5001_v7 = vmax.f32 %v4999_v55, 0.0  ;;  %v12868_v13 = vmax.f32 %v13623_v62, %v4887_v47  ;;  %4244 = vmatpush.msrb.mxu3 %v4230_v29  ;;  %v4334_v11 = vld [vmem:[%s13512_s19 + $0x418] sm:$0xff]  ;;  %v4333_v58 = vld [vmem:[%s13512_s19 + $0x410] sm:$0xff]  ;;  %v4228_v6 = vld [vmem:[%s13512_s19 + $0x3c8] sm:$0xff] }
 0x437   :  { %4364 = vmatpush.msrb.mxu2 %v4338_v24  ;;  %v4690_v60 = vld [vmem:[%s13512_s19 + $0x638] sm:$0xff]  ;;  %v4229_v53 = vld [vmem:[%s13512_s19 + $0x3d0] sm:$0xff]  ;;  %v4688_v48 = vld [vmem:[%s13512_s19 + $0x628] sm:$0xff] }
 0x438   :  { %13622 = vst [vmem:[#allocation18_spill] sm:$0xff] %v12859_v43  ;;  %v12871_v15 = vmax.f32 %v13625_v50, %v5001_v7  ;;  %v4689_v30 = vld [vmem:[%s13512_s19 + $0x630] sm:$0xff]  ;;  %4245 = vmatpush.msrb.mxu3 %v4229_v53  ;;  %v13627_v7 = vld [vmem:[#allocation15_spill] sm:$0xff] }
 0x439   :  { %13624 = vst [vmem:[#allocation19_spill] sm:$0xff] %v12868_v13  ;;  %4365 = vmatpush.msrb.mxu2 %v4337_v32  ;;  %v4196_v9 = vmul.f32 %v11868_v14, %v13627_v7  ;;  %v4310_v29 = vmul.f32 %v11871_v51, %v13627_v7  ;;  %v4227_v50 = vld [vmem:[%s13512_s19 + $0x3c0] sm:$0xff]  ;;  %v4538_v32 = vmul.f32 %v11601_v39, %v13627_v7 }
 0x43a   :  { %13626 = vst [vmem:[#allocation20_spill] sm:$0xff] %v12871_v15  ;;  %4246 = vmatpush.msrb.mxu3 %v4228_v6  ;;  %v4687_v24 = vld [vmem:[%s13512_s19 + $0x620] sm:$0xff]  ;;  %v4224_v15 = vld [vmem:[%s13512_s19 + $0x3a8] sm:$0xff] }
 0x43b   :  { %4366 = vmatpush.msrb.mxu2 %v4336_v10  ;;  %v4994_v10 = vmul.f32 %v11675_v25, %v13627_v7 }
 0x43c   :  { %4247 = vmatpush.msrb.mxu3 %v4227_v50  ;;  %v4225_v50 = vld [vmem:[%s13512_s19 + $0x3b0] sm:$0xff] }
 0x43d   :  { %4367 = vmatpush.msrb.mxu2 %v4335_v22  ;;  %v4424_v22 = vmul.f32 %v11886_v52, %v13627_v7 }
 0x43f   :  { %4368 = vmatpush.msrb.mxu2 %v4334_v11  ;;  %v4652_v11 = vmul.f32 %v11895_v57, %v13627_v7 }
 0x441   :  { %4369 = vmatpush.msrb.mxu2 %v4333_v58  ;;  %v4766_v58 = vmul.f32 %v11615_v35, %v13627_v7 }
 0x443   :  { %4696 = vmatpush.msra.mxu2 %v4690_v60  ;;  %v4880_v60 = vmul.f32 %v11663_v44, %v13627_v7 }
 0x444   :  { %v3870_v55 = vpop.f32.mrf.mxu1 }
 0x445   :  { %4697 = vmatpush.msra.mxu2 %v4689_v30  ;;  %v4226_v30 = vld [vmem:[%s13512_s19 + $0x3b8] sm:$0xff] }
 0x446   :  { %v3890_v36 = vpop.f32.mrf.mxu2  ;;  %4248 = vmatpush.msrb.mxu3 %v4226_v30 }
 0x447   :  { %v3891_v40 = vadd.f32 %v3890_v36, %v3870_v55  ;;  %4698 = vmatpush.msra.mxu2 %v4688_v48 }
 0x448   :  { %4249 = vmatpush.msrb.mxu3 %v4225_v50 }
 0x449   :  { %4699 = vmatpush.msra.mxu2 %v4687_v24  ;;  %v4685_v24 = vld [vmem:[%s13512_s19 + $0x610] sm:$0xff] }
 0x44a   :  { %v3910_v28 = vpop.f32.mrf.mxu0  ;;  %4250 = vmatpush.msrb.mxu3 %v4224_v15 }
 0x44b   :  { %v3911_v37 = vadd.f32 %v3910_v28, %v3891_v40  ;;  %v3930_v49 = vpop.f32.mrf.mxu3  ;;  %v4686_v28 = vld [vmem:[%s13512_s19 + $0x618] sm:$0xff] }
 0x44c   :  { %4700 = vmatpush.msra.mxu2 %v4686_v28 }
 0x44d   :  { %v3931_v47 = vadd.f32 %v3930_v49, %v3911_v37 }
 0x44e   :  { %v3950_v34 = vpop.f32.mrf.mxu1  ;;  %4701 = vmatpush.msra.mxu2 %v4685_v24  ;;  %v4221_v24 = vld [vmem:[%s13512_s19 + $0x390] sm:$0xff] }
 0x44f   :  { %v3951_v62 = vadd.f32 %v3950_v34, %v3931_v47 }
 0x451   :  { %v4198_v55 = vmul.f32 %v11908_v61, %v3951_v62  ;;  %v4312_v36 = vmul.f32 %v11911_v54, %v3951_v62  ;;  %v4540_v40 = vmul.f32 %v11612_v31, %v3951_v62  ;;  %v4996_v53 = vmul.f32 %v11678_v41, %v3951_v62 }
 0x452   :  { %v4426_v37 = vmul.f32 %v11928_v5, %v3951_v62  ;;  %v4654_v49 = vmul.f32 %v11914_v12, %v3951_v62  ;;  %v4768_v47 = vmul.f32 %v11618_v23, %v3951_v62  ;;  %v4882_v6 = vmul.f32 %v11666_v8, %v3951_v62 }
 0x453   :  { %v4200_v48 = vadd.f32 %v4198_v55, %v4196_v9  ;;  %v4314_v34 = vadd.f32 %v4312_v36, %v4310_v29  ;;  %v4542_v7 = vadd.f32 %v4540_v40, %v4538_v32  ;;  %v4998_v13 = vadd.f32 %v4996_v53, %v4994_v10  ;;  %v4684_v9 = vld [vmem:[%s13512_s19 + $0x608] sm:$0xff]  ;;  %v4223_v36 = vld [vmem:[%s13512_s19 + $0x3a0] sm:$0xff] }
 0x454   :  { %v4428_v43 = vadd.f32 %v4426_v37, %v4424_v22  ;;  %v4656_v62 = vadd.f32 %v4654_v49, %v4652_v11  ;;  %v4770_v30 = vadd.f32 %v4768_v47, %v4766_v58  ;;  %v4683_v10 = vld [vmem:[%s13512_s19 + $0x600] sm:$0xff]  ;;  %4702 = vmatpush.msra.mxu2 %v4684_v9  ;;  %v4884_v49 = vadd.f32 %v4882_v6, %v4880_v60  ;;  %v4222_v47 = vld [vmem:[%s13512_s19 + $0x398] sm:$0xff] }
 0x455   :  { %v4202_v29 = vadd.f32 %v4200_v48, %v12171_v4  ;;  %v4316_v32 = vadd.f32 %v4314_v34, %v12184_v26  ;;  %v4544_v55 = vadd.f32 %v4542_v7, %v12200_v56  ;;  %v5000_v22 = vadd.f32 %v4998_v13, %v12262_v38  ;;  %v4682_v13 = vld [vmem:[%s13512_s19 + $0x5f8] sm:$0xff]  ;;  %4251 = vmatpush.msrb.mxu3 %v4223_v36 }
 0x456   :  { %v4430_v11 = vadd.f32 %v4428_v43, %v12203_v20  ;;  %v4658_v58 = vadd.f32 %v4656_v62, %v12197_v46  ;;  %v4772_v40 = vadd.f32 %v4770_v30, %v12219_v3  ;;  %v4236_v43 = vld [vmem:[%s13512_s19 + $0x408] sm:$0xff]  ;;  %4703 = vmatpush.msra.mxu2 %v4683_v10  ;;  %v4681_v62 = vld [vmem:[%s13512_s19 + $0x5f0] sm:$0xff]  ;;  %v4678_v36 = vld [vmem:[%s13512_s19 + $0x5d8] sm:$0xff] }
 0x457   :  { %v4204_v53 = vmax.f32 %v4202_v29, 0.0  ;;  %v4318_v28 = vmax.f32 %v4316_v32, 0.0  ;;  %v4546_v37 = vmax.f32 %v4544_v55, 0.0  ;;  %v5002_v48 = vmax.f32 %v5000_v22, 0.0  ;;  %4274 = vmatpush.msrb.mxu1 %v4236_v43  ;;  %4252 = vmatpush.msrb.mxu3 %v4222_v47  ;;  %v4220_v29 = vld [vmem:[%s13512_s19 + $0x388] sm:$0xff]  ;;  %v4235_v55 = vld [vmem:[%s13512_s19 + $0x400] sm:$0xff] }
 0x458   :  { %v4432_v34 = vmax.f32 %v4430_v11, 0.0  ;;  %v4660_v15 = vmax.f32 %v4658_v58, 0.0  ;;  %v4774_v50 = vmax.f32 %v4772_v40, 0.0  ;;  %4704 = vmatpush.msra.mxu2 %v4682_v13  ;;  %v4462_v10 = vld [vmem:[%s13512_s19 + $0x518] sm:$0xff]  ;;  %v4461_v22 = vld [vmem:[%s13512_s19 + $0x510] sm:$0xff]  ;;  %v4676_v11 = vld [vmem:[%s13512_s19 + $0x5c8] sm:$0xff] }
 0x459   :  { %v12977_v7 = vmax.f32 %v12692_v45, %v4204_v53  ;;  %v12980_v60 = vmax.f32 %v12694_v21, %v4318_v28  ;;  %v12983_v6 = vmax.f32 %v12696_v63, %v4546_v37  ;;  %v12992_v30 = vmax.f32 %v12704_v2, %v5002_v48  ;;  %v4680_v2 = vld [vmem:[%s13512_s19 + $0x5e8] sm:$0xff]  ;;  %4253 = vmatpush.msrb.mxu3 %v4221_v24  ;;  %v4675_v40 = vld [vmem:[%s13512_s19 + $0x5c0] sm:$0xff]  ;;  %v4458_v28 = vld [vmem:[%s13512_s19 + $0x4f8] sm:$0xff] }
 0x45a   :  { %v12995_v45 = vmax.f32 %v12706_v0, %v4432_v34  ;;  %v12998_v21 = vmax.f32 %v12708_v27, %v4660_v15  ;;  %v4886_v63 = vadd.f32 %v4884_v49, %v12222_v17  ;;  %v13002_v9 = vmax.f32 %v12750_v33, %v4774_v50  ;;  %4705 = vmatpush.msra.mxu2 %v4681_v62  ;;  %v4219_v27 = vld [vmem:[%s13512_s19 + $0x380] sm:$0xff]  ;;  %v4460_v58 = vld [vmem:[%s13512_s19 + $0x508] sm:$0xff]  ;;  %v4457_v43 = vld [vmem:[%s13512_s19 + $0x4f0] sm:$0xff] }
 0x45b   :  { %v4679_v33 = vld [vmem:[%s13512_s19 + $0x5e0] sm:$0xff]  ;;  %4254 = vmatpush.msrb.mxu3 %v4220_v29  ;;  %4275 = vmatpush.msrb.mxu1 %v4235_v55  ;;  %v4456_v34 = vld [vmem:[%s13512_s19 + $0x4e8] sm:$0xff] }
 0x45c   :  { %v4888_v0 = vmax.f32 %v4886_v63, 0.0  ;;  %4706 = vmatpush.msra.mxu2 %v4680_v2  ;;  %v4459_v53 = vld [vmem:[%s13512_s19 + $0x500] sm:$0xff]  ;;  %v13628_v63 = vld [vmem:[#allocation16_spill] sm:$0xff]  ;;  %v4454_v2 = vld [vmem:[%s13512_s19 + $0x4d8] sm:$0xff] }
 0x45d   :  { %4255 = vmatpush.msrb.mxu3 %v4219_v27  ;;  %4468 = vmatpush.msra.mxu1 %v4462_v10  ;;  %v4455_v50 = vld [vmem:[%s13512_s19 + $0x4e0] sm:$0xff]  ;;  %v4207_v29 = vmul.f32 %v11868_v14, %v13628_v63  ;;  %v4321_v27 = vmul.f32 %v11871_v51, %v13628_v63  ;;  %v4435_v55 = vmul.f32 %v11886_v52, %v13628_v63 }
 0x45e   :  { %v13017_v32 = vmax.f32 %v12752_v59, %v4888_v0  ;;  %4707 = vmatpush.msra.mxu2 %v4679_v33  ;;  %v4677_v59 = vld [vmem:[%s13512_s19 + $0x5d0] sm:$0xff]  ;;  %v4663_v33 = vmul.f32 %v11895_v57, %v13628_v63  ;;  %v4549_v10 = vmul.f32 %v11601_v39, %v13628_v63 }
 0x45f   :  { %4469 = vmatpush.msra.mxu1 %v4461_v22  ;;  %v4891_v22 = vmul.f32 %v11663_v44, %v13628_v63 }
 0x460   :  { %4708 = vmatpush.msra.mxu2 %v4678_v36  ;;  %v4453_v36 = vld [vmem:[%s13512_s19 + $0x4d0] sm:$0xff] }
 0x461   :  { %4470 = vmatpush.msra.mxu1 %v4460_v58 }
 0x462   :  { %4709 = vmatpush.msra.mxu2 %v4677_v59  ;;  %v4777_v59 = vmul.f32 %v11615_v35, %v13628_v63 }
 0x463   :  { %4471 = vmatpush.msra.mxu1 %v4459_v53 }
 0x464   :  { %4710 = vmatpush.msra.mxu2 %v4676_v11  ;;  %v5005_v11 = vmul.f32 %v11675_v25, %v13628_v63 }
 0x465   :  { %4472 = vmatpush.msra.mxu1 %v4458_v28 }
 0x466   :  { %4711 = vmatpush.msra.mxu2 %v4675_v40 }
 0x467   :  { %v3984_v37 = vpop.f32.mrf.mxu2  ;;  %4473 = vmatpush.msra.mxu1 %v4457_v43 }
 0x469   :  { %4474 = vmatpush.msra.mxu1 %v4456_v34 }
 0x46b   :  { %4475 = vmatpush.msra.mxu1 %v4455_v50 }
 0x46c   :  { %v4004_v49 = vpop.f32.mrf.mxu0  ;;  %v4024_v13 = vpop.f32.mrf.mxu3 }
 0x46d   :  { %v4005_v47 = vadd.f32 %v4004_v49, %v3984_v37  ;;  %4476 = vmatpush.msra.mxu1 %v4454_v2  ;;  %v4452_v37 = vld [vmem:[%s13512_s19 + $0x4c8] sm:$0xff]  ;;  %v4451_v49 = vld [vmem:[%s13512_s19 + $0x4c0] sm:$0xff]  ;;  %v4450_v2 = vld [vmem:[%s13512_s19 + $0x4b8] sm:$0xff] }
 0x46f   :  { %v4025_v48 = vadd.f32 %v4024_v13, %v4005_v47  ;;  %4477 = vmatpush.msra.mxu1 %v4453_v36 }
 0x470   :  { %v4044_v15 = vpop.f32.mrf.mxu1 }
 0x471   :  { %v4045_v24 = vadd.f32 %v4044_v15, %v4025_v48  ;;  %v4064_v62 = vpop.f32.mrf.mxu2  ;;  %4478 = vmatpush.msra.mxu1 %v4452_v37 }
 0x473   :  { %v4065_v0 = vadd.f32 %v4064_v62, %v4045_v24  ;;  %v4350_v24 = vld [vmem:[%s13512_s19 + $0x498] sm:$0xff]  ;;  %v4349_v62 = vld [vmem:[%s13512_s19 + $0x490] sm:$0xff]  ;;  %4479 = vmatpush.msra.mxu1 %v4451_v49 }
 0x474   :  { %4388 = vmatpush.msra.mxu0 %v4350_v24 }
 0x475   :  { %v4209_v58 = vmul.f32 %v11908_v61, %v4065_v0  ;;  %v4323_v40 = vmul.f32 %v11911_v54, %v4065_v0  ;;  %v4665_v53 = vmul.f32 %v11914_v12, %v4065_v0  ;;  %v4437_v28 = vmul.f32 %v11928_v5, %v4065_v0  ;;  %4480 = vmatpush.msra.mxu1 %v4450_v2  ;;  %v5034_v2 = vld [vmem:[%s13512_s19 + $0x7f8] sm:$0xff] }
 0x476   :  { %v4551_v47 = vmul.f32 %v11612_v31, %v4065_v0  ;;  %v4779_v13 = vmul.f32 %v11618_v23, %v4065_v0  ;;  %v4893_v43 = vmul.f32 %v11666_v8, %v4065_v0  ;;  %v5007_v48 = vmul.f32 %v11678_v41, %v4065_v0  ;;  %v4578_v0 = vld [vmem:[%s13512_s19 + $0x5b8] sm:$0xff]  ;;  %4389 = vmatpush.msra.mxu0 %v4349_v62 }
 0x477   :  { %v4211_v34 = vadd.f32 %v4209_v58, %v4207_v29  ;;  %v4325_v15 = vadd.f32 %v4323_v40, %v4321_v27  ;;  %v4667_v50 = vadd.f32 %v4665_v53, %v4663_v33  ;;  %v4439_v63 = vadd.f32 %v4437_v28, %v4435_v55  ;;  %v4464_v29 = vld [vmem:[%s13512_s19 + $0x528] sm:$0xff]  ;;  %4616 = vmatpush.msra.mxu3 %v4578_v0  ;;  %v4449_v28 = vld [vmem:[%s13512_s19 + $0x4b0] sm:$0xff] }
 0x478   :  { %v4553_v27 = vadd.f32 %v4551_v47, %v4549_v10  ;;  %v4781_v33 = vadd.f32 %v4779_v13, %v4777_v59  ;;  %v4895_v36 = vadd.f32 %v4893_v43, %v4891_v22  ;;  %v5009_v58 = vadd.f32 %v5007_v48, %v5005_v11  ;;  %v4463_v10 = vld [vmem:[%s13512_s19 + $0x520] sm:$0xff]  ;;  %v4577_v59 = vld [vmem:[%s13512_s19 + $0x5b0] sm:$0xff]  ;;  %4502 = vmatpush.msrb.mxu0 %v4464_v29 }
 0x479   :  { %v4213_v40 = vadd.f32 %v4211_v34, %v12171_v4  ;;  %v4327_v55 = vadd.f32 %v4325_v15, %v12184_v26  ;;  %v4669_v53 = vadd.f32 %v4667_v50, %v12197_v46  ;;  %v4441_v22 = vadd.f32 %v4439_v63, %v12203_v20  ;;  %4617 = vmatpush.msra.mxu3 %v4577_v59 }
 0x47a   :  { %v4555_v11 = vadd.f32 %v4553_v27, %v12200_v56  ;;  %v4783_v37 = vadd.f32 %v4781_v33, %v12219_v3  ;;  %v4897_v49 = vadd.f32 %v4895_v36, %v12222_v17  ;;  %v5011_v48 = vadd.f32 %v5009_v58, %v12262_v38  ;;  %4481 = vmatpush.msra.mxu1 %v4449_v28  ;;  %v4448_v27 = vld [vmem:[%s13512_s19 + $0x4a8] sm:$0xff]  ;;  %v4691_v28 = vld [vmem:[%s13512_s19 + $0x640] sm:$0xff] }
 0x47b   :  { %v4215_v47 = vmax.f32 %v4213_v40, 0.0  ;;  %v4329_v13 = vmax.f32 %v4327_v55, 0.0  ;;  %v4671_v43 = vmax.f32 %v4669_v53, 0.0  ;;  %v4443_v34 = vmax.f32 %v4441_v22, 0.0  ;;  %4503 = vmatpush.msrb.mxu0 %v4463_v10  ;;  %v4447_v40 = vld [vmem:[%s13512_s19 + $0x4a0] sm:$0xff]  ;;  %v13631_v55 = vld [vmem:[#allocation20_spill] sm:$0xff] }
 0x47c   :  { %v4557_v15 = vmax.f32 %v4555_v11, 0.0  ;;  %v4785_v50 = vmax.f32 %v4783_v37, 0.0  ;;  %v4899_v24 = vmax.f32 %v4897_v49, 0.0  ;;  %v5013_v29 = vmax.f32 %v5011_v48, 0.0  ;;  %4482 = vmatpush.msra.mxu1 %v4448_v27 }
 0x47d   :  { %v4217_v62 = vmax.f32 %v12844_v1, %v4215_v47  ;;  %v4331_v63 = vmax.f32 %v12847_v18, %v4329_v13  ;;  %v4673_v0 = vmax.f32 %v12850_v19, %v4671_v43  ;;  %v13136_v33 = vmax.f32 %v12853_v42, %v4443_v34  ;;  %v13629_v18 = vld [vmem:[#allocation18_spill] sm:$0xff]  ;;  %v13630_v19 = vld [vmem:[#allocation19_spill] sm:$0xff]  ;;  %v5033_v42 = vld [vmem:[%s13512_s19 + $0x7f0] sm:$0xff] }
 0x47e   :  { %v13139_v1 = vmax.f32 %v12856_v16, %v4557_v15  ;;  %v13142_v36 = vmax.f32 %v13629_v18, %v4785_v50  ;;  %v13145_v58 = vmax.f32 %v13630_v19, %v4899_v24  ;;  %v13154_v53 = vmax.f32 %v13631_v55, %v5013_v29  ;;  %4483 = vmatpush.msra.mxu1 %v4447_v40  ;;  %v4692_v16 = vld [vmem:[%s13512_s19 + $0x648] sm:$0xff]  ;;  %v13632_v43 = vld [vmem:[#allocation17_spill] sm:$0xff] }
 0x47f   :  { %4256 = vmatmul.f32.vlgmr.msrb.gmra.mxu3 %v4217_v62  ;;  %4370 = vmatmul.f32.vlgmr.msrb.gmra.mxu2 %v4331_v63  ;;  %v4208_v48 = vmul.f32 %v11868_v14, %v13632_v43  ;;  %v4322_v15 = vmul.f32 %v11871_v51, %v13632_v43  ;;  %v4550_v50 = vmul.f32 %v11601_v39, %v13632_v43 }
 0x480   :  { %5072 = vmatpush.msrb.mxu2 %v5034_v2  ;;  %4730 = vmatpush.msrb.mxu3 %v4692_v16  ;;  %v5006_v24 = vmul.f32 %v11675_v25, %v13632_v43  ;;  %v4436_v62 = vmul.f32 %v11886_v52, %v13632_v43  ;;  %v4664_v63 = vmul.f32 %v11895_v57, %v13632_v43 }
 0x481   :  { %v4892_v14 = vmul.f32 %v11663_v44, %v13632_v43 }
 0x482   :  { %5073 = vmatpush.msrb.mxu2 %v5033_v42  ;;  %4731 = vmatpush.msrb.mxu3 %v4691_v28 }
 0x487   :  { %4712 = vmatmul.f32.vlgmr.msra.gmra.mxu2 %v4673_v0  ;;  %v4778_v0 = vmul.f32 %v11615_v35, %v13632_v43  ;;  %v4801_v43 = vld [vmem:[%s13512_s19 + $0x6b0] sm:$0xff] }
 0x48b   :  { %v4084_v10 = vpop.f32.mrf.mxu0 }
 0x48f   :  { %v4104_v59 = vpop.f32.mrf.mxu3 }
 0x490   :  { %v4105_v22 = vadd.f32 %v4104_v59, %v4084_v10  ;;  %v4124_v11 = vpop.f32.mrf.mxu1 }
 0x492   :  { %v4125_v37 = vadd.f32 %v4124_v11, %v4105_v22 }
 0x493   :  { %v4144_v49 = vpop.f32.mrf.mxu2 }
 0x494   :  { %v4145_v47 = vadd.f32 %v4144_v49, %v4125_v37 }
 0x495   :  { %v4164_v13 = vpop.f32.mrf.mxu0 }
 0x496   :  { %v4165_v34 = vadd.f32 %v4164_v13, %v4145_v47  ;;  %v4573_v13 = vld [vmem:[%s13512_s19 + $0x590] sm:$0xff] }
 0x498   :  { %v4210_v51 = vmul.f32 %v11908_v61, %v4165_v34  ;;  %v4324_v27 = vmul.f32 %v11911_v54, %v4165_v34  ;;  %v4552_v39 = vmul.f32 %v11612_v31, %v4165_v34  ;;  %v5008_v25 = vmul.f32 %v11678_v41, %v4165_v34 }
 0x499   :  { %v4438_v2 = vmul.f32 %v11928_v5, %v4165_v34  ;;  %v4666_v52 = vmul.f32 %v11914_v12, %v4165_v34  ;;  %v4780_v57 = vmul.f32 %v11618_v23, %v4165_v34  ;;  %v4894_v29 = vmul.f32 %v11666_v8, %v4165_v34  ;;  %v4800_v34 = vld [vmem:[%s13512_s19 + $0x6a8] sm:$0xff] }
 0x49a   :  { %v4212_v35 = vadd.f32 %v4210_v51, %v4208_v48  ;;  %v4326_v18 = vadd.f32 %v4324_v27, %v4322_v15  ;;  %v4554_v19 = vadd.f32 %v4552_v39, %v4550_v50  ;;  %v5010_v44 = vadd.f32 %v5008_v25, %v5006_v24  ;;  %v4572_v48 = vld [vmem:[%s13512_s19 + $0x588] sm:$0xff]  ;;  %v4918_v15 = vld [vmem:[%s13512_s19 + $0x758] sm:$0xff]  ;;  %v4571_v50 = vld [vmem:[%s13512_s19 + $0x580] sm:$0xff] }
 0x49b   :  { %v4440_v40 = vadd.f32 %v4438_v2, %v4436_v62  ;;  %v4668_v61 = vadd.f32 %v4666_v52, %v4664_v63  ;;  %v4782_v42 = vadd.f32 %v4780_v57, %v4778_v0  ;;  %v4896_v54 = vadd.f32 %v4894_v29, %v4892_v14  ;;  %v4799_v24 = vld [vmem:[%s13512_s19 + $0x6a0] sm:$0xff]  ;;  %v4917_v62 = vld [vmem:[%s13512_s19 + $0x750] sm:$0xff]  ;;  %v4570_v63 = vld [vmem:[%s13512_s19 + $0x578] sm:$0xff] }
 0x49c   :  { %v4214_v31 = vadd.f32 %v4212_v35, %v12171_v4  ;;  %v4328_v41 = vadd.f32 %v4326_v18, %v12184_v26  ;;  %v4556_v5 = vadd.f32 %v4554_v19, %v12200_v56  ;;  %v5012_v12 = vadd.f32 %v5010_v44, %v12262_v38  ;;  %v4916_v0 = vld [vmem:[%s13512_s19 + $0x748] sm:$0xff]  ;;  %v4569_v14 = vld [vmem:[%s13512_s19 + $0x570] sm:$0xff]  ;;  %v4915_v27 = vld [vmem:[%s13512_s19 + $0x740] sm:$0xff] }
 0x49d   :  { %v4442_v23 = vadd.f32 %v4440_v40, %v12203_v20  ;;  %v4670_v8 = vadd.f32 %v4668_v61, %v12197_v46  ;;  %v4784_v55 = vadd.f32 %v4782_v42, %v12219_v3  ;;  %v4898_v16 = vadd.f32 %v4896_v54, %v12222_v17  ;;  %v4576_v46 = vld [vmem:[%s13512_s19 + $0x5a8] sm:$0xff]  ;;  %v4797_v51 = vld [vmem:[%s13512_s19 + $0x690] sm:$0xff]  ;;  %v4914_v2 = vld [vmem:[%s13512_s19 + $0x738] sm:$0xff] }
 0x49e   :  { %v4216_v28 = vmax.f32 %v4214_v31, 0.0  ;;  %v4330_v10 = vmax.f32 %v4328_v41, 0.0  ;;  %v4558_v59 = vmax.f32 %v4556_v5, 0.0  ;;  %v5014_v22 = vmax.f32 %v5012_v12, 0.0  ;;  %v4804_v3 = vld [vmem:[%s13512_s19 + $0x6c8] sm:$0xff]  ;;  %v4567_v52 = vld [vmem:[%s13512_s19 + $0x560] sm:$0xff] }
 0x49f   :  { %v4444_v11 = vmax.f32 %v4442_v23, 0.0  ;;  %v4672_v4 = vmax.f32 %v4670_v8, 0.0  ;;  %v4786_v37 = vmax.f32 %v4784_v55, 0.0  ;;  %v4900_v26 = vmax.f32 %v4898_v16, 0.0  ;;  %v4568_v39 = vld [vmem:[%s13512_s19 + $0x568] sm:$0xff]  ;;  %v4795_v57 = vld [vmem:[%s13512_s19 + $0x680] sm:$0xff] }
 0x4a0   :  { %v4218_v56 = vmax.f32 %v12977_v7, %v4216_v28  ;;  %v4332_v38 = vmax.f32 %v12980_v60, %v4330_v10  ;;  %v4560_v20 = vmax.f32 %v12983_v6, %v4558_v59  ;;  %v5016_v17 = vmax.f32 %v12992_v30, %v5014_v22  ;;  %v4575_v6 = vld [vmem:[%s13512_s19 + $0x5a0] sm:$0xff]  ;;  %v4806_v30 = vld [vmem:[%s13512_s19 + $0x6d8] sm:$0xff]  ;;  %v4796_v25 = vld [vmem:[%s13512_s19 + $0x688] sm:$0xff] }
 0x4a1   :  { %v4446_v49 = vmax.f32 %v12995_v45, %v4444_v11  ;;  %v4674_v47 = vmax.f32 %v12998_v21, %v4672_v4  ;;  %v4788_v7 = vmax.f32 %v13002_v9, %v4786_v37  ;;  %v13208_v60 = vmax.f32 %v13017_v32, %v4900_v26  ;;  %v4803_v45 = vld [vmem:[%s13512_s19 + $0x6c0] sm:$0xff]  ;;  %v4574_v21 = vld [vmem:[%s13512_s19 + $0x598] sm:$0xff]  ;;  %v4805_v9 = vld [vmem:[%s13512_s19 + $0x6d0] sm:$0xff] }
 0x4a2   :  { %5669 = vmatmul.msk.f32.vlgmr.msrb.gmra.mxu1 %vm726_vm1, %v4218_v56  ;;  %5673 = vmatmul.msk.f32.vlgmr.msra.gmra.mxu0 %vm726_vm1, %v4332_v38  ;;  %v4802_v32 = vld [vmem:[%s13512_s19 + $0x6b8] sm:$0xff]  ;;  %v4913_v29 = vld [vmem:[%s13512_s19 + $0x730] sm:$0xff]  ;;  %v4912_v19 = vld [vmem:[%s13512_s19 + $0x728] sm:$0xff] }
 0x4a3   :  { %4582 = vmatpush.msra.mxu0 %v4576_v46  ;;  %5681 = vmatmul.msk.f32.vlgmr.msra.gmra.mxu3 %vm726_vm1, %v4560_v20  ;;  %v4566_v35 = vld [vmem:[%s13512_s19 + $0x558] sm:$0xff]  ;;  %v4565_v44 = vld [vmem:[%s13512_s19 + $0x550] sm:$0xff]  ;;  %v4911_v61 = vld [vmem:[%s13512_s19 + $0x720] sm:$0xff] }
 0x4a4   :  { %4810 = vmatpush.msrb.mxu1 %v4804_v3  ;;  %5697 = vmatmul.msk.f32.vlgmr.msrb.gmra.mxu2 %vm726_vm1, %v5016_v17  ;;  %v4794_v18 = vld [vmem:[%s13512_s19 + $0x678] sm:$0xff]  ;;  %v4793_v40 = vld [vmem:[%s13512_s19 + $0x670] sm:$0xff]  ;;  %v4564_v42 = vld [vmem:[%s13512_s19 + $0x548] sm:$0xff] }
 0x4a5   :  { %4583 = vmatpush.msra.mxu0 %v4575_v6  ;;  %4844 = vmatpush.msra.mxu3 %v4806_v30  ;;  %v4792_v54 = vld [vmem:[%s13512_s19 + $0x668] sm:$0xff]  ;;  %v4910_v31 = vld [vmem:[%s13512_s19 + $0x718] sm:$0xff]  ;;  %v4563_v41 = vld [vmem:[%s13512_s19 + $0x540] sm:$0xff] }
 0x4a6   :  { %4811 = vmatpush.msrb.mxu1 %v4803_v45  ;;  %v4791_v5 = vld [vmem:[%s13512_s19 + $0x660] sm:$0xff]  ;;  %v4909_v12 = vld [vmem:[%s13512_s19 + $0x710] sm:$0xff]  ;;  %v4562_v23 = vld [vmem:[%s13512_s19 + $0x538] sm:$0xff] }
 0x4a7   :  { %4584 = vmatpush.msra.mxu0 %v4574_v21  ;;  %4845 = vmatpush.msra.mxu3 %v4805_v9  ;;  %v4790_v8 = vld [vmem:[%s13512_s19 + $0x658] sm:$0xff]  ;;  %v4908_v55 = vld [vmem:[%s13512_s19 + $0x708] sm:$0xff]  ;;  %v4561_v16 = vld [vmem:[%s13512_s19 + $0x530] sm:$0xff] }
 0x4a8   :  { %4812 = vmatpush.msrb.mxu1 %v4802_v32  ;;  %v4789_v28 = vld [vmem:[%s13512_s19 + $0x650] sm:$0xff]  ;;  %v4907_v10 = vld [vmem:[%s13512_s19 + $0x700] sm:$0xff]  ;;  %v4920_v59 = vld [vmem:[%s13512_s19 + $0x768] sm:$0xff] }
 0x4a9   :  { %4585 = vmatpush.msra.mxu0 %v4573_v13  ;;  %v4906_v22 = vld [vmem:[%s13512_s19 + $0x6f8] sm:$0xff]  ;;  %v4919_v11 = vld [vmem:[%s13512_s19 + $0x760] sm:$0xff]  ;;  %v4905_v4 = vld [vmem:[%s13512_s19 + $0x6f0] sm:$0xff] }
 0x4aa   :  { %4813 = vmatpush.msrb.mxu1 %v4801_v43  ;;  %5677 = vmatmul.msk.f32.vlgmr.msrb.gmra.mxu0 %vm726_vm1, %v4446_v49  ;;  %v4904_v37 = vld [vmem:[%s13512_s19 + $0x6e8] sm:$0xff]  ;;  %v4903_v26 = vld [vmem:[%s13512_s19 + $0x6e0] sm:$0xff]  ;;  %v5030_v56 = vld [vmem:[%s13512_s19 + $0x7d8] sm:$0xff] }
 0x4ab   :  { %4484 = vmatmul.f32.vlgmr.msra.gmra.mxu1 %v13136_v33  ;;  %4586 = vmatpush.msra.mxu0 %v4572_v48  ;;  %v4798_v33 = vld [vmem:[%s13512_s19 + $0x698] sm:$0xff]  ;;  %v5029_v38 = vld [vmem:[%s13512_s19 + $0x7d0] sm:$0xff]  ;;  %v5028_v46 = vld [vmem:[%s13512_s19 + $0x7c8] sm:$0xff] }
 0x4ac   :  { %5685 = vmatmul.msk.f32.vlgmr.msrb.gmra.mxu3 %vm726_vm1, %v4674_v47  ;;  %4814 = vmatpush.msrb.mxu1 %v4800_v34  ;;  %v5027_v20 = vld [vmem:[%s13512_s19 + $0x7c0] sm:$0xff]  ;;  %v5026_v17 = vld [vmem:[%s13512_s19 + $0x7b8] sm:$0xff]  ;;  %v5025_v3 = vld [vmem:[%s13512_s19 + $0x7b0] sm:$0xff] }
 0x4ad   :  { %4924 = vmatpush.msrb.mxu3 %v4918_v15  ;;  %4587 = vmatpush.msra.mxu0 %v4571_v50  ;;  %v5023_v49 = vld [vmem:[%s13512_s19 + $0x7a0] sm:$0xff]  ;;  %v5022_v47 = vld [vmem:[%s13512_s19 + $0x798] sm:$0xff]  ;;  %v5017_v45 = vld [vmem:[%s13512_s19 + $0x770] sm:$0xff] }
 0x4ae   :  { %4815 = vmatpush.msrb.mxu1 %v4799_v24  ;;  %v5019_v6 = vld [vmem:[%s13512_s19 + $0x780] sm:$0xff]  ;;  %v5018_v30 = vld [vmem:[%s13512_s19 + $0x778] sm:$0xff]  ;;  %v13633_v13 = vld [vmem:[#allocation8_spill] sm:$0xff] }
 0x4af   :  { %4925 = vmatpush.msrb.mxu3 %v4917_v62  ;;  %4588 = vmatpush.msra.mxu0 %v4570_v63  ;;  %v13634_v43 = vld [vmem:[#allocation9_spill] sm:$0xff]  ;;  %v13636_v24 = vld [vmem:[#allocation10_spill] sm:$0xff] }
 0x4b0   :  { %4816 = vmatpush.msrb.mxu1 %v4798_v33  ;;  %v1748_v48 = vadd.f32 %v13634_v43, %v13633_v13  ;;  %v13635_v34 = vld [vmem:[#allocation13_spill] sm:$0xff] }
 0x4b1   :  { %4926 = vmatpush.msrb.mxu3 %v4916_v0  ;;  %4589 = vmatpush.msra.mxu0 %v4569_v14  ;;  %v5118_v63 = vld [vmem:[%s13514_s21 + $0x78] sm:$0xff]  ;;  %v13637_v0 = vld [vmem:[#allocation11_spill] sm:$0xff] }
 0x4b2   :  { %4817 = vmatpush.msrb.mxu1 %v4797_v51  ;;  %v1768_v15 = vadd.f32 %v13635_v34, %v1748_v48 }
 0x4b3   :  { %4927 = vmatpush.msrb.mxu3 %v4915_v27  ;;  %4590 = vmatpush.msra.mxu0 %v4568_v39  ;;  %v5116_v27 = vld [vmem:[%s13514_s21 + $0x68] sm:$0xff] }
 0x4b4   :  { %4818 = vmatpush.msrb.mxu1 %v4796_v25  ;;  %5689 = vmatmul.msk.f32.vlgmr.msra.gmra.mxu3 %vm726_vm1, %v4788_v7  ;;  %v5021_v7 = vld [vmem:[%s13512_s19 + $0x790] sm:$0xff]  ;;  %v1788_v62 = vadd.f32 %v13636_v24, %v1768_v15 }
 0x4b5   :  { %4928 = vmatpush.msrb.mxu3 %v4914_v2  ;;  %4591 = vmatpush.msra.mxu0 %v4567_v52  ;;  %v13638_v39 = vld [vmem:[#allocation12_spill] sm:$0xff]  ;;  %v5115_v52 = vld [vmem:[%s13514_s21 + $0x60] sm:$0xff] }
 0x4b6   :  { %4819 = vmatpush.msrb.mxu1 %v4795_v57  ;;  %v1808_v14 = vadd.f32 %v13637_v0, %v1788_v62  ;;  %v13639_v57 = vld [vmem:[#allocation14_spill] sm:$0xff] }
 0x4b7   :  { %4929 = vmatpush.msrb.mxu3 %v4913_v29  ;;  %4592 = vmatpush.msra.mxu0 %v4566_v35  ;;  %v5703_v0 = vld [vmem:[%s13515_s22] ss:$0 sm:$0xff]  ;;  %s6417_s22 = smov [#allocation5]  }
 0x4b8   :  { %4820 = vmatpush.msrb.mxu1 %v4794_v18  ;;  %v1828_v25 = vadd.f32 %v13638_v39, %v1808_v14  ;;  %v5114_v18 = vld [vmem:[%s13514_s21 + $0x58] sm:$0xff]  ;;  %s5187_s15 = sshll.u32 %s6417_s22, 4  ;;  %s5188_s15 = int_to_ptr.vmem [resolvable:$true] %s5187_s15 }
 0x4b9   :  { %4930 = vmatpush.msrb.mxu3 %v4912_v19  ;;  %4593 = vmatpush.msra.mxu0 %v4565_v44 }
 0x4ba   :  { %4821 = vmatpush.msrb.mxu1 %v4793_v40  ;;  %v1866_v29 = vadd.f32 %v13639_v57, %v1828_v25  ;;  %v5156_v57 = vld [vmem:[%s13516_s23 + $0x8] sm:$0xff] }
 0x4bb   :  { %4931 = vmatpush.msrb.mxu3 %v4911_v61  ;;  %4594 = vmatpush.msra.mxu0 %v4564_v42  ;;  %v5113_v61 = vld [vmem:[%s13514_s21 + $0x50] sm:$0xff] }
 0x4bc   :  { %4822 = vmatpush.msrb.mxu1 %v4792_v54  ;;  %5174 = vmatpush.msra.mxu2 %v5156_v57 }
 0x4bd   :  { %4932 = vmatpush.msrb.mxu3 %v4910_v31  ;;  %4595 = vmatpush.msra.mxu0 %v4563_v41  ;;  %v5112_v31 = vld [vmem:[%s13514_s21 + $0x48] sm:$0xff] }
 0x4be   :  { %4823 = vmatpush.msrb.mxu1 %v4791_v5 }
 0x4bf   :  { %4933 = vmatpush.msrb.mxu3 %v4909_v12  ;;  %4596 = vmatpush.msra.mxu0 %v4562_v23  ;;  %v5111_v23 = vld [vmem:[%s13514_s21 + $0x40] sm:$0xff] }
 0x4c0   :  { %4824 = vmatpush.msrb.mxu1 %v4790_v8  ;;  %v5110_v8 = vld [vmem:[%s13514_s21 + $0x38] sm:$0xff] }
 0x4c1   :  { %4934 = vmatpush.msrb.mxu3 %v4908_v55  ;;  %4597 = vmatpush.msra.mxu0 %v4561_v16  ;;  %v5109_v16 = vld [vmem:[%s13514_s21 + $0x30] sm:$0xff] }
 0x4c2   :  { %4825 = vmatpush.msrb.mxu1 %v4789_v28  ;;  %4598 = vmatmul.f32.vlgmr.msra.gmra.mxu0 %v13139_v1  ;;  %v5032_v1 = vld [vmem:[%s13512_s19 + $0x7e8] sm:$0xff] }
 0x4c3   :  { %4935 = vmatpush.msrb.mxu3 %v4907_v10  ;;  %4826 = vmatmul.f32.vlgmr.msrb.gmra.mxu1 %v13142_v36  ;;  %v5031_v36 = vld [vmem:[%s13512_s19 + $0x7e0] sm:$0xff]  ;;  %v5108_v10 = vld [vmem:[%s13514_s21 + $0x28] sm:$0xff] }
 0x4c4   :  { %4958 = vmatpush.msrb.mxu0 %v4920_v59  ;;  %5123 = vmatpush.msra.mxu1 %v5118_v63 }
 0x4c5   :  { %4936 = vmatpush.msrb.mxu3 %v4906_v22 }
 0x4c6   :  { %4959 = vmatpush.msrb.mxu0 %v4919_v11 }
 0x4c7   :  { %4937 = vmatpush.msrb.mxu3 %v4905_v4  ;;  %v5107_v4 = vld [vmem:[%s13514_s21 + $0x20] sm:$0xff] }
 0x4c8   :  { %5038 = vmatpush.msra.mxu0 %v5032_v1 }
 0x4c9   :  { %4938 = vmatpush.msrb.mxu3 %v4904_v37 }
 0x4ca   :  { %5039 = vmatpush.msra.mxu0 %v5031_v36 }
 0x4cb   :  { %5693 = vmatmul.msk.f32.vlgmr.msrb.gmra.mxu0 %vm726_vm1, %v13208_v60  ;;  %4939 = vmatpush.msrb.mxu3 %v4903_v26  ;;  %v5020_v60 = vld [vmem:[%s13512_s19 + $0x788] sm:$0xff]  ;;  %v5106_v26 = vld [vmem:[%s13514_s21 + $0x18] sm:$0xff] }
 0x4cc   :  { %5040 = vmatpush.msra.mxu0 %v5030_v56  ;;  %4940 = vmatmul.f32.vlgmr.msrb.gmra.mxu3 %v13145_v58  ;;  %v5024_v58 = vld [vmem:[%s13512_s19 + $0x7a8] sm:$0xff] }
 0x4ce   :  { %5041 = vmatpush.msra.mxu0 %v5029_v38 }
 0x4d0   :  { %5042 = vmatpush.msra.mxu0 %v5028_v46  ;;  %v5105_v46 = vld [vmem:[%s13514_s21 + $0x10] sm:$0xff] }
 0x4d2   :  { %5043 = vmatpush.msra.mxu0 %v5027_v20 }
 0x4d4   :  { %5044 = vmatpush.msra.mxu0 %v5026_v17  ;;  %v5104_v17 = vld [vmem:[%s13514_s21 + $0x8] sm:$0xff] }
 0x4d6   :  { %5045 = vmatpush.msra.mxu0 %v5025_v3 }
 0x4d8   :  { %5046 = vmatpush.msra.mxu0 %v5024_v58 }
 0x4da   :  { %5047 = vmatpush.msra.mxu0 %v5023_v49 }
 0x4dc   :  { %5048 = vmatpush.msra.mxu0 %v5022_v47 }
 0x4de   :  { %5049 = vmatpush.msra.mxu0 %v5021_v7  ;;  %v5702_v7 = vld [vmem:[%s13513_s20] ss:$0 sm:$0xff] }
 0x4e0   :  { %5050 = vmatpush.msra.mxu0 %v5020_v60  ;;  %v5103_v60 = vld [vmem:[%s13514_s21] sm:$0xff] }
 0x4e2   :  { %5051 = vmatpush.msra.mxu0 %v5019_v6 }
 0x4e4   :  { %5052 = vmatpush.msra.mxu0 %v5018_v30 }
 0x4e6   :  { %5053 = vmatpush.msra.mxu0 %v5017_v45 }
 0x4e7   :  { %5054 = vmatmul.f32.vlgmr.msra.gmra.mxu0 %v13154_v53  ;;  %v5117_v53 = vld [vmem:[%s13514_s21 + $0x70] sm:$0xff] }
 0x4e8   :  { %5124 = vmatpush.msra.mxu1 %v5117_v53 }
 0x4ea   :  { %5125 = vmatpush.msra.mxu1 %v5116_v27 }
 0x4ec   :  { %5126 = vmatpush.msra.mxu1 %v5115_v52 }
 0x4ee   :  { %5127 = vmatpush.msra.mxu1 %v5114_v18 }
 0x4f0   :  { %5128 = vmatpush.msra.mxu1 %v5113_v61 }
 0x4f2   :  { %5129 = vmatpush.msra.mxu1 %v5112_v31 }
 0x4f4   :  { %5130 = vmatpush.msra.mxu1 %v5111_v23 }
 0x4f6   :  { %5131 = vmatpush.msra.mxu1 %v5110_v8 }
 0x4f8   :  { %5132 = vmatpush.msra.mxu1 %v5109_v16 }
 0x4fa   :  { %5133 = vmatpush.msra.mxu1 %v5108_v10 }
 0x4fc   :  { %5134 = vmatpush.msra.mxu1 %v5107_v4 }
 0x4fe   :  { %5135 = vmatpush.msra.mxu1 %v5106_v26 }
 0x500   :  { %5136 = vmatpush.msra.mxu1 %v5105_v46 }
 0x502   :  { %v4257_v21 = vpop.f32.mrf.mxu3  ;;  %v4371_v35 = vpop.f32.mrf.mxu2  ;;  %5137 = vmatpush.msra.mxu1 %v5104_v17 }
 0x504   :  { %5138 = vmatpush.msra.mxu1 %v5103_v60 }
 0x50a   :  { %v4713_v59 = vpop.f32.mrf.mxu2 }
 0x51f   :  { %v4391_v9 = vpop.f32.mrf.mxu0  ;;  %v4277_v50 = vpop.f32.mrf.mxu1 }
 0x520   :  { %v4278_v2 = vadd.f32 %v4277_v50, %v4257_v21  ;;  %v4392_v42 = vadd.f32 %v4391_v9, %v4371_v35 }
 0x522   :  { %v4280_v40 = vadd.f32 %v4278_v2, %v1866_v29  ;;  %v5155_v29 = vld [vmem:[%s13516_s23] sm:$0xff] }
 0x523   :  { %5175 = vmatpush.msra.mxu2 %v5155_v29 }
 0x524   :  { %v4394_v5 = vadd.f32 %v4392_v42, %v4280_v40 }
 0x526   :  { %v4619_v32 = vpop.f32.mrf.mxu3 }
 0x527   :  { %v4505_v33 = vpop.f32.mrf.mxu0  ;;  %v5075_v3 = vpop.f32.mrf.mxu2 }
 0x528   :  { %v4485_v19 = vpop.f32.mrf.mxu1 }
 0x529   :  { %v4506_v54 = vadd.f32 %v4505_v33, %v4485_v19 }
 0x52b   :  { %v4508_v55 = vadd.f32 %v4506_v54, %v4394_v5 }
 0x52f   :  { %v4733_v51 = vpop.f32.mrf.mxu3 }
 0x530   :  { %v4734_v11 = vadd.f32 %v4733_v51, %v4713_v59 }
 0x537   :  { %v4847_v41 = vpop.f32.mrf.mxu3 }
 0x53f   :  { %v4599_v44 = vpop.f32.mrf.mxu0 }
 0x540   :  { %v4620_v12 = vadd.f32 %v4619_v32, %v4599_v44  ;;  %v4827_v1 = vpop.f32.mrf.mxu1 }
 0x541   :  { %v4848_v56 = vadd.f32 %v4847_v41, %v4827_v1 }
 0x542   :  { %v4622_v28 = vadd.f32 %v4620_v12, %v4508_v55 }
 0x544   :  { %v4736_v36 = vadd.f32 %v4734_v11, %v4622_v28 }
 0x546   :  { %v4850_v20 = vadd.f32 %v4848_v56, %v4736_v36 }
 0x548   :  { %v4961_v22 = vpop.f32.mrf.mxu0 }
 0x54f   :  { %v4941_v37 = vpop.f32.mrf.mxu3 }
 0x550   :  { %v4962_v38 = vadd.f32 %v4961_v22, %v4941_v37 }
 0x552   :  { %v4964_v49 = vadd.f32 %v4962_v38, %v4850_v20 }
 0x564   :  { %v5055_v58 = vpop.f32.mrf.mxu0 }
 0x565   :  { %v5076_v47 = vadd.f32 %v5075_v3, %v5055_v58 }
 0x567   :  { %v5078_v6 = vadd.f32 %v5076_v47, %v4964_v49 }
 0x569   :  { %v5083_v30 = vadd.f32 %v5702_v7, %v5078_v6 }
 0x56b   :  { %v5084_v45 = vsub.f32 0.0, %v5083_v30 }
 0x56d   :  { %v5085_v21 = vmul.f32 1.442695, %v5084_v45 }
 0x56f   :  { %5792 = vpow2.f32 %v5085_v21 }
 0x575   :  { %v5793_v9 = vpop.eup %5792 }
 0x576   :  { %v5087_v32 = vadd.f32 1.0, %v5793_v9 }
 0x578   :  { %5794 = vrcp.f32 %v5087_v32  ;;  %v5099_v34 = vand.u32 2147483648, %v5087_v32  ;;  %v5097_v50 = vand.u32 2147483647, %v5087_v32  ;;  %vm5093_vm4 = vweird.f32 %v5087_v32 }
 0x57a   :  { %v5100_v62 = vor.u32 1.1754944e-38, %v5099_v34  ;;  %vm5098_vm7 = vcmp.eq.f32.partialorder %v5097_v50, 8.507059e+37 }
 0x57e   :  { %v5795_v13 = vpop.eup %5794 }
 0x57f   :  { %v5089_v43 = vmul.f32 %v5795_v13, %v5087_v32  ;;  %vm5094_vm3 = vweird.f32 %v5795_v13 }
 0x580   :  { %vm5095_vm6 = vmor %vm5093_vm4, %vm5094_vm3 }
 0x581   :  { %v5090_v48 = vsub.f32 1.0, %v5089_v43 }
 0x583   :  { %v5091_v15 = vmul.f32 %v5795_v13, %v5090_v48 }
 0x585   :  { %v5092_v24 = vadd.f32 %v5795_v13, %v5091_v15 }
 0x587   :  { %v5096_v63 = vsel %vm5095_vm6, %v5795_v13, %v5092_v24 }
 0x588   :  { %v5101_v33 = vsel %vm5098_vm7, %v5100_v62, %v5096_v63 }
 0x589   :  { %5139 = vmatmul.f32.vlgmr.msra.gmra.mxu1 %v5101_v33 }
 0x606   :  { %v5140_v14 = vpop.f32.mrf.mxu1 }
 0x607   :  { %v5141_v53 = vadd.f32 %v5703_v0, %v5140_v14 }
 0x609   :  { %v5144_v51 = vsel %vm5143_vm8, %v5141_v53, -inf }
 0x60a   :  { %5145 = vmax.xlane.f32.xlu0 %v5144_v51 }
 0x67d   :  { %v5146_v27 = vpop.xlane.xlu0 %5145 }
 0x67e   :  { %v5147_v39 = vsub.f32 %v5141_v53, %v5146_v27 }
 0x680   :  { %v5148_v25 = vmul.f32 1.442695, %v5147_v39 }
 0x682   :  { %5796 = vpow2.f32 %v5148_v25 }
 0x688   :  { %v5797_v2 = vpop.eup %5796 }
 0x689   :  { %v5150_v52 = vsel %vm5143_vm8, %v5797_v2, 0.0 }
 0x68a   :  { %5151 = vadd.xlane.f32.xlu0 %v5150_v52 }
 0x6fd   :  { %v5152_v35 = vpop.xlane.xlu0 %5151 }
 0x6fe   :  { %5798 = vrcp.f32 %v5152_v35 }
 0x704   :  { %v5799_v18 = vpop.eup %5798 }
 0x705   :  { %v5154_v19 = vmul.f32 %v5799_v18, %v5797_v2 }
 0x707   :  { %5698 = vmatmul.msk.f32.vlgmr.msra.gmra.mxu2 %vm726_vm1, %v5154_v19 }
 0x78a   :  { %v5177_v44 = vpop.f32.mrf.mxu2 }
 0x78b   :  { %5181 = vst.msk [vmem:[#allocation5] sm:$0x3] %vm5180_vm9, %v5177_v44 }
 0x78c   :  { %5192 = dma.vmem_to_hbm [thread:$0]  %s5188_s15, 32, %s5190_s25, [#allocation3]  }
 0x78d   :  { %6414 = dma.done.wait [#allocation3], 32  }
 0x78e   :  { %6415 = vsyncadd [#allocation3], 4294967264 }
 0x78f   :  { %5197 = vsyncpa [#allocation3], 1 }
 0x790   :  { %5198 = vsyncpa [#allocation4], 1 }

</bundles_post_ra>
